<compile_context>
chip_gen: v5e
topology: v5e:2x2
jax: 0.10.0
libtpu: 0.0.40
codegen_flags: <defaults>
</compile_context>

<pallas_src>
import jax
import jax.numpy as jnp
from jax.experimental import pallas as pl
from jax.experimental.pallas import tpu as pltpu

HIDDEN = 64
NUM_LAYERS = 3


def _relu(x):
    return jnp.maximum(x, 0.0)


def _mm(a, b):
    return jnp.dot(a, b, preferred_element_type=jnp.float32)


# ---------------------------------------------------------------------------
# Fused kernel: 6 x [1x1 conv + folded BN + ReLU] + attention pooling + 3-layer LSTM.
# Single invocation (no grid); every operand/output lives fully in VMEM (<1 MiB).
# ---------------------------------------------------------------------------
def fused_kernel(x_ref, h0_ref, c0_ref, pw_ref, pb_ref, lw_ref, lb_ref,
                 gvec_ref, attnw_ref, hn_ref, cn_ref):
    BL, N, _ = x_ref.shape
    B, L, H = gvec_ref.shape
    R = BL * N

    # ---------------- point-net phase ----------------
    xf = x_ref[...].reshape(R, 3)                 # (R, 3) flattened point rows
    bs = pb_ref[...]                              # (7, 64) bias slab

    # Packed layout: conv1-3 feature channels live at columns 3..(3+C-1); columns 0..2
    # stay exactly zero (zero weights/bias + ReLU), so conv4's slot (rows 0..26) realises
    # cat([xyz, feat24]) via one extra tiny xyz matmul instead of an activation concat.
    h = _relu(_mm(xf, pw_ref[0][0:3, :]) + bs[0:1, :])        # feat6  @ cols 3:9
    h = _relu(_mm(h, pw_ref[1]) + bs[1:2, :])                 # feat12 @ cols 3:15
    h = _relu(_mm(h, pw_ref[2]) + bs[2:3, :])                 # feat24 @ cols 3:27
    w4 = pw_ref[3]
    h = _relu(_mm(xf, w4[0:3, :]) + _mm(h, w4) + bs[3:4, :])  # 32 channels
    h = _relu(_mm(h, pw_ref[4]) + bs[4:5, :])                 # 48 channels
    f = _relu(_mm(h, pw_ref[5]) + bs[5:6, :])                 # (R, 64)

    # Attention logits + per-group softmax over the N points.
    logits = _mm(f, pw_ref[6])[:, 0:1] + bs[6:7, 0:1]         # (R, 1)
    lg = logits.reshape(BL, N, 1)
    m = jnp.max(lg, axis=1, keepdims=True)
    e = jnp.exp(lg - m)
    denom = jnp.sum(e, axis=1, keepdims=True)
    wgt = e / denom                                           # exact (external output)
    attnw_ref[...] = wgt                                      # (BL, N, 1)

    f3 = f.reshape(BL, N, H)
    vec = jnp.sum(f3 * wgt, axis=1)                           # (BL, 64) attn_vec

    # ---------------- LSTM phase (wavefront) ----------------
    # Per-step fused projection: concat([x_t, h_{t-1}]) @ [[W_ih]; [W_hh]] keeps the
    # dependency of layer l+1, step t on only (layer l, step t) and (layer l+1, step t-1),
    # so the unrolled critical path is L + NUM_LAYERS - 1 steps instead of NUM_LAYERS * L.
    vec3 = vec.reshape(B, L, H)
    x_seq = [vec3[:, t, :] for t in range(L)]                 # list of (B, H) values

    for layer in range(NUM_LAYERS):
        w_cat = lw_ref[layer]                                 # (2H, 4H)  [[W_ih];[W_hh]]
        b = lb_ref[layer]                                     # (1, 4H)   b_ih + b_hh
        h_t = h0_ref[layer]                                   # (B, H)
        c_t = c0_ref[layer]                                   # (B, H)
        last = layer == NUM_LAYERS - 1
        outs = []
        for t in range(L):                                    # fully unrolled (static L)
            inp = jnp.concatenate([x_seq[t], h_t], axis=-1)   # (B, 2H), K=128 for MXU
            gates = _mm(inp, w_cat) + b                       # (B, 4H), order i,f,g,o
            sg = jax.nn.sigmoid(gates)                        # full-width sigmoid (EUP)
            i_g = sg[:, 0:H]
            f_g = sg[:, H:2 * H]
            o_g = sg[:, 3 * H:4 * H]
            g_g = jnp.tanh(gates[:, 2 * H:3 * H])             # tanh on g-slice only
            c_t = f_g * c_t + i_g * g_g
            h_t = o_g * jnp.tanh(c_t)
            if last:
                gvec_ref[:, t, :] = h_t                       # batch-first output layout
            else:
                outs.append(h_t)                              # stays in vregs for layer+1
        if not last:
            x_seq = outs
        # TODO(synk): nn.LSTM dropout=0.1 between layers is training-only; eval is identity.
        hn_ref[layer] = h_t
        cn_ref[layer] = c_t


# ---------------------------------------------------------------------------
# GlobalParsingModule.forward (wrapper: just the single pallas_call)
# ---------------------------------------------------------------------------
def global_parsing_module(packed, x, h0, c0, batch_size, length_size):
    BL, N, _ = x.shape
    B, L = batch_size, length_size
    g_vec, attn_weights, hn, cn = pl.pallas_call(
        fused_kernel,
        out_shape=(
            jax.ShapeDtypeStruct((B, L, HIDDEN), jnp.float32),
            jax.ShapeDtypeStruct((BL, N, 1), jnp.float32),
            jax.ShapeDtypeStruct((NUM_LAYERS, B, HIDDEN), jnp.float32),
            jax.ShapeDtypeStruct((NUM_LAYERS, B, HIDDEN), jnp.float32),
        ),
        compiler_params=pltpu.CompilerParams(vmem_limit_bytes=32 * 1024 * 1024),
    )(x, h0, c0, packed['pw'], packed['pb'], packed['lw'], packed['lb'])
    return g_vec, attn_weights, hn, cn


# ---------------------------------------------------------------------------
# Parameter init (shapes follow the nn.Module __init__), eval-mode BN folded in,
# plus one-time packing into contiguous slabs for the kernel.
# ---------------------------------------------------------------------------
def init_params(key):
    keys = iter(jax.random.split(key, 64))

    def conv_bn(cin, cout):
        w = 0.3 * jax.random.normal(next(keys), (cout, cin), jnp.float32)
        b = 0.1 * jax.random.normal(next(keys), (cout,), jnp.float32)
        gamma = 1.0 + 0.1 * jax.random.normal(next(keys), (cout,), jnp.float32)
        beta = 0.1 * jax.random.normal(next(keys), (cout,), jnp.float32)
        mean = 0.05 * jax.random.normal(next(keys), (cout,), jnp.float32)
        var = 1.0 + 0.2 * jax.random.uniform(next(keys), (cout,), jnp.float32)
        return w, b, gamma, beta, mean, var

    def fold(w, b, gamma, beta, mean, var, eps=1e-5):
        scale = gamma / jnp.sqrt(var + eps)
        w_f = (w * scale[:, None]).T                 # (cin, cout)
        b_f = ((b - mean) * scale + beta).reshape(1, -1)
        return w_f, b_f

    dims = [(3, 6), (6, 12), (12, 24), (27, 32), (32, 48), (48, 64)]
    folded = [fold(*conv_bn(ci, co)) for ci, co in dims]

    p = {}
    p['w1'], p['b1'] = folded[0]
    p['w2'], p['b2'] = folded[1]
    p['w3'], p['b3'] = folded[2]
    p['w4'], p['b4'] = folded[3]                     # (27, 32): rows = [xyz(3); feat24]
    p['w5'], p['b5'] = folded[4]
    p['w6'], p['b6'] = folded[5]

    attn_w = 0.3 * jax.random.normal(next(keys), (1, HIDDEN), jnp.float32)  # nn.Linear(64,1)
    attn_b = 0.1 * jax.random.normal(next(keys), (1,), jnp.float32)
    p['wa'] = attn_w.T                               # (64, 1)
    p['ba'] = attn_b.reshape(1, 1)

    p['lstm'] = []
    for _ in range(NUM_LAYERS):
        w_ih = 0.1 * jax.random.normal(next(keys), (4 * HIDDEN, HIDDEN), jnp.float32)
        w_hh = 0.1 * jax.random.normal(next(keys), (4 * HIDDEN, HIDDEN), jnp.float32)
        b_ih = 0.1 * jax.random.normal(next(keys), (4 * HIDDEN,), jnp.float32)
        b_hh = 0.1 * jax.random.normal(next(keys), (4 * HIDDEN,), jnp.float32)
        p['lstm'].append({'wih': w_ih.T, 'whh': w_hh.T,
                          'b': (b_ih + b_hh).reshape(1, 4 * HIDDEN)})
    return p


def pack_params(p):
    """One-time host-side packing of the 24 logical arrays into 4 VMEM-friendly slabs."""
    H = HIDDEN
    pw = jnp.zeros((7, H, H), jnp.float32)
    pb = jnp.zeros((7, H), jnp.float32)
    # conv1-3 feature channels shifted to columns 3.. so conv4's slot matches
    # cat([xyz(cols 0:3), feat24(cols 3:27)]) row order.
    pw = pw.at[0, 0:3, 3:9].set(p['w1']);    pb = pb.at[0, 3:9].set(p['b1'].reshape(-1))
    pw = pw.at[1, 3:9, 3:15].set(p['w2']);   pb = pb.at[1, 3:15].set(p['b2'].reshape(-1))
    pw = pw.at[2, 3:15, 3:27].set(p['w3']);  pb = pb.at[2, 3:27].set(p['b3'].reshape(-1))
    pw = pw.at[3, 0:27, 0:32].set(p['w4']);  pb = pb.at[3, 0:32].set(p['b4'].reshape(-1))
    pw = pw.at[4, 0:32, 0:48].set(p['w5']);  pb = pb.at[4, 0:48].set(p['b5'].reshape(-1))
    pw = pw.at[5, 0:48, 0:64].set(p['w6']);  pb = pb.at[5, 0:64].set(p['b6'].reshape(-1))
    pw = pw.at[6, 0:64, 0:1].set(p['wa']);   pb = pb.at[6, 0:1].set(p['ba'].reshape(-1))

    lw = jnp.zeros((NUM_LAYERS, 2 * H, 4 * H), jnp.float32)
    lb = jnp.zeros((NUM_LAYERS, 1, 4 * H), jnp.float32)
    for l in range(NUM_LAYERS):
        lw = lw.at[l, 0:H, :].set(p['lstm'][l]['wih'])
        lw = lw.at[l, H:2 * H, :].set(p['lstm'][l]['whh'])
        lb = lb.at[l, 0, :].set(p['lstm'][l]['b'].reshape(-1))
    return {'pw': pw, 'pb': pb, 'lw': lw, 'lb': lb}


# ---------------------------------------------------------------------------
# Pure-JAX reference (same folded params) for a correctness sanity check.
# ---------------------------------------------------------------------------
def reference_forward(p, x, h0, c0, B, L):
    h = _relu(x @ p['w1'] + p['b1'])
    h = _relu(h @ p['w2'] + p['b2'])
    h = _relu(h @ p['w3'] + p['b3'])
    cat = jnp.concatenate([x, h], axis=-1)                  # (BL, N, 27)
    h = _relu(cat @ p['w4'] + p['b4'])
    h = _relu(h @ p['w5'] + p['b5'])
    f = _relu(h @ p['w6'] + p['b6'])                        # (BL, N, 64)
    logits = f @ p['wa'] + p['ba']                          # (BL, N, 1)
    w = jax.nn.softmax(logits, axis=1)
    vec = jnp.sum(f * w, axis=1)                            # (BL, 64)
    ys = vec.reshape(B, L, HIDDEN)
    hs, cs = [], []
    for l in range(NUM_LAYERS):
        wih, whh, bb = p['lstm'][l]['wih'], p['lstm'][l]['whh'], p['lstm'][l]['b']
        h_t, c_t = h0[l], c0[l]
        outs = []
        for t in range(L):
            gates = ys[:, t] @ wih + h_t @ whh + bb
            i_g = jax.nn.sigmoid(gates[:, 0 * HIDDEN:1 * HIDDEN])
            f_g = jax.nn.sigmoid(gates[:, 1 * HIDDEN:2 * HIDDEN])
            g_g = jnp.tanh(gates[:, 2 * HIDDEN:3 * HIDDEN])
            o_g = jax.nn.sigmoid(gates[:, 3 * HIDDEN:4 * HIDDEN])
            c_t = f_g * c_t + i_g * g_g
            h_t = o_g * jnp.tanh(c_t)
            outs.append(h_t)
        ys = jnp.stack(outs, axis=1)
        hs.append(h_t)
        cs.append(c_t)
    return ys, w, jnp.stack(hs), jnp.stack(cs)


if __name__ == "__main__":
    B, L, N = 2, 8, 16          # batch_size, length_size, points per frame
    key = jax.random.PRNGKey(0)
    kx, kh, kc = jax.random.split(key, 3)
    x = jax.random.normal(kx, (B * L, N, 3), jnp.float32)
    h0 = 0.1 * jax.random.normal(kh, (NUM_LAYERS, B, HIDDEN), jnp.float32)
    c0 = 0.1 * jax.random.normal(kc, (NUM_LAYERS, B, HIDDEN), jnp.float32)
    params = init_params(jax.random.PRNGKey(42))
    packed = pack_params(params)            # one-time packing, outside the hot path

    g_vec, attn_w, hn, cn = global_parsing_module(packed, x, h0, c0, B, L)
    jax.block_until_ready((g_vec, attn_w, hn, cn))

    rg, rw, rh, rc = reference_forward(params, x, h0, c0, B, L)
    for got, ref in ((g_vec, rg), (attn_w, rw), (hn, rh), (cn, rc)):
        assert got.shape == ref.shape
        assert jnp.allclose(got, ref, atol=1e-2, rtol=1e-2), float(jnp.max(jnp.abs(got - ref)))

    print("KERNEL_OK")
</pallas_src>

<mosaic_0001>
module attributes {stable_mosaic.version = 11 : i64} {
  func.func @fused_kernel(%arg0: memref<16x16x3xf32, #tpu.memory_space<vmem>>, %arg1: memref<3x2x64xf32, #tpu.memory_space<vmem>>, %arg2: memref<3x2x64xf32, #tpu.memory_space<vmem>>, %arg3: memref<7x64x64xf32, #tpu.memory_space<vmem>>, %arg4: memref<7x64xf32, #tpu.memory_space<vmem>>, %arg5: memref<3x128x256xf32, #tpu.memory_space<vmem>>, %arg6: memref<3x1x256xf32, #tpu.memory_space<vmem>>, %arg7: memref<2x8x64xf32, #tpu.memory_space<vmem>>, %arg8: memref<16x16x1xf32, #tpu.memory_space<vmem>>, %arg9: memref<3x2x64xf32, #tpu.memory_space<vmem>>, %arg10: memref<3x2x64xf32, #tpu.memory_space<vmem>>) attributes {dimension_semantics = [], scalar_prefetch = 0 : i64, scratch_operands = 0 : i64, tpu.core_type = #tpu.core_type<tc>} {
    %c0 = arith.constant 0 : index
    %c0_0 = arith.constant 0 : index
    %c0_1 = arith.constant 0 : index
    %0 = vector.load %arg0[%c0, %c0_0, %c0_1] : memref<16x16x3xf32, #tpu.memory_space<vmem>>, vector<16x16x3xf32>
    %1 = vector.shape_cast %0 : vector<16x16x3xf32> to vector<256x3xf32>
    %c0_2 = arith.constant 0 : index
    %c0_3 = arith.constant 0 : index
    %2 = vector.load %arg4[%c0_2, %c0_3] : memref<7x64xf32, #tpu.memory_space<vmem>>, vector<7x64xf32>
    %c0_4 = arith.constant 0 : index
    %c0_5 = arith.constant 0 : index
    %c0_6 = arith.constant 0 : index
    %3 = vector.load %arg3[%c0_4, %c0_5, %c0_6] : memref<7x64x64xf32, #tpu.memory_space<vmem>>, vector<1x64x64xf32>
    %4 = vector.shape_cast %3 : vector<1x64x64xf32> to vector<64x64xf32>
    %5 = vector.extract_strided_slice %4 {offsets = [0, 0], sizes = [3, 64], strides = [1, 1]} : vector<64x64xf32> to vector<3x64xf32>
    %cst = arith.constant dense<0.000000e+00> : vector<256x64xf32>
    %6 = tpu.matmul %1, %5, %cst {dimension_numbers = #tpu.dot_dimension_numbers<[1], [0], [0], [1], [0, 0, 1, 1], [], []>} : vector<256x3xf32>, vector<3x64xf32>, vector<256x64xf32> -> vector<256x64xf32>
    %7 = vector.extract_strided_slice %2 {offsets = [0, 0], sizes = [1, 64], strides = [1, 1]} : vector<7x64xf32> to vector<1x64xf32>
    %8 = vector.broadcast %7 : vector<1x64xf32> to vector<256x64xf32>
    %9 = arith.addf %6, %8 : vector<256x64xf32>
    %cst_7 = arith.constant 0.000000e+00 : f32
    %10 = vector.broadcast %cst_7 : f32 to vector<256x64xf32>
    %11 = arith.maximumf %9, %10 : vector<256x64xf32>
    %c1 = arith.constant 1 : index
    %c0_8 = arith.constant 0 : index
    %c0_9 = arith.constant 0 : index
    %12 = vector.load %arg3[%c1, %c0_8, %c0_9] : memref<7x64x64xf32, #tpu.memory_space<vmem>>, vector<1x64x64xf32>
    %13 = vector.shape_cast %12 : vector<1x64x64xf32> to vector<64x64xf32>
    %cst_10 = arith.constant dense<0.000000e+00> : vector<256x64xf32>
    %14 = tpu.matmul %11, %13, %cst_10 {dimension_numbers = #tpu.dot_dimension_numbers<[1], [0], [0], [1], [0, 0, 1, 1], [], []>} : vector<256x64xf32>, vector<64x64xf32>, vector<256x64xf32> -> vector<256x64xf32>
    %15 = vector.extract_strided_slice %2 {offsets = [1, 0], sizes = [1, 64], strides = [1, 1]} : vector<7x64xf32> to vector<1x64xf32>
    %16 = vector.broadcast %15 : vector<1x64xf32> to vector<256x64xf32>
    %17 = arith.addf %14, %16 : vector<256x64xf32>
    %cst_11 = arith.constant 0.000000e+00 : f32
    %18 = vector.broadcast %cst_11 : f32 to vector<256x64xf32>
    %19 = arith.maximumf %17, %18 : vector<256x64xf32>
    %c2 = arith.constant 2 : index
    %c0_12 = arith.constant 0 : index
    %c0_13 = arith.constant 0 : index
    %20 = vector.load %arg3[%c2, %c0_12, %c0_13] : memref<7x64x64xf32, #tpu.memory_space<vmem>>, vector<1x64x64xf32>
    %21 = vector.shape_cast %20 : vector<1x64x64xf32> to vector<64x64xf32>
    %cst_14 = arith.constant dense<0.000000e+00> : vector<256x64xf32>
    %22 = tpu.matmul %19, %21, %cst_14 {dimension_numbers = #tpu.dot_dimension_numbers<[1], [0], [0], [1], [0, 0, 1, 1], [], []>} : vector<256x64xf32>, vector<64x64xf32>, vector<256x64xf32> -> vector<256x64xf32>
    %23 = vector.extract_strided_slice %2 {offsets = [2, 0], sizes = [1, 64], strides = [1, 1]} : vector<7x64xf32> to vector<1x64xf32>
    %24 = vector.broadcast %23 : vector<1x64xf32> to vector<256x64xf32>
    %25 = arith.addf %22, %24 : vector<256x64xf32>
    %cst_15 = arith.constant 0.000000e+00 : f32
    %26 = vector.broadcast %cst_15 : f32 to vector<256x64xf32>
    %27 = arith.maximumf %25, %26 : vector<256x64xf32>
    %c3 = arith.constant 3 : index
    %c0_16 = arith.constant 0 : index
    %c0_17 = arith.constant 0 : index
    %28 = vector.load %arg3[%c3, %c0_16, %c0_17] : memref<7x64x64xf32, #tpu.memory_space<vmem>>, vector<1x64x64xf32>
    %29 = vector.shape_cast %28 : vector<1x64x64xf32> to vector<64x64xf32>
    %30 = vector.extract_strided_slice %29 {offsets = [0, 0], sizes = [3, 64], strides = [1, 1]} : vector<64x64xf32> to vector<3x64xf32>
    %cst_18 = arith.constant dense<0.000000e+00> : vector<256x64xf32>
    %31 = tpu.matmul %1, %30, %cst_18 {dimension_numbers = #tpu.dot_dimension_numbers<[1], [0], [0], [1], [0, 0, 1, 1], [], []>} : vector<256x3xf32>, vector<3x64xf32>, vector<256x64xf32> -> vector<256x64xf32>
    %cst_19 = arith.constant dense<0.000000e+00> : vector<256x64xf32>
    %32 = tpu.matmul %27, %29, %cst_19 {dimension_numbers = #tpu.dot_dimension_numbers<[1], [0], [0], [1], [0, 0, 1, 1], [], []>} : vector<256x64xf32>, vector<64x64xf32>, vector<256x64xf32> -> vector<256x64xf32>
    %33 = arith.addf %31, %32 : vector<256x64xf32>
    %34 = vector.extract_strided_slice %2 {offsets = [3, 0], sizes = [1, 64], strides = [1, 1]} : vector<7x64xf32> to vector<1x64xf32>
    %35 = vector.broadcast %34 : vector<1x64xf32> to vector<256x64xf32>
    %36 = arith.addf %33, %35 : vector<256x64xf32>
    %cst_20 = arith.constant 0.000000e+00 : f32
    %37 = vector.broadcast %cst_20 : f32 to vector<256x64xf32>
    %38 = arith.maximumf %36, %37 : vector<256x64xf32>
    %c4 = arith.constant 4 : index
    %c0_21 = arith.constant 0 : index
    %c0_22 = arith.constant 0 : index
    %39 = vector.load %arg3[%c4, %c0_21, %c0_22] : memref<7x64x64xf32, #tpu.memory_space<vmem>>, vector<1x64x64xf32>
    %40 = vector.shape_cast %39 : vector<1x64x64xf32> to vector<64x64xf32>
    %cst_23 = arith.constant dense<0.000000e+00> : vector<256x64xf32>
    %41 = tpu.matmul %38, %40, %cst_23 {dimension_numbers = #tpu.dot_dimension_numbers<[1], [0], [0], [1], [0, 0, 1, 1], [], []>} : vector<256x64xf32>, vector<64x64xf32>, vector<256x64xf32> -> vector<256x64xf32>
    %42 = vector.extract_strided_slice %2 {offsets = [4, 0], sizes = [1, 64], strides = [1, 1]} : vector<7x64xf32> to vector<1x64xf32>
    %43 = vector.broadcast %42 : vector<1x64xf32> to vector<256x64xf32>
    %44 = arith.addf %41, %43 : vector<256x64xf32>
    %cst_24 = arith.constant 0.000000e+00 : f32
    %45 = vector.broadcast %cst_24 : f32 to vector<256x64xf32>
    %46 = arith.maximumf %44, %45 : vector<256x64xf32>
    %c5 = arith.constant 5 : index
    %c0_25 = arith.constant 0 : index
    %c0_26 = arith.constant 0 : index
    %47 = vector.load %arg3[%c5, %c0_25, %c0_26] : memref<7x64x64xf32, #tpu.memory_space<vmem>>, vector<1x64x64xf32>
    %48 = vector.shape_cast %47 : vector<1x64x64xf32> to vector<64x64xf32>
    %cst_27 = arith.constant dense<0.000000e+00> : vector<256x64xf32>
    %49 = tpu.matmul %46, %48, %cst_27 {dimension_numbers = #tpu.dot_dimension_numbers<[1], [0], [0], [1], [0, 0, 1, 1], [], []>} : vector<256x64xf32>, vector<64x64xf32>, vector<256x64xf32> -> vector<256x64xf32>
    %50 = vector.extract_strided_slice %2 {offsets = [5, 0], sizes = [1, 64], strides = [1, 1]} : vector<7x64xf32> to vector<1x64xf32>
    %51 = vector.broadcast %50 : vector<1x64xf32> to vector<256x64xf32>
    %52 = arith.addf %49, %51 : vector<256x64xf32>
    %cst_28 = arith.constant 0.000000e+00 : f32
    %53 = vector.broadcast %cst_28 : f32 to vector<256x64xf32>
    %54 = arith.maximumf %52, %53 : vector<256x64xf32>
    %c6 = arith.constant 6 : index
    %c0_29 = arith.constant 0 : index
    %c0_30 = arith.constant 0 : index
    %55 = vector.load %arg3[%c6, %c0_29, %c0_30] : memref<7x64x64xf32, #tpu.memory_space<vmem>>, vector<1x64x64xf32>
    %56 = vector.shape_cast %55 : vector<1x64x64xf32> to vector<64x64xf32>
    %cst_31 = arith.constant dense<0.000000e+00> : vector<256x64xf32>
    %57 = tpu.matmul %54, %56, %cst_31 {dimension_numbers = #tpu.dot_dimension_numbers<[1], [0], [0], [1], [0, 0, 1, 1], [], []>} : vector<256x64xf32>, vector<64x64xf32>, vector<256x64xf32> -> vector<256x64xf32>
    %58 = vector.extract_strided_slice %57 {offsets = [0, 0], sizes = [256, 1], strides = [1, 1]} : vector<256x64xf32> to vector<256x1xf32>
    %59 = vector.extract_strided_slice %2 {offsets = [6, 0], sizes = [1, 1], strides = [1, 1]} : vector<7x64xf32> to vector<1x1xf32>
    %60 = vector.broadcast %59 : vector<1x1xf32> to vector<256x1xf32>
    %61 = arith.addf %58, %60 : vector<256x1xf32>
    %62 = vector.shape_cast %61 : vector<256x1xf32> to vector<16x16x1xf32>
    %cst_32 = arith.constant dense<0xFF800000> : vector<16x1xf32>
    %63 = vector.multi_reduction <maximumf>, %62, %cst_32 [1] : vector<16x16x1xf32> to vector<16x1xf32>
    %64 = vector.shape_cast %63 : vector<16x1xf32> to vector<16x1x1xf32>
    %65 = vector.broadcast %64 : vector<16x1x1xf32> to vector<16x16x1xf32>
    %66 = arith.subf %62, %65 : vector<16x16x1xf32>
    %67 = math.exp %66 : vector<16x16x1xf32>
    %cst_33 = arith.constant dense<0.000000e+00> : vector<16x1xf32>
    %68 = vector.multi_reduction <add>, %67, %cst_33 [1] : vector<16x16x1xf32> to vector<16x1xf32>
    %69 = vector.shape_cast %68 : vector<16x1xf32> to vector<16x1x1xf32>
    %70 = vector.broadcast %69 : vector<16x1x1xf32> to vector<16x16x1xf32>
    %71 = arith.divf %67, %70 : vector<16x16x1xf32>
    %c0_34 = arith.constant 0 : index
    %c0_35 = arith.constant 0 : index
    %c0_36 = arith.constant 0 : index
    %72 = vector.load %arg8[%c0_34, %c0_35, %c0_36] : memref<16x16x1xf32, #tpu.memory_space<vmem>>, vector<16x16x1xf32>
    tpu.vector_store %arg8[%c0_34, %c0_35, %c0_36], %71 {strides = array<i32>} : memref<16x16x1xf32, #tpu.memory_space<vmem>>, vector<16x16x1xf32>,
    %73 = vector.shape_cast %54 : vector<256x64xf32> to vector<16x16x64xf32>
    %74 = vector.broadcast %71 : vector<16x16x1xf32> to vector<16x16x64xf32>
    %75 = arith.mulf %73, %74 : vector<16x16x64xf32>
    %cst_37 = arith.constant dense<0.000000e+00> : vector<16x64xf32>
    %76 = vector.multi_reduction <add>, %75, %cst_37 [1] : vector<16x16x64xf32> to vector<16x64xf32>
    %77 = vector.shape_cast %76 : vector<16x64xf32> to vector<2x8x64xf32>
    %78 = vector.extract_strided_slice %77 {offsets = [0, 0, 0], sizes = [2, 1, 64], strides = [1, 1, 1]} : vector<2x8x64xf32> to vector<2x1x64xf32>
    %79 = vector.shape_cast %78 : vector<2x1x64xf32> to vector<2x64xf32>
    %80 = vector.extract_strided_slice %77 {offsets = [0, 1, 0], sizes = [2, 1, 64], strides = [1, 1, 1]} : vector<2x8x64xf32> to vector<2x1x64xf32>
    %81 = vector.shape_cast %80 : vector<2x1x64xf32> to vector<2x64xf32>
    %82 = vector.extract_strided_slice %77 {offsets = [0, 2, 0], sizes = [2, 1, 64], strides = [1, 1, 1]} : vector<2x8x64xf32> to vector<2x1x64xf32>
    %83 = vector.shape_cast %82 : vector<2x1x64xf32> to vector<2x64xf32>
    %84 = vector.extract_strided_slice %77 {offsets = [0, 3, 0], sizes = [2, 1, 64], strides = [1, 1, 1]} : vector<2x8x64xf32> to vector<2x1x64xf32>
    %85 = vector.shape_cast %84 : vector<2x1x64xf32> to vector<2x64xf32>
    %86 = vector.extract_strided_slice %77 {offsets = [0, 4, 0], sizes = [2, 1, 64], strides = [1, 1, 1]} : vector<2x8x64xf32> to vector<2x1x64xf32>
    %87 = vector.shape_cast %86 : vector<2x1x64xf32> to vector<2x64xf32>
    %88 = vector.extract_strided_slice %77 {offsets = [0, 5, 0], sizes = [2, 1, 64], strides = [1, 1, 1]} : vector<2x8x64xf32> to vector<2x1x64xf32>
    %89 = vector.shape_cast %88 : vector<2x1x64xf32> to vector<2x64xf32>
    %90 = vector.extract_strided_slice %77 {offsets = [0, 6, 0], sizes = [2, 1, 64], strides = [1, 1, 1]} : vector<2x8x64xf32> to vector<2x1x64xf32>
    %91 = vector.shape_cast %90 : vector<2x1x64xf32> to vector<2x64xf32>
    %92 = vector.extract_strided_slice %77 {offsets = [0, 7, 0], sizes = [2, 1, 64], strides = [1, 1, 1]} : vector<2x8x64xf32> to vector<2x1x64xf32>
    %93 = vector.shape_cast %92 : vector<2x1x64xf32> to vector<2x64xf32>
    %c0_38 = arith.constant 0 : index
    %c0_39 = arith.constant 0 : index
    %c0_40 = arith.constant 0 : index
    %94 = vector.load %arg5[%c0_38, %c0_39, %c0_40] : memref<3x128x256xf32, #tpu.memory_space<vmem>>, vector<1x128x256xf32>
    %95 = vector.shape_cast %94 : vector<1x128x256xf32> to vector<128x256xf32>
    %c0_41 = arith.constant 0 : index
    %c0_42 = arith.constant 0 : index
    %c0_43 = arith.constant 0 : index
    %96 = vector.load %arg6[%c0_41, %c0_42, %c0_43] : memref<3x1x256xf32, #tpu.memory_space<vmem>>, vector<1x1x256xf32>
    %97 = vector.shape_cast %96 : vector<1x1x256xf32> to vector<1x256xf32>
    %c0_44 = arith.constant 0 : index
    %c0_45 = arith.constant 0 : index
    %c0_46 = arith.constant 0 : index
    %98 = vector.load %arg1[%c0_44, %c0_45, %c0_46] : memref<3x2x64xf32, #tpu.memory_space<vmem>>, vector<1x2x64xf32>
    %99 = vector.shape_cast %98 : vector<1x2x64xf32> to vector<2x64xf32>
    %c0_47 = arith.constant 0 : index
    %c0_48 = arith.constant 0 : index
    %c0_49 = arith.constant 0 : index
    %100 = vector.load %arg2[%c0_47, %c0_48, %c0_49] : memref<3x2x64xf32, #tpu.memory_space<vmem>>, vector<1x2x64xf32>
    %101 = vector.shape_cast %100 : vector<1x2x64xf32> to vector<2x64xf32>
    %102 = tpu.concatenate %79, %99 in 1 : vector<2x64xf32>, vector<2x64xf32> -> vector<2x128xf32>
    %cst_50 = arith.constant dense<0.000000e+00> : vector<2x256xf32>
    %103 = tpu.matmul %102, %95, %cst_50 {dimension_numbers = #tpu.dot_dimension_numbers<[1], [0], [0], [1], [0, 0, 1, 1], [], []>} : vector<2x128xf32>, vector<128x256xf32>, vector<2x256xf32> -> vector<2x256xf32>
    %104 = vector.broadcast %97 : vector<1x256xf32> to vector<2x256xf32>
    %105 = arith.addf %103, %104 : vector<2x256xf32>
    %106 = arith.negf %105 : vector<2x256xf32>
    %107 = math.exp %106 : vector<2x256xf32>
    %cst_51 = arith.constant 1.000000e+00 : f32
    %108 = vector.broadcast %cst_51 : f32 to vector<2x256xf32>
    %109 = arith.addf %108, %107 : vector<2x256xf32>
    %110 = arith.divf %108, %109 : vector<2x256xf32>
    %111 = vector.extract_strided_slice %110 {offsets = [0, 0], sizes = [2, 64], strides = [1, 1]} : vector<2x256xf32> to vector<2x64xf32>
    %112 = vector.extract_strided_slice %110 {offsets = [0, 64], sizes = [2, 64], strides = [1, 1]} : vector<2x256xf32> to vector<2x64xf32>
    %113 = vector.extract_strided_slice %110 {offsets = [0, 192], sizes = [2, 64], strides = [1, 1]} : vector<2x256xf32> to vector<2x64xf32>
    %114 = vector.extract_strided_slice %105 {offsets = [0, 128], sizes = [2, 64], strides = [1, 1]} : vector<2x256xf32> to vector<2x64xf32>
    %115 = math.tanh %114 : vector<2x64xf32>
    %116 = arith.mulf %112, %101 : vector<2x64xf32>
    %117 = arith.mulf %111, %115 : vector<2x64xf32>
    %118 = arith.addf %116, %117 : vector<2x64xf32>
    %119 = math.tanh %118 : vector<2x64xf32>
    %120 = arith.mulf %113, %119 : vector<2x64xf32>
    %121 = tpu.concatenate %81, %120 in 1 : vector<2x64xf32>, vector<2x64xf32> -> vector<2x128xf32>
    %cst_52 = arith.constant dense<0.000000e+00> : vector<2x256xf32>
    %122 = tpu.matmul %121, %95, %cst_52 {dimension_numbers = #tpu.dot_dimension_numbers<[1], [0], [0], [1], [0, 0, 1, 1], [], []>} : vector<2x128xf32>, vector<128x256xf32>, vector<2x256xf32> -> vector<2x256xf32>
    %123 = vector.broadcast %97 : vector<1x256xf32> to vector<2x256xf32>
    %124 = arith.addf %122, %123 : vector<2x256xf32>
    %125 = arith.negf %124 : vector<2x256xf32>
    %126 = math.exp %125 : vector<2x256xf32>
    %cst_53 = arith.constant 1.000000e+00 : f32
    %127 = vector.broadcast %cst_53 : f32 to vector<2x256xf32>
    %128 = arith.addf %127, %126 : vector<2x256xf32>
    %129 = arith.divf %127, %128 : vector<2x256xf32>
    %130 = vector.extract_strided_slice %129 {offsets = [0, 0], sizes = [2, 64], strides = [1, 1]} : vector<2x256xf32> to vector<2x64xf32>
    %131 = vector.extract_strided_slice %129 {offsets = [0, 64], sizes = [2, 64], strides = [1, 1]} : vector<2x256xf32> to vector<2x64xf32>
    %132 = vector.extract_strided_slice %129 {offsets = [0, 192], sizes = [2, 64], strides = [1, 1]} : vector<2x256xf32> to vector<2x64xf32>
    %133 = vector.extract_strided_slice %124 {offsets = [0, 128], sizes = [2, 64], strides = [1, 1]} : vector<2x256xf32> to vector<2x64xf32>
    %134 = math.tanh %133 : vector<2x64xf32>
    %135 = arith.mulf %131, %118 : vector<2x64xf32>
    %136 = arith.mulf %130, %134 : vector<2x64xf32>
    %137 = arith.addf %135, %136 : vector<2x64xf32>
    %138 = math.tanh %137 : vector<2x64xf32>
    %139 = arith.mulf %132, %138 : vector<2x64xf32>
    %140 = tpu.concatenate %83, %139 in 1 : vector<2x64xf32>, vector<2x64xf32> -> vector<2x128xf32>
    %cst_54 = arith.constant dense<0.000000e+00> : vector<2x256xf32>
    %141 = tpu.matmul %140, %95, %cst_54 {dimension_numbers = #tpu.dot_dimension_numbers<[1], [0], [0], [1], [0, 0, 1, 1], [], []>} : vector<2x128xf32>, vector<128x256xf32>, vector<2x256xf32> -> vector<2x256xf32>
    %142 = vector.broadcast %97 : vector<1x256xf32> to vector<2x256xf32>
    %143 = arith.addf %141, %142 : vector<2x256xf32>
    %144 = arith.negf %143 : vector<2x256xf32>
    %145 = math.exp %144 : vector<2x256xf32>
    %cst_55 = arith.constant 1.000000e+00 : f32
    %146 = vector.broadcast %cst_55 : f32 to vector<2x256xf32>
    %147 = arith.addf %146, %145 : vector<2x256xf32>
    %148 = arith.divf %146, %147 : vector<2x256xf32>
    %149 = vector.extract_strided_slice %148 {offsets = [0, 0], sizes = [2, 64], strides = [1, 1]} : vector<2x256xf32> to vector<2x64xf32>
    %150 = vector.extract_strided_slice %148 {offsets = [0, 64], sizes = [2, 64], strides = [1, 1]} : vector<2x256xf32> to vector<2x64xf32>
    %151 = vector.extract_strided_slice %148 {offsets = [0, 192], sizes = [2, 64], strides = [1, 1]} : vector<2x256xf32> to vector<2x64xf32>
    %152 = vector.extract_strided_slice %143 {offsets = [0, 128], sizes = [2, 64], strides = [1, 1]} : vector<2x256xf32> to vector<2x64xf32>
    %153 = math.tanh %152 : vector<2x64xf32>
    %154 = arith.mulf %150, %137 : vector<2x64xf32>
    %155 = arith.mulf %149, %153 : vector<2x64xf32>
    %156 = arith.addf %154, %155 : vector<2x64xf32>
    %157 = math.tanh %156 : vector<2x64xf32>
    %158 = arith.mulf %151, %157 : vector<2x64xf32>
    %159 = tpu.concatenate %85, %158 in 1 : vector<2x64xf32>, vector<2x64xf32> -> vector<2x128xf32>
    %cst_56 = arith.constant dense<0.000000e+00> : vector<2x256xf32>
    %160 = tpu.matmul %159, %95, %cst_56 {dimension_numbers = #tpu.dot_dimension_numbers<[1], [0], [0], [1], [0, 0, 1, 1], [], []>} : vector<2x128xf32>, vector<128x256xf32>, vector<2x256xf32> -> vector<2x256xf32>
    %161 = vector.broadcast %97 : vector<1x256xf32> to vector<2x256xf32>
    %162 = arith.addf %160, %161 : vector<2x256xf32>
    %163 = arith.negf %162 : vector<2x256xf32>
    %164 = math.exp %163 : vector<2x256xf32>
    %cst_57 = arith.constant 1.000000e+00 : f32
    %165 = vector.broadcast %cst_57 : f32 to vector<2x256xf32>
    %166 = arith.addf %165, %164 : vector<2x256xf32>
    %167 = arith.divf %165, %166 : vector<2x256xf32>
    %168 = vector.extract_strided_slice %167 {offsets = [0, 0], sizes = [2, 64], strides = [1, 1]} : vector<2x256xf32> to vector<2x64xf32>
    %169 = vector.extract_strided_slice %167 {offsets = [0, 64], sizes = [2, 64], strides = [1, 1]} : vector<2x256xf32> to vector<2x64xf32>
    %170 = vector.extract_strided_slice %167 {offsets = [0, 192], sizes = [2, 64], strides = [1, 1]} : vector<2x256xf32> to vector<2x64xf32>
    %171 = vector.extract_strided_slice %162 {offsets = [0, 128], sizes = [2, 64], strides = [1, 1]} : vector<2x256xf32> to vector<2x64xf32>
    %172 = math.tanh %171 : vector<2x64xf32>
    %173 = arith.mulf %169, %156 : vector<2x64xf32>
    %174 = arith.mulf %168, %172 : vector<2x64xf32>
    %175 = arith.addf %173, %174 : vector<2x64xf32>
    %176 = math.tanh %175 : vector<2x64xf32>
    %177 = arith.mulf %170, %176 : vector<2x64xf32>
    %178 = tpu.concatenate %87, %177 in 1 : vector<2x64xf32>, vector<2x64xf32> -> vector<2x128xf32>
    %cst_58 = arith.constant dense<0.000000e+00> : vector<2x256xf32>
    %179 = tpu.matmul %178, %95, %cst_58 {dimension_numbers = #tpu.dot_dimension_numbers<[1], [0], [0], [1], [0, 0, 1, 1], [], []>} : vector<2x128xf32>, vector<128x256xf32>, vector<2x256xf32> -> vector<2x256xf32>
    %180 = vector.broadcast %97 : vector<1x256xf32> to vector<2x256xf32>
    %181 = arith.addf %179, %180 : vector<2x256xf32>
    %182 = arith.negf %181 : vector<2x256xf32>
    %183 = math.exp %182 : vector<2x256xf32>
    %cst_59 = arith.constant 1.000000e+00 : f32
    %184 = vector.broadcast %cst_59 : f32 to vector<2x256xf32>
    %185 = arith.addf %184, %183 : vector<2x256xf32>
    %186 = arith.divf %184, %185 : vector<2x256xf32>
    %187 = vector.extract_strided_slice %186 {offsets = [0, 0], sizes = [2, 64], strides = [1, 1]} : vector<2x256xf32> to vector<2x64xf32>
    %188 = vector.extract_strided_slice %186 {offsets = [0, 64], sizes = [2, 64], strides = [1, 1]} : vector<2x256xf32> to vector<2x64xf32>
    %189 = vector.extract_strided_slice %186 {offsets = [0, 192], sizes = [2, 64], strides = [1, 1]} : vector<2x256xf32> to vector<2x64xf32>
    %190 = vector.extract_strided_slice %181 {offsets = [0, 128], sizes = [2, 64], strides = [1, 1]} : vector<2x256xf32> to vector<2x64xf32>
    %191 = math.tanh %190 : vector<2x64xf32>
    %192 = arith.mulf %188, %175 : vector<2x64xf32>
    %193 = arith.mulf %187, %191 : vector<2x64xf32>
    %194 = arith.addf %192, %193 : vector<2x64xf32>
    %195 = math.tanh %194 : vector<2x64xf32>
    %196 = arith.mulf %189, %195 : vector<2x64xf32>
    %197 = tpu.concatenate %89, %196 in 1 : vector<2x64xf32>, vector<2x64xf32> -> vector<2x128xf32>
    %cst_60 = arith.constant dense<0.000000e+00> : vector<2x256xf32>
    %198 = tpu.matmul %197, %95, %cst_60 {dimension_numbers = #tpu.dot_dimension_numbers<[1], [0], [0], [1], [0, 0, 1, 1], [], []>} : vector<2x128xf32>, vector<128x256xf32>, vector<2x256xf32> -> vector<2x256xf32>
    %199 = vector.broadcast %97 : vector<1x256xf32> to vector<2x256xf32>
    %200 = arith.addf %198, %199 : vector<2x256xf32>
    %201 = arith.negf %200 : vector<2x256xf32>
    %202 = math.exp %201 : vector<2x256xf32>
    %cst_61 = arith.constant 1.000000e+00 : f32
    %203 = vector.broadcast %cst_61 : f32 to vector<2x256xf32>
    %204 = arith.addf %203, %202 : vector<2x256xf32>
    %205 = arith.divf %203, %204 : vector<2x256xf32>
    %206 = vector.extract_strided_slice %205 {offsets = [0, 0], sizes = [2, 64], strides = [1, 1]} : vector<2x256xf32> to vector<2x64xf32>
    %207 = vector.extract_strided_slice %205 {offsets = [0, 64], sizes = [2, 64], strides = [1, 1]} : vector<2x256xf32> to vector<2x64xf32>
    %208 = vector.extract_strided_slice %205 {offsets = [0, 192], sizes = [2, 64], strides = [1, 1]} : vector<2x256xf32> to vector<2x64xf32>
    %209 = vector.extract_strided_slice %200 {offsets = [0, 128], sizes = [2, 64], strides = [1, 1]} : vector<2x256xf32> to vector<2x64xf32>
    %210 = math.tanh %209 : vector<2x64xf32>
    %211 = arith.mulf %207, %194 : vector<2x64xf32>
    %212 = arith.mulf %206, %210 : vector<2x64xf32>
    %213 = arith.addf %211, %212 : vector<2x64xf32>
    %214 = math.tanh %213 : vector<2x64xf32>
    %215 = arith.mulf %208, %214 : vector<2x64xf32>
    %216 = tpu.concatenate %91, %215 in 1 : vector<2x64xf32>, vector<2x64xf32> -> vector<2x128xf32>
    %cst_62 = arith.constant dense<0.000000e+00> : vector<2x256xf32>
    %217 = tpu.matmul %216, %95, %cst_62 {dimension_numbers = #tpu.dot_dimension_numbers<[1], [0], [0], [1], [0, 0, 1, 1], [], []>} : vector<2x128xf32>, vector<128x256xf32>, vector<2x256xf32> -> vector<2x256xf32>
    %218 = vector.broadcast %97 : vector<1x256xf32> to vector<2x256xf32>
    %219 = arith.addf %217, %218 : vector<2x256xf32>
    %220 = arith.negf %219 : vector<2x256xf32>
    %221 = math.exp %220 : vector<2x256xf32>
    %cst_63 = arith.constant 1.000000e+00 : f32
    %222 = vector.broadcast %cst_63 : f32 to vector<2x256xf32>
    %223 = arith.addf %222, %221 : vector<2x256xf32>
    %224 = arith.divf %222, %223 : vector<2x256xf32>
    %225 = vector.extract_strided_slice %224 {offsets = [0, 0], sizes = [2, 64], strides = [1, 1]} : vector<2x256xf32> to vector<2x64xf32>
    %226 = vector.extract_strided_slice %224 {offsets = [0, 64], sizes = [2, 64], strides = [1, 1]} : vector<2x256xf32> to vector<2x64xf32>
    %227 = vector.extract_strided_slice %224 {offsets = [0, 192], sizes = [2, 64], strides = [1, 1]} : vector<2x256xf32> to vector<2x64xf32>
    %228 = vector.extract_strided_slice %219 {offsets = [0, 128], sizes = [2, 64], strides = [1, 1]} : vector<2x256xf32> to vector<2x64xf32>
    %229 = math.tanh %228 : vector<2x64xf32>
    %230 = arith.mulf %226, %213 : vector<2x64xf32>
    %231 = arith.mulf %225, %229 : vector<2x64xf32>
    %232 = arith.addf %230, %231 : vector<2x64xf32>
    %233 = math.tanh %232 : vector<2x64xf32>
    %234 = arith.mulf %227, %233 : vector<2x64xf32>
    %235 = tpu.concatenate %93, %234 in 1 : vector<2x64xf32>, vector<2x64xf32> -> vector<2x128xf32>
    %cst_64 = arith.constant dense<0.000000e+00> : vector<2x256xf32>
    %236 = tpu.matmul %235, %95, %cst_64 {dimension_numbers = #tpu.dot_dimension_numbers<[1], [0], [0], [1], [0, 0, 1, 1], [], []>} : vector<2x128xf32>, vector<128x256xf32>, vector<2x256xf32> -> vector<2x256xf32>
    %237 = vector.broadcast %97 : vector<1x256xf32> to vector<2x256xf32>
    %238 = arith.addf %236, %237 : vector<2x256xf32>
    %239 = arith.negf %238 : vector<2x256xf32>
    %240 = math.exp %239 : vector<2x256xf32>
    %cst_65 = arith.constant 1.000000e+00 : f32
    %241 = vector.broadcast %cst_65 : f32 to vector<2x256xf32>
    %242 = arith.addf %241, %240 : vector<2x256xf32>
    %243 = arith.divf %241, %242 : vector<2x256xf32>
    %244 = vector.extract_strided_slice %243 {offsets = [0, 0], sizes = [2, 64], strides = [1, 1]} : vector<2x256xf32> to vector<2x64xf32>
    %245 = vector.extract_strided_slice %243 {offsets = [0, 64], sizes = [2, 64], strides = [1, 1]} : vector<2x256xf32> to vector<2x64xf32>
    %246 = vector.extract_strided_slice %243 {offsets = [0, 192], sizes = [2, 64], strides = [1, 1]} : vector<2x256xf32> to vector<2x64xf32>
    %247 = vector.extract_strided_slice %238 {offsets = [0, 128], sizes = [2, 64], strides = [1, 1]} : vector<2x256xf32> to vector<2x64xf32>
    %248 = math.tanh %247 : vector<2x64xf32>
    %249 = arith.mulf %245, %232 : vector<2x64xf32>
    %250 = arith.mulf %244, %248 : vector<2x64xf32>
    %251 = arith.addf %249, %250 : vector<2x64xf32>
    %252 = math.tanh %251 : vector<2x64xf32>
    %253 = arith.mulf %246, %252 : vector<2x64xf32>
    %c0_66 = arith.constant 0 : index
    %c0_67 = arith.constant 0 : index
    %c0_68 = arith.constant 0 : index
    %254 = vector.load %arg9[%c0_66, %c0_67, %c0_68] : memref<3x2x64xf32, #tpu.memory_space<vmem>>, vector<1x2x64xf32>
    %255 = vector.shape_cast %254 : vector<1x2x64xf32> to vector<2x64xf32>
    %256 = vector.shape_cast %253 : vector<2x64xf32> to vector<1x2x64xf32>
    tpu.vector_store %arg9[%c0_66, %c0_67, %c0_68], %256 {strides = array<i32>} : memref<3x2x64xf32, #tpu.memory_space<vmem>>, vector<1x2x64xf32>,
    %c0_69 = arith.constant 0 : index
    %c0_70 = arith.constant 0 : index
    %c0_71 = arith.constant 0 : index
    %257 = vector.load %arg10[%c0_69, %c0_70, %c0_71] : memref<3x2x64xf32, #tpu.memory_space<vmem>>, vector<1x2x64xf32>
    %258 = vector.shape_cast %257 : vector<1x2x64xf32> to vector<2x64xf32>
    %259 = vector.shape_cast %251 : vector<2x64xf32> to vector<1x2x64xf32>
    tpu.vector_store %arg10[%c0_69, %c0_70, %c0_71], %259 {strides = array<i32>} : memref<3x2x64xf32, #tpu.memory_space<vmem>>, vector<1x2x64xf32>,
    %c1_72 = arith.constant 1 : index
    %c0_73 = arith.constant 0 : index
    %c0_74 = arith.constant 0 : index
    %260 = vector.load %arg5[%c1_72, %c0_73, %c0_74] : memref<3x128x256xf32, #tpu.memory_space<vmem>>, vector<1x128x256xf32>
    %261 = vector.shape_cast %260 : vector<1x128x256xf32> to vector<128x256xf32>
    %c1_75 = arith.constant 1 : index
    %c0_76 = arith.constant 0 : index
    %c0_77 = arith.constant 0 : index
    %262 = vector.load %arg6[%c1_75, %c0_76, %c0_77] : memref<3x1x256xf32, #tpu.memory_space<vmem>>, vector<1x1x256xf32>
    %263 = vector.shape_cast %262 : vector<1x1x256xf32> to vector<1x256xf32>
    %c1_78 = arith.constant 1 : index
    %c0_79 = arith.constant 0 : index
    %c0_80 = arith.constant 0 : index
    %264 = vector.load %arg1[%c1_78, %c0_79, %c0_80] : memref<3x2x64xf32, #tpu.memory_space<vmem>>, vector<1x2x64xf32>
    %265 = vector.shape_cast %264 : vector<1x2x64xf32> to vector<2x64xf32>
    %c1_81 = arith.constant 1 : index
    %c0_82 = arith.constant 0 : index
    %c0_83 = arith.constant 0 : index
    %266 = vector.load %arg2[%c1_81, %c0_82, %c0_83] : memref<3x2x64xf32, #tpu.memory_space<vmem>>, vector<1x2x64xf32>
    %267 = vector.shape_cast %266 : vector<1x2x64xf32> to vector<2x64xf32>
    %268 = tpu.concatenate %120, %265 in 1 : vector<2x64xf32>, vector<2x64xf32> -> vector<2x128xf32>
    %cst_84 = arith.constant dense<0.000000e+00> : vector<2x256xf32>
    %269 = tpu.matmul %268, %261, %cst_84 {dimension_numbers = #tpu.dot_dimension_numbers<[1], [0], [0], [1], [0, 0, 1, 1], [], []>} : vector<2x128xf32>, vector<128x256xf32>, vector<2x256xf32> -> vector<2x256xf32>
    %270 = vector.broadcast %263 : vector<1x256xf32> to vector<2x256xf32>
    %271 = arith.addf %269, %270 : vector<2x256xf32>
    %272 = arith.negf %271 : vector<2x256xf32>
    %273 = math.exp %272 : vector<2x256xf32>
    %cst_85 = arith.constant 1.000000e+00 : f32
    %274 = vector.broadcast %cst_85 : f32 to vector<2x256xf32>
    %275 = arith.addf %274, %273 : vector<2x256xf32>
    %276 = arith.divf %274, %275 : vector<2x256xf32>
    %277 = vector.extract_strided_slice %276 {offsets = [0, 0], sizes = [2, 64], strides = [1, 1]} : vector<2x256xf32> to vector<2x64xf32>
    %278 = vector.extract_strided_slice %276 {offsets = [0, 64], sizes = [2, 64], strides = [1, 1]} : vector<2x256xf32> to vector<2x64xf32>
    %279 = vector.extract_strided_slice %276 {offsets = [0, 192], sizes = [2, 64], strides = [1, 1]} : vector<2x256xf32> to vector<2x64xf32>
    %280 = vector.extract_strided_slice %271 {offsets = [0, 128], sizes = [2, 64], strides = [1, 1]} : vector<2x256xf32> to vector<2x64xf32>
    %281 = math.tanh %280 : vector<2x64xf32>
    %282 = arith.mulf %278, %267 : vector<2x64xf32>
    %283 = arith.mulf %277, %281 : vector<2x64xf32>
    %284 = arith.addf %282, %283 : vector<2x64xf32>
    %285 = math.tanh %284 : vector<2x64xf32>
    %286 = arith.mulf %279, %285 : vector<2x64xf32>
    %287 = tpu.concatenate %139, %286 in 1 : vector<2x64xf32>, vector<2x64xf32> -> vector<2x128xf32>
    %cst_86 = arith.constant dense<0.000000e+00> : vector<2x256xf32>
    %288 = tpu.matmul %287, %261, %cst_86 {dimension_numbers = #tpu.dot_dimension_numbers<[1], [0], [0], [1], [0, 0, 1, 1], [], []>} : vector<2x128xf32>, vector<128x256xf32>, vector<2x256xf32> -> vector<2x256xf32>
    %289 = vector.broadcast %263 : vector<1x256xf32> to vector<2x256xf32>
    %290 = arith.addf %288, %289 : vector<2x256xf32>
    %291 = arith.negf %290 : vector<2x256xf32>
    %292 = math.exp %291 : vector<2x256xf32>
    %cst_87 = arith.constant 1.000000e+00 : f32
    %293 = vector.broadcast %cst_87 : f32 to vector<2x256xf32>
    %294 = arith.addf %293, %292 : vector<2x256xf32>
    %295 = arith.divf %293, %294 : vector<2x256xf32>
    %296 = vector.extract_strided_slice %295 {offsets = [0, 0], sizes = [2, 64], strides = [1, 1]} : vector<2x256xf32> to vector<2x64xf32>
    %297 = vector.extract_strided_slice %295 {offsets = [0, 64], sizes = [2, 64], strides = [1, 1]} : vector<2x256xf32> to vector<2x64xf32>
    %298 = vector.extract_strided_slice %295 {offsets = [0, 192], sizes = [2, 64], strides = [1, 1]} : vector<2x256xf32> to vector<2x64xf32>
    %299 = vector.extract_strided_slice %290 {offsets = [0, 128], sizes = [2, 64], strides = [1, 1]} : vector<2x256xf32> to vector<2x64xf32>
    %300 = math.tanh %299 : vector<2x64xf32>
    %301 = arith.mulf %297, %284 : vector<2x64xf32>
    %302 = arith.mulf %296, %300 : vector<2x64xf32>
    %303 = arith.addf %301, %302 : vector<2x64xf32>
    %304 = math.tanh %303 : vector<2x64xf32>
    %305 = arith.mulf %298, %304 : vector<2x64xf32>
    %306 = tpu.concatenate %158, %305 in 1 : vector<2x64xf32>, vector<2x64xf32> -> vector<2x128xf32>
    %cst_88 = arith.constant dense<0.000000e+00> : vector<2x256xf32>
    %307 = tpu.matmul %306, %261, %cst_88 {dimension_numbers = #tpu.dot_dimension_numbers<[1], [0], [0], [1], [0, 0, 1, 1], [], []>} : vector<2x128xf32>, vector<128x256xf32>, vector<2x256xf32> -> vector<2x256xf32>
    %308 = vector.broadcast %263 : vector<1x256xf32> to vector<2x256xf32>
    %309 = arith.addf %307, %308 : vector<2x256xf32>
    %310 = arith.negf %309 : vector<2x256xf32>
    %311 = math.exp %310 : vector<2x256xf32>
    %cst_89 = arith.constant 1.000000e+00 : f32
    %312 = vector.broadcast %cst_89 : f32 to vector<2x256xf32>
    %313 = arith.addf %312, %311 : vector<2x256xf32>
    %314 = arith.divf %312, %313 : vector<2x256xf32>
    %315 = vector.extract_strided_slice %314 {offsets = [0, 0], sizes = [2, 64], strides = [1, 1]} : vector<2x256xf32> to vector<2x64xf32>
    %316 = vector.extract_strided_slice %314 {offsets = [0, 64], sizes = [2, 64], strides = [1, 1]} : vector<2x256xf32> to vector<2x64xf32>
    %317 = vector.extract_strided_slice %314 {offsets = [0, 192], sizes = [2, 64], strides = [1, 1]} : vector<2x256xf32> to vector<2x64xf32>
    %318 = vector.extract_strided_slice %309 {offsets = [0, 128], sizes = [2, 64], strides = [1, 1]} : vector<2x256xf32> to vector<2x64xf32>
    %319 = math.tanh %318 : vector<2x64xf32>
    %320 = arith.mulf %316, %303 : vector<2x64xf32>
    %321 = arith.mulf %315, %319 : vector<2x64xf32>
    %322 = arith.addf %320, %321 : vector<2x64xf32>
    %323 = math.tanh %322 : vector<2x64xf32>
    %324 = arith.mulf %317, %323 : vector<2x64xf32>
    %325 = tpu.concatenate %177, %324 in 1 : vector<2x64xf32>, vector<2x64xf32> -> vector<2x128xf32>
    %cst_90 = arith.constant dense<0.000000e+00> : vector<2x256xf32>
    %326 = tpu.matmul %325, %261, %cst_90 {dimension_numbers = #tpu.dot_dimension_numbers<[1], [0], [0], [1], [0, 0, 1, 1], [], []>} : vector<2x128xf32>, vector<128x256xf32>, vector<2x256xf32> -> vector<2x256xf32>
    %327 = vector.broadcast %263 : vector<1x256xf32> to vector<2x256xf32>
    %328 = arith.addf %326, %327 : vector<2x256xf32>
    %329 = arith.negf %328 : vector<2x256xf32>
    %330 = math.exp %329 : vector<2x256xf32>
    %cst_91 = arith.constant 1.000000e+00 : f32
    %331 = vector.broadcast %cst_91 : f32 to vector<2x256xf32>
    %332 = arith.addf %331, %330 : vector<2x256xf32>
    %333 = arith.divf %331, %332 : vector<2x256xf32>
    %334 = vector.extract_strided_slice %333 {offsets = [0, 0], sizes = [2, 64], strides = [1, 1]} : vector<2x256xf32> to vector<2x64xf32>
    %335 = vector.extract_strided_slice %333 {offsets = [0, 64], sizes = [2, 64], strides = [1, 1]} : vector<2x256xf32> to vector<2x64xf32>
    %336 = vector.extract_strided_slice %333 {offsets = [0, 192], sizes = [2, 64], strides = [1, 1]} : vector<2x256xf32> to vector<2x64xf32>
    %337 = vector.extract_strided_slice %328 {offsets = [0, 128], sizes = [2, 64], strides = [1, 1]} : vector<2x256xf32> to vector<2x64xf32>
    %338 = math.tanh %337 : vector<2x64xf32>
    %339 = arith.mulf %335, %322 : vector<2x64xf32>
    %340 = arith.mulf %334, %338 : vector<2x64xf32>
    %341 = arith.addf %339, %340 : vector<2x64xf32>
    %342 = math.tanh %341 : vector<2x64xf32>
    %343 = arith.mulf %336, %342 : vector<2x64xf32>
    %344 = tpu.concatenate %196, %343 in 1 : vector<2x64xf32>, vector<2x64xf32> -> vector<2x128xf32>
    %cst_92 = arith.constant dense<0.000000e+00> : vector<2x256xf32>
    %345 = tpu.matmul %344, %261, %cst_92 {dimension_numbers = #tpu.dot_dimension_numbers<[1], [0], [0], [1], [0, 0, 1, 1], [], []>} : vector<2x128xf32>, vector<128x256xf32>, vector<2x256xf32> -> vector<2x256xf32>
    %346 = vector.broadcast %263 : vector<1x256xf32> to vector<2x256xf32>
    %347 = arith.addf %345, %346 : vector<2x256xf32>
    %348 = arith.negf %347 : vector<2x256xf32>
    %349 = math.exp %348 : vector<2x256xf32>
    %cst_93 = arith.constant 1.000000e+00 : f32
    %350 = vector.broadcast %cst_93 : f32 to vector<2x256xf32>
    %351 = arith.addf %350, %349 : vector<2x256xf32>
    %352 = arith.divf %350, %351 : vector<2x256xf32>
    %353 = vector.extract_strided_slice %352 {offsets = [0, 0], sizes = [2, 64], strides = [1, 1]} : vector<2x256xf32> to vector<2x64xf32>
    %354 = vector.extract_strided_slice %352 {offsets = [0, 64], sizes = [2, 64], strides = [1, 1]} : vector<2x256xf32> to vector<2x64xf32>
    %355 = vector.extract_strided_slice %352 {offsets = [0, 192], sizes = [2, 64], strides = [1, 1]} : vector<2x256xf32> to vector<2x64xf32>
    %356 = vector.extract_strided_slice %347 {offsets = [0, 128], sizes = [2, 64], strides = [1, 1]} : vector<2x256xf32> to vector<2x64xf32>
    %357 = math.tanh %356 : vector<2x64xf32>
    %358 = arith.mulf %354, %341 : vector<2x64xf32>
    %359 = arith.mulf %353, %357 : vector<2x64xf32>
    %360 = arith.addf %358, %359 : vector<2x64xf32>
    %361 = math.tanh %360 : vector<2x64xf32>
    %362 = arith.mulf %355, %361 : vector<2x64xf32>
    %363 = tpu.concatenate %215, %362 in 1 : vector<2x64xf32>, vector<2x64xf32> -> vector<2x128xf32>
    %cst_94 = arith.constant dense<0.000000e+00> : vector<2x256xf32>
    %364 = tpu.matmul %363, %261, %cst_94 {dimension_numbers = #tpu.dot_dimension_numbers<[1], [0], [0], [1], [0, 0, 1, 1], [], []>} : vector<2x128xf32>, vector<128x256xf32>, vector<2x256xf32> -> vector<2x256xf32>
    %365 = vector.broadcast %263 : vector<1x256xf32> to vector<2x256xf32>
    %366 = arith.addf %364, %365 : vector<2x256xf32>
    %367 = arith.negf %366 : vector<2x256xf32>
    %368 = math.exp %367 : vector<2x256xf32>
    %cst_95 = arith.constant 1.000000e+00 : f32
    %369 = vector.broadcast %cst_95 : f32 to vector<2x256xf32>
    %370 = arith.addf %369, %368 : vector<2x256xf32>
    %371 = arith.divf %369, %370 : vector<2x256xf32>
    %372 = vector.extract_strided_slice %371 {offsets = [0, 0], sizes = [2, 64], strides = [1, 1]} : vector<2x256xf32> to vector<2x64xf32>
    %373 = vector.extract_strided_slice %371 {offsets = [0, 64], sizes = [2, 64], strides = [1, 1]} : vector<2x256xf32> to vector<2x64xf32>
    %374 = vector.extract_strided_slice %371 {offsets = [0, 192], sizes = [2, 64], strides = [1, 1]} : vector<2x256xf32> to vector<2x64xf32>
    %375 = vector.extract_strided_slice %366 {offsets = [0, 128], sizes = [2, 64], strides = [1, 1]} : vector<2x256xf32> to vector<2x64xf32>
    %376 = math.tanh %375 : vector<2x64xf32>
    %377 = arith.mulf %373, %360 : vector<2x64xf32>
    %378 = arith.mulf %372, %376 : vector<2x64xf32>
    %379 = arith.addf %377, %378 : vector<2x64xf32>
    %380 = math.tanh %379 : vector<2x64xf32>
    %381 = arith.mulf %374, %380 : vector<2x64xf32>
    %382 = tpu.concatenate %234, %381 in 1 : vector<2x64xf32>, vector<2x64xf32> -> vector<2x128xf32>
    %cst_96 = arith.constant dense<0.000000e+00> : vector<2x256xf32>
    %383 = tpu.matmul %382, %261, %cst_96 {dimension_numbers = #tpu.dot_dimension_numbers<[1], [0], [0], [1], [0, 0, 1, 1], [], []>} : vector<2x128xf32>, vector<128x256xf32>, vector<2x256xf32> -> vector<2x256xf32>
    %384 = vector.broadcast %263 : vector<1x256xf32> to vector<2x256xf32>
    %385 = arith.addf %383, %384 : vector<2x256xf32>
    %386 = arith.negf %385 : vector<2x256xf32>
    %387 = math.exp %386 : vector<2x256xf32>
    %cst_97 = arith.constant 1.000000e+00 : f32
    %388 = vector.broadcast %cst_97 : f32 to vector<2x256xf32>
    %389 = arith.addf %388, %387 : vector<2x256xf32>
    %390 = arith.divf %388, %389 : vector<2x256xf32>
    %391 = vector.extract_strided_slice %390 {offsets = [0, 0], sizes = [2, 64], strides = [1, 1]} : vector<2x256xf32> to vector<2x64xf32>
    %392 = vector.extract_strided_slice %390 {offsets = [0, 64], sizes = [2, 64], strides = [1, 1]} : vector<2x256xf32> to vector<2x64xf32>
    %393 = vector.extract_strided_slice %390 {offsets = [0, 192], sizes = [2, 64], strides = [1, 1]} : vector<2x256xf32> to vector<2x64xf32>
    %394 = vector.extract_strided_slice %385 {offsets = [0, 128], sizes = [2, 64], strides = [1, 1]} : vector<2x256xf32> to vector<2x64xf32>
    %395 = math.tanh %394 : vector<2x64xf32>
    %396 = arith.mulf %392, %379 : vector<2x64xf32>
    %397 = arith.mulf %391, %395 : vector<2x64xf32>
    %398 = arith.addf %396, %397 : vector<2x64xf32>
    %399 = math.tanh %398 : vector<2x64xf32>
    %400 = arith.mulf %393, %399 : vector<2x64xf32>
    %401 = tpu.concatenate %253, %400 in 1 : vector<2x64xf32>, vector<2x64xf32> -> vector<2x128xf32>
    %cst_98 = arith.constant dense<0.000000e+00> : vector<2x256xf32>
    %402 = tpu.matmul %401, %261, %cst_98 {dimension_numbers = #tpu.dot_dimension_numbers<[1], [0], [0], [1], [0, 0, 1, 1], [], []>} : vector<2x128xf32>, vector<128x256xf32>, vector<2x256xf32> -> vector<2x256xf32>
    %403 = vector.broadcast %263 : vector<1x256xf32> to vector<2x256xf32>
    %404 = arith.addf %402, %403 : vector<2x256xf32>
    %405 = arith.negf %404 : vector<2x256xf32>
    %406 = math.exp %405 : vector<2x256xf32>
    %cst_99 = arith.constant 1.000000e+00 : f32
    %407 = vector.broadcast %cst_99 : f32 to vector<2x256xf32>
    %408 = arith.addf %407, %406 : vector<2x256xf32>
    %409 = arith.divf %407, %408 : vector<2x256xf32>
    %410 = vector.extract_strided_slice %409 {offsets = [0, 0], sizes = [2, 64], strides = [1, 1]} : vector<2x256xf32> to vector<2x64xf32>
    %411 = vector.extract_strided_slice %409 {offsets = [0, 64], sizes = [2, 64], strides = [1, 1]} : vector<2x256xf32> to vector<2x64xf32>
    %412 = vector.extract_strided_slice %409 {offsets = [0, 192], sizes = [2, 64], strides = [1, 1]} : vector<2x256xf32> to vector<2x64xf32>
    %413 = vector.extract_strided_slice %404 {offsets = [0, 128], sizes = [2, 64], strides = [1, 1]} : vector<2x256xf32> to vector<2x64xf32>
    %414 = math.tanh %413 : vector<2x64xf32>
    %415 = arith.mulf %411, %398 : vector<2x64xf32>
    %416 = arith.mulf %410, %414 : vector<2x64xf32>
    %417 = arith.addf %415, %416 : vector<2x64xf32>
    %418 = math.tanh %417 : vector<2x64xf32>
    %419 = arith.mulf %412, %418 : vector<2x64xf32>
    %c1_100 = arith.constant 1 : index
    %c0_101 = arith.constant 0 : index
    %c0_102 = arith.constant 0 : index
    %420 = vector.load %arg9[%c1_100, %c0_101, %c0_102] : memref<3x2x64xf32, #tpu.memory_space<vmem>>, vector<1x2x64xf32>
    %421 = vector.shape_cast %420 : vector<1x2x64xf32> to vector<2x64xf32>
    %422 = vector.shape_cast %419 : vector<2x64xf32> to vector<1x2x64xf32>
    tpu.vector_store %arg9[%c1_100, %c0_101, %c0_102], %422 {strides = array<i32>} : memref<3x2x64xf32, #tpu.memory_space<vmem>>, vector<1x2x64xf32>,
    %c1_103 = arith.constant 1 : index
    %c0_104 = arith.constant 0 : index
    %c0_105 = arith.constant 0 : index
    %423 = vector.load %arg10[%c1_103, %c0_104, %c0_105] : memref<3x2x64xf32, #tpu.memory_space<vmem>>, vector<1x2x64xf32>
    %424 = vector.shape_cast %423 : vector<1x2x64xf32> to vector<2x64xf32>
    %425 = vector.shape_cast %417 : vector<2x64xf32> to vector<1x2x64xf32>
    tpu.vector_store %arg10[%c1_103, %c0_104, %c0_105], %425 {strides = array<i32>} : memref<3x2x64xf32, #tpu.memory_space<vmem>>, vector<1x2x64xf32>,
    %c2_106 = arith.constant 2 : index
    %c0_107 = arith.constant 0 : index
    %c0_108 = arith.constant 0 : index
    %426 = vector.load %arg5[%c2_106, %c0_107, %c0_108] : memref<3x128x256xf32, #tpu.memory_space<vmem>>, vector<1x128x256xf32>
    %427 = vector.shape_cast %426 : vector<1x128x256xf32> to vector<128x256xf32>
    %c2_109 = arith.constant 2 : index
    %c0_110 = arith.constant 0 : index
    %c0_111 = arith.constant 0 : index
    %428 = vector.load %arg6[%c2_109, %c0_110, %c0_111] : memref<3x1x256xf32, #tpu.memory_space<vmem>>, vector<1x1x256xf32>
    %429 = vector.shape_cast %428 : vector<1x1x256xf32> to vector<1x256xf32>
    %c2_112 = arith.constant 2 : index
    %c0_113 = arith.constant 0 : index
    %c0_114 = arith.constant 0 : index
    %430 = vector.load %arg1[%c2_112, %c0_113, %c0_114] : memref<3x2x64xf32, #tpu.memory_space<vmem>>, vector<1x2x64xf32>
    %431 = vector.shape_cast %430 : vector<1x2x64xf32> to vector<2x64xf32>
    %c2_115 = arith.constant 2 : index
    %c0_116 = arith.constant 0 : index
    %c0_117 = arith.constant 0 : index
    %432 = vector.load %arg2[%c2_115, %c0_116, %c0_117] : memref<3x2x64xf32, #tpu.memory_space<vmem>>, vector<1x2x64xf32>
    %433 = vector.shape_cast %432 : vector<1x2x64xf32> to vector<2x64xf32>
    %434 = tpu.concatenate %286, %431 in 1 : vector<2x64xf32>, vector<2x64xf32> -> vector<2x128xf32>
    %cst_118 = arith.constant dense<0.000000e+00> : vector<2x256xf32>
    %435 = tpu.matmul %434, %427, %cst_118 {dimension_numbers = #tpu.dot_dimension_numbers<[1], [0], [0], [1], [0, 0, 1, 1], [], []>} : vector<2x128xf32>, vector<128x256xf32>, vector<2x256xf32> -> vector<2x256xf32>
    %436 = vector.broadcast %429 : vector<1x256xf32> to vector<2x256xf32>
    %437 = arith.addf %435, %436 : vector<2x256xf32>
    %438 = arith.negf %437 : vector<2x256xf32>
    %439 = math.exp %438 : vector<2x256xf32>
    %cst_119 = arith.constant 1.000000e+00 : f32
    %440 = vector.broadcast %cst_119 : f32 to vector<2x256xf32>
    %441 = arith.addf %440, %439 : vector<2x256xf32>
    %442 = arith.divf %440, %441 : vector<2x256xf32>
    %443 = vector.extract_strided_slice %442 {offsets = [0, 0], sizes = [2, 64], strides = [1, 1]} : vector<2x256xf32> to vector<2x64xf32>
    %444 = vector.extract_strided_slice %442 {offsets = [0, 64], sizes = [2, 64], strides = [1, 1]} : vector<2x256xf32> to vector<2x64xf32>
    %445 = vector.extract_strided_slice %442 {offsets = [0, 192], sizes = [2, 64], strides = [1, 1]} : vector<2x256xf32> to vector<2x64xf32>
    %446 = vector.extract_strided_slice %437 {offsets = [0, 128], sizes = [2, 64], strides = [1, 1]} : vector<2x256xf32> to vector<2x64xf32>
    %447 = math.tanh %446 : vector<2x64xf32>
    %448 = arith.mulf %444, %433 : vector<2x64xf32>
    %449 = arith.mulf %443, %447 : vector<2x64xf32>
    %450 = arith.addf %448, %449 : vector<2x64xf32>
    %451 = math.tanh %450 : vector<2x64xf32>
    %452 = arith.mulf %445, %451 : vector<2x64xf32>
    %c0_120 = arith.constant 0 : index
    %c0_121 = arith.constant 0 : index
    %c0_122 = arith.constant 0 : index
    %453 = vector.load %arg7[%c0_120, %c0_121, %c0_122] : memref<2x8x64xf32, #tpu.memory_space<vmem>>, vector<2x1x64xf32>
    %454 = vector.shape_cast %453 : vector<2x1x64xf32> to vector<2x64xf32>
    %455 = vector.shape_cast %452 : vector<2x64xf32> to vector<2x1x64xf32>
    tpu.vector_store %arg7[%c0_120, %c0_121, %c0_122], %455 {strides = array<i32>} : memref<2x8x64xf32, #tpu.memory_space<vmem>>, vector<2x1x64xf32>,
    %456 = tpu.concatenate %305, %452 in 1 : vector<2x64xf32>, vector<2x64xf32> -> vector<2x128xf32>
    %cst_123 = arith.constant dense<0.000000e+00> : vector<2x256xf32>
    %457 = tpu.matmul %456, %427, %cst_123 {dimension_numbers = #tpu.dot_dimension_numbers<[1], [0], [0], [1], [0, 0, 1, 1], [], []>} : vector<2x128xf32>, vector<128x256xf32>, vector<2x256xf32> -> vector<2x256xf32>
    %458 = vector.broadcast %429 : vector<1x256xf32> to vector<2x256xf32>
    %459 = arith.addf %457, %458 : vector<2x256xf32>
    %460 = arith.negf %459 : vector<2x256xf32>
    %461 = math.exp %460 : vector<2x256xf32>
    %cst_124 = arith.constant 1.000000e+00 : f32
    %462 = vector.broadcast %cst_124 : f32 to vector<2x256xf32>
    %463 = arith.addf %462, %461 : vector<2x256xf32>
    %464 = arith.divf %462, %463 : vector<2x256xf32>
    %465 = vector.extract_strided_slice %464 {offsets = [0, 0], sizes = [2, 64], strides = [1, 1]} : vector<2x256xf32> to vector<2x64xf32>
    %466 = vector.extract_strided_slice %464 {offsets = [0, 64], sizes = [2, 64], strides = [1, 1]} : vector<2x256xf32> to vector<2x64xf32>
    %467 = vector.extract_strided_slice %464 {offsets = [0, 192], sizes = [2, 64], strides = [1, 1]} : vector<2x256xf32> to vector<2x64xf32>
    %468 = vector.extract_strided_slice %459 {offsets = [0, 128], sizes = [2, 64], strides = [1, 1]} : vector<2x256xf32> to vector<2x64xf32>
    %469 = math.tanh %468 : vector<2x64xf32>
    %470 = arith.mulf %466, %450 : vector<2x64xf32>
    %471 = arith.mulf %465, %469 : vector<2x64xf32>
    %472 = arith.addf %470, %471 : vector<2x64xf32>
    %473 = math.tanh %472 : vector<2x64xf32>
    %474 = arith.mulf %467, %473 : vector<2x64xf32>
    %c0_125 = arith.constant 0 : index
    %c1_126 = arith.constant 1 : index
    %c0_127 = arith.constant 0 : index
    %475 = vector.load %arg7[%c0_125, %c1_126, %c0_127] : memref<2x8x64xf32, #tpu.memory_space<vmem>>, vector<2x1x64xf32>
    %476 = vector.shape_cast %475 : vector<2x1x64xf32> to vector<2x64xf32>
    %477 = vector.shape_cast %474 : vector<2x64xf32> to vector<2x1x64xf32>
    tpu.vector_store %arg7[%c0_125, %c1_126, %c0_127], %477 {strides = array<i32>} : memref<2x8x64xf32, #tpu.memory_space<vmem>>, vector<2x1x64xf32>,
    %478 = tpu.concatenate %324, %474 in 1 : vector<2x64xf32>, vector<2x64xf32> -> vector<2x128xf32>
    %cst_128 = arith.constant dense<0.000000e+00> : vector<2x256xf32>
    %479 = tpu.matmul %478, %427, %cst_128 {dimension_numbers = #tpu.dot_dimension_numbers<[1], [0], [0], [1], [0, 0, 1, 1], [], []>} : vector<2x128xf32>, vector<128x256xf32>, vector<2x256xf32> -> vector<2x256xf32>
    %480 = vector.broadcast %429 : vector<1x256xf32> to vector<2x256xf32>
    %481 = arith.addf %479, %480 : vector<2x256xf32>
    %482 = arith.negf %481 : vector<2x256xf32>
    %483 = math.exp %482 : vector<2x256xf32>
    %cst_129 = arith.constant 1.000000e+00 : f32
    %484 = vector.broadcast %cst_129 : f32 to vector<2x256xf32>
    %485 = arith.addf %484, %483 : vector<2x256xf32>
    %486 = arith.divf %484, %485 : vector<2x256xf32>
    %487 = vector.extract_strided_slice %486 {offsets = [0, 0], sizes = [2, 64], strides = [1, 1]} : vector<2x256xf32> to vector<2x64xf32>
    %488 = vector.extract_strided_slice %486 {offsets = [0, 64], sizes = [2, 64], strides = [1, 1]} : vector<2x256xf32> to vector<2x64xf32>
    %489 = vector.extract_strided_slice %486 {offsets = [0, 192], sizes = [2, 64], strides = [1, 1]} : vector<2x256xf32> to vector<2x64xf32>
    %490 = vector.extract_strided_slice %481 {offsets = [0, 128], sizes = [2, 64], strides = [1, 1]} : vector<2x256xf32> to vector<2x64xf32>
    %491 = math.tanh %490 : vector<2x64xf32>
    %492 = arith.mulf %488, %472 : vector<2x64xf32>
    %493 = arith.mulf %487, %491 : vector<2x64xf32>
    %494 = arith.addf %492, %493 : vector<2x64xf32>
    %495 = math.tanh %494 : vector<2x64xf32>
    %496 = arith.mulf %489, %495 : vector<2x64xf32>
    %c0_130 = arith.constant 0 : index
    %c2_131 = arith.constant 2 : index
    %c0_132 = arith.constant 0 : index
    %497 = vector.load %arg7[%c0_130, %c2_131, %c0_132] : memref<2x8x64xf32, #tpu.memory_space<vmem>>, vector<2x1x64xf32>
    %498 = vector.shape_cast %497 : vector<2x1x64xf32> to vector<2x64xf32>
    %499 = vector.shape_cast %496 : vector<2x64xf32> to vector<2x1x64xf32>
    tpu.vector_store %arg7[%c0_130, %c2_131, %c0_132], %499 {strides = array<i32>} : memref<2x8x64xf32, #tpu.memory_space<vmem>>, vector<2x1x64xf32>,
    %500 = tpu.concatenate %343, %496 in 1 : vector<2x64xf32>, vector<2x64xf32> -> vector<2x128xf32>
    %cst_133 = arith.constant dense<0.000000e+00> : vector<2x256xf32>
    %501 = tpu.matmul %500, %427, %cst_133 {dimension_numbers = #tpu.dot_dimension_numbers<[1], [0], [0], [1], [0, 0, 1, 1], [], []>} : vector<2x128xf32>, vector<128x256xf32>, vector<2x256xf32> -> vector<2x256xf32>
    %502 = vector.broadcast %429 : vector<1x256xf32> to vector<2x256xf32>
    %503 = arith.addf %501, %502 : vector<2x256xf32>
    %504 = arith.negf %503 : vector<2x256xf32>
    %505 = math.exp %504 : vector<2x256xf32>
    %cst_134 = arith.constant 1.000000e+00 : f32
    %506 = vector.broadcast %cst_134 : f32 to vector<2x256xf32>
    %507 = arith.addf %506, %505 : vector<2x256xf32>
    %508 = arith.divf %506, %507 : vector<2x256xf32>
    %509 = vector.extract_strided_slice %508 {offsets = [0, 0], sizes = [2, 64], strides = [1, 1]} : vector<2x256xf32> to vector<2x64xf32>
    %510 = vector.extract_strided_slice %508 {offsets = [0, 64], sizes = [2, 64], strides = [1, 1]} : vector<2x256xf32> to vector<2x64xf32>
    %511 = vector.extract_strided_slice %508 {offsets = [0, 192], sizes = [2, 64], strides = [1, 1]} : vector<2x256xf32> to vector<2x64xf32>
    %512 = vector.extract_strided_slice %503 {offsets = [0, 128], sizes = [2, 64], strides = [1, 1]} : vector<2x256xf32> to vector<2x64xf32>
    %513 = math.tanh %512 : vector<2x64xf32>
    %514 = arith.mulf %510, %494 : vector<2x64xf32>
    %515 = arith.mulf %509, %513 : vector<2x64xf32>
    %516 = arith.addf %514, %515 : vector<2x64xf32>
    %517 = math.tanh %516 : vector<2x64xf32>
    %518 = arith.mulf %511, %517 : vector<2x64xf32>
    %c0_135 = arith.constant 0 : index
    %c3_136 = arith.constant 3 : index
    %c0_137 = arith.constant 0 : index
    %519 = vector.load %arg7[%c0_135, %c3_136, %c0_137] : memref<2x8x64xf32, #tpu.memory_space<vmem>>, vector<2x1x64xf32>
    %520 = vector.shape_cast %519 : vector<2x1x64xf32> to vector<2x64xf32>
    %521 = vector.shape_cast %518 : vector<2x64xf32> to vector<2x1x64xf32>
    tpu.vector_store %arg7[%c0_135, %c3_136, %c0_137], %521 {strides = array<i32>} : memref<2x8x64xf32, #tpu.memory_space<vmem>>, vector<2x1x64xf32>,
    %522 = tpu.concatenate %362, %518 in 1 : vector<2x64xf32>, vector<2x64xf32> -> vector<2x128xf32>
    %cst_138 = arith.constant dense<0.000000e+00> : vector<2x256xf32>
    %523 = tpu.matmul %522, %427, %cst_138 {dimension_numbers = #tpu.dot_dimension_numbers<[1], [0], [0], [1], [0, 0, 1, 1], [], []>} : vector<2x128xf32>, vector<128x256xf32>, vector<2x256xf32> -> vector<2x256xf32>
    %524 = vector.broadcast %429 : vector<1x256xf32> to vector<2x256xf32>
    %525 = arith.addf %523, %524 : vector<2x256xf32>
    %526 = arith.negf %525 : vector<2x256xf32>
    %527 = math.exp %526 : vector<2x256xf32>
    %cst_139 = arith.constant 1.000000e+00 : f32
    %528 = vector.broadcast %cst_139 : f32 to vector<2x256xf32>
    %529 = arith.addf %528, %527 : vector<2x256xf32>
    %530 = arith.divf %528, %529 : vector<2x256xf32>
    %531 = vector.extract_strided_slice %530 {offsets = [0, 0], sizes = [2, 64], strides = [1, 1]} : vector<2x256xf32> to vector<2x64xf32>
    %532 = vector.extract_strided_slice %530 {offsets = [0, 64], sizes = [2, 64], strides = [1, 1]} : vector<2x256xf32> to vector<2x64xf32>
    %533 = vector.extract_strided_slice %530 {offsets = [0, 192], sizes = [2, 64], strides = [1, 1]} : vector<2x256xf32> to vector<2x64xf32>
    %534 = vector.extract_strided_slice %525 {offsets = [0, 128], sizes = [2, 64], strides = [1, 1]} : vector<2x256xf32> to vector<2x64xf32>
    %535 = math.tanh %534 : vector<2x64xf32>
    %536 = arith.mulf %532, %516 : vector<2x64xf32>
    %537 = arith.mulf %531, %535 : vector<2x64xf32>
    %538 = arith.addf %536, %537 : vector<2x64xf32>
    %539 = math.tanh %538 : vector<2x64xf32>
    %540 = arith.mulf %533, %539 : vector<2x64xf32>
    %c0_140 = arith.constant 0 : index
    %c4_141 = arith.constant 4 : index
    %c0_142 = arith.constant 0 : index
    %541 = vector.load %arg7[%c0_140, %c4_141, %c0_142] : memref<2x8x64xf32, #tpu.memory_space<vmem>>, vector<2x1x64xf32>
    %542 = vector.shape_cast %541 : vector<2x1x64xf32> to vector<2x64xf32>
    %543 = vector.shape_cast %540 : vector<2x64xf32> to vector<2x1x64xf32>
    tpu.vector_store %arg7[%c0_140, %c4_141, %c0_142], %543 {strides = array<i32>} : memref<2x8x64xf32, #tpu.memory_space<vmem>>, vector<2x1x64xf32>,
    %544 = tpu.concatenate %381, %540 in 1 : vector<2x64xf32>, vector<2x64xf32> -> vector<2x128xf32>
    %cst_143 = arith.constant dense<0.000000e+00> : vector<2x256xf32>
    %545 = tpu.matmul %544, %427, %cst_143 {dimension_numbers = #tpu.dot_dimension_numbers<[1], [0], [0], [1], [0, 0, 1, 1], [], []>} : vector<2x128xf32>, vector<128x256xf32>, vector<2x256xf32> -> vector<2x256xf32>
    %546 = vector.broadcast %429 : vector<1x256xf32> to vector<2x256xf32>
    %547 = arith.addf %545, %546 : vector<2x256xf32>
    %548 = arith.negf %547 : vector<2x256xf32>
    %549 = math.exp %548 : vector<2x256xf32>
    %cst_144 = arith.constant 1.000000e+00 : f32
    %550 = vector.broadcast %cst_144 : f32 to vector<2x256xf32>
    %551 = arith.addf %550, %549 : vector<2x256xf32>
    %552 = arith.divf %550, %551 : vector<2x256xf32>
    %553 = vector.extract_strided_slice %552 {offsets = [0, 0], sizes = [2, 64], strides = [1, 1]} : vector<2x256xf32> to vector<2x64xf32>
    %554 = vector.extract_strided_slice %552 {offsets = [0, 64], sizes = [2, 64], strides = [1, 1]} : vector<2x256xf32> to vector<2x64xf32>
    %555 = vector.extract_strided_slice %552 {offsets = [0, 192], sizes = [2, 64], strides = [1, 1]} : vector<2x256xf32> to vector<2x64xf32>
    %556 = vector.extract_strided_slice %547 {offsets = [0, 128], sizes = [2, 64], strides = [1, 1]} : vector<2x256xf32> to vector<2x64xf32>
    %557 = math.tanh %556 : vector<2x64xf32>
    %558 = arith.mulf %554, %538 : vector<2x64xf32>
    %559 = arith.mulf %553, %557 : vector<2x64xf32>
    %560 = arith.addf %558, %559 : vector<2x64xf32>
    %561 = math.tanh %560 : vector<2x64xf32>
    %562 = arith.mulf %555, %561 : vector<2x64xf32>
    %c0_145 = arith.constant 0 : index
    %c5_146 = arith.constant 5 : index
    %c0_147 = arith.constant 0 : index
    %563 = vector.load %arg7[%c0_145, %c5_146, %c0_147] : memref<2x8x64xf32, #tpu.memory_space<vmem>>, vector<2x1x64xf32>
    %564 = vector.shape_cast %563 : vector<2x1x64xf32> to vector<2x64xf32>
    %565 = vector.shape_cast %562 : vector<2x64xf32> to vector<2x1x64xf32>
    tpu.vector_store %arg7[%c0_145, %c5_146, %c0_147], %565 {strides = array<i32>} : memref<2x8x64xf32, #tpu.memory_space<vmem>>, vector<2x1x64xf32>,
    %566 = tpu.concatenate %400, %562 in 1 : vector<2x64xf32>, vector<2x64xf32> -> vector<2x128xf32>
    %cst_148 = arith.constant dense<0.000000e+00> : vector<2x256xf32>
    %567 = tpu.matmul %566, %427, %cst_148 {dimension_numbers = #tpu.dot_dimension_numbers<[1], [0], [0], [1], [0, 0, 1, 1], [], []>} : vector<2x128xf32>, vector<128x256xf32>, vector<2x256xf32> -> vector<2x256xf32>
    %568 = vector.broadcast %429 : vector<1x256xf32> to vector<2x256xf32>
    %569 = arith.addf %567, %568 : vector<2x256xf32>
    %570 = arith.negf %569 : vector<2x256xf32>
    %571 = math.exp %570 : vector<2x256xf32>
    %cst_149 = arith.constant 1.000000e+00 : f32
    %572 = vector.broadcast %cst_149 : f32 to vector<2x256xf32>
    %573 = arith.addf %572, %571 : vector<2x256xf32>
    %574 = arith.divf %572, %573 : vector<2x256xf32>
    %575 = vector.extract_strided_slice %574 {offsets = [0, 0], sizes = [2, 64], strides = [1, 1]} : vector<2x256xf32> to vector<2x64xf32>
    %576 = vector.extract_strided_slice %574 {offsets = [0, 64], sizes = [2, 64], strides = [1, 1]} : vector<2x256xf32> to vector<2x64xf32>
    %577 = vector.extract_strided_slice %574 {offsets = [0, 192], sizes = [2, 64], strides = [1, 1]} : vector<2x256xf32> to vector<2x64xf32>
    %578 = vector.extract_strided_slice %569 {offsets = [0, 128], sizes = [2, 64], strides = [1, 1]} : vector<2x256xf32> to vector<2x64xf32>
    %579 = math.tanh %578 : vector<2x64xf32>
    %580 = arith.mulf %576, %560 : vector<2x64xf32>
    %581 = arith.mulf %575, %579 : vector<2x64xf32>
    %582 = arith.addf %580, %581 : vector<2x64xf32>
    %583 = math.tanh %582 : vector<2x64xf32>
    %584 = arith.mulf %577, %583 : vector<2x64xf32>
    %c0_150 = arith.constant 0 : index
    %c6_151 = arith.constant 6 : index
    %c0_152 = arith.constant 0 : index
    %585 = vector.load %arg7[%c0_150, %c6_151, %c0_152] : memref<2x8x64xf32, #tpu.memory_space<vmem>>, vector<2x1x64xf32>
    %586 = vector.shape_cast %585 : vector<2x1x64xf32> to vector<2x64xf32>
    %587 = vector.shape_cast %584 : vector<2x64xf32> to vector<2x1x64xf32>
    tpu.vector_store %arg7[%c0_150, %c6_151, %c0_152], %587 {strides = array<i32>} : memref<2x8x64xf32, #tpu.memory_space<vmem>>, vector<2x1x64xf32>,
    %588 = tpu.concatenate %419, %584 in 1 : vector<2x64xf32>, vector<2x64xf32> -> vector<2x128xf32>
    %cst_153 = arith.constant dense<0.000000e+00> : vector<2x256xf32>
    %589 = tpu.matmul %588, %427, %cst_153 {dimension_numbers = #tpu.dot_dimension_numbers<[1], [0], [0], [1], [0, 0, 1, 1], [], []>} : vector<2x128xf32>, vector<128x256xf32>, vector<2x256xf32> -> vector<2x256xf32>
    %590 = vector.broadcast %429 : vector<1x256xf32> to vector<2x256xf32>
    %591 = arith.addf %589, %590 : vector<2x256xf32>
    %592 = arith.negf %591 : vector<2x256xf32>
    %593 = math.exp %592 : vector<2x256xf32>
    %cst_154 = arith.constant 1.000000e+00 : f32
    %594 = vector.broadcast %cst_154 : f32 to vector<2x256xf32>
    %595 = arith.addf %594, %593 : vector<2x256xf32>
    %596 = arith.divf %594, %595 : vector<2x256xf32>
    %597 = vector.extract_strided_slice %596 {offsets = [0, 0], sizes = [2, 64], strides = [1, 1]} : vector<2x256xf32> to vector<2x64xf32>
    %598 = vector.extract_strided_slice %596 {offsets = [0, 64], sizes = [2, 64], strides = [1, 1]} : vector<2x256xf32> to vector<2x64xf32>
    %599 = vector.extract_strided_slice %596 {offsets = [0, 192], sizes = [2, 64], strides = [1, 1]} : vector<2x256xf32> to vector<2x64xf32>
    %600 = vector.extract_strided_slice %591 {offsets = [0, 128], sizes = [2, 64], strides = [1, 1]} : vector<2x256xf32> to vector<2x64xf32>
    %601 = math.tanh %600 : vector<2x64xf32>
    %602 = arith.mulf %598, %582 : vector<2x64xf32>
    %603 = arith.mulf %597, %601 : vector<2x64xf32>
    %604 = arith.addf %602, %603 : vector<2x64xf32>
    %605 = math.tanh %604 : vector<2x64xf32>
    %606 = arith.mulf %599, %605 : vector<2x64xf32>
    %c0_155 = arith.constant 0 : index
    %c7 = arith.constant 7 : index
    %c0_156 = arith.constant 0 : index
    %607 = vector.load %arg7[%c0_155, %c7, %c0_156] : memref<2x8x64xf32, #tpu.memory_space<vmem>>, vector<2x1x64xf32>
    %608 = vector.shape_cast %607 : vector<2x1x64xf32> to vector<2x64xf32>
    %609 = vector.shape_cast %606 : vector<2x64xf32> to vector<2x1x64xf32>
    tpu.vector_store %arg7[%c0_155, %c7, %c0_156], %609 {strides = array<i32>} : memref<2x8x64xf32, #tpu.memory_space<vmem>>, vector<2x1x64xf32>,
    %c2_157 = arith.constant 2 : index
    %c0_158 = arith.constant 0 : index
    %c0_159 = arith.constant 0 : index
    %610 = vector.load %arg9[%c2_157, %c0_158, %c0_159] : memref<3x2x64xf32, #tpu.memory_space<vmem>>, vector<1x2x64xf32>
    %611 = vector.shape_cast %610 : vector<1x2x64xf32> to vector<2x64xf32>
    %612 = vector.shape_cast %606 : vector<2x64xf32> to vector<1x2x64xf32>
    tpu.vector_store %arg9[%c2_157, %c0_158, %c0_159], %612 {strides = array<i32>} : memref<3x2x64xf32, #tpu.memory_space<vmem>>, vector<1x2x64xf32>,
    %c2_160 = arith.constant 2 : index
    %c0_161 = arith.constant 0 : index
    %c0_162 = arith.constant 0 : index
    %613 = vector.load %arg10[%c2_160, %c0_161, %c0_162] : memref<3x2x64xf32, #tpu.memory_space<vmem>>, vector<1x2x64xf32>
    %614 = vector.shape_cast %613 : vector<1x2x64xf32> to vector<2x64xf32>
    %615 = vector.shape_cast %604 : vector<2x64xf32> to vector<1x2x64xf32>
    tpu.vector_store %arg10[%c2_160, %c0_161, %c0_162], %615 {strides = array<i32>} : memref<3x2x64xf32, #tpu.memory_space<vmem>>, vector<1x2x64xf32>,
    return
  }
}

</mosaic_0001>

<bundles_post_ra>
// kernel: tpu_custom_call.1
= control target key start
LH: loop header
LB: loop body
LE: loop exit
PB: predicated region body
PF: predicated region fallthrough
CT: control target
= control target key end

     0   :  { %16 = vsyncpa [#allocation3], 0  ;;  %s9621_s0 = inlined_call_operand.vmem [shape: f32[16,16,3], index: 0, kind: input, shape index: {}]   ;;  %s9622_s1 = inlined_call_operand.vmem [shape: f32[3,2,64], index: 1, kind: input, shape index: {}]   ;;  %s9623_s2 = inlined_call_operand.vmem [shape: f32[3,2,64], index: 2, kind: input, shape index: {}]   ;;  %s9624_s3 = inlined_call_operand.hbm [shape: f32[7,64,64], index: 3, kind: input, shape index: {}]   ;;  %s9625_s4 = inlined_call_operand.vmem [shape: f32[7,64], index: 4, kind: input, shape index: {}]   ;;  %s9626_s5 = inlined_call_operand.hbm [shape: f32[3,128,256], index: 5, kind: input, shape index: {}]   ;;  %s9627_s6 = inlined_call_operand.vmem [shape: f32[3,1,256], index: 6, kind: input, shape index: {}]   ;;  %s9628_s7 = inlined_call_operand.hbm [shape: f32[2,8,64], index: 7, kind: output, shape index: {0}]   ;;  %s9629_s8 = inlined_call_operand.vmem [shape: f32[16,16,1], index: 8, kind: output, shape index: {1}]   ;;  %s9630_s9 = inlined_call_operand.hbm [shape: f32[3,2,64], index: 9, kind: output, shape index: {2}]   ;;  %s9631_s10 = inlined_call_operand.hbm [shape: f32[3,2,64], index: 10, kind: output, shape index: {3}]  }
   0x1   :  { %17 = vsyncpa [#allocation6], 0 }
   0x2   :  { %18 = vsyncpa [#allocation4], 0 }
   0x3   :  { %19 = vsyncpa [#allocation9], 0  ;;  %s30_s15 = sshll.u32 %s9624_s3, 4  ;;  %s6527_s16 = smov [#allocation2]   ;;  %s31_s15 = int_to_ptr.hbm [resolvable:$true] %s30_s15 }
   0x4   :  { %s32_s17 = sshll.u32 %s6527_s16, 4  ;;  %s45_s20 = sshll.u32 %s9626_s5, 4  ;;  %s33_s17 = int_to_ptr.vmem [resolvable:$true] %s32_s17  ;;  %s46_s20 = int_to_ptr.hbm [resolvable:$true] %s45_s20 }
   0x5   :  { %s6528_s21 = smov 128   ;;  %s6529_s22 = smov 8  }
   0x6   :  { %38 = dma.hbm_to_vmem [thread:$0]  %s31_s15, 7168, %s33_s17, [#allocation3], %s6528_s21, %s6528_s21, %s6529_s22  }
   0x7   :  { %s6530_s23 = smov [#allocation5]   ;;  %s6531_s25 = smov 256  }
   0x8   :  { %s47_s24 = sshll.u32 %s6530_s23, 4  ;;  %s6532_s3 = smov 16   ;;  %s48_s24 = int_to_ptr.vmem [resolvable:$true] %s47_s24 }
   0x9   :  { %53 = dma.hbm_to_vmem [thread:$0]  %s46_s20, 12288, %s48_s24, [#allocation6], %s6531_s25, %s6531_s25, %s6532_s3  }
   0xa   :  { %6519 = dma.done.wait [#allocation3], 7168  }
   0xb   :  { %6520 = vsyncadd [#allocation3], 4294960128 }
   0xc   :  { %6521 = dma.done.wait [#allocation6], 12288  }
   0xd   :  { %6522 = vsyncadd [#allocation6], 4294955008  ;;  %vm196_vm0 = vcmask 1042432   ;;  %vm99_vm1 = vcmask 23552   ;;  %v97_v0 = vld [vmem:[#allocation2] sm:$0xff]  ;;  %v6615_v2 = vld [vmem:[%s9621_s0 + $0x8] sm:$0xff] }
   0xe   :  { %v6607_v1 = vld [vmem:[%s9621_s0] sm:$0xff]  ;;  %5576 = vmatpush.msk.msra.mxu0 %vm196_vm0, %v97_v0  ;;  %v6622_v3 = vld [vmem:[%s9621_s0 + $0x10] sm:$0xff]  ;;  %v6629_v4 = vld [vmem:[%s9621_s0 + $0x18] sm:$0xff]  ;;  %vm355_vm2 = vcmask 523264   ;;  %vm2000_vm3 = vcmask 7168   ;;  %s6534_s13 = smov 64  }
   0xf   :  { %5577 = vmatmul.msk.f32.vlgmr.msra.gmra.mxu0 %vm99_vm1, %v6607_v1  ;;  %v6636_v5 = vld [vmem:[%s9621_s0 + $0x20] sm:$0xff]  ;;  %v6643_v6 = vld [vmem:[%s9621_s0 + $0x28] sm:$0xff]  ;;  %v6650_v7 = vld [vmem:[%s9621_s0 + $0x30] sm:$0xff]  ;;  %s6537_s11 = smov 2   ;;  %s5551_s16 = sshll.u32 %s9631_s10, 4  ;;  %s5552_s16 = int_to_ptr.hbm [resolvable:$true] %s5551_s16 }
  0x10   :  { %v6657_v8 = vld [vmem:[%s9621_s0 + $0x38] sm:$0xff]  ;;  %v6664_v9 = vld [vmem:[%s9621_s0 + $0x40] sm:$0xff]  ;;  %v6671_v10 = vld [vmem:[%s9621_s0 + $0x48] sm:$0xff]  ;;  %s5523_s19 = sshll.u32 %s9628_s7, 4  ;;  %s5524_s19 = int_to_ptr.hbm [resolvable:$true] %s5523_s19 }
  0x11   :  { %v6678_v11 = vld [vmem:[%s9621_s0 + $0x50] sm:$0xff]  ;;  %v353_v12 = vld [vmem:[#allocation2 + $0x78] sm:$0xff]  ;;  %v351_v14 = vld [vmem:[#allocation2 + $0x68] sm:$0xff] }
  0x12   :  { %v352_v13 = vld [vmem:[#allocation2 + $0x70] sm:$0xff]  ;;  %460 = vmatpush.msra.mxu1 %v353_v12  ;;  %v6685_v15 = vld [vmem:[%s9621_s0 + $0x58] sm:$0xff]  ;;  %v350_v16 = vld [vmem:[#allocation2 + $0x60] sm:$0xff] }
  0x13   :  { %v349_v17 = vld [vmem:[#allocation2 + $0x58] sm:$0xff]  ;;  %v348_v18 = vld [vmem:[#allocation2 + $0x50] sm:$0xff]  ;;  %v6692_v19 = vld [vmem:[%s9621_s0 + $0x60] sm:$0xff] }
  0x14   :  { %461 = vmatpush.msra.mxu1 %v352_v13  ;;  %v347_v20 = vld [vmem:[#allocation2 + $0x48] sm:$0xff]  ;;  %v346_v21 = vld [vmem:[#allocation2 + $0x40] sm:$0xff]  ;;  %v6706_v23 = vld [vmem:[%s9621_s0 + $0x70] sm:$0xff] }
  0x15   :  { %v6699_v22 = vld [vmem:[%s9621_s0 + $0x68] sm:$0xff]  ;;  %v6710_v24 = vld [vmem:[#allocation2 + $0xc0] sm:$0xff]  ;;  %v6717_v25 = vld [vmem:[%s9621_s0 + $0x78] sm:$0xff] }
  0x16   :  { %462 = vmatpush.msra.mxu1 %v351_v14  ;;  %5705 = vmatpush.msk.msrb.mxu0 %vm196_vm0, %v6710_v24  ;;  %v6722_v26 = vld [vmem:[%s9625_s4] sm:$0x7f]  ;;  %v6741_v33 = vld [vmem:[%s9621_s0 + $0x88] sm:$0xff]  ;;  %v6750_v37 = vld [vmem:[%s9621_s0 + $0x90] sm:$0xff] }
  0x17   :  { %5578 = vmatmul.msk.f32.gmra.mxu0 %vm99_vm1, %v6615_v2  ;;  %v6727_v27 = vperm.slane %v6722_v26, 0  ;;  %v6732_v29 = vld [vmem:[%s9621_s0 + $0x80] sm:$0xff]  ;;  %v6759_v41 = vld [vmem:[%s9621_s0 + $0x98] sm:$0xff]  ;;  %v6777_v49 = vld [vmem:[%s9621_s0 + $0xa8] sm:$0xff] }
  0x18   :  { %463 = vmatpush.msra.mxu1 %v350_v16  ;;  %v6768_v45 = vld [vmem:[%s9621_s0 + $0xa0] sm:$0xff]  ;;  %v605_v14 = vld [vmem:[#allocation2 + $0xb8] sm:$0xff] }
  0x19   :  { %711 = vmatpush.msra.mxu2 %v605_v14 }
  0x1a   :  { %464 = vmatpush.msra.mxu1 %v349_v17 }
  0x1c   :  { %465 = vmatpush.msra.mxu1 %v348_v18  ;;  %v604_v18 = vld [vmem:[#allocation2 + $0xb0] sm:$0xff] }
  0x1d   :  { %712 = vmatpush.msra.mxu2 %v604_v18 }
  0x1e   :  { %466 = vmatpush.msra.mxu1 %v347_v20 }
  0x1f   :  { %5579 = vmatmul.msk.f32.gmra.mxu0 %vm99_vm1, %v6622_v3 }
  0x20   :  { %467 = vmatpush.msra.mxu1 %v346_v21  ;;  %v603_v21 = vld [vmem:[#allocation2 + $0xa8] sm:$0xff] }
  0x21   :  { %713 = vmatpush.msra.mxu2 %v603_v21 }
  0x27   :  { %5580 = vmatmul.msk.f32.gmra.mxu0 %vm99_vm1, %v6629_v4 }
  0x2f   :  { %5581 = vmatmul.msk.f32.gmra.mxu0 %vm99_vm1, %v6636_v5 }
  0x37   :  { %5582 = vmatmul.msk.f32.gmra.mxu0 %vm99_vm1, %v6643_v6 }
  0x3f   :  { %5583 = vmatmul.msk.f32.gmra.mxu0 %vm99_vm1, %v6650_v7 }
  0x47   :  { %5584 = vmatmul.msk.f32.gmra.mxu0 %vm99_vm1, %v6657_v8 }
  0x4f   :  { %5585 = vmatmul.msk.f32.gmra.mxu0 %vm99_vm1, %v6664_v9 }
  0x57   :  { %5586 = vmatmul.msk.f32.gmra.mxu0 %vm99_vm1, %v6671_v10 }
  0x5f   :  { %5587 = vmatmul.msk.f32.gmra.mxu0 %vm99_vm1, %v6678_v11 }
  0x67   :  { %5588 = vmatmul.msk.f32.gmra.mxu0 %vm99_vm1, %v6685_v15 }
  0x6f   :  { %5589 = vmatmul.msk.f32.gmra.mxu0 %vm99_vm1, %v6692_v19 }
  0x77   :  { %5590 = vmatmul.msk.f32.gmra.mxu0 %vm99_vm1, %v6699_v22 }
  0x7f   :  { %5591 = vmatmul.msk.f32.gmra.mxu0 %vm99_vm1, %v6706_v23 }
  0x87   :  { %5592 = vmatmul.msk.f32.gmra.mxu0 %vm99_vm1, %v6717_v25 }
  0x8c   :  { %v217_v28 = vpop.f32.mrf.mxu0 }
  0x8d   :  { %v218_v30 = vadd.f32 %v217_v28, %v6727_v27  ;;  %v602_v28 = vld [vmem:[#allocation2 + $0xa0] sm:$0xff] }
  0x8e   :  { %714 = vmatpush.msra.mxu2 %v602_v28 }
  0x8f   :  { %v313_v31 = vmax.f32 %v218_v30, 0.0  ;;  %5593 = vmatmul.msk.f32.gmra.mxu0 %vm99_vm1, %v6732_v29  ;;  %v601_v30 = vld [vmem:[#allocation2 + $0x98] sm:$0xff] }
  0x90   :  { %715 = vmatpush.msra.mxu2 %v601_v30 }
  0x91   :  { %5609 = vmatmul.msk.f32.vlgmr.msra.gmra.mxu1 %vm355_vm2, %v313_v31 }
  0x94   :  { %v220_v32 = vpop.f32.mrf.mxu0 }
  0x95   :  { %v221_v34 = vadd.f32 %v220_v32, %v6727_v27 }
  0x97   :  { %v314_v35 = vmax.f32 %v221_v34, 0.0  ;;  %5594 = vmatmul.msk.f32.gmra.mxu0 %vm99_vm1, %v6741_v33  ;;  %v600_v34 = vld [vmem:[#allocation2 + $0x90] sm:$0xff] }
  0x98   :  { %716 = vmatpush.msra.mxu2 %v600_v34  ;;  %v1254_v34 = vld [vmem:[#allocation2 + $0x130] sm:$0xff] }
  0x99   :  { %5610 = vmatmul.msk.f32.gmra.mxu1 %vm355_vm2, %v314_v35 }
  0x9c   :  { %v223_v36 = vpop.f32.mrf.mxu0 }
  0x9d   :  { %v224_v38 = vadd.f32 %v223_v36, %v6727_v27  ;;  %v599_v36 = vld [vmem:[#allocation2 + $0x88] sm:$0xff] }
  0x9e   :  { %717 = vmatpush.msra.mxu2 %v599_v36 }
  0x9f   :  { %v315_v39 = vmax.f32 %v224_v38, 0.0  ;;  %5595 = vmatmul.msk.f32.gmra.mxu0 %vm99_vm1, %v6750_v37  ;;  %v598_v38 = vld [vmem:[#allocation2 + $0x80] sm:$0xff] }
  0xa0   :  { %718 = vmatpush.msra.mxu2 %v598_v38 }
  0xa1   :  { %5611 = vmatmul.msk.f32.gmra.mxu1 %vm355_vm2, %v315_v39 }
  0xa4   :  { %v226_v40 = vpop.f32.mrf.mxu0 }
  0xa5   :  { %v227_v42 = vadd.f32 %v226_v40, %v6727_v27 }
  0xa7   :  { %v316_v43 = vmax.f32 %v227_v42, 0.0  ;;  %5596 = vmatmul.msk.f32.gmra.mxu0 %vm99_vm1, %v6759_v41 }
  0xa9   :  { %5612 = vmatmul.msk.f32.gmra.mxu1 %vm355_vm2, %v316_v43  ;;  %v6802_v43 = vld [vmem:[%s9621_s0 + $0xb0] sm:$0xff] }
  0xac   :  { %v229_v44 = vpop.f32.mrf.mxu0 }
  0xad   :  { %v230_v46 = vadd.f32 %v229_v44, %v6727_v27 }
  0xaf   :  { %v317_v47 = vmax.f32 %v230_v46, 0.0  ;;  %5597 = vmatmul.msk.f32.gmra.mxu0 %vm99_vm1, %v6768_v45 }
  0xb1   :  { %5613 = vmatmul.msk.f32.gmra.mxu1 %vm355_vm2, %v317_v47 }
  0xb4   :  { %v232_v48 = vpop.f32.mrf.mxu0 }
  0xb5   :  { %v233_v50 = vadd.f32 %v232_v48, %v6727_v27  ;;  %v6811_v48 = vld [vmem:[%s9621_s0 + $0xb8] sm:$0xff] }
  0xb7   :  { %v318_v51 = vmax.f32 %v233_v50, 0.0  ;;  %5598 = vmatmul.msk.f32.gmra.mxu0 %vm99_vm1, %v6777_v49 }
  0xb9   :  { %5614 = vmatmul.msk.f32.gmra.mxu1 %vm355_vm2, %v318_v51 }
  0xbc   :  { %v235_v52 = vpop.f32.mrf.mxu0 }
  0xbd   :  { %v236_v53 = vadd.f32 %v235_v52, %v6727_v27 }
  0xbf   :  { %v319_v54 = vmax.f32 %v236_v53, 0.0  ;;  %5599 = vmatmul.msk.f32.gmra.mxu0 %vm99_vm1, %v6802_v43  ;;  %v1255_v53 = vld [vmem:[#allocation2 + $0x138] sm:$0xff] }
  0xc0   :  { %1361 = vmatpush.msrb.mxu1 %v1255_v53 }
  0xc1   :  { %5615 = vmatmul.msk.f32.gmra.mxu1 %vm355_vm2, %v319_v54  ;;  %v6820_v54 = vld [vmem:[%s9621_s0 + $0xc0] sm:$0xff] }
  0xc2   :  { %1362 = vmatpush.msrb.mxu1 %v1254_v34 }
  0xc4   :  { %v238_v55 = vpop.f32.mrf.mxu0 }
  0xc5   :  { %v239_v56 = vadd.f32 %v238_v55, %v6727_v27  ;;  %v6825_v55 = vperm.slane %v6722_v26, 1 }
  0xc7   :  { %v320_v57 = vmax.f32 %v239_v56, 0.0  ;;  %5600 = vmatmul.msk.f32.gmra.mxu0 %vm99_vm1, %v6811_v48 }
  0xc9   :  { %5616 = vmatmul.msk.f32.gmra.mxu1 %vm355_vm2, %v320_v57 }
  0xcc   :  { %v241_v58 = vpop.f32.mrf.mxu0 }
  0xcd   :  { %v242_v59 = vadd.f32 %v241_v58, %v6727_v27 }
  0xcf   :  { %v321_v60 = vmax.f32 %v242_v59, 0.0  ;;  %5601 = vmatmul.msk.f32.gmra.mxu0 %vm99_vm1, %v6820_v54 }
  0xd1   :  { %5617 = vmatmul.msk.f32.gmra.mxu1 %vm355_vm2, %v321_v60 }
  0xd4   :  { %v244_v61 = vpop.f32.mrf.mxu0 }
  0xd5   :  { %v245_v62 = vadd.f32 %v244_v61, %v6727_v27 }
  0xd7   :  { %v322_v63 = vmax.f32 %v245_v62, 0.0  ;;  %v6833_v62 = vld [vmem:[%s9621_s0 + $0xc8] sm:$0xff] }
  0xd8   :  { %5602 = vmatmul.msk.f32.gmra.mxu0 %vm99_vm1, %v6833_v62 }
  0xd9   :  { %5618 = vmatmul.msk.f32.gmra.mxu1 %vm355_vm2, %v322_v63 }
  0xdc   :  { %v247_v0 = vpop.f32.mrf.mxu0 }
  0xdd   :  { %v248_v12 = vadd.f32 %v247_v0, %v6727_v27 }
  0xdf   :  { %v323_v13 = vmax.f32 %v248_v12, 0.0 }
  0xe1   :  { %5619 = vmatmul.msk.f32.gmra.mxu1 %vm355_vm2, %v323_v13 }
  0xe4   :  { %v250_v16 = vpop.f32.mrf.mxu0 }
  0xe5   :  { %v251_v17 = vadd.f32 %v250_v16, %v6727_v27 }
  0xe7   :  { %v324_v20 = vmax.f32 %v251_v17, 0.0  ;;  %v6844_v17 = vld [vmem:[%s9621_s0 + $0xd0] sm:$0xff] }
  0xe8   :  { %5603 = vmatmul.msk.f32.gmra.mxu0 %vm99_vm1, %v6844_v17 }
  0xe9   :  { %5620 = vmatmul.msk.f32.gmra.mxu1 %vm355_vm2, %v324_v20 }
  0xec   :  { %v253_v31 = vpop.f32.mrf.mxu0 }
  0xed   :  { %v254_v32 = vadd.f32 %v253_v31, %v6727_v27 }
  0xef   :  { %v325_v35 = vmax.f32 %v254_v32, 0.0  ;;  %v6855_v32 = vld [vmem:[%s9621_s0 + $0xd8] sm:$0xff] }
  0xf0   :  { %5604 = vmatmul.msk.f32.gmra.mxu0 %vm99_vm1, %v6855_v32 }
  0xf1   :  { %5621 = vmatmul.msk.f32.gmra.mxu1 %vm355_vm2, %v325_v35 }
  0xf4   :  { %v256_v39 = vpop.f32.mrf.mxu0 }
  0xf5   :  { %v257_v40 = vadd.f32 %v256_v39, %v6727_v27 }
  0xf7   :  { %v326_v42 = vmax.f32 %v257_v40, 0.0 }
  0xf9   :  { %5622 = vmatmul.msk.f32.gmra.mxu1 %vm355_vm2, %v326_v42 }
  0xfc   :  { %v259_v44 = vpop.f32.mrf.mxu0 }
  0xfd   :  { %v260_v46 = vadd.f32 %v259_v44, %v6727_v27  ;;  %v6866_v44 = vld [vmem:[%s9621_s0 + $0xe0] sm:$0xff] }
  0xfe   :  { %5605 = vmatmul.msk.f32.gmra.mxu0 %vm99_vm1, %v6866_v44 }
  0xff   :  { %v327_v47 = vmax.f32 %v260_v46, 0.0 }
 0x101   :  { %5623 = vmatmul.msk.f32.gmra.mxu1 %vm355_vm2, %v327_v47 }
 0x104   :  { %v262_v50 = vpop.f32.mrf.mxu0 }
 0x105   :  { %v263_v51 = vadd.f32 %v262_v50, %v6727_v27 }
 0x107   :  { %v328_v52 = vmax.f32 %v263_v51, 0.0 }
 0x109   :  { %5624 = vmatmul.msk.f32.gmra.mxu1 %vm355_vm2, %v328_v52 }
 0x10c   :  { %v265_v56 = vpop.f32.mrf.mxu0 }
 0x10d   :  { %v266_v57 = vadd.f32 %v265_v56, %v6727_v27  ;;  %v6877_v56 = vld [vmem:[%s9621_s0 + $0xe8] sm:$0xff] }
 0x10e   :  { %v469_v58 = vpop.f32.mrf.mxu1  ;;  %5606 = vmatmul.msk.f32.gmra.mxu0 %vm99_vm1, %v6877_v56 }
 0x10f   :  { %v329_v59 = vmax.f32 %v266_v57, 0.0  ;;  %v470_v60 = vadd.f32 %v469_v58, %v6825_v55 }
 0x111   :  { %v565_v61 = vmax.f32 %v470_v60, 0.0  ;;  %5625 = vmatmul.msk.f32.gmra.mxu1 %vm355_vm2, %v329_v59 }
 0x113   :  { %5641 = vmatmul.msk.f32.vlgmr.msra.gmra.mxu2 %vm355_vm2, %v565_v61 }
 0x114   :  { %v268_v63 = vpop.f32.mrf.mxu0 }
 0x115   :  { %v269_v0 = vadd.f32 %v268_v63, %v6727_v27 }
 0x116   :  { %v472_v12 = vpop.f32.mrf.mxu1 }
 0x117   :  { %v330_v13 = vmax.f32 %v269_v0, 0.0  ;;  %v473_v14 = vadd.f32 %v472_v12, %v6825_v55  ;;  %v6888_v0 = vld [vmem:[%s9621_s0 + $0xf0] sm:$0xff] }
 0x118   :  { %5607 = vmatmul.msk.f32.gmra.mxu0 %vm99_vm1, %v6888_v0 }
 0x119   :  { %v566_v16 = vmax.f32 %v473_v14, 0.0  ;;  %5626 = vmatmul.msk.f32.gmra.mxu1 %vm355_vm2, %v330_v13 }
 0x11b   :  { %5642 = vmatmul.msk.f32.gmra.mxu2 %vm355_vm2, %v566_v16  ;;  %v6897_v16 = vld [vmem:[%s9621_s0 + $0xf8] sm:$0xff]  ;;  %s5538_s0 = sshll.u32 %s9630_s9, 4  ;;  %s6539_s9 = smov [#allocation7]   ;;  %s5539_s0 = int_to_ptr.hbm [resolvable:$true] %s5538_s0 }
 0x11c   :  { %v271_v18 = vpop.f32.mrf.mxu0  ;;  %s5521_s17 = sshll.u32 %s6539_s9, 4  ;;  %s5522_s17 = int_to_ptr.vmem [resolvable:$true] %s5521_s17 }
 0x11d   :  { %v272_v20 = vadd.f32 %v271_v18, %v6727_v27  ;;  %v1253_v18 = vld [vmem:[#allocation2 + $0x128] sm:$0xff] }
 0x11e   :  { %v475_v21 = vpop.f32.mrf.mxu1  ;;  %1363 = vmatpush.msrb.mxu1 %v1253_v18 }
 0x11f   :  { %v331_v28 = vmax.f32 %v272_v20, 0.0  ;;  %v476_v30 = vadd.f32 %v475_v21, %v6825_v55 }
 0x120   :  { %5608 = vmatmul.msk.f32.gmra.mxu0 %vm99_vm1, %v6897_v16 }
 0x121   :  { %v567_v31 = vmax.f32 %v476_v30, 0.0  ;;  %5627 = vmatmul.msk.f32.gmra.mxu1 %vm355_vm2, %v331_v28 }
 0x123   :  { %5643 = vmatmul.msk.f32.gmra.mxu2 %vm355_vm2, %v567_v31 }
 0x124   :  { %v274_v35 = vpop.f32.mrf.mxu0 }
 0x125   :  { %v275_v36 = vadd.f32 %v274_v35, %v6727_v27 }
 0x126   :  { %v478_v38 = vpop.f32.mrf.mxu1 }
 0x127   :  { %v332_v39 = vmax.f32 %v275_v36, 0.0  ;;  %v479_v40 = vadd.f32 %v478_v38, %v6825_v55 }
 0x128   :  { %5706 = vmatmul.msk.f32.vlgmr.msrb.gmra.mxu0 %vm99_vm1, %v6607_v1 }
 0x129   :  { %v568_v42 = vmax.f32 %v479_v40, 0.0  ;;  %5628 = vmatmul.msk.f32.gmra.mxu1 %vm355_vm2, %v332_v39 }
 0x12b   :  { %5644 = vmatmul.msk.f32.gmra.mxu2 %vm355_vm2, %v568_v42 }
 0x12c   :  { %v277_v46 = vpop.f32.mrf.mxu0 }
 0x12d   :  { %v278_v47 = vadd.f32 %v277_v46, %v6727_v27 }
 0x12e   :  { %v481_v50 = vpop.f32.mrf.mxu1 }
 0x12f   :  { %v333_v51 = vmax.f32 %v278_v47, 0.0  ;;  %v482_v52 = vadd.f32 %v481_v50, %v6825_v55  ;;  %v855_v50 = vld [vmem:[#allocation2 + $0xf0] sm:$0xff] }
 0x130   :  { %5707 = vmatmul.msk.f32.gmra.mxu0 %vm99_vm1, %v6615_v2  ;;  %v1252_v2 = vld [vmem:[#allocation2 + $0x120] sm:$0xff] }
 0x131   :  { %v569_v53 = vmax.f32 %v482_v52, 0.0  ;;  %5629 = vmatmul.msk.f32.gmra.mxu1 %vm355_vm2, %v333_v51  ;;  %v854_v52 = vld [vmem:[#allocation2 + $0xe8] sm:$0xff] }
 0x132   :  { %1364 = vmatpush.msrb.mxu1 %v1252_v2 }
 0x133   :  { %5645 = vmatmul.msk.f32.gmra.mxu2 %vm355_vm2, %v569_v53 }
 0x134   :  { %v280_v57 = vpop.f32.mrf.mxu0 }
 0x135   :  { %v281_v58 = vadd.f32 %v280_v57, %v6727_v27  ;;  %v853_v57 = vld [vmem:[#allocation2 + $0xe0] sm:$0xff] }
 0x136   :  { %v484_v59 = vpop.f32.mrf.mxu1 }
 0x137   :  { %v334_v60 = vmax.f32 %v281_v58, 0.0  ;;  %v485_v61 = vadd.f32 %v484_v59, %v6825_v55  ;;  %v851_v58 = vld [vmem:[#allocation2 + $0xd0] sm:$0xff] }
 0x138   :  { %5708 = vmatmul.msk.f32.gmra.mxu0 %vm99_vm1, %v6622_v3  ;;  %v856_v3 = vld [vmem:[#allocation2 + $0xf8] sm:$0xff] }
 0x139   :  { %v570_v63 = vmax.f32 %v485_v61, 0.0  ;;  %5630 = vmatmul.msk.f32.gmra.mxu1 %vm355_vm2, %v334_v60  ;;  %961 = vmatpush.msra.mxu3 %v856_v3 }
 0x13b   :  { %5646 = vmatmul.msk.f32.gmra.mxu2 %vm355_vm2, %v570_v63  ;;  %962 = vmatpush.msra.mxu3 %v855_v50  ;;  %v850_v63 = vld [vmem:[#allocation2 + $0xc8] sm:$0xff] }
 0x13c   :  { %v283_v61 = vpop.f32.mrf.mxu0 }
 0x13d   :  { %963 = vmatpush.msra.mxu3 %v854_v52 }
 0x13e   :  { %v487_v12 = vpop.f32.mrf.mxu1 }
 0x13f   :  { %v488_v13 = vadd.f32 %v487_v12, %v6825_v55  ;;  %964 = vmatpush.msra.mxu3 %v853_v57  ;;  %v284_v12 = vadd.f32 %v283_v61, %v6727_v27 }
 0x140   :  { %5709 = vmatmul.msk.f32.gmra.mxu0 %vm99_vm1, %v6629_v4 }
 0x141   :  { %v571_v14 = vmax.f32 %v488_v13, 0.0 }
 0x143   :  { %5647 = vmatmul.msk.f32.gmra.mxu2 %vm355_vm2, %v571_v14  ;;  %v335_v14 = vmax.f32 %v284_v12, 0.0 }
 0x145   :  { %5631 = vmatmul.msk.f32.gmra.mxu1 %vm355_vm2, %v335_v14 }
 0x146   :  { %v490_v20 = vpop.f32.mrf.mxu1 }
 0x147   :  { %v491_v21 = vadd.f32 %v490_v20, %v6825_v55  ;;  %v286_v20 = vpop.f32.mrf.mxu0 }
 0x148   :  { %5710 = vmatmul.msk.f32.gmra.mxu0 %vm99_vm1, %v6636_v5  ;;  %v852_v5 = vld [vmem:[#allocation2 + $0xd8] sm:$0xff] }
 0x149   :  { %v572_v28 = vmax.f32 %v491_v21, 0.0  ;;  %965 = vmatpush.msra.mxu3 %v852_v5  ;;  %v287_v21 = vadd.f32 %v286_v20, %v6727_v27 }
 0x14b   :  { %5648 = vmatmul.msk.f32.gmra.mxu2 %vm355_vm2, %v572_v28  ;;  %966 = vmatpush.msra.mxu3 %v851_v58 }
 0x14d   :  { %967 = vmatpush.msra.mxu3 %v850_v63 }
 0x14e   :  { %v493_v30 = vpop.f32.mrf.mxu1 }
 0x14f   :  { %v494_v31 = vadd.f32 %v493_v30, %v6825_v55  ;;  %968 = vmatpush.msra.mxu3 %v6710_v24  ;;  %v336_v30 = vmax.f32 %v287_v21, 0.0  ;;  %v1251_v24 = vld [vmem:[#allocation2 + $0x118] sm:$0xff] }
 0x150   :  { %5711 = vmatmul.msk.f32.gmra.mxu0 %vm99_vm1, %v6643_v6  ;;  %1365 = vmatpush.msrb.mxu1 %v1251_v24 }
 0x151   :  { %v573_v34 = vmax.f32 %v494_v31, 0.0  ;;  %5632 = vmatmul.msk.f32.gmra.mxu1 %vm355_vm2, %v336_v30 }
 0x153   :  { %5649 = vmatmul.msk.f32.gmra.mxu2 %vm355_vm2, %v573_v34  ;;  %v289_v34 = vpop.f32.mrf.mxu0 }
 0x156   :  { %v496_v35 = vpop.f32.mrf.mxu1 }
 0x157   :  { %v497_v36 = vadd.f32 %v496_v35, %v6825_v55  ;;  %v290_v35 = vadd.f32 %v289_v34, %v6727_v27 }
 0x158   :  { %5712 = vmatmul.msk.f32.gmra.mxu0 %vm99_vm1, %v6650_v7 }
 0x159   :  { %v574_v38 = vmax.f32 %v497_v36, 0.0 }
 0x15b   :  { %5650 = vmatmul.msk.f32.gmra.mxu2 %vm355_vm2, %v574_v38  ;;  %v1506_v38 = vld [vmem:[#allocation2 + $0x178] sm:$0xff] }
 0x15c   :  { %1612 = vmatpush.msrb.mxu2 %v1506_v38 }
 0x15e   :  { %v499_v1 = vpop.f32.mrf.mxu1 }
 0x15f   :  { %v500_v39 = vadd.f32 %v499_v1, %v6825_v55  ;;  %v337_v1 = vmax.f32 %v290_v35, 0.0 }
 0x160   :  { %5713 = vmatmul.msk.f32.gmra.mxu0 %vm99_vm1, %v6657_v8 }
 0x161   :  { %v575_v40 = vmax.f32 %v500_v39, 0.0  ;;  %5633 = vmatmul.msk.f32.gmra.mxu1 %vm355_vm2, %v337_v1 }
 0x163   :  { %5651 = vmatmul.msk.f32.gmra.mxu2 %vm355_vm2, %v575_v40  ;;  %v292_v40 = vpop.f32.mrf.mxu0 }
 0x164   :  { %v293_v2 = vadd.f32 %v292_v40, %v6727_v27 }
 0x166   :  { %v502_v42 = vpop.f32.mrf.mxu1 }
 0x167   :  { %v503_v46 = vadd.f32 %v502_v42, %v6825_v55 }
 0x168   :  { %5714 = vmatmul.msk.f32.gmra.mxu0 %vm99_vm1, %v6664_v9 }
 0x169   :  { %v576_v47 = vmax.f32 %v503_v46, 0.0  ;;  %v338_v46 = vmax.f32 %v293_v2, 0.0 }
 0x16b   :  { %5652 = vmatmul.msk.f32.gmra.mxu2 %vm355_vm2, %v576_v47  ;;  %v6951_v47 = vperm.slane %v6722_v26, 2  ;;  %5634 = vmatmul.msk.f32.gmra.mxu1 %vm355_vm2, %v338_v46 }
 0x16e   :  { %v505_v51 = vpop.f32.mrf.mxu1 }
 0x16f   :  { %v506_v4 = vadd.f32 %v505_v51, %v6825_v55 }
 0x170   :  { %5715 = vmatmul.msk.f32.gmra.mxu0 %vm99_vm1, %v6671_v10 }
 0x171   :  { %v577_v53 = vmax.f32 %v506_v4, 0.0  ;;  %v295_v4 = vpop.f32.mrf.mxu0 }
 0x172   :  { %v296_v52 = vadd.f32 %v295_v4, %v6727_v27 }
 0x173   :  { %5653 = vmatmul.msk.f32.gmra.mxu2 %vm355_vm2, %v577_v53 }
 0x174   :  { %v339_v5 = vmax.f32 %v296_v52, 0.0 }
 0x176   :  { %v508_v59 = vpop.f32.mrf.mxu1  ;;  %5635 = vmatmul.msk.f32.gmra.mxu1 %vm355_vm2, %v339_v5 }
 0x177   :  { %v509_v60 = vadd.f32 %v508_v59, %v6825_v55 }
 0x178   :  { %5716 = vmatmul.msk.f32.gmra.mxu0 %vm99_vm1, %v6678_v11  ;;  %v1250_v11 = vld [vmem:[#allocation2 + $0x110] sm:$0xff] }
 0x179   :  { %v578_v13 = vmax.f32 %v509_v60, 0.0  ;;  %v298_v61 = vpop.f32.mrf.mxu0  ;;  %1366 = vmatpush.msrb.mxu1 %v1250_v11 }
 0x17a   :  { %v299_v63 = vadd.f32 %v298_v61, %v6727_v27 }
 0x17b   :  { %5654 = vmatmul.msk.f32.gmra.mxu2 %vm355_vm2, %v578_v13 }
 0x17c   :  { %v340_v14 = vmax.f32 %v299_v63, 0.0  ;;  %v1504_v63 = vld [vmem:[#allocation2 + $0x168] sm:$0xff] }
 0x17e   :  { %v511_v6 = vpop.f32.mrf.mxu1  ;;  %5636 = vmatmul.msk.f32.gmra.mxu1 %vm355_vm2, %v340_v14 }
 0x17f   :  { %v512_v18 = vadd.f32 %v511_v6, %v6825_v55 }
 0x180   :  { %5717 = vmatmul.msk.f32.gmra.mxu0 %vm99_vm1, %v6685_v15  ;;  %v1505_v15 = vld [vmem:[#allocation2 + $0x170] sm:$0xff] }
 0x181   :  { %v579_v28 = vmax.f32 %v512_v18, 0.0  ;;  %1613 = vmatpush.msrb.mxu2 %v1505_v15 }
 0x183   :  { %5655 = vmatmul.msk.f32.gmra.mxu2 %vm355_vm2, %v579_v28  ;;  %v301_v28 = vpop.f32.mrf.mxu0 }
 0x184   :  { %v302_v30 = vadd.f32 %v301_v28, %v6727_v27  ;;  %1614 = vmatpush.msrb.mxu2 %v1504_v63 }
 0x186   :  { %v514_v7 = vpop.f32.mrf.mxu1 }
 0x187   :  { %v515_v31 = vadd.f32 %v514_v7, %v6825_v55 }
 0x188   :  { %5718 = vmatmul.msk.f32.gmra.mxu0 %vm99_vm1, %v6692_v19 }
 0x189   :  { %v580_v36 = vmax.f32 %v515_v31, 0.0  ;;  %v341_v31 = vmax.f32 %v302_v30, 0.0  ;;  %v1503_v30 = vld [vmem:[#allocation2 + $0x160] sm:$0xff] }
 0x18a   :  { %1615 = vmatpush.msrb.mxu2 %v1503_v30 }
 0x18b   :  { %5656 = vmatmul.msk.f32.gmra.mxu2 %vm355_vm2, %v580_v36  ;;  %5637 = vmatmul.msk.f32.gmra.mxu1 %vm355_vm2, %v341_v31  ;;  %v304_v1 = vpop.f32.mrf.mxu0 }
 0x18e   :  { %v517_v8 = vpop.f32.mrf.mxu1 }
 0x18f   :  { %v518_v39 = vadd.f32 %v517_v8, %v6825_v55  ;;  %v305_v8 = vadd.f32 %v304_v1, %v6727_v27 }
 0x190   :  { %5719 = vmatmul.msk.f32.gmra.mxu0 %vm99_vm1, %v6699_v22 }
 0x191   :  { %v581_v42 = vmax.f32 %v518_v39, 0.0  ;;  %v342_v2 = vmax.f32 %v305_v8, 0.0 }
 0x193   :  { %5657 = vmatmul.msk.f32.gmra.mxu2 %vm355_vm2, %v581_v42  ;;  %5638 = vmatmul.msk.f32.gmra.mxu1 %vm355_vm2, %v342_v2 }
 0x196   :  { %v520_v9 = vpop.f32.mrf.mxu1  ;;  %v720_v3 = vpop.f32.mrf.mxu2 }
 0x197   :  { %v521_v50 = vadd.f32 %v520_v9, %v6825_v55  ;;  %v721_v51 = vadd.f32 %v720_v3, %v6951_v47  ;;  %v307_v3 = vpop.f32.mrf.mxu0 }
 0x198   :  { %5720 = vmatmul.msk.f32.gmra.mxu0 %vm99_vm1, %v6706_v23  ;;  %v1249_v23 = vld [vmem:[#allocation2 + $0x108] sm:$0xff] }
 0x199   :  { %v582_v53 = vmax.f32 %v521_v50, 0.0  ;;  %v816_v57 = vmax.f32 %v721_v51, 0.0  ;;  %v308_v50 = vadd.f32 %v307_v3, %v6727_v27  ;;  %1367 = vmatpush.msrb.mxu1 %v1249_v23  ;;  %v1502_v3 = vld [vmem:[#allocation2 + $0x158] sm:$0xff] }
 0x19a   :  { %1616 = vmatpush.msrb.mxu2 %v1502_v3 }
 0x19b   :  { %5658 = vmatmul.msk.f32.gmra.mxu2 %vm355_vm2, %v582_v53  ;;  %5673 = vmatmul.msk.f32.vlgmr.msra.gmra.mxu3 %vm355_vm2, %v816_v57  ;;  %v343_v52 = vmax.f32 %v308_v50, 0.0 }
 0x19d   :  { %5639 = vmatmul.msk.f32.gmra.mxu1 %vm355_vm2, %v343_v52 }
 0x19e   :  { %v523_v10 = vpop.f32.mrf.mxu1  ;;  %v723_v58 = vpop.f32.mrf.mxu2 }
 0x19f   :  { %v524_v59 = vadd.f32 %v523_v10, %v6825_v55  ;;  %v724_v60 = vadd.f32 %v723_v58, %v6951_v47  ;;  %v310_v57 = vpop.f32.mrf.mxu0 }
 0x1a0   :  { %v311_v5 = vadd.f32 %v310_v57, %v6727_v27  ;;  %5721 = vmatmul.msk.f32.gmra.mxu0 %vm99_vm1, %v6717_v25 }
 0x1a1   :  { %v583_v12 = vmax.f32 %v524_v59, 0.0  ;;  %v817_v13 = vmax.f32 %v724_v60, 0.0 }
 0x1a2   :  { %v344_v58 = vmax.f32 %v311_v5, 0.0 }
 0x1a3   :  { %5659 = vmatmul.msk.f32.gmra.mxu2 %vm355_vm2, %v583_v12  ;;  %5674 = vmatmul.msk.f32.gmra.mxu3 %vm355_vm2, %v817_v13 }
 0x1a5   :  { %5640 = vmatmul.msk.f32.gmra.mxu1 %vm355_vm2, %v344_v58 }
 0x1a6   :  { %v526_v6 = vpop.f32.mrf.mxu1  ;;  %v726_v18 = vpop.f32.mrf.mxu2 }
 0x1a7   :  { %v527_v20 = vadd.f32 %v526_v6, %v6825_v55  ;;  %v727_v21 = vadd.f32 %v726_v18, %v6951_v47 }
 0x1a8   :  { %5722 = vmatmul.msk.f32.gmra.mxu0 %vm99_vm1, %v6732_v29 }
 0x1a9   :  { %v584_v24 = vmax.f32 %v527_v20, 0.0  ;;  %v818_v7 = vmax.f32 %v727_v21, 0.0 }
 0x1ab   :  { %5660 = vmatmul.msk.f32.gmra.mxu2 %vm355_vm2, %v584_v24  ;;  %5675 = vmatmul.msk.f32.gmra.mxu3 %vm355_vm2, %v818_v7 }
 0x1ae   :  { %v529_v34 = vpop.f32.mrf.mxu1  ;;  %v729_v35 = vpop.f32.mrf.mxu2 }
 0x1af   :  { %v530_v36 = vadd.f32 %v529_v34, %v6825_v55  ;;  %v730_v38 = vadd.f32 %v729_v35, %v6951_v47 }
 0x1b0   :  { %5723 = vmatmul.msk.f32.gmra.mxu0 %vm99_vm1, %v6741_v33  ;;  %v1248_v33 = vld [vmem:[#allocation2 + $0x100] sm:$0xff] }
 0x1b1   :  { %v585_v39 = vmax.f32 %v530_v36, 0.0  ;;  %v819_v40 = vmax.f32 %v730_v38, 0.0  ;;  %1368 = vmatpush.msrb.mxu1 %v1248_v33  ;;  %v1086_v38 = vpop.f32.mrf.mxu0 }
 0x1b3   :  { %5661 = vmatmul.msk.f32.gmra.mxu2 %vm355_vm2, %v585_v39  ;;  %5676 = vmatmul.msk.f32.gmra.mxu3 %vm355_vm2, %v819_v40 }
 0x1b6   :  { %v532_v19 = vpop.f32.mrf.mxu1  ;;  %v732_v42 = vpop.f32.mrf.mxu2 }
 0x1b7   :  { %v533_v46 = vadd.f32 %v532_v19, %v6825_v55  ;;  %v733_v9 = vadd.f32 %v732_v42, %v6951_v47 }
 0x1b8   :  { %5724 = vmatmul.msk.f32.gmra.mxu0 %vm99_vm1, %v6750_v37 }
 0x1b9   :  { %v586_v51 = vmax.f32 %v533_v46, 0.0  ;;  %v820_v4 = vmax.f32 %v733_v9, 0.0  ;;  %v1089_v2 = vpop.f32.mrf.mxu0 }
 0x1bb   :  { %5662 = vmatmul.msk.f32.gmra.mxu2 %vm355_vm2, %v586_v51  ;;  %5677 = vmatmul.msk.f32.gmra.mxu3 %vm355_vm2, %v820_v4 }
 0x1be   :  { %v735_v22 = vpop.f32.mrf.mxu2 }
 0x1bf   :  { %v736_v53 = vadd.f32 %v735_v22, %v6951_v47 }
 0x1c0   :  { %5725 = vmatmul.msk.f32.gmra.mxu0 %vm99_vm1, %v6759_v41 }
 0x1c1   :  { %v821_v10 = vmax.f32 %v736_v53, 0.0  ;;  %v1092_v51 = vpop.f32.mrf.mxu0 }
 0x1c2   :  { %v535_v34 = vpop.f32.mrf.mxu1 }
 0x1c3   :  { %5678 = vmatmul.msk.f32.gmra.mxu3 %vm355_vm2, %v821_v10  ;;  %v536_v35 = vadd.f32 %v535_v34, %v6825_v55 }
 0x1c6   :  { %v738_v59 = vpop.f32.mrf.mxu2 }
 0x1c7   :  { %v739_v60 = vadd.f32 %v738_v59, %v6951_v47 }
 0x1c8   :  { %5726 = vmatmul.msk.f32.gmra.mxu0 %vm99_vm1, %v6768_v45  ;;  %v587_v45 = vmax.f32 %v536_v35, 0.0 }
 0x1c9   :  { %v822_v61 = vmax.f32 %v739_v60, 0.0  ;;  %v1095_v10 = vpop.f32.mrf.mxu0 }
 0x1ca   :  { %5663 = vmatmul.msk.f32.gmra.mxu2 %vm355_vm2, %v587_v45 }
 0x1cb   :  { %5679 = vmatmul.msk.f32.gmra.mxu3 %vm355_vm2, %v822_v61  ;;  %v7054_v61 = vperm.slane %v6722_v26, 3 }
 0x1ce   :  { %v741_v27 = vpop.f32.mrf.mxu2  ;;  %v538_v8 = vpop.f32.mrf.mxu1 }
 0x1cf   :  { %v742_v25 = vadd.f32 %v741_v27, %v6951_v47  ;;  %v539_v39 = vadd.f32 %v538_v8, %v6825_v55 }
 0x1d0   :  { %5727 = vmatmul.msk.f32.gmra.mxu0 %vm99_vm1, %v6777_v49 }
 0x1d1   :  { %v823_v12 = vmax.f32 %v742_v25, 0.0  ;;  %v588_v40 = vmax.f32 %v539_v39, 0.0  ;;  %v1756_v39 = vld [vmem:[#allocation2 + $0x1b0] sm:$0xff] }
 0x1d3   :  { %5680 = vmatmul.msk.f32.gmra.mxu3 %vm355_vm2, %v823_v12  ;;  %5664 = vmatmul.msk.f32.gmra.mxu2 %vm355_vm2, %v588_v40 }
 0x1d6   :  { %v744_v13 = vpop.f32.mrf.mxu2 }
 0x1d7   :  { %v745_v14 = vadd.f32 %v744_v13, %v6951_v47  ;;  %v7058_v13 = vpop.f32.mrf.mxu0 }
 0x1d8   :  { %5728 = vmatmul.msk.f32.gmra.mxu0 %vm99_vm1, %v6802_v43 }
 0x1d9   :  { %v824_v11 = vmax.f32 %v745_v14, 0.0 }
 0x1db   :  { %5681 = vmatmul.msk.f32.gmra.mxu3 %vm355_vm2, %v824_v11 }
 0x1de   :  { %v747_v29 = vpop.f32.mrf.mxu2  ;;  %v541_v46 = vpop.f32.mrf.mxu1 }
 0x1df   :  { %v748_v6 = vadd.f32 %v747_v29, %v6951_v47  ;;  %v542_v9 = vadd.f32 %v541_v46, %v6825_v55 }
 0x1e0   :  { %5729 = vmatmul.msk.f32.gmra.mxu0 %vm99_vm1, %v6811_v48 }
 0x1e1   :  { %v825_v18 = vmax.f32 %v748_v6, 0.0  ;;  %v589_v48 = vmax.f32 %v542_v9, 0.0 }
 0x1e3   :  { %5682 = vmatmul.msk.f32.gmra.mxu3 %vm355_vm2, %v825_v18  ;;  %5665 = vmatmul.msk.f32.gmra.mxu2 %vm355_vm2, %v589_v48 }
 0x1e6   :  { %v750_v20 = vpop.f32.mrf.mxu2 }
 0x1e7   :  { %v751_v21 = vadd.f32 %v750_v20, %v6951_v47 }
 0x1e8   :  { %5730 = vmatmul.msk.f32.gmra.mxu0 %vm99_vm1, %v6820_v54  ;;  %v544_v22 = vpop.f32.mrf.mxu1  ;;  %v1757_v54 = vld [vmem:[#allocation2 + $0x1b8] sm:$0xff] }
 0x1e9   :  { %v826_v28 = vmax.f32 %v751_v21, 0.0  ;;  %v545_v53 = vadd.f32 %v544_v22, %v6825_v55  ;;  %1862 = vmatpush.msrb.mxu3 %v1757_v54 }
 0x1eb   :  { %5683 = vmatmul.msk.f32.gmra.mxu3 %vm355_vm2, %v826_v28  ;;  %v590_v57 = vmax.f32 %v545_v53, 0.0  ;;  %v1101_v28 = vpop.f32.mrf.mxu0 }
 0x1ec   :  { %1863 = vmatpush.msrb.mxu3 %v1756_v39 }
 0x1ed   :  { %5666 = vmatmul.msk.f32.gmra.mxu2 %vm355_vm2, %v590_v57 }
 0x1ee   :  { %v753_v37 = vpop.f32.mrf.mxu2 }
 0x1ef   :  { %v754_v24 = vadd.f32 %v753_v37, %v6951_v47 }
 0x1f0   :  { %5731 = vmatmul.msk.f32.gmra.mxu0 %vm99_vm1, %v6833_v62 }
 0x1f1   :  { %v827_v7 = vmax.f32 %v754_v24, 0.0 }
 0x1f3   :  { %5684 = vmatmul.msk.f32.gmra.mxu3 %vm355_vm2, %v827_v7  ;;  %v547_v59 = vpop.f32.mrf.mxu1 }
 0x1f4   :  { %v548_v60 = vadd.f32 %v547_v59, %v6825_v55 }
 0x1f6   :  { %v756_v41 = vpop.f32.mrf.mxu2  ;;  %v591_v62 = vmax.f32 %v548_v60, 0.0 }
 0x1f7   :  { %v757_v15 = vadd.f32 %v756_v41, %v6951_v47  ;;  %v1501_v41 = vld [vmem:[#allocation2 + $0x150] sm:$0xff] }
 0x1f8   :  { %5732 = vmatmul.msk.f32.gmra.mxu0 %vm99_vm1, %v6844_v17  ;;  %5667 = vmatmul.msk.f32.gmra.mxu2 %vm355_vm2, %v591_v62 }
 0x1f9   :  { %v828_v31 = vmax.f32 %v757_v15, 0.0  ;;  %1617 = vmatpush.msrb.mxu2 %v1501_v41  ;;  %v1499_v41 = vld [vmem:[#allocation2 + $0x140] sm:$0xff] }
 0x1fb   :  { %5685 = vmatmul.msk.f32.gmra.mxu3 %vm355_vm2, %v828_v31  ;;  %v550_v29 = vpop.f32.mrf.mxu1 }
 0x1fc   :  { %v551_v17 = vadd.f32 %v550_v29, %v6825_v55 }
 0x1fe   :  { %v759_v36 = vpop.f32.mrf.mxu2  ;;  %v592_v6 = vmax.f32 %v551_v17, 0.0 }
 0x1ff   :  { %v760_v49 = vadd.f32 %v759_v36, %v6951_v47  ;;  %v1104_v36 = vpop.f32.mrf.mxu0 }
 0x200   :  { %5733 = vmatmul.msk.f32.gmra.mxu0 %vm99_vm1, %v6855_v32  ;;  %5668 = vmatmul.msk.f32.gmra.mxu2 %vm355_vm2, %v592_v6 }
 0x201   :  { %v829_v1 = vmax.f32 %v760_v49, 0.0 }
 0x203   :  { %5686 = vmatmul.msk.f32.gmra.mxu3 %vm355_vm2, %v829_v1 }
 0x206   :  { %v762_v43 = vpop.f32.mrf.mxu2 }
 0x207   :  { %v763_v19 = vadd.f32 %v762_v43, %v6951_v47  ;;  %v1107_v46 = vpop.f32.mrf.mxu0 }
 0x208   :  { %v553_v24 = vpop.f32.mrf.mxu1  ;;  %5734 = vmatmul.msk.f32.gmra.mxu0 %vm99_vm1, %v6866_v44 }
 0x209   :  { %v830_v42 = vmax.f32 %v763_v19, 0.0  ;;  %v554_v32 = vadd.f32 %v553_v24, %v6825_v55 }
 0x20b   :  { %5687 = vmatmul.msk.f32.gmra.mxu3 %vm355_vm2, %v830_v42  ;;  %v593_v15 = vmax.f32 %v554_v32, 0.0 }
 0x20d   :  { %5669 = vmatmul.msk.f32.gmra.mxu2 %vm355_vm2, %v593_v15 }
 0x20e   :  { %v765_v50 = vpop.f32.mrf.mxu2 }
 0x20f   :  { %v766_v4 = vadd.f32 %v765_v50, %v6951_v47 }
 0x210   :  { %v556_v44 = vpop.f32.mrf.mxu1  ;;  %5735 = vmatmul.msk.f32.gmra.mxu0 %vm99_vm1, %v6877_v56 }
 0x211   :  { %v831_v52 = vmax.f32 %v766_v4, 0.0  ;;  %v557_v1 = vadd.f32 %v556_v44, %v6825_v55 }
 0x213   :  { %5688 = vmatmul.msk.f32.gmra.mxu3 %vm355_vm2, %v831_v52  ;;  %v594_v40 = vmax.f32 %v557_v1, 0.0 }
 0x215   :  { %5670 = vmatmul.msk.f32.gmra.mxu2 %vm355_vm2, %v594_v40 }
 0x216   :  { %v768_v5 = vpop.f32.mrf.mxu2 }
 0x217   :  { %v769_v58 = vadd.f32 %v768_v5, %v6951_v47 }
 0x218   :  { %5736 = vmatmul.msk.f32.gmra.mxu0 %vm99_vm1, %v6888_v0 }
 0x219   :  { %v832_v23 = vmax.f32 %v769_v58, 0.0 }
 0x21a   :  { %v559_v56 = vpop.f32.mrf.mxu1 }
 0x21b   :  { %5689 = vmatmul.msk.f32.gmra.mxu3 %vm355_vm2, %v832_v23  ;;  %v560_v48 = vadd.f32 %v559_v56, %v6825_v55 }
 0x21e   :  { %v771_v63 = vpop.f32.mrf.mxu2  ;;  %v970_v27 = vpop.f32.mrf.mxu3 }
 0x21f   :  { %v772_v25 = vadd.f32 %v771_v63, %v6951_v47  ;;  %v1087_v12 = vadd.f32 %v1086_v38, %v970_v27  ;;  %v1500_v27 = vld [vmem:[#allocation2 + $0x148] sm:$0xff] }
 0x220   :  { %5737 = vmatmul.msk.f32.gmra.mxu0 %vm99_vm1, %v6897_v16  ;;  %1618 = vmatpush.msrb.mxu2 %v1500_v27 }
 0x221   :  { %v833_v14 = vmax.f32 %v772_v25, 0.0  ;;  %v1183_v11 = vadd.f32 %v7054_v61, %v1087_v12 }
 0x222   :  { %v562_v5 = vpop.f32.mrf.mxu1  ;;  %1619 = vmatpush.msrb.mxu2 %v1499_v41 }
 0x223   :  { %v1215_v26 = vmax.f32 %v1183_v11, 0.0  ;;  %5690 = vmatmul.msk.f32.gmra.mxu3 %vm355_vm2, %v833_v14  ;;  %v563_v0 = vadd.f32 %v562_v5, %v6825_v55  ;;  %v1755_v14 = vld [vmem:[#allocation2 + $0x1a8] sm:$0xff] }
 0x224   :  { %1864 = vmatpush.msrb.mxu3 %v1755_v14  ;;  %v7133_v14 = vld [vmem:[%s9625_s4] sm:$0x7f]  ;;  %s6538_s4 = smov [#allocation10]  }
 0x225   :  { %5738 = vmatmul.msk.f32.vlgmr.msrb.gmra.mxu1 %vm355_vm2, %v1215_v26  ;;  %v596_v23 = vmax.f32 %v563_v0, 0.0  ;;  %s5549_s12 = sshll.u32 %s6538_s4, 4  ;;  %s5550_s12 = int_to_ptr.vmem [resolvable:$true] %s5549_s12 }
 0x226   :  { %v774_v18 = vpop.f32.mrf.mxu2  ;;  %v973_v33 = vpop.f32.mrf.mxu3 }
 0x227   :  { %v775_v20 = vadd.f32 %v774_v18, %v6951_v47  ;;  %v1090_v21 = vadd.f32 %v1089_v2, %v973_v33 }
 0x229   :  { %v834_v30 = vmax.f32 %v775_v20, 0.0  ;;  %v1184_v37 = vadd.f32 %v7054_v61, %v1090_v21 }
 0x22b   :  { %v1216_v7 = vmax.f32 %v1184_v37, 0.0  ;;  %5691 = vmatmul.msk.f32.gmra.mxu3 %vm355_vm2, %v834_v30 }
 0x22d   :  { %5739 = vmatmul.msk.f32.gmra.mxu1 %vm355_vm2, %v1216_v7 }
 0x22e   :  { %v777_v31 = vpop.f32.mrf.mxu2  ;;  %v976_v34 = vpop.f32.mrf.mxu3 }
 0x22f   :  { %v778_v35 = vadd.f32 %v777_v31, %v6951_v47  ;;  %v1093_v45 = vadd.f32 %v1092_v51, %v976_v34  ;;  %v595_v51 = vmax.f32 %v560_v48, 0.0 }
 0x231   :  { %v835_v38 = vmax.f32 %v778_v35, 0.0  ;;  %v1185_v49 = vadd.f32 %v7054_v61, %v1093_v45  ;;  %5671 = vmatmul.msk.f32.gmra.mxu2 %vm355_vm2, %v595_v51  ;;  %v1754_v45 = vld [vmem:[#allocation2 + $0x1a0] sm:$0xff] }
 0x232   :  { %1865 = vmatpush.msrb.mxu3 %v1754_v45 }
 0x233   :  { %v1217_v8 = vmax.f32 %v1185_v49, 0.0  ;;  %5692 = vmatmul.msk.f32.gmra.mxu3 %vm355_vm2, %v835_v38 }
 0x235   :  { %5740 = vmatmul.msk.f32.gmra.mxu1 %vm355_vm2, %v1217_v8 }
 0x236   :  { %v780_v43 = vpop.f32.mrf.mxu2  ;;  %v979_v2 = vpop.f32.mrf.mxu3 }
 0x237   :  { %v781_v19 = vadd.f32 %v780_v43, %v6951_v47  ;;  %v1096_v42 = vadd.f32 %v1095_v10, %v979_v2  ;;  %v1110_v10 = vpop.f32.mrf.mxu0 }
 0x239   :  { %v836_v9 = vmax.f32 %v781_v19, 0.0  ;;  %v1186_v3 = vadd.f32 %v7054_v61, %v1096_v42  ;;  %5672 = vmatmul.msk.f32.gmra.mxu2 %vm355_vm2, %v596_v23 }
 0x23b   :  { %v1218_v50 = vmax.f32 %v1186_v3, 0.0  ;;  %5693 = vmatmul.msk.f32.gmra.mxu3 %vm355_vm2, %v836_v9 }
 0x23d   :  { %5741 = vmatmul.msk.f32.gmra.mxu1 %vm355_vm2, %v1218_v50 }
 0x23e   :  { %v783_v4 = vpop.f32.mrf.mxu2  ;;  %v982_v52 = vpop.f32.mrf.mxu3 }
 0x23f   :  { %v784_v22 = vadd.f32 %v783_v4, %v6951_v47  ;;  %v1099_v53 = vadd.f32 %v7058_v13, %v982_v52  ;;  %v1113_v25 = vpop.f32.mrf.mxu0 }
 0x241   :  { %v837_v54 = vmax.f32 %v784_v22, 0.0  ;;  %v1187_v57 = vadd.f32 %v7054_v61, %v1099_v53 }
 0x243   :  { %v1219_v58 = vmax.f32 %v1187_v57, 0.0  ;;  %5694 = vmatmul.msk.f32.gmra.mxu3 %vm355_vm2, %v837_v54 }
 0x245   :  { %5742 = vmatmul.msk.f32.gmra.mxu1 %vm355_vm2, %v1219_v58  ;;  %v1753_v58 = vld [vmem:[#allocation2 + $0x198] sm:$0xff] }
 0x246   :  { %v985_v59 = vpop.f32.mrf.mxu3  ;;  %1866 = vmatpush.msrb.mxu3 %v1753_v58 }
 0x247   :  { %v1102_v60 = vadd.f32 %v1101_v28, %v985_v59  ;;  %v1116_v29 = vpop.f32.mrf.mxu0 }
 0x249   :  { %v1188_v62 = vadd.f32 %v7054_v61, %v1102_v60 }
 0x24b   :  { %v1220_v63 = vmax.f32 %v1188_v62, 0.0 }
 0x24d   :  { %5743 = vmatmul.msk.f32.gmra.mxu1 %vm355_vm2, %v1220_v63  ;;  %v786_v2 = vpop.f32.mrf.mxu2 }
 0x24e   :  { %v988_v55 = vpop.f32.mrf.mxu3  ;;  %v787_v19 = vadd.f32 %v786_v2, %v6951_v47 }
 0x24f   :  { %v1105_v16 = vadd.f32 %v1104_v36, %v988_v55  ;;  %v1119_v20 = vpop.f32.mrf.mxu0 }
 0x251   :  { %v1189_v12 = vadd.f32 %v7054_v61, %v1105_v16 }
 0x253   :  { %v1221_v13 = vmax.f32 %v1189_v12, 0.0 }
 0x255   :  { %5744 = vmatmul.msk.f32.gmra.mxu1 %vm355_vm2, %v1221_v13 }
 0x256   :  { %v991_v11 = vpop.f32.mrf.mxu3  ;;  %v789_v50 = vpop.f32.mrf.mxu2 }
 0x257   :  { %v1108_v17 = vadd.f32 %v1107_v46, %v991_v11  ;;  %v1122_v32 = vpop.f32.mrf.mxu0  ;;  %v838_v46 = vmax.f32 %v787_v19, 0.0  ;;  %v790_v51 = vadd.f32 %v789_v50, %v6951_v47  ;;  %v7136_v11 = vperm.slane %v7133_v14, 4 }
 0x259   :  { %v1190_v26 = vadd.f32 %v7054_v61, %v1108_v17  ;;  %5695 = vmatmul.msk.f32.gmra.mxu3 %vm355_vm2, %v838_v46  ;;  %v839_v52 = vmax.f32 %v790_v51, 0.0 }
 0x25b   :  { %v1222_v6 = vmax.f32 %v1190_v26, 0.0 }
 0x25d   :  { %5745 = vmatmul.msk.f32.gmra.mxu1 %vm355_vm2, %v1222_v6 }
 0x25e   :  { %v994_v18 = vpop.f32.mrf.mxu3 }
 0x25f   :  { %v1111_v33 = vadd.f32 %v1110_v10, %v994_v18  ;;  %v1125_v36 = vpop.f32.mrf.mxu0 }
 0x261   :  { %v1191_v21 = vadd.f32 %v7054_v61, %v1111_v33  ;;  %5696 = vmatmul.msk.f32.gmra.mxu3 %vm355_vm2, %v839_v52 }
 0x263   :  { %v1223_v28 = vmax.f32 %v1191_v21, 0.0 }
 0x265   :  { %5746 = vmatmul.msk.f32.gmra.mxu1 %vm355_vm2, %v1223_v28 }
 0x266   :  { %v997_v30 = vpop.f32.mrf.mxu3  ;;  %v792_v57 = vpop.f32.mrf.mxu2 }
 0x267   :  { %v1114_v37 = vadd.f32 %v1113_v25, %v997_v30  ;;  %v1128_v39 = vpop.f32.mrf.mxu0  ;;  %v793_v10 = vadd.f32 %v792_v57, %v6951_v47 }
 0x269   :  { %v1192_v24 = vadd.f32 %v7054_v61, %v1114_v37  ;;  %v840_v23 = vmax.f32 %v793_v10, 0.0 }
 0x26b   :  { %v1224_v7 = vmax.f32 %v1192_v24, 0.0  ;;  %5697 = vmatmul.msk.f32.gmra.mxu3 %vm355_vm2, %v840_v23 }
 0x26d   :  { %5747 = vmatmul.msk.f32.gmra.mxu1 %vm355_vm2, %v1224_v7 }
 0x26e   :  { %v1000_v15 = vpop.f32.mrf.mxu3 }
 0x26f   :  { %v1117_v31 = vadd.f32 %v1116_v29, %v1000_v15  ;;  %v1131_v56 = vpop.f32.mrf.mxu0 }
 0x270   :  { %v795_v63 = vpop.f32.mrf.mxu2 }
 0x271   :  { %v1193_v34 = vadd.f32 %v7054_v61, %v1117_v31  ;;  %v796_v27 = vadd.f32 %v795_v63, %v6951_v47 }
 0x273   :  { %v1225_v35 = vmax.f32 %v1193_v34, 0.0  ;;  %v841_v16 = vmax.f32 %v796_v27, 0.0 }
 0x275   :  { %5748 = vmatmul.msk.f32.gmra.mxu1 %vm355_vm2, %v1225_v35  ;;  %5698 = vmatmul.msk.f32.gmra.mxu3 %vm355_vm2, %v841_v16 }
 0x276   :  { %v1003_v38 = vpop.f32.mrf.mxu3 }
 0x277   :  { %v1120_v49 = vadd.f32 %v1119_v20, %v1003_v38  ;;  %v1134_v5 = vpop.f32.mrf.mxu0  ;;  %v1752_v38 = vld [vmem:[#allocation2 + $0x190] sm:$0xff] }
 0x278   :  { %1867 = vmatpush.msrb.mxu3 %v1752_v38 }
 0x279   :  { %v1194_v44 = vadd.f32 %v7054_v61, %v1120_v49 }
 0x27b   :  { %v1226_v1 = vmax.f32 %v1194_v44, 0.0  ;;  %v798_v17 = vpop.f32.mrf.mxu2 }
 0x27c   :  { %v799_v6 = vadd.f32 %v798_v17, %v6951_v47 }
 0x27d   :  { %5749 = vmatmul.msk.f32.gmra.mxu1 %vm355_vm2, %v1226_v1 }
 0x27e   :  { %v1006_v8 = vpop.f32.mrf.mxu3  ;;  %v842_v20 = vmax.f32 %v799_v6, 0.0  ;;  %v1751_v6 = vld [vmem:[#allocation2 + $0x188] sm:$0xff] }
 0x27f   :  { %v1123_v40 = vadd.f32 %v1122_v32, %v1006_v8  ;;  %v1137_v55 = vpop.f32.mrf.mxu0  ;;  %1868 = vmatpush.msrb.mxu3 %v1751_v6 }
 0x280   :  { %5699 = vmatmul.msk.f32.gmra.mxu3 %vm355_vm2, %v842_v20 }
 0x281   :  { %v1195_v43 = vadd.f32 %v7054_v61, %v1123_v40 }
 0x283   :  { %v1227_v42 = vmax.f32 %v1195_v43, 0.0  ;;  %v801_v32 = vpop.f32.mrf.mxu2 }
 0x284   :  { %v802_v41 = vadd.f32 %v801_v32, %v6951_v47 }
 0x285   :  { %5750 = vmatmul.msk.f32.gmra.mxu1 %vm355_vm2, %v1227_v42 }
 0x286   :  { %v1009_v9 = vpop.f32.mrf.mxu3  ;;  %v843_v34 = vmax.f32 %v802_v41, 0.0 }
 0x287   :  { %v1126_v3 = vadd.f32 %v1125_v36, %v1009_v9  ;;  %v1140_v30 = vpop.f32.mrf.mxu0 }
 0x288   :  { %5700 = vmatmul.msk.f32.gmra.mxu3 %vm355_vm2, %v843_v34 }
 0x289   :  { %v1196_v48 = vadd.f32 %v7054_v61, %v1126_v3 }
 0x28b   :  { %v1228_v4 = vmax.f32 %v1196_v48, 0.0 }
 0x28d   :  { %5751 = vmatmul.msk.f32.gmra.mxu1 %vm355_vm2, %v1228_v4 }
 0x28e   :  { %v1012_v22 = vpop.f32.mrf.mxu3 }
 0x28f   :  { %v1129_v53 = vadd.f32 %v1128_v39, %v1012_v22  ;;  %v1143_v49 = vpop.f32.mrf.mxu0 }
 0x290   :  { %v804_v1 = vpop.f32.mrf.mxu2 }
 0x291   :  { %v1197_v54 = vadd.f32 %v7054_v61, %v1129_v53  ;;  %v805_v39 = vadd.f32 %v804_v1, %v6951_v47 }
 0x293   :  { %v1229_v0 = vmax.f32 %v1197_v54, 0.0  ;;  %v844_v2 = vmax.f32 %v805_v39, 0.0 }
 0x295   :  { %5752 = vmatmul.msk.f32.gmra.mxu1 %vm355_vm2, %v1229_v0  ;;  %5701 = vmatmul.msk.f32.gmra.mxu3 %vm355_vm2, %v844_v2 }
 0x296   :  { %v1015_v59 = vpop.f32.mrf.mxu3 }
 0x297   :  { %v1132_v60 = vadd.f32 %v1131_v56, %v1015_v59  ;;  %v1146_v48 = vpop.f32.mrf.mxu0 }
 0x298   :  { %v807_v3 = vpop.f32.mrf.mxu2 }
 0x299   :  { %v1198_v62 = vadd.f32 %v7054_v61, %v1132_v60  ;;  %v808_v50 = vadd.f32 %v807_v3, %v6951_v47 }
 0x29b   :  { %v1230_v25 = vmax.f32 %v1198_v62, 0.0  ;;  %v845_v52 = vmax.f32 %v808_v50, 0.0 }
 0x29d   :  { %5753 = vmatmul.msk.f32.gmra.mxu1 %vm355_vm2, %v1230_v25  ;;  %5702 = vmatmul.msk.f32.gmra.mxu3 %vm355_vm2, %v845_v52 }
 0x29e   :  { %v1018_v12 = vpop.f32.mrf.mxu3 }
 0x29f   :  { %v1135_v13 = vadd.f32 %v1134_v5, %v1018_v12  ;;  %v1149_v59 = vpop.f32.mrf.mxu0 }
 0x2a1   :  { %v1199_v29 = vadd.f32 %v7054_v61, %v1135_v13 }
 0x2a2   :  { %v1370_v26 = vpop.f32.mrf.mxu1 }
 0x2a3   :  { %v1231_v18 = vmax.f32 %v1199_v29, 0.0  ;;  %v1371_v33 = vadd.f32 %v1370_v26, %v7136_v11 }
 0x2a5   :  { %v1466_v21 = vmax.f32 %v1371_v33, 0.0  ;;  %5754 = vmatmul.msk.f32.gmra.mxu1 %vm355_vm2, %v1231_v18 }
 0x2a6   :  { %v1021_v28 = vpop.f32.mrf.mxu3 }
 0x2a7   :  { %v1138_v37 = vadd.f32 %v1137_v55, %v1021_v28  ;;  %5770 = vmatmul.msk.f32.vlgmr.msrb.gmra.mxu2 %vm355_vm2, %v1466_v21 }
 0x2a9   :  { %v1200_v24 = vadd.f32 %v7054_v61, %v1138_v37 }
 0x2aa   :  { %v1373_v7 = vpop.f32.mrf.mxu1 }
 0x2ab   :  { %v1232_v15 = vmax.f32 %v1200_v24, 0.0  ;;  %v1374_v31 = vadd.f32 %v1373_v7, %v7136_v11 }
 0x2ad   :  { %v1467_v35 = vmax.f32 %v1374_v31, 0.0  ;;  %5755 = vmatmul.msk.f32.gmra.mxu1 %vm355_vm2, %v1232_v15  ;;  %v1750_v15 = vld [vmem:[#allocation2 + $0x180] sm:$0xff] }
 0x2ae   :  { %v1024_v45 = vpop.f32.mrf.mxu3  ;;  %1869 = vmatpush.msrb.mxu3 %v1750_v15 }
 0x2af   :  { %v1141_v36 = vadd.f32 %v1140_v30, %v1024_v45  ;;  %5771 = vmatmul.msk.f32.gmra.mxu2 %vm355_vm2, %v1467_v35 }
 0x2b1   :  { %v1201_v44 = vadd.f32 %v7054_v61, %v1141_v36 }
 0x2b2   :  { %v1376_v8 = vpop.f32.mrf.mxu1 }
 0x2b3   :  { %v1233_v40 = vmax.f32 %v1201_v44, 0.0  ;;  %v1377_v43 = vadd.f32 %v1376_v8, %v7136_v11  ;;  %v1152_v8 = vpop.f32.mrf.mxu0 }
 0x2b4   :  { %v810_v5 = vpop.f32.mrf.mxu2 }
 0x2b5   :  { %v1468_v19 = vmax.f32 %v1377_v43, 0.0  ;;  %5756 = vmatmul.msk.f32.gmra.mxu1 %vm355_vm2, %v1233_v40  ;;  %v811_v0 = vadd.f32 %v810_v5, %v6951_v47 }
 0x2b6   :  { %v1027_v42 = vpop.f32.mrf.mxu3 }
 0x2b7   :  { %v1144_v46 = vadd.f32 %v1143_v49, %v1027_v42  ;;  %5772 = vmatmul.msk.f32.gmra.mxu2 %vm355_vm2, %v1468_v19  ;;  %v846_v60 = vmax.f32 %v811_v0, 0.0 }
 0x2b9   :  { %v1202_v9 = vadd.f32 %v7054_v61, %v1144_v46  ;;  %5703 = vmatmul.msk.f32.gmra.mxu3 %vm355_vm2, %v846_v60 }
 0x2ba   :  { %v1379_v56 = vpop.f32.mrf.mxu1 }
 0x2bb   :  { %v1234_v51 = vmax.f32 %v1202_v9, 0.0  ;;  %v1380_v4 = vadd.f32 %v1379_v56, %v7136_v11  ;;  %v1155_v9 = vpop.f32.mrf.mxu0 }
 0x2bc   :  { %v813_v55 = vpop.f32.mrf.mxu2 }
 0x2bd   :  { %v1469_v22 = vmax.f32 %v1380_v4, 0.0  ;;  %5757 = vmatmul.msk.f32.gmra.mxu1 %vm355_vm2, %v1234_v51  ;;  %v814_v12 = vadd.f32 %v813_v55, %v6951_v47 }
 0x2be   :  { %v1030_v53 = vpop.f32.mrf.mxu3 }
 0x2bf   :  { %v1147_v54 = vadd.f32 %v1146_v48, %v1030_v53  ;;  %5773 = vmatmul.msk.f32.gmra.mxu2 %vm355_vm2, %v1469_v22  ;;  %v847_v17 = vmax.f32 %v814_v12, 0.0 }
 0x2c1   :  { %v1203_v57 = vadd.f32 %v7054_v61, %v1147_v54  ;;  %5704 = vmatmul.msk.f32.gmra.mxu3 %vm355_vm2, %v847_v17 }
 0x2c2   :  { %v1382_v10 = vpop.f32.mrf.mxu1 }
 0x2c3   :  { %v1235_v58 = vmax.f32 %v1203_v57, 0.0  ;;  %v1383_v23 = vadd.f32 %v1382_v10, %v7136_v11  ;;  %v1158_v22 = vpop.f32.mrf.mxu0 }
 0x2c5   :  { %v1470_v62 = vmax.f32 %v1383_v23, 0.0  ;;  %5758 = vmatmul.msk.f32.gmra.mxu1 %vm355_vm2, %v1235_v58 }
 0x2c6   :  { %v1033_v63 = vpop.f32.mrf.mxu3 }
 0x2c7   :  { %v1150_v27 = vadd.f32 %v1149_v59, %v1033_v63  ;;  %5774 = vmatmul.msk.f32.gmra.mxu2 %vm355_vm2, %v1470_v62 }
 0x2c9   :  { %v1204_v25 = vadd.f32 %v7054_v61, %v1150_v27 }
 0x2ca   :  { %v1385_v16 = vpop.f32.mrf.mxu1 }
 0x2cb   :  { %v1236_v13 = vmax.f32 %v1204_v25, 0.0  ;;  %v1386_v29 = vadd.f32 %v1385_v16, %v7136_v11  ;;  %v1161_v23 = vpop.f32.mrf.mxu0  ;;  %v7204_v16 = vperm.slane %v7133_v14, 5 }
 0x2cd   :  { %v1471_v26 = vmax.f32 %v1386_v29, 0.0  ;;  %5759 = vmatmul.msk.f32.gmra.mxu1 %vm355_vm2, %v1236_v13 }
 0x2cf   :  { %5775 = vmatmul.msk.f32.gmra.mxu2 %vm355_vm2, %v1471_v26 }
 0x2d2   :  { %v1388_v18 = vpop.f32.mrf.mxu1 }
 0x2d3   :  { %v1389_v33 = vadd.f32 %v1388_v18, %v7136_v11  ;;  %v1164_v12 = vpop.f32.mrf.mxu0 }
 0x2d5   :  { %v1472_v20 = vmax.f32 %v1389_v33, 0.0 }
 0x2d7   :  { %5776 = vmatmul.msk.f32.gmra.mxu2 %vm355_vm2, %v1472_v20 }
 0x2da   :  { %v1391_v47 = vpop.f32.mrf.mxu1 }
 0x2db   :  { %v1392_v21 = vadd.f32 %v1391_v47, %v7136_v11 }
 0x2dc   :  { %v1036_v39 = vpop.f32.mrf.mxu3 }
 0x2dd   :  { %v1473_v28 = vmax.f32 %v1392_v21, 0.0  ;;  %v1153_v43 = vadd.f32 %v1152_v8, %v1036_v39 }
 0x2df   :  { %5777 = vmatmul.msk.f32.gmra.mxu2 %vm355_vm2, %v1473_v28  ;;  %v1205_v19 = vadd.f32 %v7054_v61, %v1153_v43  ;;  %v1167_v28 = vpop.f32.mrf.mxu0 }
 0x2e1   :  { %v1237_v46 = vmax.f32 %v1205_v19, 0.0 }
 0x2e2   :  { %v1394_v30 = vpop.f32.mrf.mxu1 }
 0x2e3   :  { %v1395_v37 = vadd.f32 %v1394_v30, %v7136_v11  ;;  %5760 = vmatmul.msk.f32.gmra.mxu1 %vm355_vm2, %v1237_v46 }
 0x2e4   :  { %v1039_v3 = vpop.f32.mrf.mxu3 }
 0x2e5   :  { %v1474_v24 = vmax.f32 %v1395_v37, 0.0  ;;  %v1156_v48 = vadd.f32 %v1155_v9, %v1039_v3 }
 0x2e7   :  { %5778 = vmatmul.msk.f32.gmra.mxu2 %vm355_vm2, %v1474_v24  ;;  %v1206_v51 = vadd.f32 %v7054_v61, %v1156_v48 }
 0x2e9   :  { %v1238_v52 = vmax.f32 %v1206_v51, 0.0 }
 0x2ea   :  { %v1397_v32 = vpop.f32.mrf.mxu1 }
 0x2eb   :  { %v1398_v7 = vadd.f32 %v1397_v32, %v7136_v11  ;;  %5761 = vmatmul.msk.f32.gmra.mxu1 %vm355_vm2, %v1238_v52 }
 0x2ed   :  { %v1475_v41 = vmax.f32 %v1398_v7, 0.0 }
 0x2ee   :  { %v1042_v53 = vpop.f32.mrf.mxu3 }
 0x2ef   :  { %5779 = vmatmul.msk.f32.gmra.mxu2 %vm355_vm2, %v1475_v41  ;;  %v1159_v57 = vadd.f32 %v1158_v22, %v1042_v53 }
 0x2f1   :  { %v1207_v10 = vadd.f32 %v7054_v61, %v1159_v57 }
 0x2f2   :  { %v1400_v31 = vpop.f32.mrf.mxu1 }
 0x2f3   :  { %v1401_v34 = vadd.f32 %v1400_v31, %v7136_v11  ;;  %v1239_v58 = vmax.f32 %v1207_v10, 0.0 }
 0x2f5   :  { %v1476_v35 = vmax.f32 %v1401_v34, 0.0  ;;  %5762 = vmatmul.msk.f32.gmra.mxu1 %vm355_vm2, %v1239_v58 }
 0x2f7   :  { %5780 = vmatmul.msk.f32.gmra.mxu2 %vm355_vm2, %v1476_v35 }
 0x2f8   :  { %v1045_v59 = vpop.f32.mrf.mxu3 }
 0x2f9   :  { %v1162_v62 = vadd.f32 %v1161_v23, %v1045_v59 }
 0x2fa   :  { %v1403_v45 = vpop.f32.mrf.mxu1 }
 0x2fb   :  { %v1404_v36 = vadd.f32 %v1403_v45, %v7136_v11  ;;  %v1208_v27 = vadd.f32 %v7054_v61, %v1162_v62  ;;  %v1170_v45 = vpop.f32.mrf.mxu0 }
 0x2fd   :  { %v1477_v38 = vmax.f32 %v1404_v36, 0.0  ;;  %v1240_v55 = vmax.f32 %v1208_v27, 0.0 }
 0x2ff   :  { %5781 = vmatmul.msk.f32.gmra.mxu2 %vm355_vm2, %v1477_v38  ;;  %5763 = vmatmul.msk.f32.gmra.mxu1 %vm355_vm2, %v1240_v55 }
 0x302   :  { %v1406_v49 = vpop.f32.mrf.mxu1 }
 0x303   :  { %v1407_v44 = vadd.f32 %v1406_v49, %v7136_v11  ;;  %v1048_v13 = vpop.f32.mrf.mxu3  ;;  %v1173_v19 = vpop.f32.mrf.mxu0 }
 0x304   :  { %v1165_v26 = vadd.f32 %v1164_v12, %v1048_v13 }
 0x305   :  { %v1478_v1 = vmax.f32 %v1407_v44, 0.0 }
 0x306   :  { %v1209_v33 = vadd.f32 %v7054_v61, %v1165_v26 }
 0x307   :  { %5782 = vmatmul.msk.f32.gmra.mxu2 %vm355_vm2, %v1478_v1 }
 0x308   :  { %v1241_v21 = vmax.f32 %v1209_v33, 0.0 }
 0x30a   :  { %v1409_v40 = vpop.f32.mrf.mxu1  ;;  %5764 = vmatmul.msk.f32.gmra.mxu1 %vm355_vm2, %v1241_v21 }
 0x30b   :  { %v1410_v2 = vadd.f32 %v1409_v40, %v7136_v11  ;;  %v1051_v30 = vpop.f32.mrf.mxu3  ;;  %v1176_v22 = vpop.f32.mrf.mxu0 }
 0x30c   :  { %v1168_v32 = vadd.f32 %v1167_v28, %v1051_v30 }
 0x30d   :  { %v1479_v42 = vmax.f32 %v1410_v2, 0.0 }
 0x30e   :  { %v1210_v15 = vadd.f32 %v7054_v61, %v1168_v32 }
 0x30f   :  { %5783 = vmatmul.msk.f32.gmra.mxu2 %vm355_vm2, %v1479_v42 }
 0x310   :  { %v1242_v35 = vmax.f32 %v1210_v15, 0.0 }
 0x312   :  { %v1412_v56 = vpop.f32.mrf.mxu1  ;;  %5765 = vmatmul.msk.f32.gmra.mxu1 %vm355_vm2, %v1242_v35 }
 0x313   :  { %v1413_v50 = vadd.f32 %v1412_v56, %v7136_v11  ;;  %v1179_v62 = vpop.f32.mrf.mxu0 }
 0x315   :  { %v1480_v4 = vmax.f32 %v1413_v50, 0.0 }
 0x317   :  { %5784 = vmatmul.msk.f32.gmra.mxu2 %vm355_vm2, %v1480_v4 }
 0x318   :  { %v1054_v36 = vpop.f32.mrf.mxu3 }
 0x319   :  { %v1171_v44 = vadd.f32 %v1170_v45, %v1054_v36 }
 0x31a   :  { %v1415_v54 = vpop.f32.mrf.mxu1 }
 0x31b   :  { %v1416_v5 = vadd.f32 %v1415_v54, %v7136_v11  ;;  %v1211_v39 = vadd.f32 %v7054_v61, %v1171_v44 }
 0x31d   :  { %v1481_v0 = vmax.f32 %v1416_v5, 0.0  ;;  %v1243_v2 = vmax.f32 %v1211_v39, 0.0 }
 0x31f   :  { %5785 = vmatmul.msk.f32.gmra.mxu2 %vm355_vm2, %v1481_v0  ;;  %5766 = vmatmul.msk.f32.gmra.mxu1 %vm355_vm2, %v1243_v2 }
 0x320   :  { %v1057_v42 = vpop.f32.mrf.mxu3 }
 0x321   :  { %v1174_v3 = vadd.f32 %v1173_v19, %v1057_v42 }
 0x322   :  { %v1418_v60 = vpop.f32.mrf.mxu1 }
 0x323   :  { %v1419_v63 = vadd.f32 %v1418_v60, %v7136_v11  ;;  %v1212_v50 = vadd.f32 %v7054_v61, %v1174_v3 }
 0x325   :  { %v1482_v25 = vmax.f32 %v1419_v63, 0.0  ;;  %v1244_v52 = vmax.f32 %v1212_v50, 0.0 }
 0x327   :  { %5786 = vmatmul.msk.f32.gmra.mxu2 %vm355_vm2, %v1482_v25  ;;  %5767 = vmatmul.msk.f32.gmra.mxu1 %vm355_vm2, %v1244_v52 }
 0x32a   :  { %v1421_v29 = vpop.f32.mrf.mxu1  ;;  %v1621_v17 = vpop.f32.mrf.mxu2 }
 0x32b   :  { %v1422_v6 = vadd.f32 %v1421_v29, %v7136_v11  ;;  %v7209_v18 = vadd.f32 %v1621_v17, %v7204_v16 }
 0x32d   :  { %v1483_v20 = vmax.f32 %v1422_v6, 0.0  ;;  %v9656_v47 = vmax.f32 %v7209_v18, 0.0 }
 0x32f   :  { %5787 = vmatmul.msk.f32.gmra.mxu2 %vm355_vm2, %v1483_v20  ;;  %5802 = vmatmul.msk.f32.vlgmr.msrb.gmra.mxu3 %vm355_vm2, %v9656_v47 }
 0x332   :  { %v1424_v37 = vpop.f32.mrf.mxu1  ;;  %v1624_v24 = vpop.f32.mrf.mxu2 }
 0x333   :  { %v1425_v7 = vadd.f32 %v1424_v37, %v7136_v11  ;;  %v7220_v41 = vadd.f32 %v1624_v24, %v7204_v16 }
 0x335   :  { %v1484_v31 = vmax.f32 %v1425_v7, 0.0  ;;  %v9657_v34 = vmax.f32 %v7220_v41, 0.0 }
 0x337   :  { %5788 = vmatmul.msk.f32.gmra.mxu2 %vm355_vm2, %v1484_v31  ;;  %5803 = vmatmul.msk.f32.gmra.mxu3 %vm355_vm2, %v9657_v34 }
 0x33a   :  { %v1427_v38 = vpop.f32.mrf.mxu1  ;;  %v1627_v49 = vpop.f32.mrf.mxu2 }
 0x33b   :  { %v1428_v1 = vadd.f32 %v1427_v38, %v7136_v11  ;;  %v7231_v8 = vadd.f32 %v1627_v49, %v7204_v16 }
 0x33c   :  { %v1060_v53 = vpop.f32.mrf.mxu3 }
 0x33d   :  { %9701 = vst [vmem:[#allocation15_spill] sm:$0xff] %v7231_v8  ;;  %v1485_v40 = vmax.f32 %v1428_v1, 0.0  ;;  %v9648_v43 = vmax.f32 %v7231_v8, 0.0  ;;  %v1177_v5 = vadd.f32 %v1176_v22, %v1060_v53 }
 0x33f   :  { %5789 = vmatmul.msk.f32.gmra.mxu2 %vm355_vm2, %v1485_v40  ;;  %5804 = vmatmul.msk.f32.gmra.mxu3 %vm355_vm2, %v9648_v43  ;;  %v1213_v58 = vadd.f32 %v7054_v61, %v1177_v5 }
 0x341   :  { %v1245_v60 = vmax.f32 %v1213_v58, 0.0 }
 0x342   :  { %v1430_v46 = vpop.f32.mrf.mxu1  ;;  %v1630_v9 = vpop.f32.mrf.mxu2 }
 0x343   :  { %v1431_v56 = vadd.f32 %v1430_v46, %v7136_v11  ;;  %v7242_v48 = vadd.f32 %v1630_v9, %v7204_v16  ;;  %5768 = vmatmul.msk.f32.gmra.mxu1 %vm355_vm2, %v1245_v60 }
 0x344   :  { %v1063_v63 = vpop.f32.mrf.mxu3 }
 0x345   :  { %v1486_v51 = vmax.f32 %v1431_v56, 0.0  ;;  %v9652_v4 = vmax.f32 %v7242_v48, 0.0  ;;  %v1180_v25 = vadd.f32 %v1179_v62, %v1063_v63 }
 0x347   :  { %5790 = vmatmul.msk.f32.gmra.mxu2 %vm355_vm2, %v1486_v51  ;;  %5805 = vmatmul.msk.f32.gmra.mxu3 %vm355_vm2, %v9652_v4  ;;  %v1214_v12 = vadd.f32 %v7054_v61, %v1180_v25 }
 0x349   :  { %v1246_v29 = vmax.f32 %v1214_v12, 0.0 }
 0x34a   :  { %v1433_v54 = vpop.f32.mrf.mxu1  ;;  %v1633_v57 = vpop.f32.mrf.mxu2 }
 0x34b   :  { %v1434_v10 = vadd.f32 %v1433_v54, %v7136_v11  ;;  %v7253_v0 = vadd.f32 %v1633_v57, %v7204_v16  ;;  %5769 = vmatmul.msk.f32.gmra.mxu1 %vm355_vm2, %v1246_v29 }
 0x34d   :  { %9702 = vst [vmem:[#allocation16_spill] sm:$0xff] %v7253_v0  ;;  %v1487_v23 = vmax.f32 %v1434_v10, 0.0  ;;  %v9646_v59 = vmax.f32 %v7253_v0, 0.0 }
 0x34f   :  { %5791 = vmatmul.msk.f32.gmra.mxu2 %vm355_vm2, %v1487_v23  ;;  %5806 = vmatmul.msk.f32.gmra.mxu3 %vm355_vm2, %v9646_v59 }
 0x352   :  { %v1636_v27 = vpop.f32.mrf.mxu2 }
 0x353   :  { %v7263_v55 = vadd.f32 %v1636_v27, %v7204_v16 }
 0x355   :  { %9703 = vst [vmem:[#allocation17_spill] sm:$0xff] %v7263_v55  ;;  %v9642_v13 = vmax.f32 %v7263_v55, 0.0 }
 0x357   :  { %5807 = vmatmul.msk.f32.gmra.mxu3 %vm355_vm2, %v9642_v13 }
 0x35a   :  { %v1639_v17 = vpop.f32.mrf.mxu2 }
 0x35b   :  { %v7272_v26 = vadd.f32 %v1639_v17, %v7204_v16 }
 0x35d   :  { %9704 = vst [vmem:[#allocation18_spill] sm:$0xff] %v7272_v26  ;;  %v9641_v6 = vmax.f32 %v7272_v26, 0.0 }
 0x35f   :  { %5808 = vmatmul.msk.f32.gmra.mxu3 %vm355_vm2, %v9641_v6 }
 0x360   :  { %v1436_v1 = vpop.f32.mrf.mxu1 }
 0x361   :  { %v1437_v39 = vadd.f32 %v1436_v1, %v7136_v11 }
 0x362   :  { %v1642_v61 = vpop.f32.mrf.mxu2 }
 0x363   :  { %v7279_v33 = vadd.f32 %v1642_v61, %v7204_v16  ;;  %v1488_v40 = vmax.f32 %v1437_v39, 0.0 }
 0x365   :  { %9705 = vst [vmem:[#allocation19_spill] sm:$0xff] %v7279_v33  ;;  %v9640_v20 = vmax.f32 %v7279_v33, 0.0  ;;  %5792 = vmatmul.msk.f32.gmra.mxu2 %vm355_vm2, %v1488_v40 }
 0x367   :  { %5809 = vmatmul.msk.f32.gmra.mxu3 %vm355_vm2, %v9640_v20 }
 0x368   :  { %v1439_v46 = vpop.f32.mrf.mxu1 }
 0x369   :  { %v1440_v9 = vadd.f32 %v1439_v46, %v7136_v11 }
 0x36a   :  { %v1645_v21 = vpop.f32.mrf.mxu2 }
 0x36b   :  { %v7286_v28 = vadd.f32 %v1645_v21, %v7204_v16  ;;  %v1489_v3 = vmax.f32 %v1440_v9, 0.0 }
 0x36d   :  { %9706 = vst [vmem:[#allocation20_spill] sm:$0xff] %v7286_v28  ;;  %v9639_v30 = vmax.f32 %v7286_v28, 0.0  ;;  %5793 = vmatmul.msk.f32.gmra.mxu2 %vm355_vm2, %v1489_v3 }
 0x36f   :  { %5810 = vmatmul.msk.f32.gmra.mxu3 %vm355_vm2, %v9639_v30 }
 0x372   :  { %v1648_v37 = vpop.f32.mrf.mxu2  ;;  %v1442_v52 = vpop.f32.mrf.mxu1 }
 0x373   :  { %v7293_v24 = vadd.f32 %v1648_v37, %v7204_v16  ;;  %v1443_v22 = vadd.f32 %v1442_v52, %v7136_v11  ;;  %v7363_v37 = vperm.slane %v7133_v14, 6 }
 0x375   :  { %9707 = vst [vmem:[#allocation21_spill] sm:$0xff] %v7293_v24  ;;  %v9638_v32 = vmax.f32 %v7293_v24, 0.0  ;;  %v1490_v53 = vmax.f32 %v1443_v22, 0.0 }
 0x377   :  { %5811 = vmatmul.msk.f32.gmra.mxu3 %vm355_vm2, %v9638_v32  ;;  %5794 = vmatmul.msk.f32.gmra.mxu2 %vm355_vm2, %v1490_v53 }
 0x37a   :  { %v1651_v7 = vpop.f32.mrf.mxu2 }
 0x37b   :  { %v7300_v15 = vadd.f32 %v1651_v7, %v7204_v16 }
 0x37c   :  { %v1445_v10 = vpop.f32.mrf.mxu1 }
 0x37d   :  { %9708 = vst [vmem:[#allocation22_spill] sm:$0xff] %v7300_v15  ;;  %v9637_v31 = vmax.f32 %v7300_v15, 0.0  ;;  %v1446_v58 = vadd.f32 %v1445_v10, %v7136_v11 }
 0x37f   :  { %5812 = vmatmul.msk.f32.gmra.mxu3 %vm355_vm2, %v9637_v31  ;;  %v1491_v23 = vmax.f32 %v1446_v58, 0.0 }
 0x381   :  { %5795 = vmatmul.msk.f32.gmra.mxu2 %vm355_vm2, %v1491_v23 }
 0x382   :  { %v1654_v35 = vpop.f32.mrf.mxu2 }
 0x383   :  { %v7307_v45 = vadd.f32 %v1654_v35, %v7204_v16 }
 0x385   :  { %9709 = vst [vmem:[#allocation23_spill] sm:$0xff] %v7307_v45  ;;  %v9636_v36 = vmax.f32 %v7307_v45, 0.0 }
 0x387   :  { %5813 = vmatmul.msk.f32.gmra.mxu3 %vm355_vm2, %v9636_v36  ;;  %v1448_v27 = vpop.f32.mrf.mxu1 }
 0x388   :  { %v1449_v25 = vadd.f32 %v1448_v27, %v7136_v11 }
 0x38a   :  { %v1657_v38 = vpop.f32.mrf.mxu2  ;;  %v1492_v12 = vmax.f32 %v1449_v25, 0.0 }
 0x38b   :  { %v7314_v49 = vadd.f32 %v1657_v38, %v7204_v16 }
 0x38c   :  { %5796 = vmatmul.msk.f32.gmra.mxu2 %vm355_vm2, %v1492_v12 }
 0x38d   :  { %9710 = vst [vmem:[#allocation24_spill] sm:$0xff] %v7314_v49  ;;  %v9635_v44 = vmax.f32 %v7314_v49, 0.0 }
 0x38f   :  { %5814 = vmatmul.msk.f32.gmra.mxu3 %vm355_vm2, %v9635_v44  ;;  %v1451_v7 = vpop.f32.mrf.mxu1 }
 0x390   :  { %v1452_v35 = vadd.f32 %v1451_v7, %v7136_v11 }
 0x392   :  { %v1660_v2 = vpop.f32.mrf.mxu2  ;;  %v1493_v1 = vmax.f32 %v1452_v35, 0.0 }
 0x393   :  { %v7323_v19 = vadd.f32 %v1660_v2, %v7204_v16 }
 0x394   :  { %5797 = vmatmul.msk.f32.gmra.mxu2 %vm355_vm2, %v1493_v1 }
 0x395   :  { %9711 = vst [vmem:[#allocation25_spill] sm:$0xff] %v7323_v19  ;;  %v9634_v42 = vmax.f32 %v7323_v19, 0.0 }
 0x397   :  { %5815 = vmatmul.msk.f32.gmra.mxu3 %vm355_vm2, %v9634_v42 }
 0x39a   :  { %v1663_v56 = vpop.f32.mrf.mxu2 }
 0x39b   :  { %v7332_v50 = vadd.f32 %v1663_v56, %v7204_v16 }
 0x39c   :  { %v1454_v52 = vpop.f32.mrf.mxu1 }
 0x39d   :  { %9712 = vst [vmem:[#allocation26_spill] sm:$0xff] %v7332_v50  ;;  %v9632_v51 = vmax.f32 %v7332_v50, 0.0  ;;  %v1455_v22 = vadd.f32 %v1454_v52, %v7136_v11 }
 0x39f   :  { %5816 = vmatmul.msk.f32.gmra.mxu3 %vm355_vm2, %v9632_v51 }
 0x3a2   :  { %v1666_v54 = vpop.f32.mrf.mxu2 }
 0x3a3   :  { %v7341_v57 = vadd.f32 %v1666_v54, %v7204_v16  ;;  %v1494_v54 = vmax.f32 %v1455_v22, 0.0 }
 0x3a5   :  { %9713 = vst [vmem:[#allocation27_spill] sm:$0xff] %v7341_v57  ;;  %v9633_v5 = vmax.f32 %v7341_v57, 0.0  ;;  %5798 = vmatmul.msk.f32.gmra.mxu2 %vm355_vm2, %v1494_v54 }
 0x3a7   :  { %5817 = vmatmul.msk.f32.gmra.mxu3 %vm355_vm2, %v9633_v5 }
 0x3aa   :  { %v1669_v60 = vpop.f32.mrf.mxu2 }
 0x3ab   :  { %v7350_v62 = vadd.f32 %v1669_v60, %v7204_v16 }
 0x3ad   :  { %v9655_v63 = vmax.f32 %v7350_v62, 0.0 }
 0x3af   :  { %5818 = vmatmul.msk.f32.gmra.mxu3 %vm355_vm2, %v9655_v63 }
 0x3b2   :  { %v1672_v29 = vpop.f32.mrf.mxu2  ;;  %v1871_v17 = vpop.f32.mrf.mxu3 }
 0x3b3   :  { %v7358_v61 = vadd.f32 %v1672_v29, %v7204_v16  ;;  %v1968_v38 = vadd.f32 %v7363_v37, %v1871_v17  ;;  %v1457_v29 = vpop.f32.mrf.mxu1 }
 0x3b4   :  { %v1458_v17 = vadd.f32 %v1457_v29, %v7136_v11 }
 0x3b5   :  { %v9654_v21 = vmax.f32 %v7358_v61, 0.0  ;;  %v2001_v14 = vsel %vm2000_vm3, %v1968_v38, -inf }
 0x3b6   :  { %v1495_v1 = vmax.f32 %v1458_v17, 0.0 }
 0x3b7   :  { %5819 = vmatmul.msk.f32.gmra.mxu3 %vm355_vm2, %v9654_v21 }
 0x3b8   :  { %5799 = vmatmul.msk.f32.gmra.mxu2 %vm355_vm2, %v1495_v1 }
 0x3ba   :  { %v1675_v39 = vpop.f32.mrf.mxu2  ;;  %v1874_v40 = vpop.f32.mrf.mxu3 }
 0x3bb   :  { %v7371_v2 = vadd.f32 %v1675_v39, %v7204_v16  ;;  %v1969_v46 = vadd.f32 %v7363_v37, %v1874_v40 }
 0x3bd   :  { %v9653_v9 = vmax.f32 %v7371_v2, 0.0  ;;  %v2002_v3 = vsel %vm2000_vm3, %v1969_v46, -inf }
 0x3be   :  { %v2003_v56 = vmax.f32 %v2001_v14, %v2002_v3 }
 0x3bf   :  { %5820 = vmatmul.msk.f32.gmra.mxu3 %vm355_vm2, %v9653_v9 }
 0x3c0   :  { %v2004_v53 = vrot.slane %v2003_v56, 4 }
 0x3c2   :  { %v2005_v10 = vmax.f32 %v2003_v56, %v2004_v53  ;;  %v1678_v58 = vpop.f32.mrf.mxu2  ;;  %v1877_v23 = vpop.f32.mrf.mxu3 }
 0x3c3   :  { %v7383_v60 = vadd.f32 %v1678_v58, %v7204_v16  ;;  %v1970_v35 = vadd.f32 %v7363_v37, %v1877_v23 }
 0x3c4   :  { %v2006_v27 = vrot.slane %v2005_v10, 2 }
 0x3c5   :  { %9714 = vst [vmem:[#allocation28_spill] sm:$0xff] %v7383_v60  ;;  %v9651_v25 = vmax.f32 %v7383_v60, 0.0  ;;  %v2010_v53 = vsel %vm2000_vm3, %v1970_v35, -inf }
 0x3c6   :  { %v2007_v12 = vmax.f32 %v2005_v10, %v2006_v27 }
 0x3c7   :  { %5821 = vmatmul.msk.f32.gmra.mxu3 %vm355_vm2, %v9651_v25 }
 0x3c8   :  { %v2008_v7 = vrot.slane %v2007_v12, 1 }
 0x3ca   :  { %v2009_v39 = vmax.f32 %v2007_v12, %v2008_v7  ;;  %v1681_v40 = vpop.f32.mrf.mxu2  ;;  %v1880_v14 = vpop.f32.mrf.mxu3 }
 0x3cb   :  { %v7393_v3 = vadd.f32 %v1681_v40, %v7204_v16  ;;  %v1971_v56 = vadd.f32 %v7363_v37, %v1880_v14  ;;  %v1460_v12 = vpop.f32.mrf.mxu1 }
 0x3cc   :  { %v2145_v52 = vsub.f32 %v1968_v38, %v2009_v39  ;;  %v2146_v22 = vsub.f32 %v1969_v46, %v2009_v39  ;;  %v1461_v29 = vadd.f32 %v1460_v12, %v7136_v11 }
 0x3cd   :  { %9715 = vst [vmem:[#allocation29_spill] sm:$0xff] %v7393_v3  ;;  %v9647_v54 = vmax.f32 %v7393_v3, 0.0  ;;  %v2011_v10 = vsel %vm2000_vm3, %v1971_v56, -inf }
 0x3ce   :  { %v2177_v58 = vmul.f32 1.442695, %v2145_v52  ;;  %v2179_v23 = vmul.f32 1.442695, %v2146_v22  ;;  %v2012_v27 = vmax.f32 %v2010_v53, %v2011_v10  ;;  %v1496_v38 = vmax.f32 %v1461_v29, 0.0 }
 0x3cf   :  { %5822 = vmatmul.msk.f32.gmra.mxu3 %vm355_vm2, %v9647_v54 }
 0x3d0   :  { %5914 = vpow2.f32 %v2179_v23  ;;  %v2013_v17 = vrot.slane %v2012_v27, 4  ;;  %5800 = vmatmul.msk.f32.gmra.mxu2 %vm355_vm2, %v1496_v38  ;;  %v6533_v38 = vmov 0  }
 0x3d1   :  { %5916 = vpow2.f32 %v2177_v58  ;;  %5901 = vset.pattern.permute.xlu0 %v6533_v38  ;;  %5903 = vset.pattern.permute.xlu2 %v6533_v38 }
 0x3d2   :  { %v2014_v46 = vmax.f32 %v2012_v27, %v2013_v17  ;;  %v1684_v7 = vpop.f32.mrf.mxu2  ;;  %v1883_v1 = vpop.f32.mrf.mxu3  ;;  %5902 = vset.pattern.permute.xlu1 %v6533_v38 }
 0x3d3   :  { %v7405_v39 = vadd.f32 %v1684_v7, %v7204_v16  ;;  %v1463_v53 = vpop.f32.mrf.mxu1  ;;  %v1972_v29 = vadd.f32 %v7363_v37, %v1883_v1 }
 0x3d4   :  { %v2015_v40 = vrot.slane %v2014_v46, 2  ;;  %v1464_v23 = vadd.f32 %v1463_v53, %v7136_v11 }
 0x3d5   :  { %9716 = vst [vmem:[#allocation30_spill] sm:$0xff] %v7405_v39  ;;  %v9643_v14 = vmax.f32 %v7405_v39, 0.0  ;;  %v2019_v42 = vsel %vm2000_vm3, %v1972_v29, -inf }
 0x3d6   :  { %v7409_v52 = vpop.eup %5914  ;;  %v2016_v22 = vmax.f32 %v2014_v46, %v2015_v40  ;;  %v1497_v17 = vmax.f32 %v1464_v23, 0.0 }
 0x3d7   :  { %v7411_v10 = vpop.eup %5916  ;;  %v2242_v58 = vsel %vm2000_vm3, %v7409_v52, 0.0  ;;  %5823 = vmatmul.msk.f32.gmra.mxu3 %vm355_vm2, %v9643_v14 }
 0x3d8   :  { %v2017_v27 = vrot.slane %v2016_v22, 1  ;;  %v2241_v12 = vsel %vm2000_vm3, %v7411_v10, 0.0  ;;  %5801 = vmatmul.msk.f32.gmra.mxu2 %vm355_vm2, %v1497_v17 }
 0x3d9   :  { %v2243_v46 = vadd.f32 %v2242_v58, %v2241_v12 }
 0x3da   :  { %v2018_v7 = vmax.f32 %v2016_v22, %v2017_v27  ;;  %v1886_v40 = vpop.f32.mrf.mxu3 }
 0x3db   :  { %v1973_v51 = vadd.f32 %v7363_v37, %v1886_v40  ;;  %v2244_v5 = vrot.slane %v2243_v46, 4 }
 0x3dc   :  { %v2147_v11 = vsub.f32 %v1970_v35, %v2018_v7  ;;  %v2148_v53 = vsub.f32 %v1971_v56, %v2018_v7  ;;  %v3042_v35 = vld [vmem:[%s9622_s1] sm:$0x3] }
 0x3dd   :  { %v2020_v44 = vsel %vm2000_vm3, %v1973_v51, -inf  ;;  %v2245_v1 = vadd.f32 %v2244_v5, %v2243_v46  ;;  %3050 = vrot.lane.b32.xlu2 %v3042_v35, %s6534_s13 }
 0x3de   :  { %v2181_v23 = vmul.f32 1.442695, %v2147_v11  ;;  %v2183_v36 = vmul.f32 1.442695, %v2148_v53  ;;  %v2021_v31 = vmax.f32 %v2019_v42, %v2020_v44 }
 0x3df   :  { %v2246_v58 = vrot.slane %v2245_v1, 2 }
 0x3e0   :  { %5918 = vpow2.f32 %v2181_v23  ;;  %v2022_v22 = vrot.slane %v2021_v31, 4 }
 0x3e1   :  { %5920 = vpow2.f32 %v2183_v36  ;;  %v2247_v27 = vadd.f32 %v2246_v58, %v2245_v1 }
 0x3e2   :  { %v2023_v12 = vmax.f32 %v2021_v31, %v2022_v22  ;;  %v1889_v38 = vpop.f32.mrf.mxu3 }
 0x3e3   :  { %v2248_v56 = vrot.slane %v2247_v27, 1  ;;  %v1974_v11 = vadd.f32 %v7363_v37, %v1889_v38 }
 0x3e4   :  { %v2024_v17 = vrot.slane %v2023_v12, 2 }
 0x3e5   :  { %v2249_v5 = vadd.f32 %v2248_v56, %v2247_v27  ;;  %v2028_v56 = vsel %vm2000_vm3, %v1974_v11, -inf }
 0x3e6   :  { %v7430_v46 = vpop.eup %5918  ;;  %v2025_v44 = vmax.f32 %v2023_v12, %v2024_v17 }
 0x3e7   :  { %v7432_v42 = vpop.eup %5920  ;;  %v2250_v36 = vsel %vm2000_vm3, %v7430_v46, 0.0  ;;  %5922 = vrcp.f32 %v2249_v5  ;;  %vm2390_vm5 = vweird.f32 %v2249_v5 }
 0x3e8   :  { %v2251_v31 = vsel %vm2000_vm3, %v7432_v42, 0.0  ;;  %v2026_v7 = vrot.slane %v2025_v44, 1 }
 0x3e9   :  { %v2252_v40 = vadd.f32 %v2251_v31, %v2250_v36 }
 0x3ea   :  { %v2027_v53 = vmax.f32 %v2025_v44, %v2026_v7  ;;  %v1892_v1 = vpop.f32.mrf.mxu3  ;;  %v2396_v7 = vand.u32 2147483648, %v2249_v5 }
 0x3eb   :  { %v2253_v23 = vrot.slane %v2252_v40, 4  ;;  %v1975_v58 = vadd.f32 %v7363_v37, %v1892_v1 }
 0x3ec   :  { %v2149_v22 = vsub.f32 %v1972_v29, %v2027_v53  ;;  %v2150_v27 = vsub.f32 %v1973_v51, %v2027_v53 }
 0x3ed   :  { %v5923_v12 = vpop.eup %5922  ;;  %v2254_v35 = vadd.f32 %v2253_v23, %v2252_v40  ;;  %v2029_v17 = vsel %vm2000_vm3, %v1975_v58, -inf  ;;  %v2394_v40 = vand.u32 2147483647, %v2249_v5 }
 0x3ee   :  { %v2185_v32 = vmul.f32 1.442695, %v2149_v22  ;;  %v2187_v30 = vmul.f32 1.442695, %v2150_v27  ;;  %v2030_v20 = vmax.f32 %v2028_v56, %v2029_v17  ;;  %v2386_v6 = vmul.f32 %v5923_v12, %v2249_v5 }
 0x3ef   :  { %v2255_v36 = vrot.slane %v2254_v35, 2  ;;  %vm2391_vm4 = vweird.f32 %v5923_v12  ;;  %v2397_v27 = vor.u32 1.1754944e-38, %v2396_v7  ;;  %vm2395_vm7 = vcmp.eq.f32.partialorder %v2394_v40, 8.507059e+37 }
 0x3f0   :  { %5924 = vpow2.f32 %v2185_v32  ;;  %v2031_v38 = vrot.slane %v2030_v20, 4  ;;  %v2387_v44 = vsub.f32 1.0, %v2386_v6  ;;  %vm2392_vm6 = vmor %vm2390_vm5, %vm2391_vm4 }
 0x3f1   :  { %v2256_v31 = vadd.f32 %v2255_v36, %v2254_v35  ;;  %5926 = vpow2.f32 %v2187_v30 }
 0x3f2   :  { %v2032_v1 = vmax.f32 %v2030_v20, %v2031_v38  ;;  %v1895_v29 = vpop.f32.mrf.mxu3  ;;  %v2388_v51 = vmul.f32 %v5923_v12, %v2387_v44 }
 0x3f3   :  { %v2257_v53 = vrot.slane %v2256_v31, 1 }
 0x3f4   :  { %v2033_v23 = vrot.slane %v2032_v1, 2  ;;  %v2389_v13 = vadd.f32 %v5923_v12, %v2388_v51 }
 0x3f5   :  { %v2258_v22 = vadd.f32 %v2257_v53, %v2256_v31  ;;  %v7453_v31 = vadd.f32 %v7363_v37, %v1895_v29 }
 0x3f6   :  { %v7442_v56 = vpop.eup %5924  ;;  %v2034_v32 = vmax.f32 %v2032_v1, %v2033_v23  ;;  %v2393_v17 = vsel %vm2392_vm6, %v5923_v12, %v2389_v13 }
 0x3f7   :  { %v7444_v6 = vpop.eup %5926  ;;  %5928 = vrcp.f32 %v2258_v22  ;;  %v2259_v20 = vsel %vm2000_vm3, %v7442_v56, 0.0  ;;  %v2398_v30 = vsel %vm2395_vm7, %v2397_v27, %v2393_v17  ;;  %v2037_v40 = vsel %vm2000_vm3, %v7453_v31, -inf }
 0x3f8   :  { %v2260_v35 = vsel %vm2000_vm3, %v7444_v6, 0.0  ;;  %v2035_v36 = vrot.slane %v2034_v32, 1  ;;  %v2399_v5 = vmul.f32 %v7411_v10, %v2398_v30  ;;  %v2400_v38 = vmul.f32 %v7409_v52, %v2398_v30 }
 0x3f9   :  { %v2261_v44 = vadd.f32 %v2260_v35, %v2259_v20  ;;  %vm2406_vm9 = vweird.f32 %v2258_v22 }
 0x3fa   :  { %v2036_v13 = vmax.f32 %v2034_v32, %v2035_v36  ;;  %2642 = vst.msk [vmem:[%s9629_s8 + $0x8] sm:$0xff] %vm2000_vm3, %v2400_v38  ;;  %2675 = vperm.xlu0 %5901, %v2399_v5   ;;  %v1898_v12 = vpop.f32.mrf.mxu3 }
 0x3fb   :  { %v2262_v7 = vrot.slane %v2261_v44, 4  ;;  %2641 = vst.msk [vmem:[%s9629_s8] sm:$0xff] %vm2000_vm3, %v2399_v5  ;;  %v7464_v52 = vadd.f32 %v7363_v37, %v1898_v12 }
 0x3fc   :  { %v2151_v10 = vsub.f32 %v1974_v11, %v2036_v13  ;;  %v2152_v1 = vsub.f32 %v1975_v58, %v2036_v13  ;;  %v2412_v11 = vand.u32 2147483648, %v2258_v22  ;;  %v2410_v13 = vand.u32 2147483647, %v2258_v22 }
 0x3fd   :  { %v5929_v29 = vpop.eup %5928  ;;  %v2263_v51 = vadd.f32 %v2262_v7, %v2261_v44  ;;  %v2038_v53 = vsel %vm2000_vm3, %v7464_v52, -inf }
 0x3fe   :  { %v2189_v23 = vmul.f32 1.442695, %v2151_v10  ;;  %v2191_v27 = vmul.f32 1.442695, %v2152_v1  ;;  %v2039_v32 = vmax.f32 %v2037_v40, %v2038_v53  ;;  %v2402_v17 = vmul.f32 %v5929_v29, %v2258_v22 }
 0x3ff   :  { %v2264_v20 = vrot.slane %v2263_v51, 2  ;;  %vm2407_vm8 = vweird.f32 %v5929_v29  ;;  %v2413_v1 = vor.u32 1.1754944e-38, %v2412_v11  ;;  %vm2411_vm11 = vcmp.eq.f32.partialorder %v2410_v13, 8.507059e+37 }
 0x400   :  { %5930 = vpow2.f32 %v2189_v23  ;;  %v2040_v30 = vrot.slane %v2039_v32, 4  ;;  %v2403_v35 = vsub.f32 1.0, %v2402_v17  ;;  %vm2408_vm10 = vmor %vm2406_vm9, %vm2407_vm8 }
 0x401   :  { %v2265_v36 = vadd.f32 %v2264_v20, %v2263_v51  ;;  %5932 = vpow2.f32 %v2191_v27  ;;  %v3039_v27 = vld [vmem:[#allocation5 + $0xf0] sm:$0xff] }
 0x402   :  { %v2041_v58 = vmax.f32 %v2039_v32, %v2040_v30  ;;  %2680 = vperm.xlu0 %5901, %v2400_v38   ;;  %v1901_v5 = vpop.f32.mrf.mxu3  ;;  %v2404_v44 = vmul.f32 %v5929_v29, %v2403_v35  ;;  %3059 = vmatpush.msra.mxu0 %v3039_v27 }
 0x403   :  { %v2266_v12 = vrot.slane %v2265_v36, 1  ;;  %3156 = vmatpush.msra.mxu2 %v3039_v27 }
 0x404   :  { %v2042_v7 = vrot.slane %v2041_v58, 2  ;;  %v2405_v14 = vadd.f32 %v5929_v29, %v2404_v44 }
 0x405   :  { %v7470_v10 = vadd.f32 %v2266_v12, %v2265_v36 }
 0x406   :  { %v7472_v40 = vpop.eup %5930  ;;  %v2043_v53 = vmax.f32 %v2041_v58, %v2042_v7  ;;  %v2409_v51 = vsel %vm2408_vm10, %v5929_v29, %v2405_v14  ;;  %v7484_v29 = vadd.f32 %v7363_v37, %v1901_v5 }
 0x407   :  { %v7474_v23 = vpop.eup %5932  ;;  %5934 = vrcp.f32 %v7470_v10  ;;  %v2268_v38 = vsel %vm2000_vm3, %v7472_v40, 0.0  ;;  %v2414_v32 = vsel %vm2411_vm11, %v2413_v1, %v2409_v51  ;;  %vm2422_vm13 = vweird.f32 %v7470_v10 }
 0x408   :  { %v2269_v22 = vsel %vm2000_vm3, %v7474_v23, 0.0  ;;  %v2044_v17 = vrot.slane %v2043_v53, 1  ;;  %v2416_v20 = vmul.f32 %v7432_v42, %v2414_v32  ;;  %v2415_v30 = vmul.f32 %v7430_v46, %v2414_v32 }
 0x409   :  { %v2270_v14 = vadd.f32 %v2269_v22, %v2268_v38  ;;  %v2046_v13 = vsel %vm2000_vm3, %v7484_v29, -inf  ;;  %v2428_v22 = vand.u32 2147483648, %v7470_v10 }
 0x40a   :  { %v2045_v35 = vmax.f32 %v2043_v53, %v2044_v17  ;;  %2690 = vperm.xlu0 %5901, %v2416_v20   ;;  %2644 = vst.msk [vmem:[%s9629_s8 + $0x18] sm:$0xff] %vm2000_vm3, %v2416_v20  ;;  %2685 = vperm.xlu2 %5903, %v2415_v30   ;;  %v1904_v36 = vpop.f32.mrf.mxu3 }
 0x40b   :  { %v2271_v11 = vrot.slane %v2270_v14, 4  ;;  %2643 = vst.msk [vmem:[%s9629_s8 + $0x10] sm:$0xff] %vm2000_vm3, %v2415_v30  ;;  %v7495_v46 = vadd.f32 %v7363_v37, %v1904_v36 }
 0x40c   :  { %v2153_v42 = vsub.f32 %v7453_v31, %v2045_v35  ;;  %v2154_v58 = vsub.f32 %v7464_v52, %v2045_v35  ;;  %v3043_v31 = vld [vmem:[%s9623_s2] sm:$0x3] }
 0x40d   :  { %v5935_v5 = vpop.eup %5934  ;;  %v2272_v44 = vadd.f32 %v2271_v11, %v2270_v14  ;;  %v2047_v12 = vsel %vm2000_vm3, %v7495_v46, -inf  ;;  %v2426_v14 = vand.u32 2147483647, %v7470_v10 }
 0x40e   :  { %v2193_v7 = vmul.f32 1.442695, %v2153_v42  ;;  %v2195_v1 = vmul.f32 1.442695, %v2154_v58  ;;  %v2048_v53 = vmax.f32 %v2046_v13, %v2047_v12  ;;  %v2418_v51 = vmul.f32 %v5935_v5, %v7470_v10 }
 0x40f   :  { %v2273_v38 = vrot.slane %v2272_v44, 2  ;;  %vm2423_vm12 = vweird.f32 %v5935_v5  ;;  %v2429_v58 = vor.u32 1.1754944e-38, %v2428_v22  ;;  %vm2427_vm15 = vcmp.eq.f32.partialorder %v2426_v14, 8.507059e+37 }
 0x410   :  { %5936 = vpow2.f32 %v2193_v7  ;;  %v2049_v52 = vrot.slane %v2048_v53, 4  ;;  %v2419_v27 = vsub.f32 1.0, %v2418_v51  ;;  %vm2424_vm14 = vmor %vm2422_vm13, %vm2423_vm12 }
 0x411   :  { %v2274_v32 = vadd.f32 %v2273_v38, %v2272_v44  ;;  %5938 = vpow2.f32 %v2195_v1 }
 0x412   :  { %v2050_v17 = vmax.f32 %v2048_v53, %v2049_v52  ;;  %3139 = vrot.lane.b32.xlu0 %v3043_v31, %s6534_s13  ;;  %v1907_v20 = vpop.f32.mrf.mxu3  ;;  %v2420_v30 = vmul.f32 %v5935_v5, %v2419_v27  ;;  %v3037_v53 = vld [vmem:[#allocation5 + $0xe0] sm:$0xff]  ;;  %v1687_v52 = vpop.f32.mrf.mxu2 }
 0x413   :  { %v2275_v35 = vrot.slane %v2274_v32, 1  ;;  %3060 = vmatpush.msra.mxu0 %v3037_v53  ;;  %3157 = vmatpush.msra.mxu2 %v3037_v53  ;;  %v7530_v22 = vadd.f32 %v1687_v52, %v7204_v16 }
 0x414   :  { %v2051_v36 = vrot.slane %v2050_v17, 2  ;;  %v2421_v11 = vadd.f32 %v5935_v5, %v2420_v30 }
 0x415   :  { %v7511_v42 = vadd.f32 %v2275_v35, %v2274_v32  ;;  %v7527_v32 = vadd.f32 %v7363_v37, %v1907_v20  ;;  %9717 = vst [vmem:[#allocation31_spill] sm:$0xff] %v7530_v22  ;;  %v9645_v14 = vmax.f32 %v7530_v22, 0.0 }
 0x416   :  { %v7513_v44 = vpop.eup %5936  ;;  %v2052_v13 = vmax.f32 %v2050_v17, %v2051_v36  ;;  %v2425_v12 = vsel %vm2424_vm14, %v5935_v5, %v2421_v11 }
 0x417   :  { %v7515_v7 = vpop.eup %5938  ;;  %5940 = vrcp.f32 %v7511_v42  ;;  %v2277_v1 = vsel %vm2000_vm3, %v7513_v44, 0.0  ;;  %v2430_v51 = vsel %vm2427_vm15, %v2429_v58, %v2425_v12  ;;  %v2055_v58 = vsel %vm2000_vm3, %v7527_v32, -inf  ;;  %5824 = vmatmul.msk.f32.gmra.mxu3 %vm355_vm2, %v9645_v14 }
 0x418   :  { %v2278_v10 = vsel %vm2000_vm3, %v7515_v7, 0.0  ;;  %v2053_v38 = vrot.slane %v2052_v13, 1  ;;  %v2432_v31 = vmul.f32 %v7444_v6, %v2430_v51  ;;  %v7524_v5 = vmul.f32 %v7442_v56, %v2430_v51 }
 0x419   :  { %v2279_v27 = vadd.f32 %v2278_v10, %v2277_v1  ;;  %vm2438_vm1 = vweird.f32 %v7511_v42 }
 0x41a   :  { %v2054_v17 = vmax.f32 %v2052_v13, %v2053_v38  ;;  %2700 = vperm.xlu0 %5901, %v2432_v31   ;;  %2646 = vst.msk [vmem:[%s9629_s8 + $0x28] sm:$0xff] %vm2000_vm3, %v2432_v31  ;;  %v1910_v6 = vpop.f32.mrf.mxu3  ;;  %v1690_v10 = vpop.f32.mrf.mxu2 }
 0x41b   :  { %v2280_v30 = vrot.slane %v2279_v27, 4  ;;  %v7537_v56 = vadd.f32 %v7363_v37, %v1910_v6  ;;  %2645 = vst.msk [vmem:[%s9629_s8 + $0x20] sm:$0xff] %vm2000_vm3, %v7524_v5  ;;  %v7556_v52 = vadd.f32 %v1690_v10, %v7204_v16  ;;  %v3040_v10 = vld [vmem:[#allocation5 + $0xf8] sm:$0xff] }
 0x41c   :  { %v2155_v20 = vsub.f32 %v7484_v29, %v2054_v17  ;;  %v2156_v35 = vsub.f32 %v7495_v46, %v2054_v17  ;;  %3079 = vmatpush.msra.mxu1 %v3040_v10  ;;  %3176 = vmatpush.msra.mxu3 %v3040_v10 }
 0x41d   :  { %v5941_v36 = vpop.eup %5940  ;;  %v2281_v11 = vadd.f32 %v2280_v30, %v2279_v27  ;;  %v2056_v13 = vsel %vm2000_vm3, %v7537_v56, -inf  ;;  %9718 = vst [vmem:[#allocation32_spill] sm:$0xff] %v7556_v52  ;;  %v2444_v27 = vand.u32 2147483648, %v7511_v42 }
 0x41e   :  { %v2197_v12 = vmul.f32 1.442695, %v2155_v20  ;;  %v2199_v1 = vmul.f32 1.442695, %v2156_v35  ;;  %v2057_v53 = vmax.f32 %v2055_v58, %v2056_v13  ;;  %v2434_v51 = vmul.f32 %v5941_v36, %v7511_v42 }
 0x41f   :  { %v2282_v29 = vrot.slane %v2281_v11, 2  ;;  %vm2439_vm0 = vweird.f32 %v5941_v36  ;;  %v2442_v20 = vand.u32 2147483647, %v7511_v42  ;;  %v9644_v58 = vmax.f32 %v7556_v52, 0.0 }
 0x420   :  { %5942 = vpow2.f32 %v2197_v12  ;;  %v2058_v46 = vrot.slane %v2057_v53, 4  ;;  %v2435_v38 = vsub.f32 1.0, %v2434_v51  ;;  %vm2440_vm4 = vmor %vm2438_vm1, %vm2439_vm0 }
 0x421   :  { %v2283_v31 = vadd.f32 %v2282_v29, %v2281_v11  ;;  %5944 = vpow2.f32 %v2199_v1  ;;  %5825 = vmatmul.msk.f32.gmra.mxu3 %vm355_vm2, %v9644_v58  ;;  %v2445_v1 = vor.u32 1.1754944e-38, %v2444_v27  ;;  %vm2443_vm5 = vcmp.eq.f32.partialorder %v2442_v20, 8.507059e+37 }
 0x422   :  { %v2059_v17 = vmax.f32 %v2057_v53, %v2058_v46  ;;  %v1913_v6 = vpop.f32.mrf.mxu3  ;;  %v2436_v30 = vmul.f32 %v5941_v36, %v2435_v38  ;;  %v3035_v38 = vld [vmem:[#allocation5 + $0xd0] sm:$0xff]  ;;  %v1693_v27 = vpop.f32.mrf.mxu2 }
 0x423   :  { %v2284_v35 = vrot.slane %v2283_v31, 1  ;;  %3061 = vmatpush.msra.mxu0 %v3035_v38  ;;  %3158 = vmatpush.msra.mxu2 %v3035_v38 }
 0x424   :  { %v2060_v13 = vrot.slane %v2059_v17, 2  ;;  %v2437_v12 = vadd.f32 %v5941_v36, %v2436_v30 }
 0x425   :  { %v7562_v11 = vadd.f32 %v2284_v35, %v2283_v31 }
 0x426   :  { %v7567_v53 = vpop.eup %5942  ;;  %v2061_v51 = vmax.f32 %v2059_v17, %v2060_v13  ;;  %v2441_v29 = vsel %vm2440_vm4, %v5941_v36, %v2437_v12  ;;  %v7583_v13 = vadd.f32 %v7363_v37, %v1913_v6  ;;  %v7586_v12 = vadd.f32 %v1693_v27, %v7204_v16 }
 0x427   :  { %v7569_v46 = vpop.eup %5944  ;;  %5946 = vrcp.f32 %v7562_v11  ;;  %v2286_v42 = vsel %vm2000_vm3, %v7567_v53, 0.0  ;;  %v2446_v31 = vsel %vm2443_vm5, %v2445_v1, %v2441_v29  ;;  %v2460_v59 = vand.u32 2147483648, %v7562_v11 }
 0x428   :  { %v2287_v30 = vsel %vm2000_vm3, %v7569_v46, 0.0  ;;  %v2062_v35 = vrot.slane %v2061_v51, 1  ;;  %v7577_v36 = vmul.f32 %v7474_v23, %v2446_v31  ;;  %v7580_v17 = vmul.f32 %v7472_v40, %v2446_v31  ;;  %9719 = vst [vmem:[#allocation33_spill] sm:$0xff] %v7586_v12 }
 0x429   :  { %v2288_v20 = vadd.f32 %v2287_v30, %v2286_v42  ;;  %v9649_v6 = vmax.f32 %v7586_v12, 0.0  ;;  %v2064_v31 = vsel %vm2000_vm3, %v7583_v13, -inf  ;;  %vm2454_vm7 = vweird.f32 %v7562_v11 }
 0x42a   :  { %v2063_v1 = vmax.f32 %v2061_v51, %v2062_v35  ;;  %v1916_v29 = vpop.f32.mrf.mxu3  ;;  %2648 = vst.msk [vmem:[%s9629_s8 + $0x38] sm:$0xff] %vm2000_vm3, %v7577_v36 }
 0x42b   :  { %v2289_v23 = vrot.slane %v2288_v20, 4  ;;  %v7594_v40 = vadd.f32 %v7363_v37, %v1916_v29  ;;  %2647 = vst.msk [vmem:[%s9629_s8 + $0x30] sm:$0xff] %vm2000_vm3, %v7580_v17  ;;  %5826 = vmatmul.msk.f32.gmra.mxu3 %vm355_vm2, %v9649_v6 }
 0x42c   :  { %v2157_v51 = vsub.f32 %v7527_v32, %v2063_v1  ;;  %v2158_v42 = vsub.f32 %v7537_v56, %v2063_v1  ;;  %v1696_v1 = vpop.f32.mrf.mxu2 }
 0x42d   :  { %v5947_v10 = vpop.eup %5946  ;;  %v2290_v38 = vadd.f32 %v2289_v23, %v2288_v20  ;;  %v2065_v30 = vsel %vm2000_vm3, %v7594_v40, -inf  ;;  %v7613_v14 = vadd.f32 %v1696_v1, %v7204_v16  ;;  %v7633_v1 = vld [vmem:[#allocation5 + $0xc0] sm:$0xff] }
 0x42e   :  { %v2201_v35 = vmul.f32 1.442695, %v2157_v51  ;;  %v2203_v27 = vmul.f32 1.442695, %v2158_v42  ;;  %v2066_v29 = vmax.f32 %v2064_v31, %v2065_v30  ;;  %v2450_v58 = vmul.f32 %v5947_v10, %v7562_v11  ;;  %3062 = vmatpush.msra.mxu0 %v7633_v1  ;;  %3159 = vmatpush.msra.mxu2 %v7633_v1 }
 0x42f   :  { %v2291_v32 = vrot.slane %v2290_v38, 2  ;;  %9720 = vst [vmem:[#allocation34_spill] sm:$0xff] %v7613_v14  ;;  %vm2455_vm6 = vweird.f32 %v5947_v10  ;;  %v2458_v51 = vand.u32 2147483647, %v7562_v11  ;;  %v9650_v31 = vmax.f32 %v7613_v14, 0.0  ;;  %v7912_v14 = vld [vmem:[#allocation5 + $0x68] sm:$0xff] }
 0x430   :  { %5948 = vpow2.f32 %v2201_v35  ;;  %v2067_v56 = vrot.slane %v2066_v29, 4  ;;  %v2451_v20 = vsub.f32 1.0, %v2450_v58  ;;  %vm2456_vm8 = vmor %vm2454_vm7, %vm2455_vm6 }
 0x431   :  { %v2292_v23 = vadd.f32 %v2291_v32, %v2290_v38  ;;  %5950 = vpow2.f32 %v2203_v27  ;;  %v2461_v38 = vor.u32 1.1754944e-38, %v2460_v59  ;;  %vm2459_vm9 = vcmp.eq.f32.partialorder %v2458_v51, 8.507059e+37 }
 0x432   :  { %v2068_v54 = vmax.f32 %v2066_v29, %v2067_v56  ;;  %v1919_v43 = vpop.f32.mrf.mxu3  ;;  %v2452_v6 = vmul.f32 %v5947_v10, %v2451_v20  ;;  %v7635_v20 = vld [vmem:[#allocation5 + $0xd8] sm:$0xff] }
 0x433   :  { %v2293_v42 = vrot.slane %v2292_v23, 1  ;;  %5827 = vmatmul.msk.f32.gmra.mxu3 %vm355_vm2, %v9650_v31 }
 0x434   :  { %v2069_v30 = vrot.slane %v2068_v54, 2  ;;  %v2453_v35 = vadd.f32 %v5947_v10, %v2452_v6  ;;  %v7631_v6 = vld [vmem:[#allocation5 + $0xe8] sm:$0xff]  ;;  %v1699_v51 = vpop.f32.mrf.mxu2 }
 0x435   :  { %v7619_v58 = vadd.f32 %v2293_v42, %v2292_v23  ;;  %3080 = vmatpush.msra.mxu1 %v7631_v6  ;;  %3177 = vmatpush.msra.mxu3 %v7631_v6 }
 0x436   :  { %v7624_v27 = vpop.eup %5948  ;;  %v2070_v29 = vmax.f32 %v2068_v54, %v2069_v30  ;;  %v2457_v32 = vsel %vm2456_vm8, %v5947_v10, %v2453_v35  ;;  %v7641_v10 = vld [vmem:[#allocation5 + $0xb0] sm:$0xff] }
 0x437   :  { %v7626_v56 = vpop.eup %5950  ;;  %5952 = vrcp.f32 %v7619_v58  ;;  %v2295_v11 = vsel %vm2000_vm3, %v7624_v27, 0.0  ;;  %v2462_v23 = vsel %vm2459_vm9, %v2461_v38, %v2457_v32  ;;  %v7650_v38 = vadd.f32 %v7363_v37, %v1919_v43  ;;  %3081 = vmatpush.msra.mxu1 %v7635_v20  ;;  %3063 = vmatpush.msra.mxu0 %v7641_v10 }
 0x438   :  { %v2296_v59 = vsel %vm2000_vm3, %v7626_v56, 0.0  ;;  %v2071_v54 = vrot.slane %v2070_v29, 1  ;;  %v7644_v42 = vmul.f32 %v7515_v7, %v2462_v23  ;;  %v7647_v30 = vmul.f32 %v7513_v44, %v2462_v23  ;;  %3178 = vmatpush.msra.mxu3 %v7635_v20  ;;  %3160 = vmatpush.msra.mxu2 %v7641_v10 }
 0x439   :  { %v2297_v35 = vadd.f32 %v2296_v59, %v2295_v11  ;;  %v7653_v32 = vadd.f32 %v1699_v51, %v7204_v16  ;;  %v2476_v47 = vand.u32 2147483648, %v7619_v58  ;;  %vm2470_vm11 = vweird.f32 %v7619_v58 }
 0x43a   :  { %9721 = vst [vmem:[#allocation35_spill] sm:$0xff] %v7647_v30  ;;  %v2072_v31 = vmax.f32 %v2070_v29, %v2071_v54  ;;  %v1922_v25 = vpop.f32.mrf.mxu3 }
 0x43b   :  { %9722 = vst [vmem:[#allocation36_spill] sm:$0xff] %v7653_v32  ;;  %v2298_v43 = vrot.slane %v2297_v35, 4  ;;  %v7665_v44 = vadd.f32 %v7363_v37, %v1922_v25  ;;  %v9659_v7 = vmax.f32 %v7653_v32, 0.0  ;;  %v2073_v25 = vsel %vm2000_vm3, %v7650_v38, -inf }
 0x43c   :  { %2650 = vst.msk [vmem:[%s9629_s8 + $0x48] sm:$0xff] %vm2000_vm3, %v7644_v42  ;;  %v2159_v29 = vsub.f32 %v7583_v13, %v2072_v31  ;;  %v2160_v11 = vsub.f32 %v7594_v40, %v2072_v31  ;;  %v1702_v31 = vpop.f32.mrf.mxu2 }
 0x43d   :  { %2649 = vst.msk [vmem:[%s9629_s8 + $0x40] sm:$0xff] %vm2000_vm3, %v7647_v30  ;;  %v5953_v23 = vpop.eup %5952  ;;  %v2299_v59 = vadd.f32 %v2298_v43, %v2297_v35  ;;  %v2074_v54 = vsel %vm2000_vm3, %v7665_v44, -inf  ;;  %5828 = vmatmul.msk.f32.gmra.mxu3 %vm355_vm2, %v9659_v7  ;;  %v7686_v63 = vadd.f32 %v1702_v31, %v7204_v16 }
 0x43e   :  { %v2205_v51 = vmul.f32 1.442695, %v2159_v29  ;;  %v2207_v4 = vmul.f32 1.442695, %v2160_v11  ;;  %v2075_v9 = vmax.f32 %v2073_v25, %v2074_v54  ;;  %v2466_v21 = vmul.f32 %v5953_v23, %v7619_v58 }
 0x43f   :  { %v2300_v13 = vrot.slane %v2299_v59, 2  ;;  %9723 = vst [vmem:[#allocation37_spill] sm:$0xff] %v7686_v63  ;;  %vm2471_vm10 = vweird.f32 %v5953_v23  ;;  %v2474_v29 = vand.u32 2147483647, %v7619_v58  ;;  %v9660_v25 = vmax.f32 %v7686_v63, 0.0 }
 0x440   :  { %5954 = vpow2.f32 %v2205_v51  ;;  %v2076_v40 = vrot.slane %v2075_v9, 4  ;;  %v2467_v35 = vsub.f32 1.0, %v2466_v21  ;;  %vm2472_vm12 = vmor %vm2470_vm11, %vm2471_vm10 }
 0x441   :  { %v2301_v43 = vadd.f32 %v2300_v13, %v2299_v59  ;;  %5956 = vpow2.f32 %v2207_v4  ;;  %v2477_v4 = vor.u32 1.1754944e-38, %v2476_v47  ;;  %vm2475_vm13 = vcmp.eq.f32.partialorder %v2474_v29, 8.507059e+37 }
 0x442   :  { %v2077_v34 = vmax.f32 %v2075_v9, %v2076_v40  ;;  %v1925_v50 = vpop.f32.mrf.mxu3  ;;  %v2468_v7 = vmul.f32 %v5953_v23, %v2467_v35 }
 0x443   :  { %v2302_v11 = vrot.slane %v2301_v43, 1 }
 0x444   :  { %v2078_v54 = vrot.slane %v2077_v34, 2  ;;  %v2469_v51 = vadd.f32 %v5953_v23, %v2468_v7  ;;  %v7705_v7 = vadd.f32 %v7363_v37, %v1925_v50 }
 0x445   :  { %v7692_v21 = vadd.f32 %v2302_v11, %v2301_v43  ;;  %5829 = vmatmul.msk.f32.gmra.mxu3 %vm355_vm2, %v9660_v25  ;;  %v1705_v43 = vpop.f32.mrf.mxu2 }
 0x446   :  { %v7697_v9 = vpop.eup %5954  ;;  %v2079_v59 = vmax.f32 %v2077_v34, %v2078_v54  ;;  %v2473_v13 = vsel %vm2472_vm12, %v5953_v23, %v2469_v51  ;;  %v7716_v11 = vadd.f32 %v1705_v43, %v7204_v16 }
 0x447   :  { %v7699_v40 = vpop.eup %5956  ;;  %5958 = vrcp.f32 %v7692_v21  ;;  %v2304_v58 = vsel %vm2000_vm3, %v7697_v9, 0.0  ;;  %v2478_v31 = vsel %vm2475_vm13, %v2477_v4, %v2473_v13  ;;  %vm2486_vm15 = vweird.f32 %v7692_v21 }
 0x448   :  { %v2305_v35 = vsel %vm2000_vm3, %v7699_v40, 0.0  ;;  %v2080_v47 = vrot.slane %v2079_v59, 1  ;;  %v7710_v34 = vmul.f32 %v7569_v46, %v2478_v31  ;;  %v7713_v23 = vmul.f32 %v7567_v53, %v2478_v31  ;;  %9726 = vst [vmem:[#allocation40_spill] sm:$0xff] %v7716_v11 }
 0x449   :  { %v2306_v29 = vadd.f32 %v2305_v35, %v2304_v58  ;;  %v2082_v46 = vsel %vm2000_vm3, %v7705_v7, -inf  ;;  %v9665_v53 = vmax.f32 %v7716_v11, 0.0 }
 0x44a   :  { %9724 = vst [vmem:[#allocation38_spill] sm:$0xff] %v7710_v34  ;;  %v2081_v54 = vmax.f32 %v2079_v59, %v2080_v47  ;;  %v1928_v51 = vpop.f32.mrf.mxu3 }
 0x44b   :  { %9725 = vst [vmem:[#allocation39_spill] sm:$0xff] %v7713_v23  ;;  %v2307_v50 = vrot.slane %v2306_v29, 4  ;;  %v7726_v4 = vadd.f32 %v7363_v37, %v1928_v51 }
 0x44c   :  { %2652 = vst.msk [vmem:[%s9629_s8 + $0x58] sm:$0xff] %vm2000_vm3, %v7710_v34  ;;  %v2161_v59 = vsub.f32 %v7650_v38, %v2081_v54  ;;  %v2162_v13 = vsub.f32 %v7665_v44, %v2081_v54  ;;  %v2492_v54 = vand.u32 2147483648, %v7692_v21 }
 0x44d   :  { %2651 = vst.msk [vmem:[%s9629_s8 + $0x50] sm:$0xff] %vm2000_vm3, %v7713_v23  ;;  %v5959_v58 = vpop.eup %5958  ;;  %v2308_v31 = vadd.f32 %v2307_v50, %v2306_v29  ;;  %v2083_v35 = vsel %vm2000_vm3, %v7726_v4, -inf  ;;  %5830 = vmatmul.msk.f32.gmra.mxu3 %vm355_vm2, %v9665_v53  ;;  %v1708_v38 = vpop.f32.mrf.mxu2 }
 0x44e   :  { %v2209_v47 = vmul.f32 1.442695, %v2161_v59  ;;  %v2211_v43 = vmul.f32 1.442695, %v2162_v13  ;;  %v2084_v51 = vmax.f32 %v2082_v46, %v2083_v35  ;;  %v2482_v25 = vmul.f32 %v5959_v58, %v7692_v21 }
 0x44f   :  { %v2309_v57 = vrot.slane %v2308_v31, 2  ;;  %v7743_v29 = vadd.f32 %v1708_v38, %v7204_v16  ;;  %vm2487_vm14 = vweird.f32 %v5959_v58  ;;  %v2490_v46 = vand.u32 2147483647, %v7692_v21  ;;  %v7766_v38 = vld [vmem:[#allocation5 + $0xa0] sm:$0xff] }
 0x450   :  { %5960 = vpow2.f32 %v2211_v43  ;;  %v2085_v19 = vrot.slane %v2084_v51, 4  ;;  %v2483_v49 = vsub.f32 1.0, %v2482_v25  ;;  %vm2488_vm0 = vmor %vm2486_vm15, %vm2487_vm14  ;;  %3064 = vmatpush.msra.mxu0 %v7766_v38  ;;  %3161 = vmatpush.msra.mxu2 %v7766_v38 }
 0x451   :  { %v2310_v44 = vadd.f32 %v2309_v57, %v2308_v31  ;;  %9727 = vst [vmem:[#allocation41_spill] sm:$0xff] %v7743_v29  ;;  %5962 = vpow2.f32 %v2209_v47  ;;  %v9666_v13 = vmax.f32 %v7743_v29, 0.0  ;;  %vm2491_vm1 = vcmp.eq.f32.partialorder %v2490_v46, 8.507059e+37 }
 0x452   :  { %v2086_v50 = vmax.f32 %v2084_v51, %v2085_v19  ;;  %v1931_v11 = vpop.f32.mrf.mxu3  ;;  %v2484_v53 = vmul.f32 %v5959_v58, %v2483_v49  ;;  %v2493_v19 = vor.u32 1.1754944e-38, %v2492_v54 }
 0x453   :  { %v2311_v59 = vrot.slane %v2310_v44, 1  ;;  %v7764_v51 = vadd.f32 %v7363_v37, %v1931_v11 }
 0x454   :  { %v2087_v35 = vrot.slane %v2086_v50, 2  ;;  %v2485_v43 = vadd.f32 %v5959_v58, %v2484_v53  ;;  %v7761_v53 = vld [vmem:[#allocation5 + $0xc8] sm:$0xff] }
 0x455   :  { %v7749_v57 = vadd.f32 %v2311_v59, %v2310_v44  ;;  %5831 = vmatmul.msk.f32.gmra.mxu3 %vm355_vm2, %v9666_v13  ;;  %3082 = vmatpush.msra.mxu1 %v7761_v53 }
 0x456   :  { %v7754_v25 = vpop.eup %5960  ;;  %v2088_v49 = vmax.f32 %v2086_v50, %v2087_v35  ;;  %v2489_v31 = vsel %vm2488_vm0, %v5959_v58, %v2485_v43  ;;  %v1711_v58 = vpop.f32.mrf.mxu2  ;;  %3179 = vmatpush.msra.mxu3 %v7761_v53 }
 0x457   :  { %v7756_v47 = vpop.eup %5962  ;;  %5964 = vrcp.f32 %v7749_v57  ;;  %v2314_v21 = vsel %vm2000_vm3, %v7754_v25, 0.0  ;;  %v2494_v44 = vsel %vm2491_vm1, %v2493_v19, %v2489_v31  ;;  %v7779_v11 = vadd.f32 %v1711_v58, %v7204_v16 }
 0x458   :  { %v2089_v54 = vrot.slane %v2088_v49, 1  ;;  %v2313_v50 = vsel %vm2000_vm3, %v7756_v47, 0.0  ;;  %v7773_v46 = vmul.f32 %v7626_v56, %v2494_v44  ;;  %v7776_v59 = vmul.f32 %v7624_v27, %v2494_v44 }
 0x459   :  { %9730 = vst [vmem:[#allocation44_spill] sm:$0xff] %v7779_v11  ;;  %v2315_v35 = vadd.f32 %v2314_v21, %v2313_v50  ;;  %v2091_v27 = vsel %vm2000_vm3, %v7764_v51, -inf  ;;  %v9674_v31 = vmax.f32 %v7779_v11, 0.0  ;;  %vm2502_vm5 = vweird.f32 %v7749_v57 }
 0x45a   :  { %9728 = vst [vmem:[#allocation42_spill] sm:$0xff] %v7773_v46  ;;  %v2090_v43 = vmax.f32 %v2088_v49, %v2089_v54  ;;  %v1934_v19 = vpop.f32.mrf.mxu3 }
 0x45b   :  { %9729 = vst [vmem:[#allocation43_spill] sm:$0xff] %v7776_v59  ;;  %v7791_v56 = vadd.f32 %v7363_v37, %v1934_v19  ;;  %v2316_v21 = vrot.slane %v2315_v35, 4 }
 0x45c   :  { %2654 = vst.msk [vmem:[%s9629_s8 + $0x68] sm:$0xff] %vm2000_vm3, %v7773_v46  ;;  %v2163_v49 = vsub.f32 %v7705_v7, %v2090_v43  ;;  %v2164_v44 = vsub.f32 %v7726_v4, %v2090_v43 }
 0x45d   :  { %2653 = vst.msk [vmem:[%s9629_s8 + $0x60] sm:$0xff] %vm2000_vm3, %v7776_v59  ;;  %v5965_v54 = vpop.eup %5964  ;;  %v2092_v58 = vsel %vm2000_vm3, %v7791_v56, -inf  ;;  %v2317_v50 = vadd.f32 %v2316_v21, %v2315_v35  ;;  %5832 = vmatmul.msk.f32.gmra.mxu3 %vm355_vm2, %v9674_v31 }
 0x45e   :  { %v2213_v19 = vmul.f32 1.442695, %v2163_v49  ;;  %v2215_v13 = vmul.f32 1.442695, %v2164_v44  ;;  %v2093_v29 = vmax.f32 %v2091_v27, %v2092_v58  ;;  %v2498_v45 = vmul.f32 %v5965_v54, %v7749_v57  ;;  %v1714_v7 = vpop.f32.mrf.mxu2 }
 0x45f   :  { %v2318_v63 = vrot.slane %v2317_v50, 2  ;;  %v7808_v43 = vadd.f32 %v1714_v7, %v7204_v16  ;;  %vm2503_vm4 = vweird.f32 %v5965_v54  ;;  %v2508_v27 = vand.u32 2147483648, %v7749_v57 }
 0x460   :  { %5966 = vpow2.f32 %v2213_v19  ;;  %v2094_v15 = vrot.slane %v2093_v29, 4  ;;  %v2499_v32 = vsub.f32 1.0, %v2498_v45  ;;  %v2506_v19 = vand.u32 2147483647, %v7749_v57  ;;  %vm7819_vm6 = vmor %vm2502_vm5, %vm2503_vm4  ;;  %v7831_v57 = vld [vmem:[#allocation5 + $0xb8] sm:$0xff] }
 0x461   :  { %5968 = vpow2.f32 %v2215_v13  ;;  %v2319_v4 = vadd.f32 %v2318_v63, %v2317_v50  ;;  %9731 = vst [vmem:[#allocation45_spill] sm:$0xff] %v7808_v43  ;;  %v9673_v49 = vmax.f32 %v7808_v43, 0.0  ;;  %v7835_v50 = vld [vmem:[#allocation5 + $0xa8] sm:$0xff]  ;;  %v2509_v7 = vor.u32 1.1754944e-38, %v2508_v27  ;;  %3083 = vmatpush.msra.mxu1 %v7831_v57  ;;  %3180 = vmatpush.msra.mxu3 %v7831_v57 }
 0x462   :  { %v2095_v35 = vmax.f32 %v2093_v29, %v2094_v15  ;;  %v2500_v21 = vmul.f32 %v5965_v54, %v2499_v32  ;;  %vm2507_vm7 = vcmp.eq.f32.partialorder %v2506_v19, 8.507059e+37 }
 0x463   :  { %v2320_v11 = vrot.slane %v2319_v4, 1  ;;  %3084 = vmatpush.msra.mxu1 %v7835_v50  ;;  %3181 = vmatpush.msra.mxu3 %v7835_v50 }
 0x464   :  { %v2096_v44 = vrot.slane %v2095_v35, 2  ;;  %v2501_v58 = vadd.f32 %v5965_v54, %v2500_v21 }
 0x465   :  { %v7814_v45 = vadd.f32 %v2320_v11, %v2319_v4  ;;  %5833 = vmatmul.msk.f32.gmra.mxu3 %vm355_vm2, %v9673_v49  ;;  %v7833_v11 = vld [vmem:[#allocation5 + $0x90] sm:$0xff]  ;;  %v7883_v49 = vld [vmem:[#allocation5 + $0x60] sm:$0xff] }
 0x466   :  { %v7823_v15 = vpop.eup %5966  ;;  %v2097_v63 = vmax.f32 %v2095_v35, %v2096_v44  ;;  %v2505_v32 = vsel %vm7819_vm6, %v5965_v54, %v2501_v58  ;;  %3065 = vmatpush.msra.mxu0 %v7833_v11  ;;  %v7842_v54 = vld [vmem:[#allocation5 + $0x80] sm:$0xff]  ;;  %3162 = vmatpush.msra.mxu2 %v7833_v11 }
 0x467   :  { %v7827_v29 = vpop.eup %5968  ;;  %v2322_v13 = vsel %vm2000_vm3, %v7823_v15, 0.0  ;;  %5970 = vrcp.f32 %v7814_v45  ;;  %v2510_v44 = vsel %vm2507_vm7, %v2509_v7, %v2505_v32  ;;  %v7860_v7 = vld [vmem:[#allocation5 + $0x70] sm:$0xff]  ;;  %vm2518_vm9 = vweird.f32 %v7814_v45 }
 0x468   :  { %v2323_v4 = vsel %vm2000_vm3, %v7827_v29, 0.0  ;;  %v2098_v35 = vrot.slane %v2097_v63, 1  ;;  %3066 = vmatpush.msra.mxu0 %v7842_v54  ;;  %v7849_v27 = vmul.f32 %v7697_v9, %v2510_v44  ;;  %3163 = vmatpush.msra.mxu2 %v7842_v54  ;;  %v7854_v19 = vmul.f32 %v7699_v40, %v2510_v44 }
 0x469   :  { %v2324_v21 = vadd.f32 %v2323_v4, %v2322_v13 }
 0x46a   :  { %v2099_v58 = vmax.f32 %v2097_v63, %v2098_v35  ;;  %9734 = vst [vmem:[#allocation46_spill] sm:$0xff] %v7849_v27  ;;  %v7858_v63 = vld [vmem:[#allocation5 + $0x98] sm:$0xff]  ;;  %3067 = vmatpush.msra.mxu0 %v7860_v7  ;;  %3164 = vmatpush.msra.mxu2 %v7860_v7 }
 0x46b   :  { %v2325_v16 = vrot.slane %v2324_v21, 4  ;;  %9735 = vst [vmem:[#allocation47_spill] sm:$0xff] %v7854_v19  ;;  %3085 = vmatpush.msra.mxu1 %v7858_v63  ;;  %3182 = vmatpush.msra.mxu3 %v7858_v63 }
 0x46c   :  { %v2165_v13 = vsub.f32 %v7764_v51, %v2099_v58  ;;  %v2166_v32 = vsub.f32 %v7791_v56, %v2099_v58  ;;  %2655 = vst.msk [vmem:[%s9629_s8 + $0x70] sm:$0xff] %vm2000_vm3, %v7849_v27  ;;  %3068 = vmatpush.msra.mxu0 %v7883_v49  ;;  %3165 = vmatpush.msra.mxu2 %v7883_v49 }
 0x46d   :  { %v5971_v9 = vpop.eup %5970  ;;  %v2326_v4 = vadd.f32 %v2325_v16, %v2324_v21  ;;  %2656 = vst.msk [vmem:[%s9629_s8 + $0x78] sm:$0xff] %vm2000_vm3, %v7854_v19  ;;  %v7877_v21 = vld [vmem:[#allocation5 + $0x88] sm:$0xff]  ;;  %v2524_v16 = vand.u32 2147483648, %v7814_v45 }
 0x46e   :  { %v2217_v40 = vmul.f32 1.442695, %v2165_v13  ;;  %v2219_v51 = vmul.f32 1.442695, %v2166_v32  ;;  %v2514_v56 = vmul.f32 %v5971_v9, %v7814_v45  ;;  %3086 = vmatpush.msra.mxu1 %v7877_v21  ;;  %3183 = vmatpush.msra.mxu3 %v7877_v21  ;;  %vm2519_vm8 = vweird.f32 %v5971_v9 }
 0x46f   :  { %v2327_v35 = vrot.slane %v2326_v4, 2  ;;  %v2522_v32 = vand.u32 2147483647, %v7814_v45  ;;  %vm2520_vm10 = vmor %vm2518_vm9, %vm2519_vm8 }
 0x470   :  { %5972 = vpow2.f32 %v2217_v40  ;;  %v2515_v44 = vsub.f32 1.0, %v2514_v56 }
 0x471   :  { %v2328_v58 = vadd.f32 %v2327_v35, %v2326_v4  ;;  %5974 = vpow2.f32 %v2219_v51  ;;  %v2525_v4 = vor.u32 1.1754944e-38, %v2524_v16  ;;  %vm2523_vm11 = vcmp.eq.f32.partialorder %v2522_v32, 8.507059e+37 }
 0x472   :  { %v2516_v13 = vmul.f32 %v5971_v9, %v2515_v44 }
 0x473   :  { %v2329_v31 = vrot.slane %v2328_v58, 1 }
 0x474   :  { %v2517_v40 = vadd.f32 %v5971_v9, %v2516_v13 }
 0x475   :  { %v2330_v56 = vadd.f32 %v2329_v31, %v2328_v58 }
 0x476   :  { %v7888_v51 = vpop.eup %5972  ;;  %v2521_v35 = vsel %vm2520_vm10, %v5971_v9, %v2517_v40  ;;  %v7902_v9 = vld [vmem:[#allocation5 + $0x78] sm:$0xff] }
 0x477   :  { %v7890_v44 = vpop.eup %5974  ;;  %5976 = vrcp.f32 %v2330_v56  ;;  %v2331_v43 = vsel %vm2000_vm3, %v7888_v51, 0.0  ;;  %v2526_v19 = vsel %vm2523_vm11, %v2525_v4, %v2521_v35  ;;  %3087 = vmatpush.msra.mxu1 %v7902_v9  ;;  %3184 = vmatpush.msra.mxu3 %v7902_v9  ;;  %vm2534_vm12 = vweird.f32 %v2330_v56  ;;  %v7910_v35 = vld [vmem:[#allocation5 + $0x50] sm:$0xff] }
 0x478   :  { %v2332_v24 = vsel %vm2000_vm3, %v7890_v44, 0.0  ;;  %v2527_v13 = vmul.f32 %v7756_v47, %v2526_v19  ;;  %v2528_v31 = vmul.f32 %v7754_v25, %v2526_v19  ;;  %v2540_v19 = vand.u32 2147483648, %v2330_v56  ;;  %3069 = vmatpush.msra.mxu0 %v7910_v35  ;;  %3166 = vmatpush.msra.mxu2 %v7910_v35 }
 0x479   :  { %v2333_v45 = vadd.f32 %v2332_v24, %v2331_v43  ;;  %v2538_v32 = vand.u32 2147483647, %v2330_v56  ;;  %3088 = vmatpush.msra.mxu1 %v7912_v14  ;;  %3185 = vmatpush.msra.mxu3 %v7912_v14 }
 0x47a   :  { %2658 = vst.msk [vmem:[%s9629_s8 + $0x88] sm:$0xff] %vm2000_vm3, %v2528_v31  ;;  %2755 = vperm.xlu1 %5902, %v2527_v13  }
 0x47b   :  { %v2334_v58 = vrot.slane %v2333_v45, 4  ;;  %2657 = vst.msk [vmem:[%s9629_s8 + $0x80] sm:$0xff] %vm2000_vm3, %v2527_v13  ;;  %v7914_v13 = vld [vmem:[#allocation5 + $0x40] sm:$0xff]  ;;  %vm2539_vm15 = vcmp.eq.f32.partialorder %v2538_v32, 8.507059e+37 }
 0x47c   :  { %3070 = vmatpush.msra.mxu0 %v7914_v13  ;;  %3167 = vmatpush.msra.mxu2 %v7914_v13 }
 0x47d   :  { %v5977_v25 = vpop.eup %5976  ;;  %v2335_v24 = vadd.f32 %v2334_v58, %v2333_v45  ;;  %v2541_v45 = vor.u32 1.1754944e-38, %v2540_v19 }
 0x47e   :  { %v2530_v47 = vmul.f32 %v5977_v25, %v2330_v56  ;;  %vm2535_vm13 = vweird.f32 %v5977_v25  ;;  %v7922_v56 = vld [vmem:[#allocation5 + $0x58] sm:$0xff] }
 0x47f   :  { %v2336_v43 = vrot.slane %v2335_v24, 2  ;;  %vm7916_vm14 = vmor %vm2534_vm12, %vm2535_vm13  ;;  %3089 = vmatpush.msra.mxu1 %v7922_v56  ;;  %3186 = vmatpush.msra.mxu3 %v7922_v56 }
 0x480   :  { %v2531_v16 = vsub.f32 1.0, %v2530_v47 }
 0x481   :  { %v2337_v40 = vadd.f32 %v2336_v43, %v2335_v24 }
 0x482   :  { %2760 = vperm.xlu1 %5902, %v2528_v31   ;;  %v2532_v4 = vmul.f32 %v5977_v25, %v2531_v16 }
 0x483   :  { %v2338_v28 = vrot.slane %v2337_v40, 1 }
 0x484   :  { %v2533_v31 = vadd.f32 %v5977_v25, %v2532_v4 }
 0x485   :  { %v2339_v58 = vadd.f32 %v2338_v28, %v2337_v40 }
 0x486   :  { %v2537_v24 = vsel %vm7916_vm14, %v5977_v25, %v2533_v31 }
 0x487   :  { %5978 = vrcp.f32 %v2339_v58  ;;  %v2542_v47 = vsel %vm2539_vm15, %v2541_v45, %v2537_v24  ;;  %v2556_v25 = vand.u32 2147483648, %v2339_v58  ;;  %vm2550_vm0 = vweird.f32 %v2339_v58 }
 0x488   :  { %v2544_v43 = vmul.f32 %v7827_v29, %v2542_v47  ;;  %v2543_v19 = vmul.f32 %v7823_v15, %v2542_v47  ;;  %v2554_v29 = vand.u32 2147483647, %v2339_v58  ;;  %vm3046_vm15 = vcmask 1041409  }
 0x489   :  { %v2557_v32 = vor.u32 1.1754944e-38, %v2556_v25 }
 0x48a   :  { %2770 = vperm.xlu2 %5903, %v2544_v43   ;;  %2660 = vst.msk [vmem:[%s9629_s8 + $0x98] sm:$0xff] %vm2000_vm3, %v2544_v43  ;;  %2765 = vperm.xlu1 %5902, %v2543_v19   ;;  %vm2555_vm5 = vcmp.eq.f32.partialorder %v2554_v29, 8.507059e+37 }
 0x48b   :  { %2659 = vst.msk [vmem:[%s9629_s8 + $0x90] sm:$0xff] %vm2000_vm3, %v2543_v19 }
 0x48d   :  { %v5979_v28 = vpop.eup %5978 }
 0x48e   :  { %v2546_v12 = vmul.f32 %v5979_v28, %v2339_v58  ;;  %vm2551_vm1 = vweird.f32 %v5979_v28 }
 0x48f   :  { %vm2552_vm4 = vmor %vm2550_vm0, %vm2551_vm1 }
 0x490   :  { %v2547_v16 = vsub.f32 1.0, %v2546_v12 }
 0x492   :  { %2695 = vperm.xlu2 %5903, %v7524_v5   ;;  %v2548_v15 = vmul.f32 %v5979_v28, %v2547_v16 }
 0x494   :  { %v2549_v40 = vadd.f32 %v5979_v28, %v2548_v15  ;;  %v7956_v15 = vld [vmem:[#allocation5 + $0x30] sm:$0xff] }
 0x495   :  { %3071 = vmatpush.msra.mxu0 %v7956_v15  ;;  %3168 = vmatpush.msra.mxu2 %v7956_v15 }
 0x496   :  { %v2553_v4 = vsel %vm2552_vm4, %v5979_v28, %v2549_v40 }
 0x497   :  { %v7943_v45 = vsel %vm2555_vm5, %v2557_v32, %v2553_v4  ;;  %v7958_v32 = vld [vmem:[#allocation5 + $0x48] sm:$0xff] }
 0x498   :  { %v2560_v31 = vmul.f32 %v7890_v44, %v7943_v45  ;;  %3090 = vmatpush.msra.mxu1 %v7958_v32  ;;  %3187 = vmatpush.msra.mxu3 %v7958_v32 }
 0x49a   :  { %2780 = vperm.xlu2 %5903, %v2560_v31   ;;  %2662 = vst.msk [vmem:[%s9629_s8 + $0xa8] sm:$0xff] %vm2000_vm3, %v2560_v31  ;;  %v1937_v58 = vpop.f32.mrf.mxu3 }
 0x49b   :  { %v1990_v5 = vadd.f32 %v7363_v37, %v1937_v58 }
 0x49d   :  { %v2100_v47 = vsel %vm2000_vm3, %v1990_v5, -inf }
 0x4a2   :  { %2710 = vperm.xlu2 %5903, %v7577_v36  }
 0x4a4   :  { %v1940_v24 = vpop.f32.mrf.mxu3 }
 0x4a5   :  { %v1991_v43 = vadd.f32 %v7363_v37, %v1940_v24 }
 0x4a7   :  { %v2101_v19 = vsel %vm2000_vm3, %v1991_v43, -inf }
 0x4a8   :  { %v2102_v28 = vmax.f32 %v2100_v47, %v2101_v19 }
 0x4aa   :  { %v2103_v44 = vrot.slane %v2102_v28, 4 }
 0x4ac   :  { %v2104_v12 = vmax.f32 %v2102_v28, %v2103_v44 }
 0x4ae   :  { %v1943_v25 = vpop.f32.mrf.mxu3  ;;  %v2105_v16 = vrot.slane %v2104_v12, 2 }
 0x4af   :  { %v1992_v40 = vadd.f32 %v7363_v37, %v1943_v25 }
 0x4b0   :  { %v2106_v29 = vmax.f32 %v2104_v12, %v2105_v16 }
 0x4b1   :  { %v2109_v47 = vsel %vm2000_vm3, %v1992_v40, -inf }
 0x4b2   :  { %v2107_v36 = vrot.slane %v2106_v29, 1 }
 0x4b4   :  { %v2108_v4 = vmax.f32 %v2106_v29, %v2107_v36 }
 0x4b6   :  { %v1946_v31 = vpop.f32.mrf.mxu3  ;;  %v2167_v58 = vsub.f32 %v1990_v5, %v2108_v4  ;;  %v2168_v24 = vsub.f32 %v1991_v43, %v2108_v4  ;;  %v7976_v4 = vld [vmem:[#allocation5 + $0x20] sm:$0xff] }
 0x4b7   :  { %v1993_v19 = vadd.f32 %v7363_v37, %v1946_v31  ;;  %v7978_v31 = vld [vmem:[#allocation5 + $0x38] sm:$0xff]  ;;  %3072 = vmatpush.msra.mxu0 %v7976_v4  ;;  %3169 = vmatpush.msra.mxu2 %v7976_v4 }
 0x4b8   :  { %v2221_v28 = vmul.f32 1.442695, %v2167_v58  ;;  %v2223_v44 = vmul.f32 1.442695, %v2168_v24  ;;  %3091 = vmatpush.msra.mxu1 %v7978_v31  ;;  %3188 = vmatpush.msra.mxu3 %v7978_v31 }
 0x4b9   :  { %v2110_v12 = vsel %vm2000_vm3, %v1993_v19, -inf }
 0x4ba   :  { %v2111_v16 = vmax.f32 %v2109_v47, %v2110_v12  ;;  %5980 = vpow2.f32 %v2221_v28 }
 0x4bb   :  { %5982 = vpow2.f32 %v2223_v44 }
 0x4bc   :  { %v2112_v25 = vrot.slane %v2111_v16, 4 }
 0x4be   :  { %v2113_v27 = vmax.f32 %v2111_v16, %v2112_v25 }
 0x4c0   :  { %v1949_v59 = vpop.f32.mrf.mxu3  ;;  %v2114_v33 = vrot.slane %v2113_v27, 2  ;;  %v7968_v52 = vpop.eup %5980 }
 0x4c1   :  { %v7970_v29 = vpop.eup %5982  ;;  %v2340_v5 = vsel %vm2000_vm3, %v7968_v52, 0.0  ;;  %v1994_v58 = vadd.f32 %v7363_v37, %v1949_v59 }
 0x4c2   :  { %v2115_v43 = vmax.f32 %v2113_v27, %v2114_v33  ;;  %v2341_v36 = vsel %vm2000_vm3, %v7970_v29, 0.0 }
 0x4c3   :  { %v2342_v24 = vadd.f32 %v2341_v36, %v2340_v5  ;;  %v2118_v44 = vsel %vm2000_vm3, %v1994_v58, -inf }
 0x4c4   :  { %v2116_v47 = vrot.slane %v2115_v43, 1 }
 0x4c5   :  { %v2343_v33 = vrot.slane %v2342_v24, 4 }
 0x4c6   :  { %v2117_v27 = vmax.f32 %v2115_v43, %v2116_v47 }
 0x4c7   :  { %v2344_v16 = vadd.f32 %v2343_v33, %v2342_v24  ;;  %v7994_v33 = vld [vmem:[#allocation5 + $0x10] sm:$0xff] }
 0x4c8   :  { %v1952_v28 = vpop.f32.mrf.mxu3  ;;  %v2169_v25 = vsub.f32 %v1992_v40, %v2117_v27  ;;  %v2170_v59 = vsub.f32 %v1993_v19, %v2117_v27  ;;  %3073 = vmatpush.msra.mxu0 %v7994_v33  ;;  %3170 = vmatpush.msra.mxu2 %v7994_v33 }
 0x4c9   :  { %v1995_v12 = vadd.f32 %v7363_v37, %v1952_v28  ;;  %v2345_v36 = vrot.slane %v2344_v16, 2 }
 0x4ca   :  { %v2225_v26 = vmul.f32 1.442695, %v2169_v25  ;;  %v2227_v22 = vmul.f32 1.442695, %v2170_v59  ;;  %v8015_v59 = vld [vmem:[#allocation5 + $0x28] sm:$0xff] }
 0x4cb   :  { %v2119_v5 = vsel %vm2000_vm3, %v1995_v12, -inf  ;;  %v2346_v23 = vadd.f32 %v2345_v36, %v2344_v16  ;;  %3092 = vmatpush.msra.mxu1 %v8015_v59  ;;  %3189 = vmatpush.msra.mxu3 %v8015_v59 }
 0x4cc   :  { %v2120_v46 = vmax.f32 %v2118_v44, %v2119_v5  ;;  %5984 = vpow2.f32 %v2225_v26  ;;  %v7998_v26 = vmul.f32 %v7888_v51, %v7943_v45 }
 0x4cd   :  { %5986 = vpow2.f32 %v2227_v22  ;;  %v2347_v39 = vrot.slane %v2346_v23, 1 }
 0x4ce   :  { %v2121_v55 = vrot.slane %v2120_v46, 4  ;;  %2661 = vst.msk [vmem:[%s9629_s8 + $0xa0] sm:$0xff] %vm2000_vm3, %v7998_v26 }
 0x4cf   :  { %v2348_v0 = vadd.f32 %v2347_v39, %v2346_v23 }
 0x4d0   :  { %v2122_v43 = vmax.f32 %v2120_v46, %v2121_v55  ;;  %v1955_v47 = vpop.f32.mrf.mxu3 }
 0x4d1   :  { %5988 = vrcp.f32 %v2348_v0  ;;  %v8010_v45 = vadd.f32 %v7363_v37, %v1955_v47  ;;  %vm2566_vm6 = vweird.f32 %v2348_v0 }
 0x4d2   :  { %v2123_v3 = vrot.slane %v2122_v43, 2  ;;  %v7988_v34 = vpop.eup %5984 }
 0x4d3   :  { %v7990_v19 = vpop.eup %5986  ;;  %v2349_v24 = vsel %vm2000_vm3, %v7988_v34, 0.0  ;;  %v2127_v5 = vsel %vm2000_vm3, %v8010_v45, -inf }
 0x4d4   :  { %v2124_v40 = vmax.f32 %v2122_v43, %v2123_v3  ;;  %v2350_v55 = vsel %vm2000_vm3, %v7990_v19, 0.0  ;;  %v2676_v3 = vpop.permute.xlu0 %2675 }
 0x4d5   :  { %v2351_v22 = vadd.f32 %v2350_v55, %v2349_v24 }
 0x4d6   :  { %v2125_v39 = vrot.slane %v2124_v40, 1 }
 0x4d7   :  { %v2352_v51 = vrot.slane %v2351_v22, 4  ;;  %v5989_v28 = vpop.eup %5988 }
 0x4d8   :  { %v2126_v23 = vmax.f32 %v2124_v40, %v2125_v39  ;;  %v1958_v46 = vpop.f32.mrf.mxu3  ;;  %v2562_v43 = vmul.f32 %v5989_v28, %v2348_v0  ;;  %vm2567_vm7 = vweird.f32 %v5989_v28 }
 0x4d9   :  { %v8013_v27 = vadd.f32 %v7363_v37, %v1958_v46  ;;  %v2353_v25 = vadd.f32 %v2352_v51, %v2351_v22  ;;  %v2572_v51 = vand.u32 2147483648, %v2348_v0  ;;  %vm2568_vm8 = vmor %vm2566_vm6, %vm2567_vm7 }
 0x4da   :  { %v2171_v44 = vsub.f32 %v1994_v58, %v2126_v23  ;;  %v2172_v16 = vsub.f32 %v1995_v12, %v2126_v23  ;;  %v2563_v58 = vsub.f32 1.0, %v2562_v43 }
 0x4db   :  { %v2128_v36 = vsel %vm2000_vm3, %v8013_v27, -inf  ;;  %v2354_v55 = vrot.slane %v2353_v25, 2 }
 0x4dc   :  { %v2229_v40 = vmul.f32 1.442695, %v2171_v44  ;;  %v2231_v24 = vmul.f32 1.442695, %v2172_v16  ;;  %v2129_v47 = vmax.f32 %v2127_v5, %v2128_v36  ;;  %v2564_v22 = vmul.f32 %v5989_v28, %v2563_v58  ;;  %v2681_v30 = vpop.permute.xlu0 %2680 }
 0x4dd   :  { %v2355_v39 = vadd.f32 %v2354_v55, %v2353_v25  ;;  %v2570_v16 = vand.u32 2147483647, %v2348_v0  ;;  %v2573_v5 = vor.u32 1.1754944e-38, %v2572_v51  ;;  %v9738_v25 = vmax.f32 %v7220_v41, 0.0  ;;  %v8050_v51 = vld [vmem:[#allocation5 + $0x8] sm:$0xff] }
 0x4de   :  { %5990 = vpow2.f32 %v2229_v40  ;;  %v2130_v12 = vrot.slane %v2129_v47, 4  ;;  %v2565_v60 = vadd.f32 %v5989_v28, %v2564_v22 }
 0x4df   :  { %5992 = vpow2.f32 %v2231_v24  ;;  %v2356_v8 = vrot.slane %v2355_v39, 1  ;;  %v2834_v24 = vmul.f32 %v2681_v30, %v9738_v25  ;;  %vm2571_vm9 = vcmp.eq.f32.partialorder %v2570_v16, 8.507059e+37  ;;  %v8041_v30 = vld [vmem:[#allocation5 + $0x18] sm:$0xff] }
 0x4e0   :  { %v2131_v23 = vmax.f32 %v2129_v47, %v2130_v12  ;;  %v1961_v46 = vpop.f32.mrf.mxu3  ;;  %v2569_v43 = vsel %vm2568_vm8, %v5989_v28, %v2565_v60  ;;  %v8034_v12 = vld [vmem:[#allocation5] sm:$0xff]  ;;  %3093 = vmatpush.msra.mxu1 %v8041_v30  ;;  %3190 = vmatpush.msra.mxu3 %v8041_v30 }
 0x4e1   :  { %v8023_v36 = vadd.f32 %v2356_v8, %v2355_v39  ;;  %v2574_v0 = vsel %vm2571_vm9, %v2573_v5, %v2569_v43  ;;  %v9739_v8 = vmax.f32 %v7209_v18, 0.0  ;;  %3074 = vmatpush.msra.mxu0 %v8034_v12  ;;  %3171 = vmatpush.msra.mxu2 %v8034_v12  ;;  %v2866_v18 = vsel %vm355_vm2, %v2834_v24, 0.0 }
 0x4e2   :  { %v2132_v44 = vrot.slane %v2131_v23, 2  ;;  %v8045_v39 = vmul.f32 %v7968_v52, %v2574_v0  ;;  %v8062_v16 = vadd.f32 %v7363_v37, %v1961_v46  ;;  %3094 = vmatpush.msra.mxu1 %v8050_v51  ;;  %3191 = vmatpush.msra.mxu3 %v8050_v51 }
 0x4e3   :  { %5994 = vrcp.f32 %v8023_v36  ;;  %v2833_v60 = vmul.f32 %v2676_v3, %v9739_v8  ;;  %vm2582_vm10 = vweird.f32 %v8023_v36 }
 0x4e4   :  { %v8025_v40 = vpop.eup %5990  ;;  %v2133_v47 = vmax.f32 %v2131_v23, %v2132_v44  ;;  %2663 = vst.msk [vmem:[%s9629_s8 + $0xb0] sm:$0xff] %vm2000_vm3, %v8045_v39  ;;  %v8057_v44 = vld [vmem:[#allocation5 + $0xf0] sm:$0xff] }
 0x4e5   :  { %v8029_v55 = vpop.eup %5992  ;;  %v2358_v58 = vsel %vm2000_vm3, %v8025_v40, 0.0  ;;  %3249 = vmatpush.msrb.mxu0 %v8057_v44  ;;  %3342 = vmatpush.msrb.mxu2 %v8057_v44  ;;  %v2865_v43 = vsel %vm355_vm2, %v2833_v60, 0.0  ;;  %v2136_v60 = vsel %vm2000_vm3, %v8062_v16, -inf }
 0x4e6   :  { %v2359_v28 = vsel %vm2000_vm3, %v8029_v55, 0.0  ;;  %v2134_v41 = vrot.slane %v2133_v47, 1  ;;  %v2867_v46 = vadd.f32 %v2866_v18, %v2865_v43 }
 0x4e7   :  { %v2360_v22 = vadd.f32 %v2359_v28, %v2358_v58  ;;  %v8075_v58 = vld [vmem:[#allocation5 + $0xe0] sm:$0xff] }
 0x4e8   :  { %v2135_v3 = vmax.f32 %v2133_v47, %v2134_v41  ;;  %v1964_v23 = vpop.f32.mrf.mxu3  ;;  %v8072_v47 = vld [vmem:[#allocation5 + $0xf8] sm:$0xff]  ;;  %3250 = vmatpush.msrb.mxu0 %v8075_v58  ;;  %3343 = vmatpush.msrb.mxu2 %v8075_v58  ;;  %v2868_v43 = vrot.slane %v2867_v46, 4 }
 0x4e9   :  { %v2361_v52 = vrot.slane %v2360_v22, 4  ;;  %v8065_v5 = vadd.f32 %v7363_v37, %v1964_v23  ;;  %3269 = vmatpush.msrb.mxu1 %v8072_v47  ;;  %v8078_v37 = vpop.eup %5994  ;;  %3362 = vmatpush.msrb.mxu3 %v8072_v47  ;;  %v8091_v23 = vmul.f32 %v7970_v29, %v2574_v0  ;;  %v2588_v29 = vand.u32 2147483648, %v8023_v36 }
 0x4ea   :  { %v2173_v25 = vsub.f32 %v8010_v45, %v2135_v3  ;;  %v2174_v24 = vsub.f32 %v8013_v27, %v2135_v3  ;;  %v8087_v3 = vld [vmem:[#allocation5 + $0xd0] sm:$0xff]  ;;  %vm2583_vm11 = vweird.f32 %v8078_v37 }
 0x4eb   :  { %v2362_v8 = vadd.f32 %v2361_v52, %v2360_v22  ;;  %v2137_v45 = vsel %vm2000_vm3, %v8065_v5, -inf  ;;  %3270 = vmatpush.msrb.mxu1 %v7631_v6  ;;  %3251 = vmatpush.msrb.mxu0 %v8087_v3  ;;  %v2578_v52 = vmul.f32 %v8078_v37, %v8023_v36  ;;  %2664 = vst.msk [vmem:[%s9629_s8 + $0xb8] sm:$0xff] %vm2000_vm3, %v8091_v23  ;;  %vm8121_vm12 = vmor %vm2582_vm10, %vm2583_vm11 }
 0x4ec   :  { %v2756_v28 = vpop.permute.xlu1 %2755  ;;  %v2233_v27 = vmul.f32 1.442695, %v2173_v25  ;;  %v2235_v41 = vmul.f32 1.442695, %v2174_v24  ;;  %v2138_v18 = vmax.f32 %v2136_v60, %v2137_v45  ;;  %3363 = vmatpush.msrb.mxu3 %v7631_v6  ;;  %3344 = vmatpush.msrb.mxu2 %v8087_v3  ;;  %v9740_v60 = vmax.f32 %v7350_v62, 0.0 }
 0x4ed   :  { %v2363_v22 = vrot.slane %v2362_v8, 2  ;;  %3271 = vmatpush.msrb.mxu1 %v7635_v20  ;;  %3252 = vmatpush.msrb.mxu0 %v7633_v1  ;;  %v2579_v6 = vsub.f32 1.0, %v2578_v52  ;;  %v2586_v45 = vand.u32 2147483647, %v8023_v36  ;;  %v9743_v36 = vmax.f32 %v7358_v61, 0.0 }
 0x4ee   :  { %5996 = vpow2.f32 %v2233_v27  ;;  %v2139_v24 = vrot.slane %v2138_v18, 4  ;;  %3364 = vmatpush.msrb.mxu3 %v7635_v20  ;;  %3345 = vmatpush.msrb.mxu2 %v7633_v1  ;;  %v2849_v20 = vmul.f32 %v2756_v28, %v9740_v60  ;;  %v2869_v27 = vadd.f32 %v2868_v43, %v2867_v46 }
 0x4ef   :  { %v2364_v25 = vadd.f32 %v2363_v22, %v2362_v8  ;;  %5998 = vpow2.f32 %v2235_v41  ;;  %3272 = vmatpush.msrb.mxu1 %v7761_v53  ;;  %3253 = vmatpush.msrb.mxu0 %v7641_v10  ;;  %v2580_v1 = vmul.f32 %v8078_v37, %v2579_v6  ;;  %v2589_v46 = vor.u32 1.1754944e-38, %v2588_v29 }
 0x4f0   :  { %v2140_v8 = vmax.f32 %v2138_v18, %v2139_v24  ;;  %3365 = vmatpush.msrb.mxu3 %v7761_v53  ;;  %3346 = vmatpush.msrb.mxu2 %v7641_v10  ;;  %vm2587_vm13 = vcmp.eq.f32.partialorder %v2586_v45, 8.507059e+37  ;;  %v2937_v61 = vsel %vm355_vm2, %v2849_v20, 0.0  ;;  %v2870_v29 = vrot.slane %v2869_v27, 2 }
 0x4f1   :  { %v2365_v0 = vrot.slane %v2364_v25, 1  ;;  %3273 = vmatpush.msrb.mxu1 %v7831_v57  ;;  %3254 = vmatpush.msrb.mxu0 %v7766_v38  ;;  %v2581_v18 = vadd.f32 %v8078_v37, %v2580_v1 }
 0x4f2   :  { %v2141_v53 = vrot.slane %v2140_v8, 2  ;;  %3366 = vmatpush.msrb.mxu3 %v7831_v57  ;;  %3347 = vmatpush.msrb.mxu2 %v7766_v38  ;;  %v2871_v10 = vadd.f32 %v2870_v29, %v2869_v27 }
 0x4f3   :  { %v8119_v41 = vadd.f32 %v2365_v0, %v2364_v25  ;;  %3274 = vmatpush.msrb.mxu1 %v7835_v50  ;;  %3255 = vmatpush.msrb.mxu0 %v7833_v11  ;;  %v2585_v6 = vsel %vm8121_vm12, %v8078_v37, %v2581_v18 }
 0x4f4   :  { %v2761_v22 = vpop.permute.xlu1 %2760  ;;  %v8127_v62 = vpop.eup %5996  ;;  %v2142_v38 = vmax.f32 %v2140_v8, %v2141_v53  ;;  %3367 = vmatpush.msrb.mxu3 %v7835_v50  ;;  %3348 = vmatpush.msrb.mxu2 %v7833_v11  ;;  %v2590_v20 = vsel %vm2587_vm13, %v2589_v46, %v2585_v6 }
 0x4f5   :  { %v2850_v28 = vmul.f32 %v2761_v22, %v9743_v36  ;;  %v8134_v52 = vpop.eup %5998  ;;  %6000 = vrcp.f32 %v8119_v41  ;;  %v2367_v43 = vsel %vm2000_vm3, %v8127_v62, 0.0  ;;  %3275 = vmatpush.msrb.mxu1 %v7858_v63  ;;  %3256 = vmatpush.msrb.mxu0 %v7842_v54  ;;  %v8159_v22 = vmul.f32 %v7988_v34, %v2590_v20 }
 0x4f6   :  { %v2368_v24 = vsel %vm2000_vm3, %v8134_v52, 0.0  ;;  %v2143_v60 = vrot.slane %v2142_v38, 1  ;;  %3368 = vmatpush.msrb.mxu3 %v7858_v63  ;;  %3349 = vmatpush.msrb.mxu2 %v7842_v54  ;;  %v2604_v6 = vand.u32 2147483648, %v8119_v41  ;;  %vm2598_vm14 = vweird.f32 %v8119_v41 }
 0x4f7   :  { %v2938_v25 = vsel %vm355_vm2, %v2850_v28, 0.0  ;;  %v2369_v8 = vadd.f32 %v2368_v24, %v2367_v43  ;;  %3276 = vmatpush.msrb.mxu1 %v7877_v21  ;;  %3257 = vmatpush.msrb.mxu0 %v7860_v7  ;;  %2665 = vst.msk [vmem:[%s9629_s8 + $0xc0] sm:$0xff] %vm2000_vm3, %v8159_v22 }
 0x4f8   :  { %v2939_v0 = vadd.f32 %v2938_v25, %v2937_v61  ;;  %v2144_v37 = vmax.f32 %v2142_v38, %v2143_v60  ;;  %3369 = vmatpush.msrb.mxu3 %v7877_v21  ;;  %3350 = vmatpush.msrb.mxu2 %v7860_v7  ;;  %v8174_v38 = vmul.f32 %v7990_v19, %v2590_v20  ;;  %v2872_v61 = vrot.slane %v2871_v10, 1 }
 0x4f9   :  { %v2370_v45 = vrot.slane %v2369_v8, 4  ;;  %3277 = vmatpush.msrb.mxu1 %v7902_v9  ;;  %3258 = vmatpush.msrb.mxu0 %v7883_v49  ;;  %v2602_v60 = vand.u32 2147483647, %v8119_v41 }
 0x4fa   :  { %v2940_v1 = vrot.slane %v2939_v0, 4  ;;  %v2175_v18 = vsub.f32 %v8062_v16, %v2144_v37  ;;  %3370 = vmatpush.msrb.mxu3 %v7902_v9  ;;  %v2176_v46 = vsub.f32 %v8065_v5, %v2144_v37  ;;  %3351 = vmatpush.msrb.mxu2 %v7883_v49  ;;  %2666 = vst.msk [vmem:[%s9629_s8 + $0xc8] sm:$0xff] %vm2000_vm3, %v8174_v38 }
 0x4fb   :  { %v8161_v53 = vpop.eup %6000  ;;  %v2371_v28 = vadd.f32 %v2370_v45, %v2369_v8  ;;  %3278 = vmatpush.msrb.mxu1 %v7912_v14  ;;  %3259 = vmatpush.msrb.mxu0 %v7910_v35  ;;  %v2873_v20 = vadd.f32 %v2872_v61, %v2871_v10  ;;  %vm8210_vm4 = vcmp.eq.f32.partialorder %v2602_v60, 8.507059e+37 }
 0x4fc   :  { %v2941_v36 = vadd.f32 %v2940_v1, %v2939_v0  ;;  %v2237_v43 = vmul.f32 1.442695, %v2175_v18  ;;  %3371 = vmatpush.msrb.mxu3 %v7912_v14  ;;  %v2239_v16 = vmul.f32 1.442695, %v2176_v46  ;;  %v2594_v5 = vmul.f32 %v8161_v53, %v8119_v41  ;;  %3352 = vmatpush.msrb.mxu2 %v7910_v35  ;;  %v3051_v18 = vpop.permute.xlu2 %3050 }
 0x4fd   :  { %v2372_v27 = vrot.slane %v2371_v28, 2  ;;  %3279 = vmatpush.msrb.mxu1 %v7922_v56  ;;  %3260 = vmatpush.msrb.mxu0 %v7914_v13  ;;  %vm2599_vm0 = vweird.f32 %v8161_v53 }
 0x4fe   :  { %v2942_v34 = vrot.slane %v2941_v36, 2  ;;  %6002 = vpow2.f32 %v2237_v43  ;;  %v2595_v19 = vsub.f32 1.0, %v2594_v5  ;;  %3372 = vmatpush.msrb.mxu3 %v7922_v56  ;;  %3353 = vmatpush.msrb.mxu2 %v7914_v13  ;;  %vm8201_vm1 = vmor %vm2598_vm14, %vm2599_vm0 }
 0x4ff   :  { %v2373_v24 = vadd.f32 %v2372_v27, %v2371_v28  ;;  %6004 = vpow2.f32 %v2239_v16  ;;  %3280 = vmatpush.msrb.mxu1 %v7958_v32  ;;  %3261 = vmatpush.msrb.mxu0 %v7956_v15 }
 0x500   :  { %v2943_v25 = vadd.f32 %v2942_v34, %v2941_v36  ;;  %v2596_v8 = vmul.f32 %v8161_v53, %v2595_v19  ;;  %v2605_v36 = vor.u32 1.1754944e-38, %v2604_v6  ;;  %3373 = vmatpush.msrb.mxu3 %v7958_v32  ;;  %3354 = vmatpush.msrb.mxu2 %v7956_v15 }
 0x501   :  { %v2374_v0 = vrot.slane %v2373_v24, 1  ;;  %3281 = vmatpush.msrb.mxu1 %v7978_v31  ;;  %3262 = vmatpush.msrb.mxu0 %v7976_v4 }
 0x502   :  { %v2944_v29 = vrot.slane %v2943_v25, 1  ;;  %v2597_v28 = vadd.f32 %v8161_v53, %v2596_v8  ;;  %3374 = vmatpush.msrb.mxu3 %v7978_v31  ;;  %3355 = vmatpush.msrb.mxu2 %v7976_v4 }
 0x503   :  { %v8199_v45 = vadd.f32 %v2374_v0, %v2373_v24  ;;  %3282 = vmatpush.msrb.mxu1 %v8015_v59  ;;  %3263 = vmatpush.msrb.mxu0 %v7994_v33 }
 0x504   :  { %v2945_v1 = vadd.f32 %v2944_v29, %v2943_v25  ;;  %v8214_v10 = vpop.eup %6002  ;;  %v2601_v16 = vsel %vm8201_vm1, %v8161_v53, %v2597_v28  ;;  %3375 = vmatpush.msrb.mxu3 %v8015_v59  ;;  %3356 = vmatpush.msrb.mxu2 %v7994_v33  ;;  %v8252_v29 = vld [vmem:[#allocation5 + $0xe8] sm:$0xff] }
 0x505   :  { %6006 = vrcp.f32 %v8199_v45  ;;  %v8220_v34 = vpop.eup %6004  ;;  %v2376_v27 = vsel %vm2000_vm3, %v8214_v10, 0.0  ;;  %3283 = vmatpush.msrb.mxu1 %v8041_v30  ;;  %3264 = vmatpush.msrb.mxu0 %v8034_v12  ;;  %v2606_v61 = vsel %vm8210_vm4, %v2605_v36, %v2601_v16  ;;  %v2620_v36 = vand.u32 2147483648, %v8199_v45  ;;  %v8271_v28 = vld [vmem:[#allocation5 + $0xc8] sm:$0xff]  ;;  %v8280_v16 = vld [vmem:[#allocation5 + $0xa0] sm:$0xff] }
 0x506   :  { %v3047_v46 = vsel %vm3046_vm15, %v2945_v1, %v2873_v20  ;;  %v2377_v5 = vsel %vm2000_vm3, %v8220_v34, 0.0  ;;  %v8237_v24 = vmul.f32 %v8025_v40, %v2606_v61  ;;  %3376 = vmatpush.msrb.mxu3 %v8041_v30  ;;  %3357 = vmatpush.msrb.mxu2 %v8034_v12  ;;  %v8256_v0 = vmul.f32 %v8029_v55, %v2606_v61  ;;  %v8259_v20 = vld [vmem:[#allocation5 + $0xd8] sm:$0xff]  ;;  %v8267_v1 = vld [vmem:[#allocation5 + $0xc0] sm:$0xff] }
 0x507   :  { %v3053_v43 = vsel %vm355_vm2, %v3047_v46, %v3051_v18  ;;  %v2378_v25 = vadd.f32 %v2377_v5, %v2376_v27  ;;  %3284 = vmatpush.msrb.mxu1 %v8050_v51  ;;  %vm2614_vm5 = vweird.f32 %v8199_v45  ;;  %v2618_v41 = vand.u32 2147483647, %v8199_v45  ;;  %v8276_v18 = vld [vmem:[#allocation5 + $0xb0] sm:$0xff] }
 0x508   :  { %3075 = vmatmul.f32.vlgmr.msra.gmra.mxu0 %v3053_v43  ;;  %3095 = vmatmul.f32.vlgmr.msra.gmra.mxu1 %v3053_v43  ;;  %2667 = vst.msk [vmem:[%s9629_s8 + $0xd0] sm:$0xff] %vm2000_vm3, %v8237_v24  ;;  %v2621_v43 = vor.u32 1.1754944e-38, %v2620_v36 }
 0x509   :  { %3435 = vmatpush.msra.mxu0 %v8057_v44  ;;  %v2379_v53 = vrot.slane %v2378_v25, 4  ;;  %3455 = vmatpush.msra.mxu1 %v8072_v47  ;;  %2668 = vst.msk [vmem:[%s9629_s8 + $0xd8] sm:$0xff] %vm2000_vm3, %v8256_v0  ;;  %vm2619_vm8 = vcmp.eq.f32.partialorder %v2618_v41, 8.507059e+37 }
 0x50a   :  { %3377 = vmatpush.msrb.mxu3 %v8050_v51 }
 0x50b   :  { %v6007_v19 = vpop.eup %6006  ;;  %3436 = vmatpush.msra.mxu0 %v8075_v58  ;;  %v2380_v40 = vadd.f32 %v2379_v53, %v2378_v25  ;;  %3456 = vmatpush.msra.mxu1 %v8252_v29 }
 0x50c   :  { %v2610_v6 = vmul.f32 %v6007_v19, %v8199_v45  ;;  %vm2615_vm6 = vweird.f32 %v6007_v19 }
 0x50d   :  { %3437 = vmatpush.msra.mxu0 %v8087_v3  ;;  %v2381_v8 = vrot.slane %v2380_v40, 2  ;;  %3457 = vmatpush.msra.mxu1 %v8259_v20  ;;  %vm2616_vm7 = vmor %vm2614_vm5, %vm2615_vm6 }
 0x50e   :  { %v2611_v60 = vsub.f32 1.0, %v2610_v6 }
 0x50f   :  { %3438 = vmatpush.msra.mxu0 %v8267_v1  ;;  %v2382_v55 = vadd.f32 %v2381_v8, %v2380_v40  ;;  %3458 = vmatpush.msra.mxu1 %v8271_v28 }
 0x510   :  { %v2612_v37 = vmul.f32 %v6007_v19, %v2611_v60 }
 0x511   :  { %3439 = vmatpush.msra.mxu0 %v8276_v18  ;;  %v2383_v46 = vrot.slane %v2382_v55, 1  ;;  %3459 = vmatpush.msra.mxu1 %v7831_v57 }
 0x512   :  { %v2613_v27 = vadd.f32 %v6007_v19, %v2612_v37 }
 0x513   :  { %3440 = vmatpush.msra.mxu0 %v8280_v16  ;;  %v2384_v5 = vadd.f32 %v2383_v46, %v2382_v55  ;;  %3460 = vmatpush.msra.mxu1 %v7835_v50 }
 0x514   :  { %v2617_v61 = vsel %vm2616_vm7, %v6007_v19, %v2613_v27 }
 0x515   :  { %v2622_v45 = vsel %vm2619_vm8, %v2621_v43, %v2617_v61  ;;  %3441 = vmatpush.msra.mxu0 %v7833_v11  ;;  %6008 = vrcp.f32 %v2384_v5  ;;  %3461 = vmatpush.msra.mxu1 %v7858_v63  ;;  %vm2630_vm9 = vweird.f32 %v2384_v5  ;;  %v2634_v63 = vand.u32 2147483647, %v2384_v5 }
 0x516   :  { %v8287_v25 = vmul.f32 %v8127_v62, %v2622_v45  ;;  %v8301_v11 = vmul.f32 %v8134_v52, %v2622_v45  ;;  %v3041_v62 = vld [vmem:[%s9627_s6] sm:$0x3] }
 0x517   :  { %3442 = vmatpush.msra.mxu0 %v7842_v54  ;;  %3462 = vmatpush.msra.mxu1 %v7877_v21  ;;  %vm2635_vm12 = vcmp.eq.f32.partialorder %v2634_v63, 8.507059e+37  ;;  %v8339_v52 = vperm.slane %v3041_v62, 0  ;;  %v8342_v6 = vperm.slane %v3041_v62, 1 }
 0x518   :  { %2669 = vst.msk [vmem:[%s9629_s8 + $0xe0] sm:$0xff] %vm2000_vm3, %v8287_v25 }
 0x519   :  { %3443 = vmatpush.msra.mxu0 %v7860_v7  ;;  %3463 = vmatpush.msra.mxu1 %v7902_v9  ;;  %2670 = vst.msk [vmem:[%s9629_s8 + $0xe8] sm:$0xff] %vm2000_vm3, %v8301_v11 }
 0x51b   :  { %3444 = vmatpush.msra.mxu0 %v7883_v49  ;;  %v6009_v57 = vpop.eup %6008  ;;  %3464 = vmatpush.msra.mxu1 %v7912_v14  ;;  %v2636_v49 = vand.u32 2147483648, %v2384_v5 }
 0x51c   :  { %v2626_v50 = vmul.f32 %v6009_v57, %v2384_v5  ;;  %vm2631_vm10 = vweird.f32 %v6009_v57 }
 0x51d   :  { %3445 = vmatpush.msra.mxu0 %v7910_v35  ;;  %3465 = vmatpush.msra.mxu1 %v7922_v56  ;;  %vm2632_vm11 = vmor %vm2630_vm9, %vm2631_vm10  ;;  %v2637_v7 = vor.u32 1.1754944e-38, %v2636_v49  ;;  %v2686_v49 = vpop.permute.xlu2 %2685 }
 0x51e   :  { %v2627_v54 = vsub.f32 1.0, %v2626_v50 }
 0x51f   :  { %3446 = vmatpush.msra.mxu0 %v7914_v13  ;;  %3466 = vmatpush.msra.mxu1 %v7958_v32 }
 0x520   :  { %v2628_v14 = vmul.f32 %v6009_v57, %v2627_v54 }
 0x521   :  { %3447 = vmatpush.msra.mxu0 %v7956_v15  ;;  %3467 = vmatpush.msra.mxu1 %v7978_v31 }
 0x522   :  { %v2629_v21 = vadd.f32 %v6009_v57, %v2628_v14  ;;  %v2766_v14 = vpop.permute.xlu1 %2765 }
 0x523   :  { %3448 = vmatpush.msra.mxu0 %v7976_v4  ;;  %3468 = vmatpush.msra.mxu1 %v8015_v59 }
 0x524   :  { %v2633_v9 = vsel %vm2632_vm11, %v6009_v57, %v2629_v21 }
 0x525   :  { %3449 = vmatpush.msra.mxu0 %v7994_v33  ;;  %v2638_v35 = vsel %vm2635_vm12, %v2637_v7, %v2633_v9  ;;  %3469 = vmatpush.msra.mxu1 %v8041_v30  ;;  %v2691_v7 = vpop.permute.xlu0 %2690  ;;  %v2771_v21 = vpop.permute.xlu2 %2770  ;;  %v9748_v9 = vmax.f32 %v7371_v2, 0.0 }
 0x526   :  { %v8320_v13 = vmul.f32 %v8214_v10, %v2638_v35  ;;  %v8329_v56 = vmul.f32 %v8220_v34, %v2638_v35 }
 0x527   :  { %3450 = vmatpush.msra.mxu0 %v8034_v12  ;;  %3470 = vmatpush.msra.mxu1 %v8050_v51  ;;  %v2851_v35 = vmul.f32 %v2766_v14, %v9748_v9 }
 0x528   :  { %2671 = vst.msk [vmem:[%s9629_s8 + $0xf0] sm:$0xff] %vm2000_vm3, %v8320_v13 }
 0x529   :  { %2672 = vst.msk [vmem:[%s9629_s8 + $0xf8] sm:$0xff] %vm2000_vm3, %v8329_v56 }
 0x585   :  { %v3076_v10 = vpop.f32.mrf.mxu0  ;;  %v3096_v8 = vpop.f32.mrf.mxu1 }
 0x586   :  { %v3077_v53 = vadd.f32 %v3076_v10, %v8339_v52  ;;  %v3097_v55 = vadd.f32 %v3096_v8, %v8342_v6  ;;  %v9749_v10 = vmax.f32 %v7242_v48, 0.0 }
 0x588   :  { %v5834_v19 = vmul.f32 -1.442695, %v3077_v53  ;;  %v5835_v54 = vmul.f32 -1.442695, %v3097_v55  ;;  %v9750_v53 = vld [vmem:[#allocation28_spill] sm:$0xff] }
 0x58a   :  { %6010 = vpow2.f32 %v5834_v19 }
 0x590   :  { %v6011_v40 = vpop.eup %6010 }
 0x591   :  { %v3105_v34 = vadd.f32 1.0, %v6011_v40 }
 0x593   :  { %6012 = vrcp.f32 %v3105_v34  ;;  %v3118_v41 = vand.u32 2147483648, %v3105_v34  ;;  %v3116_v27 = vand.u32 2147483647, %v3105_v34  ;;  %vm3112_vm13 = vweird.f32 %v3105_v34 }
 0x594   :  { %6014 = vtanh.f32 %v3097_v55 }
 0x595   :  { %v3119_v5 = vor.u32 1.1754944e-38, %v3118_v41  ;;  %vm3117_vm0 = vcmp.eq.f32.partialorder %v3116_v27, 8.507059e+37  ;;  %6016 = vpow2.f32 %v5835_v54 }
 0x599   :  { %v6013_v60 = vpop.eup %6012 }
 0x59a   :  { %v3108_v37 = vmul.f32 %v6013_v60, %v3105_v34  ;;  %vm3113_vm3 = vweird.f32 %v6013_v60  ;;  %v6015_v45 = vpop.eup %6014  ;;  %v2946_v34 = vsel %vm355_vm2, %v2851_v35, 0.0 }
 0x59b   :  { %vm3114_vm14 = vmor %vm3112_vm13, %vm3113_vm3  ;;  %v6017_v63 = vpop.eup %6016 }
 0x59c   :  { %v3109_v36 = vsub.f32 1.0, %v3108_v37  ;;  %v3106_v62 = vadd.f32 1.0, %v6017_v63 }
 0x59e   :  { %v3110_v46 = vmul.f32 %v6013_v60, %v3109_v36  ;;  %6018 = vrcp.f32 %v3106_v62  ;;  %vm3127_vm4 = vweird.f32 %v3106_v62 }
 0x5a0   :  { %v3111_v43 = vadd.f32 %v6013_v60, %v3110_v46 }
 0x5a2   :  { %v3115_v61 = vsel %vm3114_vm14, %v6013_v60, %v3111_v43 }
 0x5a3   :  { %v3120_v57 = vsel %vm3117_vm0, %v3119_v5, %v3115_v61 }
 0x5a4   :  { %v3143_v50 = vmul.f32 %v6015_v45, %v3120_v57  ;;  %v6019_v36 = vpop.eup %6018 }
 0x5a5   :  { %v3123_v46 = vmul.f32 %v6019_v36, %v3106_v62  ;;  %vm3128_vm1 = vweird.f32 %v6019_v36 }
 0x5a6   :  { %3145 = vrot.lane.b32.xlu1 %v3143_v50, %s6534_s13  ;;  %v3140_v50 = vpop.permute.xlu0 %3139  ;;  %vm3129_vm5 = vmor %vm3127_vm4, %vm3128_vm1 }
 0x5a7   :  { %v3124_v5 = vsub.f32 1.0, %v3123_v46  ;;  %v3142_v14 = vmul.f32 %v3140_v50, %v3120_v57  ;;  %v8401_v46 = vld [vmem:[#allocation5 + $0x78] sm:$0xff] }
 0x5a9   :  { %v3125_v54 = vmul.f32 %v6019_v36, %v3124_v5  ;;  %v8410_v5 = vld [vmem:[#allocation5 + $0x50] sm:$0xff] }
 0x5ab   :  { %v3126_v9 = vadd.f32 %v6019_v36, %v3125_v54 }
 0x5ae   :  { %2775 = vperm.xlu1 %5902, %v7998_v26   ;;  %v2836_v26 = vmul.f32 %v2691_v7, %v9749_v10  ;;  %v3133_v10 = vand.u32 2147483648, %v3106_v62 }
 0x5b0   :  { %v2875_v8 = vsel %vm355_vm2, %v2836_v26, 0.0  ;;  %v3131_v26 = vand.u32 2147483647, %v3106_v62  ;;  %v8379_v62 = vld [vmem:[#allocation5 + $0xb8] sm:$0xff] }
 0x5b2   :  { %vm3132_vm6 = vcmp.eq.f32.partialorder %v3131_v26, 8.507059e+37 }
 0x5b6   :  { %2705 = vperm.xlu1 %5902, %v7580_v17   ;;  %v9751_v17 = vmax.f32 %v9750_v53, 0.0 }
 0x5b8   :  { %v2852_v19 = vmul.f32 %v2771_v21, %v9751_v17  ;;  %v3130_v17 = vsel %vm3129_vm5, %v6019_v36, %v3126_v9  ;;  %v8392_v36 = vld [vmem:[#allocation5 + $0x80] sm:$0xff] }
 0x5ba   :  { %v2947_v60 = vsel %vm355_vm2, %v2852_v19, 0.0 }
 0x5bb   :  { %v2948_v55 = vadd.f32 %v2947_v60, %v2946_v34 }
 0x5bd   :  { %v2949_v48 = vrot.slane %v2948_v55, 4 }
 0x5be   :  { %2790 = vperm.xlu1 %5902, %v8091_v23   ;;  %v9752_v23 = vld [vmem:[#allocation15_spill] sm:$0xff] }
 0x5bf   :  { %v9753_v40 = vmax.f32 %v9752_v23, 0.0  ;;  %v2950_v27 = vadd.f32 %v2949_v48, %v2948_v55  ;;  %v3134_v23 = vor.u32 1.1754944e-38, %v3133_v10  ;;  %v8383_v55 = vld [vmem:[#allocation5 + $0xa8] sm:$0xff] }
 0x5c0   :  { %v8395_v48 = vld [vmem:[#allocation5 + $0x88] sm:$0xff] }
 0x5c1   :  { %v2951_v61 = vrot.slane %v2950_v27, 2 }
 0x5c6   :  { %2720 = vperm.xlu1 %5902, %v7644_v42   ;;  %v2835_v42 = vmul.f32 %v2686_v49, %v9753_v40  ;;  %v2952_v49 = vadd.f32 %v2951_v61, %v2950_v27  ;;  %v8404_v27 = vld [vmem:[#allocation5 + $0x60] sm:$0xff]  ;;  %v8413_v61 = vld [vmem:[#allocation5 + $0x58] sm:$0xff] }
 0x5c8   :  { %v2874_v2 = vsel %vm355_vm2, %v2835_v42, 0.0  ;;  %v2953_v35 = vrot.slane %v2952_v49, 1  ;;  %v3135_v42 = vsel %vm3132_vm6, %v3134_v23, %v3130_v17  ;;  %v9754_v23 = vld [vmem:[#allocation35_spill] sm:$0xff] }
 0x5c9   :  { %v2876_v37 = vadd.f32 %v2875_v8, %v2874_v2  ;;  %v8386_v2 = vld [vmem:[#allocation5 + $0x90] sm:$0xff] }
 0x5ca   :  { %v2954_v19 = vadd.f32 %v2953_v35, %v2952_v49 }
 0x5cb   :  { %v2877_v41 = vrot.slane %v2876_v37, 4 }
 0x5cd   :  { %v2878_v43 = vadd.f32 %v2877_v41, %v2876_v37  ;;  %v8389_v37 = vld [vmem:[#allocation5 + $0x98] sm:$0xff]  ;;  %v8398_v41 = vld [vmem:[#allocation5 + $0x70] sm:$0xff] }
 0x5cf   :  { %v2879_v45 = vrot.slane %v2878_v43, 2 }
 0x5d1   :  { %v2880_v7 = vadd.f32 %v2879_v45, %v2878_v43  ;;  %v8407_v43 = vld [vmem:[#allocation5 + $0x68] sm:$0xff]  ;;  %v8416_v45 = vld [vmem:[#allocation5 + $0x40] sm:$0xff] }
 0x5d3   :  { %v2881_v53 = vrot.slane %v2880_v7, 1 }
 0x5d5   :  { %v2882_v57 = vadd.f32 %v2881_v53, %v2880_v7 }
 0x5d7   :  { %v3153_v8 = vsel %vm3046_vm15, %v2954_v19, %v2882_v57 }
 0x618   :  { %v3146_v63 = vpop.permute.xlu1 %3145 }
 0x619   :  { %v8362_v21 = vadd.f32 %v3146_v63, %v3142_v14 }
 0x61b   :  { %6020 = vtanh.f32 %v8362_v21 }
 0x621   :  { %v6021_v40 = vpop.eup %6020 }
 0x622   :  { %v8365_v34 = vmul.f32 %v6021_v40, %v3135_v42  ;;  %v9755_v40 = vld [vmem:[#allocation38_spill] sm:$0xff]  ;;  %v2696_v42 = vpop.permute.xlu2 %2695 }
 0x624   :  { %v3155_v60 = vsel %vm355_vm2, %v3153_v8, %v8365_v34  ;;  %v2776_v8 = vpop.permute.xlu1 %2775 }
 0x625   :  { %3172 = vmatmul.f32.vlgmr.msra.gmra.mxu2 %v3155_v60  ;;  %3192 = vmatmul.f32.vlgmr.msra.gmra.mxu3 %v3155_v60 }
 0x626   :  { %3528 = vmatpush.msra.mxu2 %v8057_v44  ;;  %3548 = vmatpush.msra.mxu3 %v8072_v47 }
 0x628   :  { %3529 = vmatpush.msra.mxu2 %v8075_v58  ;;  %3549 = vmatpush.msra.mxu3 %v8252_v29 }
 0x62a   :  { %3530 = vmatpush.msra.mxu2 %v8087_v3  ;;  %3550 = vmatpush.msra.mxu3 %v8259_v20 }
 0x62c   :  { %3531 = vmatpush.msra.mxu2 %v8267_v1  ;;  %3551 = vmatpush.msra.mxu3 %v8271_v28 }
 0x62e   :  { %3532 = vmatpush.msra.mxu2 %v8276_v18  ;;  %3552 = vmatpush.msra.mxu3 %v8379_v62 }
 0x630   :  { %3533 = vmatpush.msra.mxu2 %v8280_v16  ;;  %3553 = vmatpush.msra.mxu3 %v8383_v55 }
 0x632   :  { %3534 = vmatpush.msra.mxu2 %v8386_v2  ;;  %3554 = vmatpush.msra.mxu3 %v8389_v37 }
 0x634   :  { %3535 = vmatpush.msra.mxu2 %v8392_v36  ;;  %3555 = vmatpush.msra.mxu3 %v8395_v48 }
 0x636   :  { %3536 = vmatpush.msra.mxu2 %v8398_v41  ;;  %3556 = vmatpush.msra.mxu3 %v8401_v46 }
 0x638   :  { %3537 = vmatpush.msra.mxu2 %v8404_v27  ;;  %3557 = vmatpush.msra.mxu3 %v8407_v43 }
 0x63a   :  { %3538 = vmatpush.msra.mxu2 %v8410_v5  ;;  %3558 = vmatpush.msra.mxu3 %v8413_v61 }
 0x63c   :  { %3539 = vmatpush.msra.mxu2 %v8416_v45  ;;  %3559 = vmatpush.msra.mxu3 %v7958_v32 }
 0x63e   :  { %3540 = vmatpush.msra.mxu2 %v7956_v15  ;;  %3560 = vmatpush.msra.mxu3 %v7978_v31 }
 0x640   :  { %3541 = vmatpush.msra.mxu2 %v7976_v4  ;;  %3561 = vmatpush.msra.mxu3 %v8015_v59 }
 0x642   :  { %3542 = vmatpush.msra.mxu2 %v7994_v33  ;;  %3562 = vmatpush.msra.mxu3 %v8041_v30 }
 0x644   :  { %3543 = vmatpush.msra.mxu2 %v8034_v12  ;;  %3563 = vmatpush.msra.mxu3 %v8050_v51 }
 0x6a8   :  { %v3173_v50 = vpop.f32.mrf.mxu2  ;;  %v3193_v31 = vpop.f32.mrf.mxu3 }
 0x6a9   :  { %v3174_v54 = vadd.f32 %v3173_v50, %v8339_v52  ;;  %v3194_v59 = vadd.f32 %v3193_v31, %v8342_v6  ;;  %v2781_v50 = vpop.permute.xlu2 %2780 }
 0x6ab   :  { %v5836_v32 = vmul.f32 -1.442695, %v3174_v54  ;;  %v5837_v57 = vmul.f32 -1.442695, %v3194_v59  ;;  %v9756_v54 = vld [vmem:[#allocation29_spill] sm:$0xff] }
 0x6ad   :  { %6022 = vpow2.f32 %v5836_v32  ;;  %v9757_v32 = vmax.f32 %v9756_v54, 0.0 }
 0x6b3   :  { %v6023_v15 = vpop.eup %6022 }
 0x6b4   :  { %v3202_v49 = vadd.f32 1.0, %v6023_v15  ;;  %v2853_v15 = vmul.f32 %v2776_v8, %v9757_v32 }
 0x6b6   :  { %6024 = vrcp.f32 %v3202_v49  ;;  %v3215_v63 = vand.u32 2147483648, %v3202_v49  ;;  %v3213_v9 = vand.u32 2147483647, %v3202_v49  ;;  %vm3209_vm8 = vweird.f32 %v3202_v49 }
 0x6b7   :  { %6026 = vtanh.f32 %v3194_v59  ;;  %v2955_v59 = vsel %vm355_vm2, %v2853_v15, 0.0 }
 0x6b8   :  { %v3216_v10 = vor.u32 1.1754944e-38, %v3215_v63  ;;  %vm3214_vm10 = vcmp.eq.f32.partialorder %v3213_v9, 8.507059e+37  ;;  %6028 = vpow2.f32 %v5837_v57 }
 0x6bc   :  { %v6025_v4 = vpop.eup %6024 }
 0x6bd   :  { %v3205_v14 = vmul.f32 %v6025_v4, %v3202_v49  ;;  %vm3210_vm7 = vweird.f32 %v6025_v4  ;;  %v6027_v53 = vpop.eup %6026  ;;  %v2701_v49 = vpop.permute.xlu0 %2700 }
 0x6be   :  { %vm3211_vm9 = vmor %vm3209_vm8, %vm3210_vm7  ;;  %v6029_v60 = vpop.eup %6028 }
 0x6bf   :  { %v3206_v33 = vsub.f32 1.0, %v3205_v14  ;;  %v3203_v31 = vadd.f32 1.0, %v6029_v60 }
 0x6c1   :  { %v3207_v7 = vmul.f32 %v6025_v4, %v3206_v33  ;;  %v9760_v33 = vld [vmem:[#allocation30_spill] sm:$0xff]  ;;  %6030 = vrcp.f32 %v3203_v31  ;;  %vm3224_vm12 = vweird.f32 %v3203_v31 }
 0x6c2   :  { %v9761_v63 = vmax.f32 %v9760_v33, 0.0 }
 0x6c3   :  { %v3208_v35 = vadd.f32 %v6025_v4, %v3207_v7 }
 0x6c4   :  { %v2854_v7 = vmul.f32 %v2781_v50, %v9761_v63 }
 0x6c5   :  { %v3212_v26 = vsel %vm3211_vm9, %v6025_v4, %v3208_v35  ;;  %v9758_v4 = vld [vmem:[#allocation16_spill] sm:$0xff] }
 0x6c6   :  { %v3217_v17 = vsel %vm3214_vm10, %v3216_v10, %v3212_v26  ;;  %v9759_v14 = vmax.f32 %v9758_v4, 0.0  ;;  %v2956_v26 = vsel %vm355_vm2, %v2854_v7, 0.0 }
 0x6c7   :  { %v3236_v19 = vmul.f32 %v6027_v53, %v3217_v17  ;;  %v2957_v53 = vadd.f32 %v2956_v26, %v2955_v59 }
 0x6c9   :  { %3238 = vrot.lane.b32.xlu0 %v3236_v19, %s6534_s13  ;;  %v2958_v57 = vrot.slane %v2957_v53, 4 }
 0x6cb   :  { %v2959_v60 = vadd.f32 %v2958_v57, %v2957_v53 }
 0x6cd   :  { %v2960_v32 = vrot.slane %v2959_v60, 2 }
 0x6cf   :  { %v2961_v15 = vadd.f32 %v2960_v32, %v2959_v60 }
 0x6d1   :  { %2785 = vperm.xlu0 %5901, %v8045_v39   ;;  %v2837_v39 = vmul.f32 %v2696_v42, %v9759_v14  ;;  %v3235_v14 = vmul.f32 %v3217_v17, %v8362_v21 }
 0x6d3   :  { %v2883_v10 = vsel %vm355_vm2, %v2837_v39, 0.0 }
 0x6d9   :  { %2715 = vperm.xlu0 %5901, %v9754_v23  }
 0x6e1   :  { %2800 = vperm.xlu0 %5901, %v8174_v38   ;;  %v9762_v38 = vld [vmem:[#allocation17_spill] sm:$0xff] }
 0x6e2   :  { %v9763_v9 = vmax.f32 %v9762_v38, 0.0  ;;  %v2962_v38 = vrot.slane %v2961_v15, 1 }
 0x6e4   :  { %v2838_v35 = vmul.f32 %v2701_v49, %v9763_v9  ;;  %v3230_v9 = vand.u32 2147483648, %v3203_v31  ;;  %v2963_v26 = vadd.f32 %v2962_v38, %v2961_v15 }
 0x6e6   :  { %v2884_v19 = vsel %vm355_vm2, %v2838_v35, 0.0  ;;  %v3228_v35 = vand.u32 2147483647, %v3203_v31  ;;  %v3231_v53 = vor.u32 1.1754944e-38, %v3230_v9 }
 0x6e7   :  { %v2885_v23 = vadd.f32 %v2884_v19, %v2883_v10 }
 0x6e8   :  { %vm3229_vm13 = vcmp.eq.f32.partialorder %v3228_v35, 8.507059e+37 }
 0x6e9   :  { %2730 = vperm.xlu0 %5901, %v9755_v40   ;;  %v6031_v40 = vpop.eup %6030  ;;  %v2886_v42 = vrot.slane %v2885_v23, 4 }
 0x6ea   :  { %v3220_v8 = vmul.f32 %v6031_v40, %v3203_v31  ;;  %vm3225_vm11 = vweird.f32 %v6031_v40  ;;  %v8491_v31 = vld [vmem:[#allocation5 + $0x28] sm:$0xff] }
 0x6eb   :  { %v2887_v50 = vadd.f32 %v2886_v42, %v2885_v23  ;;  %vm3226_vm3 = vmor %vm3224_vm12, %vm3225_vm11 }
 0x6ec   :  { %v3221_v54 = vsub.f32 1.0, %v3220_v8 }
 0x6ed   :  { %v2888_v49 = vrot.slane %v2887_v50, 2 }
 0x6ee   :  { %v3222_v4 = vmul.f32 %v6031_v40, %v3221_v54 }
 0x6ef   :  { %v2889_v33 = vadd.f32 %v2888_v49, %v2887_v50 }
 0x6f0   :  { %v3223_v7 = vadd.f32 %v6031_v40, %v3222_v4 }
 0x6f1   :  { %v2890_v59 = vrot.slane %v2889_v33, 1 }
 0x6f2   :  { %v3227_v10 = vsel %vm3226_vm3, %v6031_v40, %v3223_v7  ;;  %v8494_v40 = vld [vmem:[#allocation5 + $0x10] sm:$0xff] }
 0x6f3   :  { %v2891_v21 = vadd.f32 %v2890_v59, %v2889_v33  ;;  %v3232_v17 = vsel %vm3229_vm13, %v3231_v53, %v3227_v10  ;;  %v9764_v10 = vld [vmem:[#allocation39_spill] sm:$0xff] }
 0x6f5   :  { %v3246_v57 = vsel %vm3046_vm15, %v2963_v26, %v2891_v21  ;;  %v9765_v26 = vld [vmem:[#allocation42_spill] sm:$0xff] }
 0x73b   :  { %v3239_v39 = vpop.permute.xlu0 %3238 }
 0x73c   :  { %v8448_v63 = vadd.f32 %v3239_v39, %v3235_v14 }
 0x73e   :  { %6032 = vtanh.f32 %v8448_v63 }
 0x743   :  { %v2786_v21 = vpop.permute.xlu0 %2785 }
 0x744   :  { %v6033_v19 = vpop.eup %6032 }
 0x745   :  { %v8451_v23 = vmul.f32 %v6033_v19, %v3232_v17  ;;  %v2706_v19 = vpop.permute.xlu1 %2705 }
 0x747   :  { %v3248_v42 = vsel %vm355_vm2, %v3246_v57, %v8451_v23 }
 0x748   :  { %3265 = vmatmul.f32.vlgmr.msrb.gmra.mxu0 %v3248_v42  ;;  %3285 = vmatmul.f32.vlgmr.msrb.gmra.mxu1 %v3248_v42  ;;  %v9766_v42 = vld [vmem:[#allocation31_spill] sm:$0xff] }
 0x749   :  { %3621 = vmatpush.msrb.mxu0 %v8057_v44  ;;  %3641 = vmatpush.msrb.mxu1 %v8072_v47  ;;  %v8479_v44 = vld [vmem:[#allocation5 + $0x48] sm:$0xff]  ;;  %v8482_v47 = vld [vmem:[#allocation5 + $0x30] sm:$0xff] }
 0x74b   :  { %3622 = vmatpush.msrb.mxu0 %v8075_v58  ;;  %3642 = vmatpush.msrb.mxu1 %v8252_v29  ;;  %v8485_v58 = vld [vmem:[#allocation5 + $0x38] sm:$0xff] }
 0x74d   :  { %3623 = vmatpush.msrb.mxu0 %v8087_v3  ;;  %3643 = vmatpush.msrb.mxu1 %v8259_v20  ;;  %v8488_v3 = vld [vmem:[#allocation5 + $0x20] sm:$0xff]  ;;  %v2791_v57 = vpop.permute.xlu1 %2790 }
 0x74f   :  { %3624 = vmatpush.msrb.mxu0 %v8267_v1  ;;  %3644 = vmatpush.msrb.mxu1 %v8271_v28 }
 0x751   :  { %3625 = vmatpush.msrb.mxu0 %v8276_v18  ;;  %3645 = vmatpush.msrb.mxu1 %v8379_v62 }
 0x753   :  { %3626 = vmatpush.msrb.mxu0 %v8280_v16  ;;  %3646 = vmatpush.msrb.mxu1 %v8383_v55 }
 0x755   :  { %3627 = vmatpush.msrb.mxu0 %v8386_v2  ;;  %3647 = vmatpush.msrb.mxu1 %v8389_v37 }
 0x757   :  { %3628 = vmatpush.msrb.mxu0 %v8392_v36  ;;  %3648 = vmatpush.msrb.mxu1 %v8395_v48 }
 0x759   :  { %3629 = vmatpush.msrb.mxu0 %v8398_v41  ;;  %3649 = vmatpush.msrb.mxu1 %v8401_v46 }
 0x75b   :  { %3630 = vmatpush.msrb.mxu0 %v8404_v27  ;;  %3650 = vmatpush.msrb.mxu1 %v8407_v43 }
 0x75d   :  { %3631 = vmatpush.msrb.mxu0 %v8410_v5  ;;  %3651 = vmatpush.msrb.mxu1 %v8413_v61 }
 0x75f   :  { %3632 = vmatpush.msrb.mxu0 %v8416_v45  ;;  %3652 = vmatpush.msrb.mxu1 %v8479_v44 }
 0x761   :  { %3633 = vmatpush.msrb.mxu0 %v8482_v47  ;;  %3653 = vmatpush.msrb.mxu1 %v8485_v58 }
 0x763   :  { %3634 = vmatpush.msrb.mxu0 %v8488_v3  ;;  %3654 = vmatpush.msrb.mxu1 %v8491_v31 }
 0x765   :  { %3635 = vmatpush.msrb.mxu0 %v8494_v40  ;;  %3655 = vmatpush.msrb.mxu1 %v8041_v30 }
 0x767   :  { %3636 = vmatpush.msrb.mxu0 %v8034_v12  ;;  %3656 = vmatpush.msrb.mxu1 %v8050_v51 }
 0x7c5   :  { %v3266_v8 = vpop.f32.mrf.mxu0  ;;  %v3286_v49 = vpop.f32.mrf.mxu1 }
 0x7c6   :  { %v3267_v60 = vadd.f32 %v3266_v8, %v8339_v52  ;;  %v3287_v15 = vadd.f32 %v3286_v49, %v8342_v6  ;;  %v9767_v8 = vmax.f32 %v9766_v42, 0.0 }
 0x7c8   :  { %v5838_v50 = vmul.f32 -1.442695, %v3267_v60  ;;  %v5839_v53 = vmul.f32 -1.442695, %v3287_v15  ;;  %v2855_v60 = vmul.f32 %v2786_v21, %v9767_v8 }
 0x7ca   :  { %6034 = vpow2.f32 %v5838_v50  ;;  %v2711_v50 = vpop.permute.xlu2 %2710 }
 0x7d0   :  { %v6035_v54 = vpop.eup %6034 }
 0x7d1   :  { %v3295_v32 = vadd.f32 1.0, %v6035_v54 }
 0x7d3   :  { %6036 = vrcp.f32 %v3295_v32  ;;  %v3308_v30 = vand.u32 2147483648, %v3295_v32  ;;  %v3306_v12 = vand.u32 2147483647, %v3295_v32  ;;  %vm3302_vm0 = vweird.f32 %v3295_v32 }
 0x7d4   :  { %6038 = vtanh.f32 %v3287_v15  ;;  %v2964_v15 = vsel %vm355_vm2, %v2855_v60, 0.0 }
 0x7d5   :  { %v3309_v7 = vor.u32 1.1754944e-38, %v3308_v30  ;;  %vm3307_vm4 = vcmp.eq.f32.partialorder %v3306_v12, 8.507059e+37  ;;  %6040 = vpow2.f32 %v5839_v53 }
 0x7d9   :  { %v6037_v4 = vpop.eup %6036 }
 0x7da   :  { %v3298_v14 = vmul.f32 %v6037_v4, %v3295_v32  ;;  %vm3303_vm14 = vweird.f32 %v6037_v4  ;;  %v6039_v9 = vpop.eup %6038  ;;  %v9768_v32 = vld [vmem:[#allocation18_spill] sm:$0xff] }
 0x7db   :  { %vm3304_vm1 = vmor %vm3302_vm0, %vm3303_vm14  ;;  %v6041_v17 = vpop.eup %6040  ;;  %v9769_v49 = vmax.f32 %v9768_v32, 0.0 }
 0x7dc   :  { %v3299_v39 = vsub.f32 1.0, %v3298_v14  ;;  %v3296_v54 = vadd.f32 1.0, %v6041_v17 }
 0x7de   :  { %v3300_v33 = vmul.f32 %v6037_v4, %v3299_v39  ;;  %6042 = vrcp.f32 %v3296_v54  ;;  %vm3317_vm6 = vweird.f32 %v3296_v54 }
 0x7e0   :  { %v3301_v51 = vadd.f32 %v6037_v4, %v3300_v33 }
 0x7e2   :  { %v3305_v38 = vsel %vm3304_vm1, %v6037_v4, %v3301_v51  ;;  %v9770_v4 = vld [vmem:[#allocation32_spill] sm:$0xff] }
 0x7e3   :  { %v3310_v35 = vsel %vm3307_vm4, %v3309_v7, %v3305_v38  ;;  %v9771_v14 = vmax.f32 %v9770_v4, 0.0 }
 0x7e4   :  { %v3329_v59 = vmul.f32 %v6039_v9, %v3310_v35 }
 0x7e5   :  { %v2856_v39 = vmul.f32 %v2791_v57, %v9771_v14 }
 0x7e6   :  { %3331 = vrot.lane.b32.xlu2 %v3329_v59, %s6534_s13  ;;  %v6043_v59 = vpop.eup %6042 }
 0x7e7   :  { %v2965_v51 = vsel %vm355_vm2, %v2856_v39, 0.0  ;;  %v3313_v53 = vmul.f32 %v6043_v59, %v3296_v54  ;;  %vm3318_vm5 = vweird.f32 %v6043_v59  ;;  %v3323_v39 = vand.u32 2147483648, %v3296_v54 }
 0x7e8   :  { %v2966_v7 = vadd.f32 %v2965_v51, %v2964_v15  ;;  %vm3319_vm7 = vmor %vm3317_vm6, %vm3318_vm5 }
 0x7e9   :  { %v3314_v17 = vsub.f32 1.0, %v3313_v53  ;;  %v2716_v53 = vpop.permute.xlu0 %2715 }
 0x7eb   :  { %v3315_v8 = vmul.f32 %v6043_v59, %v3314_v17 }
 0x7ed   :  { %v3316_v4 = vadd.f32 %v6043_v59, %v3315_v8 }
 0x7ee   :  { %2795 = vperm.xlu2 %5903, %v8159_v22   ;;  %v2839_v22 = vmul.f32 %v2706_v19, %v9769_v49 }
 0x7f0   :  { %v2892_v12 = vsel %vm355_vm2, %v2839_v22, 0.0 }
 0x7f1   :  { %v2801_v17 = vpop.permute.xlu0 %2800 }
 0x7f6   :  { %2725 = vperm.xlu2 %5903, %v9764_v10   ;;  %v2967_v10 = vrot.slane %v2966_v7, 4 }
 0x7f8   :  { %v2968_v19 = vadd.f32 %v2967_v10, %v2966_v7  ;;  %v6328_v10 = vld [vmem:[#allocation5 + $0xf0] sm:$0xff] }
 0x7fa   :  { %v2969_v57 = vrot.slane %v2968_v19, 2 }
 0x7fc   :  { %v2970_v60 = vadd.f32 %v2969_v57, %v2968_v19  ;;  %v9776_v57 = vld [vmem:[#allocation33_spill] sm:$0xff] }
 0x7fe   :  { %2810 = vperm.xlu2 %5903, %v8256_v0   ;;  %v9772_v0 = vld [vmem:[#allocation19_spill] sm:$0xff]  ;;  %v2971_v14 = vrot.slane %v2970_v60, 1 }
 0x7ff   :  { %v9773_v30 = vmax.f32 %v9772_v0, 0.0  ;;  %v3321_v0 = vand.u32 2147483647, %v3296_v54  ;;  %v6329_v54 = vld [vmem:[#allocation5 + $0xf8] sm:$0xff] }
 0x800   :  { %v2972_v15 = vadd.f32 %v2971_v14, %v2970_v60  ;;  %v2721_v60 = vpop.permute.xlu1 %2720 }
 0x801   :  { %v2840_v33 = vmul.f32 %v2711_v50, %v9773_v30  ;;  %v3328_v50 = vmul.f32 %v3310_v35, %v8448_v63  ;;  %vm3322_vm8 = vcmp.eq.f32.partialorder %v3321_v0, 8.507059e+37 }
 0x803   :  { %v2893_v38 = vsel %vm355_vm2, %v2840_v33, 0.0  ;;  %v3320_v33 = vsel %vm3319_vm7, %v6043_v59, %v3316_v4  ;;  %v6330_v59 = vld [vmem:[#allocation5 + $0xe0] sm:$0xff]  ;;  %v9780_v4 = vld [vmem:[#allocation34_spill] sm:$0xff] }
 0x804   :  { %v2894_v9 = vadd.f32 %v2893_v38, %v2892_v12  ;;  %v3324_v12 = vor.u32 1.1754944e-38, %v3323_v39  ;;  %v9782_v39 = vld [vmem:[#allocation21_spill] sm:$0xff] }
 0x805   :  { %v9783_v0 = vmax.f32 %v9782_v39, 0.0  ;;  %v5851_v39 = vld [vmem:[%s9622_s1 + $0x2] sm:$0x3] }
 0x806   :  { %2740 = vperm.xlu2 %5903, %v9765_v26   ;;  %v2895_v26 = vrot.slane %v2894_v9, 4  ;;  %v3325_v35 = vsel %vm3322_vm8, %v3324_v12, %v3320_v33 }
 0x808   :  { %v2896_v21 = vadd.f32 %v2895_v26, %v2894_v9  ;;  %v6331_v26 = vld [vmem:[#allocation5 + $0xd0] sm:$0xff] }
 0x80a   :  { %v2897_v42 = vrot.slane %v2896_v21, 2 }
 0x80c   :  { %v2898_v49 = vadd.f32 %v2897_v42, %v2896_v21  ;;  %v9777_v42 = vmax.f32 %v9776_v57, 0.0 }
 0x80e   :  { %v2899_v30 = vrot.slane %v2898_v49, 1 }
 0x810   :  { %v2900_v63 = vadd.f32 %v2899_v30, %v2898_v49 }
 0x812   :  { %v3339_v38 = vsel %vm3046_vm15, %v2972_v15, %v2900_v63 }
 0x840   :  { %v3332_v32 = vpop.permute.xlu2 %3331 }
 0x841   :  { %v8520_v22 = vadd.f32 %v3332_v32, %v3328_v50 }
 0x843   :  { %6044 = vtanh.f32 %v8520_v22 }
 0x848   :  { %v2796_v19 = vpop.permute.xlu2 %2795 }
 0x849   :  { %v6045_v51 = vpop.eup %6044  ;;  %v2857_v8 = vmul.f32 %v2796_v19, %v9777_v42 }
 0x84a   :  { %v8523_v7 = vmul.f32 %v6045_v51, %v3325_v35 }
 0x84b   :  { %v2973_v30 = vsel %vm355_vm2, %v2857_v8, 0.0 }
 0x84c   :  { %v3341_v9 = vsel %vm355_vm2, %v3339_v38, %v8523_v7 }
 0x84d   :  { %3358 = vmatmul.f32.vlgmr.msrb.gmra.mxu2 %v3341_v9  ;;  %3378 = vmatmul.f32.vlgmr.msrb.gmra.mxu3 %v3341_v9 }
 0x84e   :  { %3714 = vmatpush.msrb.mxu2 %v6328_v10  ;;  %3734 = vmatpush.msrb.mxu3 %v6329_v54 }
 0x850   :  { %3715 = vmatpush.msrb.mxu2 %v6330_v59  ;;  %3735 = vmatpush.msrb.mxu3 %v8252_v29  ;;  %v6332_v29 = vld [vmem:[#allocation5 + $0x18] sm:$0xff] }
 0x852   :  { %3716 = vmatpush.msrb.mxu2 %v6331_v26  ;;  %3736 = vmatpush.msrb.mxu3 %v8259_v20  ;;  %v6333_v20 = vld [vmem:[#allocation5] sm:$0xff] }
 0x854   :  { %3717 = vmatpush.msrb.mxu2 %v8267_v1  ;;  %3737 = vmatpush.msrb.mxu3 %v8271_v28  ;;  %v6334_v1 = vld [vmem:[#allocation5 + $0x8] sm:$0xff] }
 0x856   :  { %3718 = vmatpush.msrb.mxu2 %v8276_v18  ;;  %3738 = vmatpush.msrb.mxu3 %v8379_v62 }
 0x858   :  { %3719 = vmatpush.msrb.mxu2 %v8280_v16  ;;  %3739 = vmatpush.msrb.mxu3 %v8383_v55 }
 0x85a   :  { %3720 = vmatpush.msrb.mxu2 %v8386_v2  ;;  %3740 = vmatpush.msrb.mxu3 %v8389_v37 }
 0x85c   :  { %3721 = vmatpush.msrb.mxu2 %v8392_v36  ;;  %3741 = vmatpush.msrb.mxu3 %v8395_v48 }
 0x85e   :  { %3722 = vmatpush.msrb.mxu2 %v8398_v41  ;;  %3742 = vmatpush.msrb.mxu3 %v8401_v46 }
 0x860   :  { %3723 = vmatpush.msrb.mxu2 %v8404_v27  ;;  %3743 = vmatpush.msrb.mxu3 %v8407_v43 }
 0x862   :  { %3724 = vmatpush.msrb.mxu2 %v8410_v5  ;;  %3744 = vmatpush.msrb.mxu3 %v8413_v61 }
 0x864   :  { %3725 = vmatpush.msrb.mxu2 %v8416_v45  ;;  %3745 = vmatpush.msrb.mxu3 %v8479_v44 }
 0x866   :  { %3726 = vmatpush.msrb.mxu2 %v8482_v47  ;;  %3746 = vmatpush.msrb.mxu3 %v8485_v58 }
 0x868   :  { %3727 = vmatpush.msrb.mxu2 %v8488_v3  ;;  %3747 = vmatpush.msrb.mxu3 %v8491_v31  ;;  %v9774_v3 = vld [vmem:[#allocation43_spill] sm:$0xff]  ;;  %v9775_v31 = vld [vmem:[#allocation46_spill] sm:$0xff] }
 0x86a   :  { %3728 = vmatpush.msrb.mxu2 %v8494_v40  ;;  %3748 = vmatpush.msrb.mxu3 %v6332_v29 }
 0x86c   :  { %3729 = vmatpush.msrb.mxu2 %v6333_v20  ;;  %3749 = vmatpush.msrb.mxu3 %v6334_v1 }
 0x8d0   :  { %v3359_v28 = vpop.f32.mrf.mxu2  ;;  %v3379_v2 = vpop.f32.mrf.mxu3 }
 0x8d1   :  { %v3360_v18 = vadd.f32 %v3359_v28, %v8339_v52  ;;  %v3380_v36 = vadd.f32 %v3379_v2, %v8342_v6 }
 0x8d3   :  { %v5840_v16 = vmul.f32 -1.442695, %v3360_v18  ;;  %v5841_v40 = vmul.f32 -1.442695, %v3380_v36 }
 0x8d5   :  { %6046 = vpow2.f32 %v5840_v16 }
 0x8db   :  { %v6047_v62 = vpop.eup %6046 }
 0x8dc   :  { %v3388_v55 = vadd.f32 1.0, %v6047_v62 }
 0x8de   :  { %6048 = vrcp.f32 %v3388_v55  ;;  %v3401_v46 = vand.u32 2147483648, %v3388_v55  ;;  %v3399_v43 = vand.u32 2147483647, %v3388_v55  ;;  %vm3395_vm10 = vweird.f32 %v3388_v55 }
 0x8df   :  { %6050 = vtanh.f32 %v3380_v36 }
 0x8e0   :  { %v3402_v61 = vor.u32 1.1754944e-38, %v3401_v46  ;;  %vm3400_vm12 = vcmp.eq.f32.partialorder %v3399_v43, 8.507059e+37  ;;  %6052 = vpow2.f32 %v5841_v40 }
 0x8e4   :  { %v6049_v37 = vpop.eup %6048 }
 0x8e5   :  { %v3391_v48 = vmul.f32 %v6049_v37, %v3388_v55  ;;  %vm3396_vm9 = vweird.f32 %v6049_v37  ;;  %v6051_v44 = vpop.eup %6050 }
 0x8e6   :  { %vm3397_vm11 = vmor %vm3395_vm10, %vm3396_vm9  ;;  %v6053_v21 = vpop.eup %6052 }
 0x8e7   :  { %v3392_v41 = vsub.f32 1.0, %v3391_v48  ;;  %v3389_v50 = vadd.f32 1.0, %v6053_v21 }
 0x8e9   :  { %v3393_v27 = vmul.f32 %v6049_v37, %v3392_v41  ;;  %6054 = vrcp.f32 %v3389_v50  ;;  %v3416_v36 = vand.u32 2147483648, %v3389_v50  ;;  %vm3410_vm13 = vweird.f32 %v3389_v50 }
 0x8ea   :  { %v3414_v48 = vand.u32 2147483647, %v3389_v50 }
 0x8eb   :  { %v3394_v5 = vadd.f32 %v6049_v37, %v3393_v27  ;;  %v3417_v43 = vor.u32 1.1754944e-38, %v3416_v36 }
 0x8ec   :  { %vm3415_vm0 = vcmp.eq.f32.partialorder %v3414_v48, 8.507059e+37 }
 0x8ed   :  { %v3398_v45 = vsel %vm3397_vm11, %v6049_v37, %v3394_v5 }
 0x8ee   :  { %v3403_v47 = vsel %vm3400_vm12, %v3402_v61, %v3398_v45 }
 0x8ef   :  { %v3422_v58 = vmul.f32 %v6051_v44, %v3403_v47  ;;  %v6055_v35 = vpop.eup %6054  ;;  %v3421_v18 = vmul.f32 %v3403_v47, %v8520_v22 }
 0x8f0   :  { %v3406_v10 = vmul.f32 %v6055_v35, %v3389_v50  ;;  %vm3411_vm3 = vweird.f32 %v6055_v35 }
 0x8f1   :  { %3424 = vrot.lane.b32.xlu1 %v3422_v58, %s6534_s13  ;;  %vm3412_vm14 = vmor %vm3410_vm13, %vm3411_vm3 }
 0x8f2   :  { %v3407_v26 = vsub.f32 1.0, %v3406_v10 }
 0x8f4   :  { %v3408_v1 = vmul.f32 %v6055_v35, %v3407_v26 }
 0x8f6   :  { %v3409_v2 = vadd.f32 %v6055_v35, %v3408_v1 }
 0x8f8   :  { %v3413_v46 = vsel %vm3412_vm14, %v6055_v35, %v3409_v2 }
 0x8f9   :  { %2805 = vperm.xlu1 %5902, %v8237_v24   ;;  %v9778_v24 = vld [vmem:[#allocation20_spill] sm:$0xff]  ;;  %v3418_v61 = vsel %vm3415_vm0, %v3417_v43, %v3413_v46 }
 0x8fa   :  { %v9779_v32 = vmax.f32 %v9778_v24, 0.0 }
 0x8fc   :  { %v2841_v49 = vmul.f32 %v2716_v53, %v9779_v32 }
 0x8fe   :  { %v2901_v33 = vsel %vm355_vm2, %v2841_v49, 0.0 }
 0x901   :  { %2735 = vperm.xlu1 %5902, %v9774_v3  }
 0x909   :  { %2820 = vperm.xlu1 %5902, %v8301_v11   ;;  %v9781_v11 = vmax.f32 %v9780_v4, 0.0 }
 0x90b   :  { %v2858_v14 = vmul.f32 %v2801_v17, %v9781_v11 }
 0x90d   :  { %v2974_v15 = vsel %vm355_vm2, %v2858_v14, 0.0 }
 0x90e   :  { %v2975_v12 = vadd.f32 %v2974_v15, %v2973_v30  ;;  %v2726_v30 = vpop.permute.xlu2 %2725 }
 0x910   :  { %v2976_v38 = vrot.slane %v2975_v12, 4 }
 0x911   :  { %2745 = vperm.xlu1 %5902, %v9775_v31  }
 0x912   :  { %v2977_v54 = vadd.f32 %v2976_v38, %v2975_v12 }
 0x914   :  { %v2978_v29 = vrot.slane %v2977_v54, 2 }
 0x916   :  { %v2979_v28 = vadd.f32 %v2978_v29, %v2977_v54  ;;  %v2811_v12 = vpop.permute.xlu2 %2810  ;;  %v9790_v29 = vld [vmem:[#allocation23_spill] sm:$0xff] }
 0x918   :  { %v2980_v37 = vrot.slane %v2979_v28, 1 }
 0x919   :  { %2830 = vperm.xlu1 %5902, %v8329_v56   ;;  %v2842_v56 = vmul.f32 %v2721_v60, %v9783_v0  ;;  %v5904_v0 = vpack.i.bf16 %v5851_v39, %v8365_v34  ;;  %v8614_v39 = vld [vmem:[#allocation5 + $0x1f0] sm:$0xff] }
 0x91a   :  { %v2981_v27 = vadd.f32 %v2980_v37, %v2979_v28 }
 0x91b   :  { %v2902_v51 = vsel %vm355_vm2, %v2842_v56, 0.0 }
 0x91c   :  { %v2903_v63 = vadd.f32 %v2902_v51, %v2901_v33  ;;  %v9784_v51 = vld [vmem:[#allocation36_spill] sm:$0xff] }
 0x91e   :  { %v2904_v9 = vrot.slane %v2903_v63, 4 }
 0x920   :  { %v2905_v59 = vadd.f32 %v2904_v9, %v2903_v63  ;;  %v9785_v63 = vmax.f32 %v9784_v51, 0.0  ;;  %v9786_v9 = vld [vmem:[#allocation22_spill] sm:$0xff] }
 0x921   :  { %v9787_v10 = vmax.f32 %v9786_v9, 0.0 }
 0x922   :  { %v2906_v20 = vrot.slane %v2905_v59, 2 }
 0x923   :  { %v2843_v54 = vmul.f32 %v2726_v30, %v9787_v10  ;;  %v8622_v30 = vld [vmem:[#allocation5 + $0x1e8] sm:$0xff]  ;;  %v8648_v10 = vld [vmem:[#allocation5 + $0x1a0] sm:$0xff] }
 0x924   :  { %v2907_v62 = vadd.f32 %v2906_v20, %v2905_v59  ;;  %v9788_v59 = vld [vmem:[#allocation37_spill] sm:$0xff]  ;;  %v9791_v20 = vmax.f32 %v9790_v29, 0.0 }
 0x925   :  { %v9789_v34 = vmax.f32 %v9788_v59, 0.0  ;;  %v2910_v28 = vsel %vm355_vm2, %v2843_v54, 0.0  ;;  %v8650_v54 = vld [vmem:[#allocation5 + $0x1a8] sm:$0xff] }
 0x926   :  { %v2908_v41 = vrot.slane %v2907_v62, 1 }
 0x927   :  { %v2860_v26 = vmul.f32 %v2811_v12, %v9789_v34  ;;  %v8626_v12 = vld [vmem:[#allocation5 + $0x1d8] sm:$0xff] }
 0x928   :  { %v2909_v22 = vadd.f32 %v2908_v41, %v2907_v62 }
 0x92a   :  { %v3432_v44 = vsel %vm3046_vm15, %v2981_v27, %v2909_v22 }
 0x963   :  { %v3425_v16 = vpop.permute.xlu1 %3424 }
 0x964   :  { %v8574_v55 = vadd.f32 %v3425_v16, %v3421_v18  ;;  %v2983_v18 = vsel %vm355_vm2, %v2860_v26, 0.0 }
 0x966   :  { %6056 = vtanh.f32 %v8574_v55 }
 0x96b   :  { %v2806_v33 = vpop.permute.xlu1 %2805 }
 0x96c   :  { %v6057_v5 = vpop.eup %6056  ;;  %v2859_v35 = vmul.f32 %v2806_v33, %v9785_v63  ;;  %v8632_v63 = vld [vmem:[#allocation5 + $0x1c0] sm:$0xff] }
 0x96d   :  { %v8577_v45 = vmul.f32 %v6057_v5, %v3418_v61 }
 0x96e   :  { %v2982_v1 = vsel %vm355_vm2, %v2859_v35, 0.0  ;;  %v8634_v35 = vld [vmem:[#allocation5 + $0x1c8] sm:$0xff] }
 0x96f   :  { %v3434_v47 = vsel %vm355_vm2, %v3432_v44, %v8577_v45  ;;  %v2984_v16 = vadd.f32 %v2983_v18, %v2982_v1 }
 0x970   :  { %3451 = vmatmul.f32.vlgmr.msra.gmra.mxu0 %v3434_v47  ;;  %3471 = vmatmul.f32.vlgmr.msra.gmra.mxu1 %v3434_v47 }
 0x971   :  { %v2985_v36 = vrot.slane %v2984_v16, 4  ;;  %3866 = vmatpush.msra.mxu0 %v8614_v39 }
 0x973   :  { %v2986_v46 = vadd.f32 %v2985_v36, %v2984_v16  ;;  %v9792_v36 = vld [vmem:[#allocation47_spill] sm:$0xff] }
 0x975   :  { %v2987_v5 = vrot.slane %v2986_v46, 2 }
 0x977   :  { %v2988_v44 = vadd.f32 %v2987_v5, %v2986_v46  ;;  %v8668_v46 = vld [vmem:[#allocation5 + $0x190] sm:$0xff] }
 0x9ed   :  { %v3452_v58 = vpop.f32.mrf.mxu0  ;;  %v3472_v19 = vpop.f32.mrf.mxu1 }
 0x9ee   :  { %v3453_v3 = vadd.f32 %v3452_v58, %v8339_v52  ;;  %v3473_v17 = vadd.f32 %v3472_v19, %v8342_v6 }
 0x9f0   :  { %v5842_v31 = vmul.f32 -1.442695, %v3453_v3  ;;  %v5843_v56 = vmul.f32 -1.442695, %v3473_v17 }
 0x9f2   :  { %6058 = vpow2.f32 %v5842_v31 }
 0x9f8   :  { %v6059_v40 = vpop.eup %6058 }
 0x9f9   :  { %v3481_v53 = vadd.f32 1.0, %v6059_v40 }
 0x9fb   :  { %6060 = vrcp.f32 %v3481_v53  ;;  %v3494_v8 = vand.u32 2147483648, %v3481_v53  ;;  %v3492_v50 = vand.u32 2147483647, %v3481_v53  ;;  %vm3488_vm4 = vweird.f32 %v3481_v53 }
 0x9fc   :  { %6062 = vtanh.f32 %v3473_v17 }
 0x9fd   :  { %v3495_v32 = vor.u32 1.1754944e-38, %v3494_v8  ;;  %vm3493_vm6 = vcmp.eq.f32.partialorder %v3492_v50, 8.507059e+37  ;;  %6064 = vpow2.f32 %v5843_v56  ;;  %v8618_v56 = vld [vmem:[#allocation5 + $0x1e0] sm:$0xff] }
 0x9fe   :  { %3867 = vmatpush.msra.mxu0 %v8618_v56 }
 0xa01   :  { %v6061_v21 = vpop.eup %6060 }
 0xa02   :  { %v3484_v57 = vmul.f32 %v6061_v21, %v3481_v53  ;;  %vm3489_vm1 = vweird.f32 %v6061_v21  ;;  %v6063_v4 = vpop.eup %6062  ;;  %v2989_v53 = vrot.slane %v2988_v44, 1 }
 0xa03   :  { %vm3490_vm5 = vmor %vm3488_vm4, %vm3489_vm1  ;;  %v6065_v15 = vpop.eup %6064 }
 0xa04   :  { %v3485_v42 = vsub.f32 1.0, %v3484_v57  ;;  %v3482_v38 = vadd.f32 1.0, %v6065_v15  ;;  %v8624_v15 = vld [vmem:[#allocation5 + $0x1d0] sm:$0xff] }
 0xa05   :  { %3868 = vmatpush.msra.mxu0 %v8624_v15 }
 0xa06   :  { %v3486_v60 = vmul.f32 %v6061_v21, %v3485_v42  ;;  %6066 = vrcp.f32 %v3482_v38  ;;  %v3509_v19 = vand.u32 2147483648, %v3482_v38  ;;  %vm3503_vm8 = vweird.f32 %v3482_v38 }
 0xa07   :  { %v2990_v42 = vadd.f32 %v2989_v53, %v2988_v44  ;;  %3869 = vmatpush.msra.mxu0 %v8632_v63  ;;  %v8686_v53 = vld [vmem:[#allocation5 + $0x178] sm:$0xff] }
 0xa08   :  { %v3487_v24 = vadd.f32 %v6061_v21, %v3486_v60  ;;  %v3510_v8 = vor.u32 1.1754944e-38, %v3509_v19  ;;  %v2741_v19 = vpop.permute.xlu2 %2740 }
 0xa0a   :  { %v3491_v49 = vsel %vm3490_vm5, %v6061_v21, %v3487_v24  ;;  %v3507_v21 = vand.u32 2147483647, %v3482_v38 }
 0xa0b   :  { %v3496_v11 = vsel %vm3493_vm6, %v3495_v32, %v3491_v49 }
 0xa0c   :  { %v3515_v14 = vmul.f32 %v6063_v4, %v3496_v11  ;;  %v6067_v37 = vpop.eup %6066  ;;  %v3514_v47 = vmul.f32 %v3496_v11, %v8574_v55  ;;  %vm3508_vm10 = vcmp.eq.f32.partialorder %v3507_v21, 8.507059e+37 }
 0xa0d   :  { %v3499_v41 = vmul.f32 %v6067_v37, %v3482_v38  ;;  %vm3504_vm7 = vweird.f32 %v6067_v37  ;;  %v8642_v38 = vld [vmem:[#allocation5 + $0x1b8] sm:$0xff] }
 0xa0e   :  { %3517 = vrot.lane.b32.xlu0 %v3515_v14, %s6534_s13  ;;  %vm3505_vm9 = vmor %vm3503_vm8, %vm3504_vm7 }
 0xa0f   :  { %v3500_v43 = vsub.f32 1.0, %v3499_v41  ;;  %v2736_v41 = vpop.permute.xlu1 %2735 }
 0xa11   :  { %v3501_v61 = vmul.f32 %v6067_v37, %v3500_v43 }
 0xa13   :  { %v3502_v40 = vadd.f32 %v6067_v37, %v3501_v61  ;;  %v8676_v61 = vld [vmem:[#allocation5 + $0x188] sm:$0xff] }
 0xa15   :  { %v3506_v57 = vsel %vm3505_vm9, %v6067_v37, %v3502_v40  ;;  %v8684_v40 = vld [vmem:[#allocation5 + $0x170] sm:$0xff] }
 0xa16   :  { %2815 = vperm.xlu0 %5901, %v8287_v25   ;;  %v2731_v25 = vpop.permute.xlu0 %2730  ;;  %v3511_v50 = vsel %vm3508_vm10, %v3510_v8, %v3506_v57  ;;  %v9797_v8 = vld [vmem:[#allocation41_spill] sm:$0xff] }
 0xa17   :  { %v2821_v44 = vpop.permute.xlu1 %2820 }
 0xa1e   :  { %5905 = vrot.lane.b32.xlu0 %v5904_v0, %s6534_s13  ;;  %v8616_v0 = vld [vmem:[#allocation5 + $0x1f8] sm:$0xff] }
 0xa1f   :  { %3886 = vmatpush.msra.mxu1 %v8616_v0 }
 0xa21   :  { %3887 = vmatpush.msra.mxu1 %v8622_v30 }
 0xa23   :  { %3888 = vmatpush.msra.mxu1 %v8626_v12 }
 0xa25   :  { %3889 = vmatpush.msra.mxu1 %v8634_v35 }
 0xa26   :  { %2825 = vperm.xlu0 %5901, %v8320_v13   ;;  %v2844_v13 = vmul.f32 %v2731_v25, %v9791_v20  ;;  %v8640_v25 = vld [vmem:[#allocation5 + $0x1b0] sm:$0xff] }
 0xa27   :  { %3870 = vmatpush.msra.mxu0 %v8640_v25  ;;  %3890 = vmatpush.msra.mxu1 %v8642_v38 }
 0xa28   :  { %v2911_v62 = vsel %vm355_vm2, %v2844_v13, 0.0 }
 0xa29   :  { %v2912_v2 = vadd.f32 %v2911_v62, %v2910_v28  ;;  %3871 = vmatpush.msra.mxu0 %v8648_v10  ;;  %3891 = vmatpush.msra.mxu1 %v8650_v54 }
 0xa2b   :  { %v2913_v48 = vrot.slane %v2912_v2, 4  ;;  %3872 = vmatpush.msra.mxu0 %v8668_v46 }
 0xa2d   :  { %v2914_v27 = vadd.f32 %v2913_v48, %v2912_v2 }
 0xa2f   :  { %v2915_v22 = vrot.slane %v2914_v27, 2 }
 0xa31   :  { %v2916_v3 = vadd.f32 %v2915_v22, %v2914_v27  ;;  %v8670_v27 = vld [vmem:[#allocation5 + $0x198] sm:$0xff]  ;;  %v8674_v22 = vld [vmem:[#allocation5 + $0x180] sm:$0xff] }
 0xa32   :  { %3892 = vmatpush.msra.mxu1 %v8670_v27  ;;  %3873 = vmatpush.msra.mxu0 %v8674_v22 }
 0xa33   :  { %v2917_v17 = vrot.slane %v2916_v3, 1 }
 0xa34   :  { %3893 = vmatpush.msra.mxu1 %v8676_v61  ;;  %3874 = vmatpush.msra.mxu0 %v8684_v40 }
 0xa35   :  { %v2918_v55 = vadd.f32 %v2917_v17, %v2916_v3  ;;  %v9795_v17 = vld [vmem:[#allocation24_spill] sm:$0xff] }
 0xa36   :  { %3894 = vmatpush.msra.mxu1 %v8686_v53  ;;  %v9796_v57 = vmax.f32 %v9795_v17, 0.0 }
 0xa37   :  { %v3525_v32 = vsel %vm3046_vm15, %v2990_v42, %v2918_v55 }
 0xa38   :  { %v2845_v42 = vmul.f32 %v2736_v41, %v9796_v57 }
 0xa80   :  { %v3518_v58 = vpop.permute.xlu0 %3517 }
 0xa81   :  { %v8605_v31 = vadd.f32 %v3518_v58, %v3514_v47  ;;  %v9793_v47 = vld [vmem:[#allocation40_spill] sm:$0xff] }
 0xa82   :  { %v9794_v58 = vmax.f32 %v9793_v47, 0.0 }
 0xa83   :  { %6068 = vtanh.f32 %v8605_v31 }
 0xa88   :  { %v2816_v43 = vpop.permute.xlu0 %2815 }
 0xa89   :  { %v6069_v60 = vpop.eup %6068  ;;  %v2861_v3 = vmul.f32 %v2816_v43, %v9794_v58  ;;  %v5852_v58 = vld [vmem:[%s9623_s2 + $0x2] sm:$0x3] }
 0xa8a   :  { %v8608_v24 = vmul.f32 %v6069_v60, %v3511_v50  ;;  %v9798_v60 = vmax.f32 %v9797_v8, 0.0  ;;  %v8698_v50 = vld [vmem:[#allocation5 + $0x160] sm:$0xff]  ;;  %3946 = vrot.lane.b32.xlu0 %v5852_v58, %s6534_s13 }
 0xa8b   :  { %3875 = vmatpush.msra.mxu0 %v8698_v50 }
 0xa8c   :  { %v3527_v49 = vsel %vm355_vm2, %v3525_v32, %v8608_v24  ;;  %v2862_v55 = vmul.f32 %v2821_v44, %v9798_v60  ;;  %v8700_v32 = vld [vmem:[#allocation5 + $0x168] sm:$0xff] }
 0xa8d   :  { %3544 = vmatmul.f32.vlgmr.msra.gmra.mxu2 %v3527_v49  ;;  %3564 = vmatmul.f32.vlgmr.msra.gmra.mxu3 %v3527_v49  ;;  %v9799_v49 = vld [vmem:[#allocation25_spill] sm:$0xff] }
 0xa8e   :  { %3963 = vmatpush.msra.mxu2 %v8614_v39  ;;  %3983 = vmatpush.msra.mxu3 %v8616_v0  ;;  %v8756_v44 = vld [vmem:[#allocation5 + $0x108] sm:$0xff] }
 0xa8f   :  { %3895 = vmatpush.msra.mxu1 %v8700_v32 }
 0xa90   :  { %3964 = vmatpush.msra.mxu2 %v8618_v56  ;;  %3984 = vmatpush.msra.mxu3 %v8622_v30 }
 0xa92   :  { %3965 = vmatpush.msra.mxu2 %v8624_v15  ;;  %3985 = vmatpush.msra.mxu3 %v8626_v12 }
 0xa94   :  { %3966 = vmatpush.msra.mxu2 %v8632_v63  ;;  %3986 = vmatpush.msra.mxu3 %v8634_v35 }
 0xa96   :  { %3967 = vmatpush.msra.mxu2 %v8640_v25  ;;  %3987 = vmatpush.msra.mxu3 %v8642_v38 }
 0xa98   :  { %3968 = vmatpush.msra.mxu2 %v8648_v10  ;;  %3988 = vmatpush.msra.mxu3 %v8650_v54 }
 0xa9a   :  { %3969 = vmatpush.msra.mxu2 %v8668_v46  ;;  %3989 = vmatpush.msra.mxu3 %v8670_v27 }
 0xa9c   :  { %3970 = vmatpush.msra.mxu2 %v8674_v22  ;;  %3990 = vmatpush.msra.mxu3 %v8676_v61 }
 0xa9e   :  { %3971 = vmatpush.msra.mxu2 %v8684_v40  ;;  %3991 = vmatpush.msra.mxu3 %v8686_v53 }
 0xaa0   :  { %3972 = vmatpush.msra.mxu2 %v8698_v50  ;;  %3992 = vmatpush.msra.mxu3 %v8700_v32 }
 0xb10   :  { %v3545_v4 = vpop.f32.mrf.mxu2  ;;  %v3565_v9 = vpop.f32.mrf.mxu3 }
 0xb11   :  { %v3546_v11 = vadd.f32 %v3545_v4, %v8339_v52  ;;  %v3566_v34 = vadd.f32 %v3565_v9, %v8342_v6  ;;  %v9800_v4 = vmax.f32 %v9799_v49, 0.0  ;;  %v2919_v9 = vsel %vm355_vm2, %v2845_v42, 0.0 }
 0xb13   :  { %v5844_v14 = vmul.f32 -1.442695, %v3546_v11  ;;  %v5845_v48 = vmul.f32 -1.442695, %v3566_v34  ;;  %v2846_v11 = vmul.f32 %v2741_v19, %v9800_v4 }
 0xb15   :  { %6070 = vpow2.f32 %v5844_v14  ;;  %v2991_v14 = vsel %vm355_vm2, %v2861_v3, 0.0 }
 0xb1b   :  { %v6071_v33 = vpop.eup %6070 }
 0xb1c   :  { %v3574_v51 = vadd.f32 1.0, %v6071_v33  ;;  %v8709_v33 = vld [vmem:[#allocation5 + $0x150] sm:$0xff] }
 0xb1d   :  { %3876 = vmatpush.msra.mxu0 %v8709_v33  ;;  %3973 = vmatpush.msra.mxu2 %v8709_v33 }
 0xb1e   :  { %6072 = vrcp.f32 %v3574_v51  ;;  %v3587_v20 = vand.u32 2147483648, %v3574_v51  ;;  %v3585_v1 = vand.u32 2147483647, %v3574_v51  ;;  %vm3581_vm12 = vweird.f32 %v3574_v51 }
 0xb1f   :  { %6074 = vtanh.f32 %v3566_v34  ;;  %v8720_v34 = vld [vmem:[#allocation5 + $0x140] sm:$0xff] }
 0xb20   :  { %v3588_v18 = vor.u32 1.1754944e-38, %v3587_v20  ;;  %vm3586_vm13 = vcmp.eq.f32.partialorder %v3585_v1, 8.507059e+37  ;;  %6076 = vpow2.f32 %v5845_v48  ;;  %3877 = vmatpush.msra.mxu0 %v8720_v34  ;;  %v2920_v20 = vsel %vm355_vm2, %v2846_v11, 0.0  ;;  %v8731_v1 = vld [vmem:[#allocation5 + $0x138] sm:$0xff]  ;;  %3974 = vmatpush.msra.mxu2 %v8720_v34 }
 0xb21   :  { %v8747_v48 = vld [vmem:[#allocation5 + $0x118] sm:$0xff] }
 0xb24   :  { %v6073_v59 = vpop.eup %6072 }
 0xb25   :  { %v3577_v26 = vmul.f32 %v6073_v59, %v3574_v51  ;;  %vm3582_vm11 = vweird.f32 %v6073_v59  ;;  %v6075_v62 = vpop.eup %6074  ;;  %v8711_v51 = vld [vmem:[#allocation5 + $0x158] sm:$0xff] }
 0xb26   :  { %vm3583_vm3 = vmor %vm3581_vm12, %vm3582_vm11  ;;  %v6077_v5 = vpop.eup %6076  ;;  %3896 = vmatpush.msra.mxu1 %v8711_v51  ;;  %3993 = vmatpush.msra.mxu3 %v8711_v51 }
 0xb27   :  { %v3578_v29 = vsub.f32 1.0, %v3577_v26  ;;  %v8690_v21 = vadd.f32 1.0, %v6077_v5  ;;  %v8722_v26 = vld [vmem:[#allocation5 + $0x148] sm:$0xff]  ;;  %v8754_v5 = vld [vmem:[#allocation5 + $0x100] sm:$0xff] }
 0xb28   :  { %3897 = vmatpush.msra.mxu1 %v8722_v26  ;;  %3994 = vmatpush.msra.mxu3 %v8722_v26 }
 0xb29   :  { %v3579_v13 = vmul.f32 %v6073_v59, %v3578_v29  ;;  %6078 = vrcp.f32 %v8690_v21  ;;  %vm3596_vm0 = vweird.f32 %v8690_v21 }
 0xb2a   :  { %3898 = vmatpush.msra.mxu1 %v8731_v1  ;;  %3995 = vmatpush.msra.mxu3 %v8731_v1 }
 0xb2b   :  { %v3580_v28 = vadd.f32 %v6073_v59, %v3579_v13  ;;  %v8729_v13 = vld [vmem:[#allocation5 + $0x130] sm:$0xff] }
 0xb2c   :  { %3878 = vmatpush.msra.mxu0 %v8729_v13  ;;  %3975 = vmatpush.msra.mxu2 %v8729_v13 }
 0xb2d   :  { %v3584_v16 = vsel %vm3583_vm3, %v6073_v59, %v3580_v28  ;;  %v2992_v59 = vsel %vm355_vm2, %v2862_v55, 0.0  ;;  %v2921_v28 = vadd.f32 %v2920_v20, %v2919_v9  ;;  %v3602_v9 = vand.u32 2147483648, %v8690_v21 }
 0xb2e   :  { %v8663_v2 = vsel %vm3586_vm13, %v3588_v18, %v3584_v16  ;;  %v2993_v29 = vadd.f32 %v2992_v59, %v2991_v14  ;;  %v8737_v18 = vld [vmem:[#allocation5 + $0x120] sm:$0xff]  ;;  %v8739_v16 = vld [vmem:[#allocation5 + $0x128] sm:$0xff]  ;;  %v3600_v59 = vand.u32 2147483647, %v8690_v21 }
 0xb2f   :  { %v3608_v37 = vmul.f32 %v6075_v62, %v8663_v2  ;;  %v6079_v62 = vpop.eup %6078  ;;  %3879 = vmatpush.msra.mxu0 %v8737_v18  ;;  %3899 = vmatpush.msra.mxu1 %v8739_v16  ;;  %v2922_v41 = vrot.slane %v2921_v28, 4  ;;  %v3607_v60 = vmul.f32 %v8663_v2, %v8605_v31  ;;  %v3603_v31 = vor.u32 1.1754944e-38, %v3602_v9 }
 0xb30   :  { %3976 = vmatpush.msra.mxu2 %v8737_v18  ;;  %3996 = vmatpush.msra.mxu3 %v8739_v16  ;;  %v3592_v43 = vmul.f32 %v6079_v62, %v8690_v21  ;;  %vm3597_vm14 = vweird.f32 %v6079_v62  ;;  %vm3601_vm4 = vcmp.eq.f32.partialorder %v3600_v59, 8.507059e+37 }
 0xb31   :  { %3610 = vrot.lane.b32.xlu2 %v3608_v37, %s6534_s13  ;;  %v2994_v37 = vrot.slane %v2993_v29, 4  ;;  %3900 = vmatpush.msra.mxu1 %v8747_v48  ;;  %v2923_v3 = vadd.f32 %v2922_v41, %v2921_v28  ;;  %vm3598_vm1 = vmor %vm3596_vm0, %vm3597_vm14 }
 0xb32   :  { %3997 = vmatpush.msra.mxu3 %v8747_v48  ;;  %v3593_v19 = vsub.f32 1.0, %v3592_v43 }
 0xb33   :  { %v2995_v47 = vadd.f32 %v2994_v37, %v2993_v29  ;;  %3901 = vmatpush.msra.mxu1 %v8756_v44  ;;  %v2924_v57 = vrot.slane %v2923_v3, 2 }
 0xb34   :  { %3998 = vmatpush.msra.mxu3 %v8756_v44  ;;  %v3594_v42 = vmul.f32 %v6079_v62, %v3593_v19 }
 0xb35   :  { %v2996_v17 = vrot.slane %v2995_v47, 2  ;;  %v2925_v49 = vadd.f32 %v2924_v57, %v2923_v3  ;;  %v5906_v3 = vpop.permute.xlu0 %5905 }
 0xb36   :  { %v3595_v11 = vadd.f32 %v6079_v62, %v3594_v42  ;;  %v5908_v21 = vunpack.i.h.bf16 %v5906_v3  ;;  %v5850_v42 = vld [vmem:[%s9627_s6 + $0x2] sm:$0x3] }
 0xb37   :  { %v2997_v8 = vadd.f32 %v2996_v17, %v2995_v47  ;;  %v2926_v29 = vrot.slane %v2925_v49, 1 }
 0xb38   :  { %v3599_v20 = vsel %vm3598_vm1, %v6079_v62, %v3595_v11  ;;  %v5907_v62 = vunpack.i.l.bf16 %v5906_v3 }
 0xb39   :  { %2750 = vperm.xlu2 %5903, %v9792_v36   ;;  %v8745_v36 = vld [vmem:[#allocation5 + $0x110] sm:$0xff]  ;;  %v2998_v14 = vrot.slane %v2997_v8, 1  ;;  %v2927_v37 = vadd.f32 %v2926_v29, %v2925_v49  ;;  %v3604_v41 = vsel %vm3601_vm4, %v3603_v31, %v3599_v20 }
 0xb3a   :  { %3880 = vmatpush.msra.mxu0 %v8745_v36  ;;  %3977 = vmatpush.msra.mxu2 %v8745_v36  ;;  %v3860_v19 = vsel %vm355_vm2, %v5907_v62, %v5908_v21 }
 0xb3b   :  { %v2999_v28 = vadd.f32 %v2998_v14, %v2997_v8 }
 0xb3c   :  { %3881 = vmatpush.msra.mxu0 %v8754_v5  ;;  %3978 = vmatpush.msra.mxu2 %v8754_v5 }
 0xb3d   :  { %v3618_v47 = vsel %vm3046_vm15, %v2999_v28, %v2927_v37 }
 0xb8b   :  { %v3611_v55 = vpop.permute.xlu2 %3610 }
 0xb8c   :  { %v8770_v4 = vadd.f32 %v3611_v55, %v3607_v60  ;;  %v8850_v60 = vperm.slane %v5850_v42, 0 }
 0xb8e   :  { %6080 = vtanh.f32 %v8770_v4 }
 0xb94   :  { %v6081_v2 = vpop.eup %6080 }
 0xb95   :  { %v8776_v43 = vmul.f32 %v6081_v2, %v3604_v41  ;;  %v8854_v41 = vperm.slane %v5850_v42, 1 }
 0xb97   :  { %9801 = vst [vmem:[#allocation28_spill] sm:$0xff] %v8776_v43  ;;  %v3620_v58 = vsel %vm355_vm2, %v3618_v47, %v8776_v43 }
 0xb98   :  { %3637 = vmatmul.f32.vlgmr.msrb.gmra.mxu0 %v3620_v58  ;;  %3657 = vmatmul.f32.vlgmr.msrb.gmra.mxu1 %v3620_v58 }
 0xb99   :  { %4056 = vmatpush.msrb.mxu0 %v8614_v39  ;;  %4076 = vmatpush.msrb.mxu1 %v8616_v0 }
 0xb9b   :  { %4057 = vmatpush.msrb.mxu0 %v8618_v56  ;;  %4077 = vmatpush.msrb.mxu1 %v8622_v30 }
 0xb9d   :  { %4058 = vmatpush.msrb.mxu0 %v8624_v15  ;;  %4078 = vmatpush.msrb.mxu1 %v8626_v12 }
 0xb9f   :  { %4059 = vmatpush.msrb.mxu0 %v8632_v63  ;;  %4079 = vmatpush.msrb.mxu1 %v8634_v35 }
 0xba0   :  { %3882 = vmatmul.f32.vlgmr.msra.gmra.mxu0 %v3860_v19  ;;  %3902 = vmatmul.f32.vlgmr.msra.gmra.mxu1 %v3860_v19 }
 0xba1   :  { %4060 = vmatpush.msrb.mxu0 %v8640_v25  ;;  %4080 = vmatpush.msrb.mxu1 %v8642_v38 }
 0xba3   :  { %4061 = vmatpush.msrb.mxu0 %v8648_v10  ;;  %4081 = vmatpush.msrb.mxu1 %v8650_v54 }
 0xba5   :  { %4062 = vmatpush.msrb.mxu0 %v8668_v46  ;;  %4082 = vmatpush.msrb.mxu1 %v8670_v27 }
 0xba7   :  { %4063 = vmatpush.msrb.mxu0 %v8674_v22  ;;  %4083 = vmatpush.msrb.mxu1 %v8676_v61 }
 0xba9   :  { %4064 = vmatpush.msrb.mxu0 %v8684_v40  ;;  %4084 = vmatpush.msrb.mxu1 %v8686_v53 }
 0xbab   :  { %4065 = vmatpush.msrb.mxu0 %v8698_v50  ;;  %4085 = vmatpush.msrb.mxu1 %v8700_v32 }
 0xbad   :  { %4066 = vmatpush.msrb.mxu0 %v8709_v33  ;;  %4086 = vmatpush.msrb.mxu1 %v8711_v51 }
 0xbaf   :  { %4067 = vmatpush.msrb.mxu0 %v8720_v34  ;;  %4087 = vmatpush.msrb.mxu1 %v8722_v26 }
 0xbb1   :  { %4068 = vmatpush.msrb.mxu0 %v8729_v13  ;;  %4088 = vmatpush.msrb.mxu1 %v8731_v1 }
 0xbb3   :  { %4069 = vmatpush.msrb.mxu0 %v8737_v18  ;;  %4089 = vmatpush.msrb.mxu1 %v8739_v16 }
 0xbb5   :  { %4070 = vmatpush.msrb.mxu0 %v8745_v36  ;;  %4090 = vmatpush.msrb.mxu1 %v8747_v48 }
 0xbb7   :  { %4071 = vmatpush.msrb.mxu0 %v8754_v5  ;;  %4091 = vmatpush.msrb.mxu1 %v8756_v44 }
 0xbb9   :  { %4242 = vmatpush.msra.mxu0 %v8614_v39  ;;  %4262 = vmatpush.msra.mxu1 %v8616_v0 }
 0xbbb   :  { %4243 = vmatpush.msra.mxu0 %v8618_v56  ;;  %4263 = vmatpush.msra.mxu1 %v8622_v30 }
 0xbbd   :  { %4244 = vmatpush.msra.mxu0 %v8624_v15  ;;  %4264 = vmatpush.msra.mxu1 %v8626_v12 }
 0xbbf   :  { %4245 = vmatpush.msra.mxu0 %v8632_v63  ;;  %4265 = vmatpush.msra.mxu1 %v8634_v35 }
 0xbc1   :  { %4246 = vmatpush.msra.mxu0 %v8640_v25  ;;  %4266 = vmatpush.msra.mxu1 %v8642_v38 }
 0xbc3   :  { %4247 = vmatpush.msra.mxu0 %v8648_v10  ;;  %4267 = vmatpush.msra.mxu1 %v8650_v54 }
 0xbc5   :  { %4248 = vmatpush.msra.mxu0 %v8668_v46  ;;  %4268 = vmatpush.msra.mxu1 %v8670_v27 }
 0xbc7   :  { %4249 = vmatpush.msra.mxu0 %v8674_v22  ;;  %4269 = vmatpush.msra.mxu1 %v8676_v61 }
 0xbc9   :  { %4250 = vmatpush.msra.mxu0 %v8684_v40  ;;  %4270 = vmatpush.msra.mxu1 %v8686_v53 }
 0xbcb   :  { %4251 = vmatpush.msra.mxu0 %v8698_v50  ;;  %4271 = vmatpush.msra.mxu1 %v8700_v32 }
 0xbcd   :  { %4252 = vmatpush.msra.mxu0 %v8709_v33  ;;  %4272 = vmatpush.msra.mxu1 %v8711_v51 }
 0xbcf   :  { %4253 = vmatpush.msra.mxu0 %v8720_v34  ;;  %4273 = vmatpush.msra.mxu1 %v8722_v26 }
 0xbd1   :  { %4254 = vmatpush.msra.mxu0 %v8729_v13  ;;  %4274 = vmatpush.msra.mxu1 %v8731_v1 }
 0xbd3   :  { %4255 = vmatpush.msra.mxu0 %v8737_v18  ;;  %4275 = vmatpush.msra.mxu1 %v8739_v16 }
 0xbd5   :  { %4256 = vmatpush.msra.mxu0 %v8745_v36  ;;  %4276 = vmatpush.msra.mxu1 %v8747_v48 }
 0xbd7   :  { %4257 = vmatpush.msra.mxu0 %v8754_v5  ;;  %4277 = vmatpush.msra.mxu1 %v8756_v44 }
 0xc15   :  { %v3638_v17 = vpop.f32.mrf.mxu0  ;;  %v3658_v59 = vpop.f32.mrf.mxu1 }
 0xc16   :  { %v3639_v57 = vadd.f32 %v3638_v17, %v8339_v52  ;;  %v3659_v28 = vadd.f32 %v3658_v59, %v8342_v6 }
 0xc18   :  { %v5846_v8 = vmul.f32 -1.442695, %v3639_v57 }
 0xc1a   :  { %6082 = vpow2.f32 %v5846_v8 }
 0xc1d   :  { %v3883_v55 = vpop.f32.mrf.mxu0  ;;  %v3903_v58 = vpop.f32.mrf.mxu1 }
 0xc1e   :  { %v3884_v49 = vadd.f32 %v3883_v55, %v8850_v60  ;;  %v3904_v17 = vadd.f32 %v3903_v58, %v8854_v41 }
 0xc20   :  { %v6083_v11 = vpop.eup %6082  ;;  %v5853_v14 = vmul.f32 -1.442695, %v3884_v49 }
 0xc21   :  { %v3667_v9 = vadd.f32 1.0, %v6083_v11 }
 0xc22   :  { %6084 = vpow2.f32 %v5853_v14 }
 0xc23   :  { %6086 = vrcp.f32 %v3667_v9  ;;  %v3680_v47 = vand.u32 2147483648, %v3667_v9  ;;  %v3678_v21 = vand.u32 2147483647, %v3667_v9  ;;  %vm3674_vm6 = vweird.f32 %v3667_v9 }
 0xc25   :  { %v3681_v57 = vor.u32 1.1754944e-38, %v3680_v47  ;;  %vm3679_vm8 = vcmp.eq.f32.partialorder %v3678_v21, 8.507059e+37  ;;  %v5847_v21 = vmul.f32 -1.442695, %v3659_v28 }
 0xc28   :  { %v6085_v29 = vpop.eup %6084 }
 0xc29   :  { %v6087_v20 = vpop.eup %6086  ;;  %v3912_v31 = vadd.f32 1.0, %v6085_v29 }
 0xc2a   :  { %v3670_v2 = vmul.f32 %v6087_v20, %v3667_v9  ;;  %vm3675_vm5 = vweird.f32 %v6087_v20 }
 0xc2b   :  { %6088 = vrcp.f32 %v3912_v31  ;;  %vm3676_vm7 = vmor %vm3674_vm6, %vm3675_vm5  ;;  %v3925_v59 = vand.u32 2147483648, %v3912_v31  ;;  %vm3919_vm10 = vweird.f32 %v3912_v31 }
 0xc2c   :  { %v3671_v37 = vsub.f32 1.0, %v3670_v2  ;;  %6090 = vtanh.f32 %v3659_v28  ;;  %v3923_v2 = vand.u32 2147483647, %v3912_v31 }
 0xc2d   :  { %6092 = vtanh.f32 %v3904_v17 }
 0xc2e   :  { %v3672_v3 = vmul.f32 %v6087_v20, %v3671_v37  ;;  %v3926_v37 = vor.u32 1.1754944e-38, %v3925_v59  ;;  %vm3924_vm12 = vcmp.eq.f32.partialorder %v3923_v2, 8.507059e+37  ;;  %6094 = vpow2.f32 %v5847_v21  ;;  %v9804_v59 = vld [vmem:[#allocation26_spill] sm:$0xff] }
 0xc30   :  { %v3673_v62 = vadd.f32 %v6087_v20, %v3672_v3 }
 0xc31   :  { %v6089_v19 = vpop.eup %6088 }
 0xc32   :  { %v3677_v8 = vsel %vm3676_vm7, %v6087_v20, %v3673_v62  ;;  %v3915_v55 = vmul.f32 %v6089_v19, %v3912_v31  ;;  %v6091_v49 = vpop.eup %6090  ;;  %vm3920_vm9 = vweird.f32 %v6089_v19  ;;  %v2746_v62 = vpop.permute.xlu1 %2745 }
 0xc33   :  { %v3682_v11 = vsel %vm3679_vm8, %v3681_v57, %v3677_v8  ;;  %vm3921_vm11 = vmor %vm3919_vm10, %vm3920_vm9  ;;  %v6093_v20 = vpop.eup %6092  ;;  %v2751_v31 = vpop.permute.xlu2 %2750  ;;  %v9802_v8 = vld [vmem:[#allocation27_spill] sm:$0xff] }
 0xc34   :  { %v3701_v14 = vmul.f32 %v6091_v49, %v3682_v11  ;;  %v3916_v42 = vsub.f32 1.0, %v3915_v55  ;;  %v6095_v57 = vpop.eup %6094  ;;  %v9803_v55 = vmax.f32 %v9802_v8, 0.0 }
 0xc36   :  { %3703 = vrot.lane.b32.xlu2 %v3701_v14, %s6534_s13  ;;  %v3917_v29 = vmul.f32 %v6089_v19, %v3916_v42  ;;  %v2848_v49 = vmul.f32 %v2751_v31, %v9803_v55  ;;  %v3668_v42 = vadd.f32 1.0, %v6095_v57 }
 0xc38   :  { %v3918_v9 = vadd.f32 %v6089_v19, %v3917_v29  ;;  %v9805_v29 = vmax.f32 %v9804_v59, 0.0  ;;  %v2929_v28 = vsel %vm355_vm2, %v2848_v49, 0.0  ;;  %6096 = vrcp.f32 %v3668_v42 }
 0xc39   :  { %vm3689_vm13 = vweird.f32 %v3668_v42 }
 0xc3a   :  { %v3922_v58 = vsel %vm3921_vm11, %v6089_v19, %v3918_v9  ;;  %v2826_v19 = vpop.permute.xlu0 %2825  ;;  %v2831_v14 = vpop.permute.xlu1 %2830  ;;  %v2847_v2 = vmul.f32 %v2746_v62, %v9805_v29 }
 0xc3b   :  { %v8858_v47 = vsel %vm3924_vm12, %v3926_v37, %v3922_v58  ;;  %v9808_v58 = vld [vmem:[#allocation45_spill] sm:$0xff] }
 0xc3c   :  { %v3950_v3 = vmul.f32 %v6093_v20, %v8858_v47  ;;  %v9809_v20 = vmax.f32 %v9808_v58, 0.0 }
 0xc3e   :  { %3959 = vrot.lane.b32.xlu2 %v8451_v23, %s6534_s13  ;;  %3952 = vrot.lane.b32.xlu1 %v3950_v3, %s6534_s13  ;;  %v9806_v23 = vld [vmem:[#allocation44_spill] sm:$0xff]  ;;  %v2928_v3 = vsel %vm355_vm2, %v2847_v2, 0.0  ;;  %v6097_v55 = vpop.eup %6096  ;;  %v3700_v2 = vmul.f32 %v3682_v11, %v8770_v4 }
 0xc3f   :  { %v9807_v9 = vmax.f32 %v9806_v23, 0.0  ;;  %v2930_v8 = vadd.f32 %v2929_v28, %v2928_v3  ;;  %v3685_v29 = vmul.f32 %v6097_v55, %v3668_v42  ;;  %vm3690_vm3 = vweird.f32 %v6097_v55 }
 0xc40   :  { %vm3691_vm14 = vmor %vm3689_vm13, %vm3690_vm3 }
 0xc41   :  { %v2863_v37 = vmul.f32 %v2826_v19, %v9807_v9  ;;  %v2931_v59 = vrot.slane %v2930_v8, 4  ;;  %v3686_v9 = vsub.f32 1.0, %v3685_v29 }
 0xc43   :  { %v3000_v21 = vsel %vm355_vm2, %v2863_v37, 0.0  ;;  %v2932_v23 = vadd.f32 %v2931_v59, %v2930_v8  ;;  %v3687_v49 = vmul.f32 %v6097_v55, %v3686_v9  ;;  %v3693_v8 = vand.u32 2147483647, %v3668_v42 }
 0xc45   :  { %v2933_v58 = vrot.slane %v2932_v23, 2  ;;  %vm3694_vm0 = vcmp.eq.f32.partialorder %v3693_v8, 8.507059e+37 }
 0xc46   :  { %4052 = vrot.lane.b32.xlu1 %v8523_v7, %s6534_s13  ;;  %v2864_v7 = vmul.f32 %v2831_v14, %v9809_v20  ;;  %v5854_v14 = vmul.f32 -1.442695, %v3904_v17 }
 0xc47   :  { %v2934_v43 = vadd.f32 %v2933_v58, %v2932_v23 }
 0xc48   :  { %v3001_v31 = vsel %vm355_vm2, %v2864_v7, 0.0  ;;  %6098 = vpow2.f32 %v5854_v14  ;;  %v3688_v7 = vadd.f32 %v6097_v55, %v3687_v49 }
 0xc49   :  { %v3002_v57 = vadd.f32 %v3001_v31, %v3000_v21  ;;  %v2935_v21 = vrot.slane %v2934_v43, 1  ;;  %v3695_v31 = vand.u32 2147483648, %v3668_v42 }
 0xc4a   :  { %v3692_v59 = vsel %vm3691_vm14, %v6097_v55, %v3688_v7 }
 0xc4b   :  { %v3003_v62 = vrot.slane %v3002_v57, 4  ;;  %v3696_v29 = vor.u32 1.1754944e-38, %v3695_v31 }
 0xc4d   :  { %v3004_v19 = vadd.f32 %v3003_v62, %v3002_v57  ;;  %v2936_v62 = vadd.f32 %v2935_v21, %v2934_v43 }
 0xc4e   :  { %v6099_v17 = vpop.eup %6098 }
 0xc4f   :  { %v3005_v20 = vrot.slane %v3004_v19, 2  ;;  %v3913_v23 = vadd.f32 1.0, %v6099_v17 }
 0xc51   :  { %v3006_v28 = vadd.f32 %v3005_v20, %v3004_v19  ;;  %v3697_v19 = vsel %vm3694_vm0, %v3696_v29, %v3692_v59  ;;  %v3947_v20 = vpop.permute.xlu0 %3946  ;;  %v3940_v21 = vand.u32 2147483648, %v3913_v23  ;;  %vm3934_vm1 = vweird.f32 %v3913_v23 }
 0xc52   :  { %v3938_v31 = vand.u32 2147483647, %v3913_v23 }
 0xc53   :  { %v3007_v57 = vrot.slane %v3006_v28, 1  ;;  %v3941_v8 = vor.u32 1.1754944e-38, %v3940_v21 }
 0xc54   :  { %vm3939_vm5 = vcmp.eq.f32.partialorder %v3938_v31, 8.507059e+37 }
 0xc55   :  { %v3008_v11 = vadd.f32 %v3007_v57, %v3006_v28 }
 0xc57   :  { %v3711_v58 = vsel %vm3046_vm15, %v3008_v11, %v2936_v62 }
 0xc90   :  { %v3704_v37 = vpop.permute.xlu2 %3703 }
 0xc91   :  { %v8879_v3 = vadd.f32 %v3704_v37, %v3700_v2  ;;  %v3949_v2 = vmul.f32 %v3947_v20, %v8858_v47 }
 0xc93   :  { %6100 = vtanh.f32 %v8879_v3 }
 0xc94   :  { %6102 = vrcp.f32 %v3913_v23 }
 0xc98   :  { %v3960_v62 = vpop.permute.xlu2 %3959 }
 0xc99   :  { %v6101_v4 = vpop.eup %6100 }
 0xc9a   :  { %v8882_v9 = vmul.f32 %v6101_v4, %v3697_v19  ;;  %v6103_v43 = vpop.eup %6102 }
 0xc9b   :  { %v3930_v42 = vmul.f32 %v6103_v43, %v3913_v23  ;;  %vm3935_vm15 = vweird.f32 %v6103_v43 }
 0xc9c   :  { %v3713_v14 = vsel %vm355_vm2, %v3711_v58, %v8882_v9  ;;  %vm3936_vm4 = vmor %vm3934_vm1, %vm3935_vm15 }
 0xc9d   :  { %3730 = vmatmul.f32.vlgmr.msrb.gmra.mxu2 %v3713_v14  ;;  %3750 = vmatmul.f32.vlgmr.msrb.gmra.mxu3 %v3713_v14  ;;  %v3931_v55 = vsub.f32 1.0, %v3930_v42 }
 0xc9e   :  { %4149 = vmatpush.msrb.mxu2 %v8614_v39  ;;  %4169 = vmatpush.msrb.mxu3 %v8616_v0 }
 0xc9f   :  { %v3932_v49 = vmul.f32 %v6103_v43, %v3931_v55 }
 0xca0   :  { %4150 = vmatpush.msrb.mxu2 %v8618_v56  ;;  %4170 = vmatpush.msrb.mxu3 %v8622_v30 }
 0xca1   :  { %v3933_v7 = vadd.f32 %v6103_v43, %v3932_v49 }
 0xca2   :  { %4151 = vmatpush.msrb.mxu2 %v8624_v15  ;;  %4171 = vmatpush.msrb.mxu3 %v8626_v12 }
 0xca3   :  { %v3937_v47 = vsel %vm3936_vm4, %v6103_v43, %v3933_v7 }
 0xca4   :  { %4152 = vmatpush.msrb.mxu2 %v8632_v63  ;;  %4172 = vmatpush.msrb.mxu3 %v8634_v35  ;;  %v3942_v17 = vsel %vm3939_vm5, %v3941_v8, %v3937_v47 }
 0xca6   :  { %4153 = vmatpush.msrb.mxu2 %v8640_v25  ;;  %4173 = vmatpush.msrb.mxu3 %v8642_v38 }
 0xca8   :  { %4154 = vmatpush.msrb.mxu2 %v8648_v10  ;;  %4174 = vmatpush.msrb.mxu3 %v8650_v54 }
 0xcaa   :  { %4155 = vmatpush.msrb.mxu2 %v8668_v46  ;;  %4175 = vmatpush.msrb.mxu3 %v8670_v27 }
 0xcac   :  { %4156 = vmatpush.msrb.mxu2 %v8674_v22  ;;  %4176 = vmatpush.msrb.mxu3 %v8676_v61 }
 0xcae   :  { %4157 = vmatpush.msrb.mxu2 %v8684_v40  ;;  %4177 = vmatpush.msrb.mxu3 %v8686_v53 }
 0xcb0   :  { %v3953_v37 = vpop.permute.xlu1 %3952  ;;  %4158 = vmatpush.msrb.mxu2 %v8698_v50  ;;  %4178 = vmatpush.msrb.mxu3 %v8700_v32 }
 0xcb1   :  { %v8908_v28 = vadd.f32 %v3953_v37, %v3949_v2 }
 0xcb2   :  { %4159 = vmatpush.msrb.mxu2 %v8709_v33  ;;  %4179 = vmatpush.msrb.mxu3 %v8711_v51 }
 0xcb3   :  { %6104 = vtanh.f32 %v8908_v28 }
 0xcb4   :  { %4160 = vmatpush.msrb.mxu2 %v8720_v34  ;;  %4180 = vmatpush.msrb.mxu3 %v8722_v26 }
 0xcb6   :  { %4161 = vmatpush.msrb.mxu2 %v8729_v13  ;;  %4181 = vmatpush.msrb.mxu3 %v8731_v1 }
 0xcb8   :  { %4162 = vmatpush.msrb.mxu2 %v8737_v18  ;;  %4182 = vmatpush.msrb.mxu3 %v8739_v16 }
 0xcb9   :  { %v6105_v57 = vpop.eup %6104 }
 0xcba   :  { %v8919_v59 = vmul.f32 %v6105_v57, %v3942_v17  ;;  %4163 = vmatpush.msrb.mxu2 %v8745_v36  ;;  %4183 = vmatpush.msrb.mxu3 %v8747_v48 }
 0xcbc   :  { %v3962_v29 = vsel %vm355_vm2, %v3960_v62, %v8919_v59  ;;  %4164 = vmatpush.msrb.mxu2 %v8754_v5  ;;  %4184 = vmatpush.msrb.mxu3 %v8756_v44 }
 0xcbd   :  { %3979 = vmatmul.f32.vlgmr.msra.gmra.mxu2 %v3962_v29  ;;  %3999 = vmatmul.f32.vlgmr.msra.gmra.mxu3 %v3962_v29 }
 0xcbe   :  { %4335 = vmatpush.msra.mxu2 %v8614_v39  ;;  %4355 = vmatpush.msra.mxu3 %v8616_v0 }
 0xcc0   :  { %4336 = vmatpush.msra.mxu2 %v8618_v56  ;;  %4356 = vmatpush.msra.mxu3 %v8622_v30 }
 0xcc2   :  { %4337 = vmatpush.msra.mxu2 %v8624_v15  ;;  %4357 = vmatpush.msra.mxu3 %v8626_v12 }
 0xcc4   :  { %4338 = vmatpush.msra.mxu2 %v8632_v63  ;;  %4358 = vmatpush.msra.mxu3 %v8634_v35 }
 0xcc6   :  { %4339 = vmatpush.msra.mxu2 %v8640_v25  ;;  %4359 = vmatpush.msra.mxu3 %v8642_v38 }
 0xcc8   :  { %4340 = vmatpush.msra.mxu2 %v8648_v10  ;;  %4360 = vmatpush.msra.mxu3 %v8650_v54 }
 0xcca   :  { %4341 = vmatpush.msra.mxu2 %v8668_v46  ;;  %4361 = vmatpush.msra.mxu3 %v8670_v27 }
 0xccc   :  { %4342 = vmatpush.msra.mxu2 %v8674_v22  ;;  %4362 = vmatpush.msra.mxu3 %v8676_v61 }
 0xcce   :  { %4343 = vmatpush.msra.mxu2 %v8684_v40  ;;  %4363 = vmatpush.msra.mxu3 %v8686_v53 }
 0xcd0   :  { %4344 = vmatpush.msra.mxu2 %v8698_v50  ;;  %4364 = vmatpush.msra.mxu3 %v8700_v32 }
 0xcd2   :  { %4345 = vmatpush.msra.mxu2 %v8709_v33  ;;  %4365 = vmatpush.msra.mxu3 %v8711_v51 }
 0xcd4   :  { %4346 = vmatpush.msra.mxu2 %v8720_v34  ;;  %4366 = vmatpush.msra.mxu3 %v8722_v26 }
 0xcd6   :  { %4347 = vmatpush.msra.mxu2 %v8729_v13  ;;  %4367 = vmatpush.msra.mxu3 %v8731_v1 }
 0xcd8   :  { %4348 = vmatpush.msra.mxu2 %v8737_v18  ;;  %4368 = vmatpush.msra.mxu3 %v8739_v16 }
 0xcda   :  { %4349 = vmatpush.msra.mxu2 %v8745_v36  ;;  %4369 = vmatpush.msra.mxu3 %v8747_v48 }
 0xcdc   :  { %4350 = vmatpush.msra.mxu2 %v8754_v5  ;;  %4370 = vmatpush.msra.mxu3 %v8756_v44 }
 0xd20   :  { %v3731_v39 = vpop.f32.mrf.mxu2  ;;  %v3751_v12 = vpop.f32.mrf.mxu3 }
 0xd21   :  { %v3732_v0 = vadd.f32 %v3731_v39, %v8339_v52  ;;  %v8961_v35 = vadd.f32 %v3751_v12, %v8342_v6 }
 0xd23   :  { %v5848_v56 = vmul.f32 -1.442695, %v3732_v0 }
 0xd25   :  { %6106 = vpow2.f32 %v5848_v56 }
 0xd2b   :  { %v6107_v30 = vpop.eup %6106 }
 0xd2c   :  { %v3760_v15 = vadd.f32 1.0, %v6107_v30 }
 0xd2e   :  { %6108 = vrcp.f32 %v3760_v15  ;;  %v3773_v10 = vand.u32 2147483648, %v3760_v15  ;;  %v3771_v4 = vand.u32 2147483647, %v3760_v15  ;;  %vm3767_vm7 = vweird.f32 %v3760_v15 }
 0xd2f   :  { %6110 = vtanh.f32 %v8961_v35 }
 0xd30   :  { %v3774_v52 = vor.u32 1.1754944e-38, %v3773_v10  ;;  %vm3772_vm9 = vcmp.eq.f32.partialorder %v3771_v4, 8.507059e+37 }
 0xd34   :  { %v6109_v63 = vpop.eup %6108 }
 0xd35   :  { %v3763_v25 = vmul.f32 %v6109_v63, %v3760_v15  ;;  %vm3768_vm6 = vweird.f32 %v6109_v63  ;;  %v6111_v19 = vpop.eup %6110 }
 0xd36   :  { %vm3769_vm8 = vmor %vm3767_vm7, %vm3768_vm6 }
 0xd37   :  { %v3764_v38 = vsub.f32 1.0, %v3763_v25 }
 0xd39   :  { %v3765_v54 = vmul.f32 %v6109_v63, %v3764_v38 }
 0xd3b   :  { %v3766_v11 = vadd.f32 %v6109_v63, %v3765_v54 }
 0xd3d   :  { %v3770_v23 = vsel %vm3769_vm8, %v6109_v63, %v3766_v11 }
 0xd3e   :  { %v8964_v58 = vsel %vm3772_vm9, %v3774_v52, %v3770_v23 }
 0xd3f   :  { %v8967_v6 = vmul.f32 %v6111_v19, %v8964_v58 }
 0xd40   :  { %v3980_v14 = vpop.f32.mrf.mxu2  ;;  %v4000_v49 = vpop.f32.mrf.mxu3 }
 0xd41   :  { %v3981_v43 = vadd.f32 %v3980_v14, %v8850_v60  ;;  %v4001_v37 = vadd.f32 %v4000_v49, %v8854_v41  ;;  %v8985_v49 = vld [vmem:[#allocation5 + $0x1f8] sm:$0xff] }
 0xd43   :  { %v5855_v42 = vmul.f32 -1.442695, %v3981_v43  ;;  %v5856_v56 = vmul.f32 -1.442695, %v4001_v37 }
 0xd45   :  { %6112 = vpow2.f32 %v5855_v42 }
 0xd4b   :  { %v6113_v55 = vpop.eup %6112 }
 0xd4c   :  { %v4009_v20 = vadd.f32 1.0, %v6113_v55  ;;  %v4053_v55 = vpop.permute.xlu1 %4052 }
 0xd4e   :  { %6114 = vrcp.f32 %v4009_v20  ;;  %v4022_v31 = vand.u32 2147483648, %v4009_v20  ;;  %v4020_v8 = vand.u32 2147483647, %v4009_v20  ;;  %vm4016_vm11 = vweird.f32 %v4009_v20 }
 0xd4f   :  { %6116 = vtanh.f32 %v4001_v37  ;;  %v8991_v37 = vld [vmem:[#allocation5 + $0x1e8] sm:$0xff] }
 0xd50   :  { %v4023_v17 = vor.u32 1.1754944e-38, %v4022_v31  ;;  %vm4021_vm3 = vcmp.eq.f32.partialorder %v4020_v8, 8.507059e+37  ;;  %6118 = vpow2.f32 %v5856_v56  ;;  %v9000_v31 = vld [vmem:[#allocation5 + $0x1c0] sm:$0xff]  ;;  %v9006_v8 = vld [vmem:[#allocation5 + $0x1b0] sm:$0xff] }
 0xd54   :  { %v6115_v2 = vpop.eup %6114 }
 0xd55   :  { %v4012_v7 = vmul.f32 %v6115_v2, %v4009_v20  ;;  %vm4017_vm10 = vweird.f32 %v6115_v2  ;;  %v6117_v29 = vpop.eup %6116  ;;  %v8982_v20 = vld [vmem:[#allocation5 + $0x1f0] sm:$0xff] }
 0xd56   :  { %vm4018_vm12 = vmor %vm4016_vm11, %vm4017_vm10  ;;  %v6119_v30 = vpop.eup %6118 }
 0xd57   :  { %v4013_v21 = vsub.f32 1.0, %v4012_v7  ;;  %v4010_v15 = vadd.f32 1.0, %v6119_v30  ;;  %v8994_v7 = vld [vmem:[#allocation5 + $0x1d0] sm:$0xff] }
 0xd59   :  { %v4014_v47 = vmul.f32 %v6115_v2, %v4013_v21  ;;  %6120 = vrcp.f32 %v4010_v15  ;;  %v4037_v52 = vand.u32 2147483648, %v4010_v15  ;;  %vm4031_vm14 = vweird.f32 %v4010_v15  ;;  %v8997_v21 = vld [vmem:[#allocation5 + $0x1d8] sm:$0xff] }
 0xd5b   :  { %v4015_v57 = vadd.f32 %v6115_v2, %v4014_v47  ;;  %v4038_v19 = vor.u32 1.1754944e-38, %v4037_v52  ;;  %v9003_v47 = vld [vmem:[#allocation5 + $0x1c8] sm:$0xff] }
 0xd5d   :  { %v4019_v62 = vsel %vm4018_vm12, %v6115_v2, %v4015_v57  ;;  %v8988_v2 = vld [vmem:[#allocation5 + $0x1e0] sm:$0xff]  ;;  %v9009_v57 = vld [vmem:[#allocation5 + $0x1b8] sm:$0xff] }
 0xd5e   :  { %v4024_v39 = vsel %vm4021_vm3, %v4023_v17, %v4019_v62  ;;  %v9012_v17 = vld [vmem:[#allocation5 + $0x1a0] sm:$0xff]  ;;  %v9015_v62 = vld [vmem:[#allocation5 + $0x1a8] sm:$0xff] }
 0xd5f   :  { %v4043_v0 = vmul.f32 %v6117_v29, %v4024_v39  ;;  %v6121_v12 = vpop.eup %6120  ;;  %v4042_v10 = vmul.f32 %v4024_v39, %v8908_v28 }
 0xd60   :  { %v4027_v63 = vmul.f32 %v6121_v12, %v4010_v15  ;;  %vm4032_vm13 = vweird.f32 %v6121_v12 }
 0xd61   :  { %4045 = vrot.lane.b32.xlu0 %v4043_v0, %s6534_s13  ;;  %vm4033_vm0 = vmor %vm4031_vm14, %vm4032_vm13 }
 0xd62   :  { %v4028_v25 = vsub.f32 1.0, %v4027_v63 }
 0xd64   :  { %v4029_v38 = vmul.f32 %v6121_v12, %v4028_v25 }
 0xd66   :  { %v4030_v11 = vadd.f32 %v6121_v12, %v4029_v38 }
 0xd68   :  { %v4034_v23 = vsel %vm4033_vm0, %v6121_v12, %v4030_v11 }
 0xd69   :  { %4145 = vrot.lane.b32.xlu0 %v8577_v45, %s6534_s13  ;;  %v4035_v45 = vand.u32 2147483647, %v4010_v15 }
 0xd6b   :  { %vm4036_vm15 = vcmp.eq.f32.partialorder %v4035_v45, 8.507059e+37 }
 0xd6c   :  { %v4039_v43 = vsel %vm4036_vm15, %v4038_v19, %v4034_v23 }
 0xdd3   :  { %v4046_v54 = vpop.permute.xlu0 %4045 }
 0xdd4   :  { %v8975_v4 = vadd.f32 %v4046_v54, %v4042_v10 }
 0xdd6   :  { %6122 = vtanh.f32 %v8975_v4 }
 0xddb   :  { %v4146_v19 = vpop.permute.xlu0 %4145 }
 0xddc   :  { %v6123_v14 = vpop.eup %6122 }
 0xddd   :  { %v8978_v42 = vmul.f32 %v6123_v14, %v4039_v43  ;;  %v6347_v14 = vld [vmem:[#allocation5 + $0x190] sm:$0xff]  ;;  %v6348_v43 = vld [vmem:[#allocation5 + $0x198] sm:$0xff] }
 0xddf   :  { %v4055_v28 = vsel %vm355_vm2, %v4053_v55, %v8978_v42  ;;  %v6349_v55 = vld [vmem:[#allocation5 + $0x180] sm:$0xff] }
 0xde0   :  { %4072 = vmatmul.f32.vlgmr.msrb.gmra.mxu0 %v4055_v28  ;;  %4092 = vmatmul.f32.vlgmr.msrb.gmra.mxu1 %v4055_v28  ;;  %v6350_v28 = vld [vmem:[#allocation5 + $0x188] sm:$0xff] }
 0xde1   :  { %4428 = vmatpush.msrb.mxu0 %v8982_v20  ;;  %4448 = vmatpush.msrb.mxu1 %v8985_v49 }
 0xde3   :  { %4429 = vmatpush.msrb.mxu0 %v8988_v2  ;;  %4449 = vmatpush.msrb.mxu1 %v8991_v37 }
 0xde5   :  { %4430 = vmatpush.msrb.mxu0 %v8994_v7  ;;  %4450 = vmatpush.msrb.mxu1 %v8997_v21 }
 0xde7   :  { %4431 = vmatpush.msrb.mxu0 %v9000_v31  ;;  %4451 = vmatpush.msrb.mxu1 %v9003_v47 }
 0xde9   :  { %4432 = vmatpush.msrb.mxu0 %v9006_v8  ;;  %4452 = vmatpush.msrb.mxu1 %v9009_v57 }
 0xdeb   :  { %4433 = vmatpush.msrb.mxu0 %v9012_v17  ;;  %4453 = vmatpush.msrb.mxu1 %v9015_v62 }
 0xded   :  { %4434 = vmatpush.msrb.mxu0 %v8668_v46  ;;  %4454 = vmatpush.msrb.mxu1 %v8670_v27 }
 0xdef   :  { %4435 = vmatpush.msrb.mxu0 %v8674_v22  ;;  %4455 = vmatpush.msrb.mxu1 %v8676_v61 }
 0xdf1   :  { %4436 = vmatpush.msrb.mxu0 %v8684_v40  ;;  %4456 = vmatpush.msrb.mxu1 %v8686_v53 }
 0xdf3   :  { %4437 = vmatpush.msrb.mxu0 %v8698_v50  ;;  %4457 = vmatpush.msrb.mxu1 %v8700_v32 }
 0xdf5   :  { %4438 = vmatpush.msrb.mxu0 %v8709_v33  ;;  %4458 = vmatpush.msrb.mxu1 %v8711_v51 }
 0xdf7   :  { %4439 = vmatpush.msrb.mxu0 %v8720_v34  ;;  %4459 = vmatpush.msrb.mxu1 %v8722_v26 }
 0xdf9   :  { %4440 = vmatpush.msrb.mxu0 %v8729_v13  ;;  %4460 = vmatpush.msrb.mxu1 %v8731_v1 }
 0xdfb   :  { %4441 = vmatpush.msrb.mxu0 %v8737_v18  ;;  %4461 = vmatpush.msrb.mxu1 %v8739_v16 }
 0xdfd   :  { %4442 = vmatpush.msrb.mxu0 %v8745_v36  ;;  %4462 = vmatpush.msrb.mxu1 %v8747_v48 }
 0xdff   :  { %4443 = vmatpush.msrb.mxu0 %v8754_v5  ;;  %4463 = vmatpush.msrb.mxu1 %v8756_v44 }
 0xe5d   :  { %v4073_v46 = vpop.f32.mrf.mxu0  ;;  %v4093_v53 = vpop.f32.mrf.mxu1 }
 0xe5e   :  { %v4074_v27 = vadd.f32 %v4073_v46, %v8850_v60  ;;  %v4094_v32 = vadd.f32 %v4093_v53, %v8854_v41  ;;  %v6363_v46 = vld [vmem:[#allocation5 + $0x110] sm:$0xff] }
 0xe60   :  { %v5857_v22 = vmul.f32 -1.442695, %v4074_v27  ;;  %v5858_v44 = vmul.f32 -1.442695, %v4094_v32  ;;  %v6364_v27 = vld [vmem:[#allocation5 + $0x118] sm:$0xff] }
 0xe62   :  { %6124 = vpow2.f32 %v5857_v22  ;;  %v6365_v22 = vld [vmem:[#allocation5 + $0x100] sm:$0xff] }
 0xe68   :  { %v6125_v61 = vpop.eup %6124 }
 0xe69   :  { %v4102_v40 = vadd.f32 1.0, %v6125_v61  ;;  %v6366_v61 = vld [vmem:[#allocation5 + $0x108] sm:$0xff] }
 0xe6b   :  { %6126 = vrcp.f32 %v4102_v40  ;;  %v4115_v34 = vand.u32 2147483648, %v4102_v40  ;;  %v4113_v13 = vand.u32 2147483647, %v4102_v40  ;;  %vm4109_vm4 = vweird.f32 %v4102_v40 }
 0xe6c   :  { %6128 = vtanh.f32 %v4094_v32 }
 0xe6d   :  { %v4116_v18 = vor.u32 1.1754944e-38, %v4115_v34  ;;  %vm4114_vm6 = vcmp.eq.f32.partialorder %v4113_v13, 8.507059e+37  ;;  %6130 = vpow2.f32 %v5858_v44 }
 0xe71   :  { %v6127_v50 = vpop.eup %6126 }
 0xe72   :  { %v4105_v33 = vmul.f32 %v6127_v50, %v4102_v40  ;;  %vm4110_vm1 = vweird.f32 %v6127_v50  ;;  %v6129_v36 = vpop.eup %6128 }
 0xe73   :  { %vm4111_vm5 = vmor %vm4109_vm4, %vm4110_vm1  ;;  %v6131_v29 = vpop.eup %6130 }
 0xe74   :  { %v4106_v51 = vsub.f32 1.0, %v4105_v33  ;;  %v4103_v39 = vadd.f32 1.0, %v6131_v29 }
 0xe76   :  { %v4107_v26 = vmul.f32 %v6127_v50, %v4106_v51  ;;  %6132 = vrcp.f32 %v4103_v39  ;;  %v4130_v10 = vand.u32 2147483648, %v4103_v39  ;;  %vm4124_vm8 = vweird.f32 %v4103_v39 }
 0xe78   :  { %v4108_v1 = vadd.f32 %v6127_v50, %v4107_v26  ;;  %v4131_v11 = vor.u32 1.1754944e-38, %v4130_v10 }
 0xe7a   :  { %v4112_v16 = vsel %vm4111_vm5, %v6127_v50, %v4108_v1 }
 0xe7b   :  { %v4117_v48 = vsel %vm4114_vm6, %v4116_v18, %v4112_v16 }
 0xe7c   :  { %v4136_v5 = vmul.f32 %v6129_v36, %v4117_v48  ;;  %v6133_v0 = vpop.eup %6132  ;;  %v4135_v12 = vmul.f32 %v4117_v48, %v8975_v4 }
 0xe7d   :  { %v4120_v56 = vmul.f32 %v6133_v0, %v4103_v39  ;;  %vm4125_vm7 = vweird.f32 %v6133_v0 }
 0xe7e   :  { %4138 = vrot.lane.b32.xlu2 %v4136_v5, %s6534_s13  ;;  %vm4126_vm9 = vmor %vm4124_vm8, %vm4125_vm7 }
 0xe7f   :  { %v4121_v30 = vsub.f32 1.0, %v4120_v56  ;;  %v9810_v56 = vld [vmem:[#allocation28_spill] sm:$0xff] }
 0xe81   :  { %v4122_v15 = vmul.f32 %v6133_v0, %v4121_v30  ;;  %v5870_v30 = vld [vmem:[%s9622_s1 + $0x4] sm:$0x3] }
 0xe83   :  { %v4123_v38 = vadd.f32 %v6133_v0, %v4122_v15  ;;  %v5909_v15 = vpack.i.bf16 %v5870_v30, %v8919_v59 }
 0xe85   :  { %v4127_v54 = vsel %vm4126_vm9, %v6133_v0, %v4123_v38 }
 0xe86   :  { %4238 = vrot.lane.b32.xlu2 %v8608_v24, %s6534_s13  ;;  %v4128_v24 = vand.u32 2147483647, %v4103_v39 }
 0xe88   :  { %vm4129_vm10 = vcmp.eq.f32.partialorder %v4128_v24, 8.507059e+37 }
 0xe89   :  { %v4132_v45 = vsel %vm4129_vm10, %v4131_v11, %v4127_v54 }
 0xed8   :  { %v4139_v63 = vpop.permute.xlu2 %4138 }
 0xed9   :  { %v9044_v25 = vadd.f32 %v4139_v63, %v4135_v12  ;;  %v5871_v12 = vld [vmem:[%s9623_s2 + $0x4] sm:$0x3] }
 0xedb   :  { %6134 = vtanh.f32 %v9044_v25 }
 0xee1   :  { %v6135_v52 = vpop.eup %6134 }
 0xee2   :  { %v9047_v23 = vmul.f32 %v6135_v52, %v4132_v45 }
 0xee4   :  { %v4148_v4 = vsel %vm355_vm2, %v4146_v19, %v9047_v23 }
 0xee5   :  { %4165 = vmatmul.f32.vlgmr.msrb.gmra.mxu2 %v4148_v4  ;;  %4185 = vmatmul.f32.vlgmr.msrb.gmra.mxu3 %v4148_v4 }
 0xee6   :  { %4517 = vmatpush.msrb.mxu2 %v8982_v20  ;;  %4537 = vmatpush.msrb.mxu3 %v8985_v49  ;;  %v6351_v20 = vld [vmem:[#allocation5 + $0x170] sm:$0xff]  ;;  %v6352_v49 = vld [vmem:[#allocation5 + $0x178] sm:$0xff] }
 0xee8   :  { %4518 = vmatpush.msrb.mxu2 %v8988_v2  ;;  %4538 = vmatpush.msrb.mxu3 %v8991_v37  ;;  %v6353_v2 = vld [vmem:[#allocation5 + $0x160] sm:$0xff]  ;;  %v6354_v37 = vld [vmem:[#allocation5 + $0x168] sm:$0xff] }
 0xeea   :  { %4519 = vmatpush.msrb.mxu2 %v8994_v7  ;;  %4539 = vmatpush.msrb.mxu3 %v8997_v21  ;;  %v6355_v7 = vld [vmem:[#allocation5 + $0x150] sm:$0xff]  ;;  %v6356_v21 = vld [vmem:[#allocation5 + $0x158] sm:$0xff] }
 0xeec   :  { %4520 = vmatpush.msrb.mxu2 %v9000_v31  ;;  %4540 = vmatpush.msrb.mxu3 %v9003_v47  ;;  %v6357_v31 = vld [vmem:[#allocation5 + $0x140] sm:$0xff]  ;;  %v6358_v47 = vld [vmem:[#allocation5 + $0x148] sm:$0xff] }
 0xeee   :  { %4521 = vmatpush.msrb.mxu2 %v9006_v8  ;;  %4541 = vmatpush.msrb.mxu3 %v9009_v57  ;;  %v6359_v8 = vld [vmem:[#allocation5 + $0x130] sm:$0xff]  ;;  %v6360_v57 = vld [vmem:[#allocation5 + $0x138] sm:$0xff] }
 0xef0   :  { %4522 = vmatpush.msrb.mxu2 %v9012_v17  ;;  %4542 = vmatpush.msrb.mxu3 %v9015_v62  ;;  %v6361_v17 = vld [vmem:[#allocation5 + $0x120] sm:$0xff]  ;;  %v6362_v62 = vld [vmem:[#allocation5 + $0x128] sm:$0xff] }
 0xef2   :  { %4523 = vmatpush.msrb.mxu2 %v6347_v14  ;;  %4543 = vmatpush.msrb.mxu3 %v6348_v43 }
 0xef4   :  { %4524 = vmatpush.msrb.mxu2 %v6349_v55  ;;  %4544 = vmatpush.msrb.mxu3 %v6350_v28 }
 0xef6   :  { %4525 = vmatpush.msrb.mxu2 %v6351_v20  ;;  %4545 = vmatpush.msrb.mxu3 %v6352_v49 }
 0xef8   :  { %4526 = vmatpush.msrb.mxu2 %v6353_v2  ;;  %4546 = vmatpush.msrb.mxu3 %v6354_v37  ;;  %v4239_v2 = vpop.permute.xlu2 %4238 }
 0xefa   :  { %4527 = vmatpush.msrb.mxu2 %v6355_v7  ;;  %4547 = vmatpush.msrb.mxu3 %v6356_v21 }
 0xefc   :  { %4528 = vmatpush.msrb.mxu2 %v6357_v31  ;;  %4548 = vmatpush.msrb.mxu3 %v6358_v47 }
 0xefe   :  { %4529 = vmatpush.msrb.mxu2 %v6359_v8  ;;  %4549 = vmatpush.msrb.mxu3 %v6360_v57 }
 0xf00   :  { %4530 = vmatpush.msrb.mxu2 %v6361_v17  ;;  %4550 = vmatpush.msrb.mxu3 %v6362_v62 }
 0xf02   :  { %4531 = vmatpush.msrb.mxu2 %v6363_v46  ;;  %4551 = vmatpush.msrb.mxu3 %v6364_v27 }
 0xf04   :  { %4532 = vmatpush.msrb.mxu2 %v6365_v22  ;;  %4552 = vmatpush.msrb.mxu3 %v6366_v61 }
 0xf68   :  { %v4166_v40 = vpop.f32.mrf.mxu2  ;;  %v4186_v51 = vpop.f32.mrf.mxu3 }
 0xf69   :  { %v4167_v53 = vadd.f32 %v4166_v40, %v8850_v60  ;;  %v4187_v26 = vadd.f32 %v4186_v51, %v8854_v41 }
 0xf6b   :  { %v5859_v50 = vmul.f32 -1.442695, %v4167_v53  ;;  %v5860_v63 = vmul.f32 -1.442695, %v4187_v26 }
 0xf6d   :  { %6136 = vpow2.f32 %v5859_v50 }
 0xf73   :  { %v6137_v32 = vpop.eup %6136 }
 0xf74   :  { %v4195_v33 = vadd.f32 1.0, %v6137_v32 }
 0xf76   :  { %6138 = vrcp.f32 %v4195_v33  ;;  %v4208_v18 = vand.u32 2147483648, %v4195_v33  ;;  %v4206_v36 = vand.u32 2147483647, %v4195_v33  ;;  %vm4202_vm12 = vweird.f32 %v4195_v33 }
 0xf77   :  { %6140 = vtanh.f32 %v4187_v26 }
 0xf78   :  { %v4209_v5 = vor.u32 1.1754944e-38, %v4208_v18  ;;  %vm4207_vm13 = vcmp.eq.f32.partialorder %v4206_v36, 8.507059e+37  ;;  %6142 = vpow2.f32 %v5860_v63 }
 0xf7c   :  { %v6139_v34 = vpop.eup %6138 }
 0xf7d   :  { %v4198_v13 = vmul.f32 %v6139_v34, %v4195_v33  ;;  %vm4203_vm11 = vweird.f32 %v6139_v34  ;;  %v6141_v29 = vpop.eup %6140 }
 0xf7e   :  { %vm4204_vm3 = vmor %vm4202_vm12, %vm4203_vm11  ;;  %v6143_v38 = vpop.eup %6142 }
 0xf7f   :  { %v4199_v1 = vsub.f32 1.0, %v4198_v13  ;;  %v4196_v10 = vadd.f32 1.0, %v6143_v38 }
 0xf81   :  { %v4200_v16 = vmul.f32 %v6139_v34, %v4199_v1  ;;  %6144 = vrcp.f32 %v4196_v10  ;;  %v4223_v14 = vand.u32 2147483648, %v4196_v10  ;;  %vm4217_vm0 = vweird.f32 %v4196_v10 }
 0xf82   :  { %v4221_v43 = vand.u32 2147483647, %v4196_v10 }
 0xf83   :  { %v4201_v48 = vadd.f32 %v6139_v34, %v4200_v16  ;;  %v4224_v55 = vor.u32 1.1754944e-38, %v4223_v14  ;;  %v9109_v14 = vld [vmem:[#allocation5 + $0x2d8] sm:$0xff] }
 0xf84   :  { %vm4222_vm1 = vcmp.eq.f32.partialorder %v4221_v43, 8.507059e+37 }
 0xf85   :  { %v4205_v44 = vsel %vm4204_vm3, %v6139_v34, %v4201_v48 }
 0xf86   :  { %v4210_v39 = vsel %vm4207_vm13, %v4209_v5, %v4205_v44 }
 0xf87   :  { %v4229_v0 = vmul.f32 %v6141_v29, %v4210_v39  ;;  %v6145_v24 = vpop.eup %6144  ;;  %v4228_v52 = vmul.f32 %v4210_v39, %v9044_v25 }
 0xf88   :  { %v4213_v54 = vmul.f32 %v6145_v24, %v4196_v10  ;;  %vm4218_vm14 = vweird.f32 %v6145_v24 }
 0xf89   :  { %4231 = vrot.lane.b32.xlu1 %v4229_v0, %s6534_s13  ;;  %vm4219_vm15 = vmor %vm4217_vm0, %vm4218_vm14 }
 0xf8a   :  { %v4214_v11 = vsub.f32 1.0, %v4213_v54 }
 0xf8c   :  { %v4215_v59 = vmul.f32 %v6145_v24, %v4214_v11  ;;  %v9097_v11 = vld [vmem:[#allocation5 + $0x2f0] sm:$0xff] }
 0xf8e   :  { %v4216_v4 = vadd.f32 %v6145_v24, %v4215_v59  ;;  %v9099_v59 = vld [vmem:[#allocation5 + $0x2f8] sm:$0xff] }
 0xf91   :  { %4331 = vrot.lane.b32.xlu1 %v9810_v56, %s6534_s13 }
 0xf99   :  { %5910 = vrot.lane.b32.xlu1 %v5909_v15, %s6534_s13 }
 0xfa1   :  { %4750 = vrot.lane.b32.xlu1 %v5871_v12, %s6534_s13 }
 0xfa9   :  { %4776 = vrot.lane.b32.xlu1 %v8978_v42, %s6534_s13  ;;  %v4220_v42 = vsel %vm4219_vm15, %v6145_v24, %v4216_v4  ;;  %v9107_v4 = vld [vmem:[#allocation5 + $0x2d0] sm:$0xff] }
 0xfaa   :  { %v4225_v20 = vsel %vm4222_vm1, %v4224_v55, %v4220_v42  ;;  %v9115_v42 = vld [vmem:[#allocation5 + $0x2c0] sm:$0xff]  ;;  %v9117_v55 = vld [vmem:[#allocation5 + $0x2c8] sm:$0xff] }
 0xffb   :  { %v4232_v45 = vpop.permute.xlu1 %4231 }
 0xffc   :  { %v4234_v19 = vadd.f32 %v4232_v45, %v4228_v52  ;;  %v9101_v52 = vld [vmem:[#allocation5 + $0x2e0] sm:$0xff]  ;;  %v9105_v45 = vld [vmem:[#allocation5 + $0x2e8] sm:$0xff] }
 0xffe   :  { %6146 = vtanh.f32 %v4234_v19 }
0x1003   :  { %v4332_v63 = vpop.permute.xlu1 %4331 }
0x1004   :  { %v6147_v28 = vpop.eup %6146 }
0x1005   :  { %v9080_v49 = vmul.f32 %v6147_v28, %v4225_v20  ;;  %v9123_v28 = vld [vmem:[#allocation5 + $0x2b0] sm:$0xff]  ;;  %v9125_v20 = vld [vmem:[#allocation5 + $0x2b8] sm:$0xff] }
0x1007   :  { %9811 = vst [vmem:[#allocation15_spill] sm:$0xff] %v9080_v49  ;;  %v4241_v25 = vsel %vm355_vm2, %v4239_v2, %v9080_v49 }
0x1008   :  { %4258 = vmatmul.f32.vlgmr.msra.gmra.mxu0 %v4241_v25  ;;  %4278 = vmatmul.f32.vlgmr.msra.gmra.mxu1 %v4241_v25  ;;  %v9131_v25 = vld [vmem:[#allocation5 + $0x2a0] sm:$0xff] }
0x1009   :  { %4670 = vmatpush.msra.mxu0 %v9097_v11  ;;  %4690 = vmatpush.msra.mxu1 %v9099_v59 }
0x100b   :  { %4671 = vmatpush.msra.mxu0 %v9101_v52  ;;  %4691 = vmatpush.msra.mxu1 %v9105_v45 }
0x100d   :  { %4672 = vmatpush.msra.mxu0 %v9107_v4  ;;  %4692 = vmatpush.msra.mxu1 %v9109_v14 }
0x100f   :  { %4673 = vmatpush.msra.mxu0 %v9115_v42  ;;  %4693 = vmatpush.msra.mxu1 %v9117_v55 }
0x1011   :  { %4674 = vmatpush.msra.mxu0 %v9123_v28  ;;  %4694 = vmatpush.msra.mxu1 %v9125_v20 }
0x1013   :  { %4675 = vmatpush.msra.mxu0 %v9131_v25 }
0x1085   :  { %v4259_v37 = vpop.f32.mrf.mxu0  ;;  %v4279_v8 = vpop.f32.mrf.mxu1 }
0x1086   :  { %v4260_v7 = vadd.f32 %v4259_v37, %v8850_v60  ;;  %v4280_v17 = vadd.f32 %v4279_v8, %v8854_v41  ;;  %v9133_v37 = vld [vmem:[#allocation5 + $0x2a8] sm:$0xff] }
0x1087   :  { %4695 = vmatpush.msra.mxu1 %v9133_v37 }
0x1088   :  { %v5861_v21 = vmul.f32 -1.442695, %v4260_v7  ;;  %v5862_v34 = vmul.f32 -1.442695, %v4280_v17 }
0x108a   :  { %6148 = vpow2.f32 %v5861_v21 }
0x1090   :  { %v6149_v31 = vpop.eup %6148 }
0x1091   :  { %v4288_v47 = vadd.f32 1.0, %v6149_v31 }
0x1093   :  { %6150 = vrcp.f32 %v4288_v47  ;;  %v4301_v27 = vand.u32 2147483648, %v4288_v47  ;;  %v4299_v61 = vand.u32 2147483647, %v4288_v47  ;;  %vm4295_vm5 = vweird.f32 %v4288_v47 }
0x1094   :  { %6152 = vtanh.f32 %v4280_v17 }
0x1095   :  { %v4302_v53 = vor.u32 1.1754944e-38, %v4301_v27  ;;  %vm4300_vm7 = vcmp.eq.f32.partialorder %v4299_v61, 8.507059e+37  ;;  %6154 = vpow2.f32 %v5862_v34  ;;  %v9160_v34 = vld [vmem:[#allocation5 + $0x288] sm:$0xff] }
0x1099   :  { %v6151_v57 = vpop.eup %6150 }
0x109a   :  { %v4291_v62 = vmul.f32 %v6151_v57, %v4288_v47  ;;  %vm4296_vm4 = vweird.f32 %v6151_v57  ;;  %v6153_v32 = vpop.eup %6152 }
0x109b   :  { %vm4297_vm6 = vmor %vm4295_vm5, %vm4296_vm4  ;;  %v6155_v26 = vpop.eup %6154 }
0x109c   :  { %v4292_v46 = vsub.f32 1.0, %v4291_v62  ;;  %v4289_v13 = vadd.f32 1.0, %v6155_v26  ;;  %v9168_v26 = vld [vmem:[#allocation5 + $0x270] sm:$0xff] }
0x109e   :  { %v4293_v22 = vmul.f32 %v6151_v57, %v4292_v46  ;;  %6156 = vrcp.f32 %v4289_v13  ;;  %v4316_v39 = vand.u32 2147483648, %v4289_v13  ;;  %vm4310_vm9 = vweird.f32 %v4289_v13 }
0x10a0   :  { %v4294_v40 = vadd.f32 %v6151_v57, %v4293_v22  ;;  %v4317_v56 = vor.u32 1.1754944e-38, %v4316_v39  ;;  %v9199_v39 = vld [vmem:[#allocation5 + $0x238] sm:$0xff] }
0x10a2   :  { %v4298_v50 = vsel %vm4297_vm6, %v6151_v57, %v4294_v40 }
0x10a3   :  { %v4303_v33 = vsel %vm4300_vm7, %v4302_v53, %v4298_v50  ;;  %v9152_v50 = vld [vmem:[#allocation5 + $0x290] sm:$0xff] }
0x10a4   :  { %v4322_v51 = vmul.f32 %v6153_v32, %v4303_v33  ;;  %v6157_v1 = vpop.eup %6156  ;;  %v4321_v48 = vmul.f32 %v4303_v33, %v4234_v19  ;;  %v9154_v32 = vld [vmem:[#allocation5 + $0x298] sm:$0xff]  ;;  %4676 = vmatpush.msra.mxu0 %v9152_v50 }
0x10a5   :  { %v4306_v18 = vmul.f32 %v6157_v1, %v4289_v13  ;;  %vm4311_vm8 = vweird.f32 %v6157_v1  ;;  %4696 = vmatpush.msra.mxu1 %v9154_v32 }
0x10a6   :  { %4324 = vrot.lane.b32.xlu0 %v4322_v51, %s6534_s13  ;;  %vm4312_vm10 = vmor %vm4310_vm9, %vm4311_vm8  ;;  %v9158_v51 = vld [vmem:[#allocation5 + $0x280] sm:$0xff] }
0x10a7   :  { %v4307_v16 = vsub.f32 1.0, %v4306_v18  ;;  %4677 = vmatpush.msra.mxu0 %v9158_v51  ;;  %4697 = vmatpush.msra.mxu1 %v9160_v34  ;;  %v9178_v18 = vld [vmem:[#allocation5 + $0x268] sm:$0xff] }
0x10a9   :  { %v4308_v36 = vmul.f32 %v6157_v1, %v4307_v16  ;;  %4678 = vmatpush.msra.mxu0 %v9168_v26  ;;  %v9180_v16 = vld [vmem:[#allocation5 + $0x250] sm:$0xff] }
0x10ab   :  { %v4309_v29 = vadd.f32 %v6157_v1, %v4308_v36  ;;  %v9182_v36 = vld [vmem:[#allocation5 + $0x258] sm:$0xff] }
0x10ad   :  { %v4313_v0 = vsel %vm4312_vm10, %v6157_v1, %v4309_v29  ;;  %v9176_v1 = vld [vmem:[#allocation5 + $0x260] sm:$0xff]  ;;  %v9197_v29 = vld [vmem:[#allocation5 + $0x230] sm:$0xff] }
0x10ae   :  { %4424 = vrot.lane.b32.xlu0 %v8882_v9, %s6534_s13  ;;  %v4314_v9 = vand.u32 2147483647, %v4289_v13  ;;  %v9170_v13 = vld [vmem:[#allocation5 + $0x278] sm:$0xff]  ;;  %4679 = vmatpush.msra.mxu0 %v9176_v1 }
0x10af   :  { %4698 = vmatpush.msra.mxu1 %v9170_v13 }
0x10b0   :  { %vm4315_vm11 = vcmp.eq.f32.partialorder %v4314_v9, 8.507059e+37  ;;  %4680 = vmatpush.msra.mxu0 %v9180_v16  ;;  %v9205_v9 = vld [vmem:[#allocation5 + $0x220] sm:$0xff] }
0x10b1   :  { %v4318_v15 = vsel %vm4315_vm11, %v4317_v56, %v4313_v0  ;;  %4699 = vmatpush.msra.mxu1 %v9178_v18  ;;  %v9207_v0 = vld [vmem:[#allocation5 + $0x228] sm:$0xff] }
0x10b3   :  { %4700 = vmatpush.msra.mxu1 %v9182_v36 }
0x1118   :  { %v4325_v5 = vpop.permute.xlu0 %4324 }
0x1119   :  { %v9089_v44 = vadd.f32 %v4325_v5, %v4321_v48  ;;  %v9189_v48 = vld [vmem:[#allocation5 + $0x240] sm:$0xff]  ;;  %v9191_v5 = vld [vmem:[#allocation5 + $0x248] sm:$0xff] }
0x111a   :  { %4681 = vmatpush.msra.mxu0 %v9189_v48  ;;  %4701 = vmatpush.msra.mxu1 %v9191_v5 }
0x111b   :  { %6158 = vtanh.f32 %v9089_v44 }
0x111c   :  { %4682 = vmatpush.msra.mxu0 %v9197_v29  ;;  %4702 = vmatpush.msra.mxu1 %v9199_v39 }
0x111e   :  { %4683 = vmatpush.msra.mxu0 %v9205_v9  ;;  %4703 = vmatpush.msra.mxu1 %v9207_v0 }
0x1121   :  { %v6159_v30 = vpop.eup %6158 }
0x1122   :  { %v9092_v12 = vmul.f32 %v6159_v30, %v4318_v15  ;;  %v9213_v30 = vld [vmem:[#allocation5 + $0x210] sm:$0xff]  ;;  %v9215_v15 = vld [vmem:[#allocation5 + $0x218] sm:$0xff] }
0x1123   :  { %4684 = vmatpush.msra.mxu0 %v9213_v30  ;;  %4704 = vmatpush.msra.mxu1 %v9215_v15 }
0x1124   :  { %9812 = vst [vmem:[#allocation35_spill] sm:$0xff] %v9092_v12  ;;  %v4334_v38 = vsel %vm355_vm2, %v4332_v63, %v9092_v12  ;;  %v9221_v63 = vld [vmem:[#allocation5 + $0x200] sm:$0xff] }
0x1125   :  { %4351 = vmatmul.f32.vlgmr.msra.gmra.mxu2 %v4334_v38  ;;  %4371 = vmatmul.f32.vlgmr.msra.gmra.mxu3 %v4334_v38  ;;  %v9223_v38 = vld [vmem:[#allocation5 + $0x208] sm:$0xff] }
0x1126   :  { %4780 = vmatpush.msra.mxu2 %v9097_v11  ;;  %4800 = vmatpush.msra.mxu3 %v9099_v59 }
0x1127   :  { %4685 = vmatpush.msra.mxu0 %v9221_v63  ;;  %4705 = vmatpush.msra.mxu1 %v9223_v38 }
0x1128   :  { %4781 = vmatpush.msra.mxu2 %v9101_v52  ;;  %4801 = vmatpush.msra.mxu3 %v9105_v45 }
0x112a   :  { %4782 = vmatpush.msra.mxu2 %v9107_v4  ;;  %4802 = vmatpush.msra.mxu3 %v9109_v14 }
0x112c   :  { %4783 = vmatpush.msra.mxu2 %v9115_v42  ;;  %4803 = vmatpush.msra.mxu3 %v9117_v55 }
0x112e   :  { %4784 = vmatpush.msra.mxu2 %v9123_v28  ;;  %4804 = vmatpush.msra.mxu3 %v9125_v20 }
0x1130   :  { %4785 = vmatpush.msra.mxu2 %v9131_v25  ;;  %4805 = vmatpush.msra.mxu3 %v9133_v37 }
0x1132   :  { %4786 = vmatpush.msra.mxu2 %v9152_v50  ;;  %4806 = vmatpush.msra.mxu3 %v9154_v32 }
0x1134   :  { %4787 = vmatpush.msra.mxu2 %v9158_v51  ;;  %4807 = vmatpush.msra.mxu3 %v9160_v34 }
0x1136   :  { %4788 = vmatpush.msra.mxu2 %v9168_v26  ;;  %4808 = vmatpush.msra.mxu3 %v9170_v13 }
0x1138   :  { %4789 = vmatpush.msra.mxu2 %v9176_v1  ;;  %4809 = vmatpush.msra.mxu3 %v9178_v18 }
0x113a   :  { %4790 = vmatpush.msra.mxu2 %v9180_v16  ;;  %4810 = vmatpush.msra.mxu3 %v9182_v36 }
0x113c   :  { %4791 = vmatpush.msra.mxu2 %v9189_v48  ;;  %4811 = vmatpush.msra.mxu3 %v9191_v5 }
0x113e   :  { %4792 = vmatpush.msra.mxu2 %v9197_v29  ;;  %4812 = vmatpush.msra.mxu3 %v9199_v39 }
0x1140   :  { %4793 = vmatpush.msra.mxu2 %v9205_v9  ;;  %4813 = vmatpush.msra.mxu3 %v9207_v0 }
0x1142   :  { %4794 = vmatpush.msra.mxu2 %v9213_v30  ;;  %4814 = vmatpush.msra.mxu3 %v9215_v15 }
0x1144   :  { %4795 = vmatpush.msra.mxu2 %v9221_v63  ;;  %4815 = vmatpush.msra.mxu3 %v9223_v38 }
0x11a8   :  { %v4352_v10 = vpop.f32.mrf.mxu2  ;;  %v4372_v2 = vpop.f32.mrf.mxu3 }
0x11a9   :  { %v4353_v24 = vadd.f32 %v4352_v10, %v8850_v60  ;;  %v4373_v21 = vadd.f32 %v4372_v2, %v8854_v41 }
0x11ab   :  { %v5863_v54 = vmul.f32 -1.442695, %v4353_v24  ;;  %v5864_v53 = vmul.f32 -1.442695, %v4373_v21 }
0x11ad   :  { %6160 = vpow2.f32 %v5863_v54 }
0x11b3   :  { %v6161_v19 = vpop.eup %6160 }
0x11b4   :  { %v4381_v43 = vadd.f32 1.0, %v6161_v19 }
0x11b6   :  { %6162 = vrcp.f32 %v4381_v43  ;;  %v4394_v8 = vand.u32 2147483648, %v4381_v43  ;;  %v4392_v17 = vand.u32 2147483647, %v4381_v43  ;;  %vm4388_vm3 = vweird.f32 %v4381_v43 }
0x11b7   :  { %6164 = vtanh.f32 %v4373_v21 }
0x11b8   :  { %v4395_v46 = vor.u32 1.1754944e-38, %v4394_v8  ;;  %vm4393_vm14 = vcmp.eq.f32.partialorder %v4392_v17, 8.507059e+37  ;;  %6166 = vpow2.f32 %v5864_v53  ;;  %v5849_v53 = vmul.f32 -1.442695, %v8961_v35 }
0x11bc   :  { %v6163_v7 = vpop.eup %6162 }
0x11bd   :  { %v4384_v31 = vmul.f32 %v6163_v7, %v4381_v43  ;;  %vm4389_vm12 = vweird.f32 %v6163_v7  ;;  %v6165_v22 = vpop.eup %6164 }
0x11be   :  { %vm4390_vm13 = vmor %vm4388_vm3, %vm4389_vm12  ;;  %v6167_v33 = vpop.eup %6166 }
0x11bf   :  { %v4385_v47 = vsub.f32 1.0, %v4384_v31 }
0x11c1   :  { %v4386_v57 = vmul.f32 %v6163_v7, %v4385_v47 }
0x11c3   :  { %v4387_v62 = vadd.f32 %v6163_v7, %v4386_v57 }
0x11c5   :  { %v4391_v27 = vsel %vm4390_vm13, %v6163_v7, %v4387_v62  ;;  %v4425_v62 = vpop.permute.xlu0 %4424 }
0x11c6   :  { %v9146_v61 = vsel %vm4393_vm14, %v4395_v46, %v4391_v27  ;;  %v5911_v27 = vpop.permute.xlu1 %5910 }
0x11c7   :  { %v4415_v40 = vmul.f32 %v6165_v22, %v9146_v61  ;;  %v4414_v19 = vmul.f32 %v9146_v61, %v9089_v44  ;;  %v5913_v22 = vunpack.i.h.bf16 %v5911_v27  ;;  %v5912_v61 = vunpack.i.l.bf16 %v5911_v27 }
0x11c9   :  { %4417 = vrot.lane.b32.xlu2 %v4415_v40, %s6534_s13  ;;  %v4664_v40 = vsel %vm355_vm2, %v5912_v61, %v5913_v22 }
0x11d1   :  { %3796 = vrot.lane.b32.xlu2 %v8967_v6, %s6534_s13  ;;  %v9166_v6 = vadd.f32 1.0, %v6167_v33 }
0x11d3   :  { %6168 = vrcp.f32 %v9166_v6  ;;  %v4409_v21 = vand.u32 2147483648, %v9166_v6  ;;  %vm4403_vm15 = vweird.f32 %v9166_v6  ;;  %v4407_v31 = vand.u32 2147483647, %v9166_v6 }
0x11d5   :  { %v4410_v8 = vor.u32 1.1754944e-38, %v4409_v21  ;;  %vm4408_vm4 = vcmp.eq.f32.partialorder %v4407_v31, 8.507059e+37 }
0x11d9   :  { %v6169_v56 = vpop.eup %6168 }
0x11da   :  { %v4399_v10 = vmul.f32 %v6169_v56, %v9166_v6  ;;  %vm4404_vm0 = vweird.f32 %v6169_v56 }
0x11db   :  { %vm4405_vm1 = vmor %vm4403_vm15, %vm4404_vm0 }
0x11dc   :  { %v4400_v24 = vsub.f32 1.0, %v4399_v10 }
0x11de   :  { %v4401_v54 = vmul.f32 %v6169_v56, %v4400_v24 }
0x11e0   :  { %v4402_v7 = vadd.f32 %v6169_v56, %v4401_v54 }
0x11e2   :  { %v4406_v47 = vsel %vm4405_vm1, %v6169_v56, %v4402_v7  ;;  %v5869_v56 = vld [vmem:[%s9627_s6 + $0x4] sm:$0x3]  ;;  %s6535_s6 = smov [#allocation8]  }
0x11e3   :  { %v4411_v17 = vsel %vm4408_vm4, %v4410_v8, %v4406_v47  ;;  %v9318_v54 = vperm.slane %v5869_v56, 0  ;;  %s5536_s28 = sshll.u32 %s6535_s6, 4  ;;  %s5537_s28 = int_to_ptr.vmem [resolvable:$true] %s5536_s28 }
0x1223   :  { %v4418_v43 = vpop.permute.xlu2 %4417 }
0x1224   :  { %v9238_v2 = vadd.f32 %v4418_v43, %v4414_v19 }
0x1226   :  { %6170 = vtanh.f32 %v9238_v2 }
0x1227   :  { %6172 = vpow2.f32 %v5849_v53 }
0x122b   :  { %v3797_v61 = vpop.permute.xlu2 %3796 }
0x122c   :  { %v6171_v57 = vpop.eup %6170 }
0x122d   :  { %v9244_v44 = vmul.f32 %v6171_v57, %v4411_v17  ;;  %v6173_v10 = vpop.eup %6172 }
0x122e   :  { %v9320_v19 = vadd.f32 1.0, %v6173_v10 }
0x122f   :  { %9813 = vst [vmem:[#allocation38_spill] sm:$0xff] %v9244_v44  ;;  %v4427_v46 = vsel %vm355_vm2, %v4425_v62, %v9244_v44 }
0x1230   :  { %4444 = vmatmul.f32.vlgmr.msrb.gmra.mxu0 %v4427_v46  ;;  %4464 = vmatmul.f32.vlgmr.msrb.gmra.mxu1 %v4427_v46  ;;  %vm3782_vm10 = vweird.f32 %v9320_v19 }
0x1231   :  { %4885 = vmatpush.msrb.mxu0 %v9097_v11  ;;  %4905 = vmatpush.msrb.mxu1 %v9099_v59 }
0x1233   :  { %4886 = vmatpush.msrb.mxu0 %v9101_v52  ;;  %4906 = vmatpush.msrb.mxu1 %v9105_v45 }
0x1235   :  { %4887 = vmatpush.msrb.mxu0 %v9107_v4  ;;  %4907 = vmatpush.msrb.mxu1 %v9109_v14 }
0x1237   :  { %4888 = vmatpush.msrb.mxu0 %v9115_v42  ;;  %4908 = vmatpush.msrb.mxu1 %v9117_v55 }
0x1238   :  { %4686 = vmatmul.f32.vlgmr.msra.gmra.mxu0 %v4664_v40  ;;  %4706 = vmatmul.f32.vlgmr.msra.gmra.mxu1 %v4664_v40 }
0x1239   :  { %4889 = vmatpush.msrb.mxu0 %v9123_v28  ;;  %4909 = vmatpush.msrb.mxu1 %v9125_v20 }
0x123b   :  { %4890 = vmatpush.msrb.mxu0 %v9131_v25  ;;  %4910 = vmatpush.msrb.mxu1 %v9133_v37 }
0x123d   :  { %4891 = vmatpush.msrb.mxu0 %v9152_v50  ;;  %4911 = vmatpush.msrb.mxu1 %v9154_v32 }
0x123f   :  { %4892 = vmatpush.msrb.mxu0 %v9158_v51  ;;  %4912 = vmatpush.msrb.mxu1 %v9160_v34 }
0x1241   :  { %4893 = vmatpush.msrb.mxu0 %v9168_v26  ;;  %4913 = vmatpush.msrb.mxu1 %v9170_v13 }
0x1243   :  { %4894 = vmatpush.msrb.mxu0 %v9176_v1  ;;  %4914 = vmatpush.msrb.mxu1 %v9178_v18 }
0x1245   :  { %4895 = vmatpush.msrb.mxu0 %v9180_v16  ;;  %4915 = vmatpush.msrb.mxu1 %v9182_v36 }
0x1247   :  { %4896 = vmatpush.msrb.mxu0 %v9189_v48  ;;  %4916 = vmatpush.msrb.mxu1 %v9191_v5 }
0x1249   :  { %4897 = vmatpush.msrb.mxu0 %v9197_v29  ;;  %4917 = vmatpush.msrb.mxu1 %v9199_v39 }
0x124b   :  { %4898 = vmatpush.msrb.mxu0 %v9205_v9  ;;  %4918 = vmatpush.msrb.mxu1 %v9207_v0 }
0x124d   :  { %4899 = vmatpush.msrb.mxu0 %v9213_v30  ;;  %4919 = vmatpush.msrb.mxu1 %v9215_v15 }
0x124f   :  { %4900 = vmatpush.msrb.mxu0 %v9221_v63  ;;  %4920 = vmatpush.msrb.mxu1 %v9223_v38 }
0x1251   :  { %5095 = vmatpush.msra.mxu0 %v9097_v11  ;;  %5115 = vmatpush.msra.mxu1 %v9099_v59 }
0x1253   :  { %5096 = vmatpush.msra.mxu0 %v9101_v52  ;;  %5116 = vmatpush.msra.mxu1 %v9105_v45 }
0x1255   :  { %5097 = vmatpush.msra.mxu0 %v9107_v4  ;;  %5117 = vmatpush.msra.mxu1 %v9109_v14 }
0x1257   :  { %5098 = vmatpush.msra.mxu0 %v9115_v42  ;;  %5118 = vmatpush.msra.mxu1 %v9117_v55 }
0x1259   :  { %5099 = vmatpush.msra.mxu0 %v9123_v28  ;;  %5119 = vmatpush.msra.mxu1 %v9125_v20 }
0x125b   :  { %5100 = vmatpush.msra.mxu0 %v9131_v25  ;;  %5120 = vmatpush.msra.mxu1 %v9133_v37 }
0x125d   :  { %5101 = vmatpush.msra.mxu0 %v9152_v50  ;;  %5121 = vmatpush.msra.mxu1 %v9154_v32 }
0x125f   :  { %5102 = vmatpush.msra.mxu0 %v9158_v51  ;;  %5122 = vmatpush.msra.mxu1 %v9160_v34 }
0x1261   :  { %5103 = vmatpush.msra.mxu0 %v9168_v26  ;;  %5123 = vmatpush.msra.mxu1 %v9170_v13 }
0x1263   :  { %5104 = vmatpush.msra.mxu0 %v9176_v1  ;;  %5124 = vmatpush.msra.mxu1 %v9178_v18 }
0x1265   :  { %5105 = vmatpush.msra.mxu0 %v9180_v16  ;;  %5125 = vmatpush.msra.mxu1 %v9182_v36 }
0x1267   :  { %5106 = vmatpush.msra.mxu0 %v9189_v48  ;;  %5126 = vmatpush.msra.mxu1 %v9191_v5 }
0x1269   :  { %5107 = vmatpush.msra.mxu0 %v9197_v29  ;;  %5127 = vmatpush.msra.mxu1 %v9199_v39 }
0x126b   :  { %5108 = vmatpush.msra.mxu0 %v9205_v9  ;;  %5128 = vmatpush.msra.mxu1 %v9207_v0 }
0x126d   :  { %5109 = vmatpush.msra.mxu0 %v9213_v30  ;;  %5129 = vmatpush.msra.mxu1 %v9215_v15 }
0x126f   :  { %5110 = vmatpush.msra.mxu0 %v9221_v63  ;;  %5130 = vmatpush.msra.mxu1 %v9223_v38 }
0x12ad   :  { %v4445_v33 = vpop.f32.mrf.mxu0  ;;  %v4465_v47 = vpop.f32.mrf.mxu1 }
0x12ae   :  { %v4446_v6 = vadd.f32 %v4445_v33, %v8850_v60  ;;  %v4466_v46 = vadd.f32 %v4465_v47, %v8854_v41  ;;  %v3793_v33 = vmul.f32 %v8964_v58, %v8879_v3 }
0x12b0   :  { %v5865_v24 = vmul.f32 -1.442695, %v4446_v6  ;;  %v9328_v6 = vperm.slane %v5869_v56, 1 }
0x12b2   :  { %6174 = vpow2.f32 %v5865_v24 }
0x12b3   :  { %6176 = vrcp.f32 %v9320_v19 }
0x12b5   :  { %v4687_v43 = vpop.f32.mrf.mxu0  ;;  %v4707_v24 = vpop.f32.mrf.mxu1 }
0x12b6   :  { %v4688_v7 = vadd.f32 %v4687_v43, %v9318_v54 }
0x12b8   :  { %v6175_v35 = vpop.eup %6174  ;;  %v5872_v21 = vmul.f32 -1.442695, %v4688_v7 }
0x12b9   :  { %v4474_v31 = vadd.f32 1.0, %v6175_v35  ;;  %v6177_v8 = vpop.eup %6176  ;;  %v9330_v35 = vadd.f32 %v3797_v61, %v3793_v33  ;;  %v3786_v33 = vand.u32 2147483647, %v9320_v19 }
0x12ba   :  { %6178 = vpow2.f32 %v5872_v21  ;;  %v3778_v17 = vmul.f32 %v6177_v8, %v9320_v19  ;;  %vm3783_vm9 = vweird.f32 %v6177_v8 }
0x12bb   :  { %6180 = vrcp.f32 %v4474_v31  ;;  %v4487_v10 = vand.u32 2147483648, %v4474_v31  ;;  %v4485_v7 = vand.u32 2147483647, %v4474_v31  ;;  %vm4481_vm6 = vweird.f32 %v4474_v31  ;;  %vm3784_vm12 = vmor %vm3782_vm10, %vm3783_vm9 }
0x12bc   :  { %v3779_v53 = vsub.f32 1.0, %v3778_v17  ;;  %vm3787_vm0 = vcmp.eq.f32.partialorder %v3786_v33, 8.507059e+37 }
0x12bd   :  { %v4488_v17 = vor.u32 1.1754944e-38, %v4487_v10  ;;  %vm4486_vm8 = vcmp.eq.f32.partialorder %v4485_v7, 8.507059e+37 }
0x12be   :  { %v3780_v47 = vmul.f32 %v6177_v8, %v3779_v53 }
0x12c0   :  { %v6179_v57 = vpop.eup %6178  ;;  %v3781_v49 = vadd.f32 %v6177_v8, %v3780_v47 }
0x12c1   :  { %v6181_v62 = vpop.eup %6180  ;;  %v4716_v27 = vadd.f32 1.0, %v6179_v57 }
0x12c2   :  { %v4477_v22 = vmul.f32 %v6181_v62, %v4474_v31  ;;  %vm4482_vm5 = vweird.f32 %v6181_v62  ;;  %v3788_v31 = vand.u32 2147483648, %v9320_v19 }
0x12c3   :  { %6182 = vrcp.f32 %v4716_v27  ;;  %vm4483_vm7 = vmor %vm4481_vm6, %vm4482_vm5  ;;  %v4729_v61 = vand.u32 2147483648, %v4716_v27  ;;  %vm4723_vm3 = vweird.f32 %v4716_v27  ;;  %vm3806_vm5 = vcmask 517120  }
0x12c4   :  { %v4478_v40 = vsub.f32 1.0, %v4477_v22  ;;  %6184 = vtanh.f32 %v4466_v46  ;;  %v4708_v22 = vadd.f32 %v4707_v24, %v9328_v6  ;;  %v3785_v24 = vsel %vm3784_vm12, %v6177_v8, %v3781_v49 }
0x12c5   :  { %6186 = vtanh.f32 %v9330_v35  ;;  %v3789_v7 = vor.u32 1.1754944e-38, %v3788_v31  ;;  %v5866_v49 = vmul.f32 -1.442695, %v4466_v46 }
0x12c6   :  { %v4479_v43 = vmul.f32 %v6181_v62, %v4478_v40  ;;  %6188 = vtanh.f32 %v4708_v22  ;;  %v5873_v19 = vmul.f32 -1.442695, %v4708_v22 }
0x12c7   :  { %6190 = vpow2.f32 %v5866_v49 }
0x12c8   :  { %v4480_v21 = vadd.f32 %v6181_v62, %v4479_v43  ;;  %v4730_v43 = vor.u32 1.1754944e-38, %v4729_v61  ;;  %6192 = vpow2.f32 %v5873_v19 }
0x12c9   :  { %v6183_v57 = vpop.eup %6182 }
0x12ca   :  { %v4719_v44 = vmul.f32 %v6183_v57, %v4716_v27  ;;  %v4484_v3 = vsel %vm4483_vm7, %v6181_v62, %v4480_v21  ;;  %v6185_v58 = vpop.eup %6184  ;;  %vm4724_vm11 = vweird.f32 %v6183_v57  ;;  %v4727_v62 = vand.u32 2147483647, %v4716_v27 }
0x12cb   :  { %v4489_v56 = vsel %vm4486_vm8, %v4488_v17, %v4484_v3  ;;  %vm4725_vm13 = vmor %vm4723_vm3, %vm4724_vm11  ;;  %v3790_v3 = vsel %vm3787_vm0, %v3789_v7, %v3785_v24  ;;  %v4751_v24 = vpop.permute.xlu1 %4750 }
0x12cc   :  { %v4508_v40 = vmul.f32 %v6185_v58, %v4489_v56  ;;  %v4720_v12 = vsub.f32 1.0, %v4719_v44  ;;  %v6187_v44 = vpop.eup %6186  ;;  %vm4728_vm14 = vcmp.eq.f32.partialorder %v4727_v62, 8.507059e+37 }
0x12cd   :  { %v6189_v47 = vpop.eup %6188 }
0x12ce   :  { %4510 = vrot.lane.b32.xlu0 %v4508_v40, %s6534_s13  ;;  %v4721_v53 = vmul.f32 %v6183_v57, %v4720_v12  ;;  %v3801_v12 = vmul.f32 %v6187_v44, %v3790_v3  ;;  %v6191_v8 = vpop.eup %6190  ;;  %v4507_v44 = vmul.f32 %v4489_v56, %v9238_v2 }
0x12cf   :  { %v4475_v27 = vadd.f32 1.0, %v6191_v8 }
0x12d0   :  { %v4722_v10 = vadd.f32 %v6183_v57, %v4721_v53 }
0x12d1   :  { %6194 = vrcp.f32 %v4475_v27  ;;  %v4502_v3 = vand.u32 2147483648, %v4475_v27  ;;  %vm4496_vm1 = vweird.f32 %v4475_v27 }
0x12d2   :  { %v4726_v21 = vsel %vm4725_vm13, %v6183_v57, %v4722_v10  ;;  %v6193_v57 = vpop.eup %6192 }
0x12d3   :  { %v4731_v17 = vsel %vm4728_vm14, %v4730_v43, %v4726_v21  ;;  %v4717_v40 = vadd.f32 1.0, %v6193_v57  ;;  %v4503_v2 = vor.u32 1.1754944e-38, %v4502_v3 }
0x12d4   :  { %v4754_v58 = vmul.f32 %v6189_v47, %v4731_v17  ;;  %v4753_v22 = vmul.f32 %v4751_v24, %v4731_v17 }
0x12d5   :  { %6196 = vrcp.f32 %v4717_v40  ;;  %v4744_v8 = vand.u32 2147483648, %v4717_v40  ;;  %vm4738_vm8 = vweird.f32 %v4717_v40 }
0x12d6   :  { %4756 = vrot.lane.b32.xlu2 %v4754_v58, %s6534_s13  ;;  %3803 = vrot.lane.b32.xlu0 %v3801_v12, %s6534_s13  ;;  %v4500_v12 = vand.u32 2147483647, %v4475_v27 }
0x12d7   :  { %v6195_v61 = vpop.eup %6194 }
0x12d8   :  { %v4492_v31 = vmul.f32 %v6195_v61, %v4475_v27  ;;  %vm4497_vm15 = vweird.f32 %v6195_v61  ;;  %vm4501_vm7 = vcmp.eq.f32.partialorder %v4500_v12, 8.507059e+37 }
0x12d9   :  { %vm4498_vm4 = vmor %vm4496_vm1, %vm4497_vm15 }
0x12da   :  { %v4493_v62 = vsub.f32 1.0, %v4492_v31  ;;  %v4742_v31 = vand.u32 2147483647, %v4717_v40 }
0x12db   :  { %v6197_v53 = vpop.eup %6196 }
0x12dc   :  { %v4734_v33 = vmul.f32 %v6197_v53, %v4717_v40  ;;  %v4494_v10 = vmul.f32 %v6195_v61, %v4493_v62  ;;  %vm4739_vm6 = vweird.f32 %v6197_v53  ;;  %vm4743_vm10 = vcmp.eq.f32.partialorder %v4742_v31, 8.507059e+37  ;;  %v4777_v40 = vpop.permute.xlu1 %4776 }
0x12dd   :  { %vm4740_vm9 = vmor %vm4738_vm8, %vm4739_vm6 }
0x12de   :  { %4881 = vrot.lane.b32.xlu0 %v9047_v23, %s6534_s13  ;;  %v4735_v23 = vsub.f32 1.0, %v4734_v33  ;;  %v4495_v21 = vadd.f32 %v6195_v61, %v4494_v10  ;;  %v4745_v10 = vor.u32 1.1754944e-38, %v4744_v8 }
0x12e0   :  { %v4736_v58 = vmul.f32 %v6197_v53, %v4735_v23  ;;  %v4499_v49 = vsel %vm4498_vm4, %v6195_v61, %v4495_v21 }
0x12e1   :  { %v4504_v57 = vsel %vm4501_vm7, %v4503_v2, %v4499_v49 }
0x12e2   :  { %v4737_v56 = vadd.f32 %v6197_v53, %v4736_v58 }
0x12e4   :  { %v4741_v27 = vsel %vm4740_vm9, %v6197_v53, %v4737_v56 }
0x12e5   :  { %v4746_v24 = vsel %vm4743_vm10, %v4745_v10, %v4741_v27 }
0x1330   :  { %v4757_v46 = vpop.permute.xlu2 %4756 }
0x1331   :  { %v9345_v47 = vadd.f32 %v4757_v46, %v4753_v22 }
0x1340   :  { %v4511_v43 = vpop.permute.xlu0 %4510 }
0x1341   :  { %v9343_v7 = vadd.f32 %v4511_v43, %v4507_v44 }
0x1343   :  { %6198 = vtanh.f32 %v9343_v7 }
0x1344   :  { %6200 = vtanh.f32 %v9345_v47 }
0x1348   :  { %v3804_v17 = vpop.permute.xlu0 %3803 }
0x1349   :  { %v6199_v19 = vpop.eup %6198  ;;  %3807 = vst.msk [vmem:[#allocation8] sm:$0x3] %vm3806_vm5, %v3804_v17 }
0x134a   :  { %v9350_v62 = vmul.f32 %v6199_v19, %v4504_v57  ;;  %v6201_v33 = vpop.eup %6200 }
0x134b   :  { %v9356_v44 = vmul.f32 %v6201_v33, %v4746_v24 }
0x134c   :  { %v4516_v61 = vsel %vm355_vm2, %v3804_v17, %v9350_v62 }
0x134d   :  { %4533 = vmatmul.f32.vlgmr.msrb.gmra.mxu2 %v4516_v61  ;;  %4553 = vmatmul.f32.vlgmr.msrb.gmra.mxu3 %v4516_v61  ;;  %v4779_v53 = vsel %vm355_vm2, %v4777_v40, %v9356_v44 }
0x134e   :  { %4990 = vmatpush.msrb.mxu2 %v9097_v11  ;;  %5010 = vmatpush.msrb.mxu3 %v9099_v59 }
0x1350   :  { %4991 = vmatpush.msrb.mxu2 %v9101_v52  ;;  %5011 = vmatpush.msrb.mxu3 %v9105_v45 }
0x1352   :  { %4992 = vmatpush.msrb.mxu2 %v9107_v4  ;;  %5012 = vmatpush.msrb.mxu3 %v9109_v14 }
0x1354   :  { %4993 = vmatpush.msrb.mxu2 %v9115_v42  ;;  %5013 = vmatpush.msrb.mxu3 %v9117_v55 }
0x1355   :  { %4796 = vmatmul.f32.vlgmr.msra.gmra.mxu2 %v4779_v53  ;;  %4816 = vmatmul.f32.vlgmr.msra.gmra.mxu3 %v4779_v53 }
0x1356   :  { %4994 = vmatpush.msrb.mxu2 %v9123_v28  ;;  %5014 = vmatpush.msrb.mxu3 %v9125_v20 }
0x1358   :  { %4995 = vmatpush.msrb.mxu2 %v9131_v25  ;;  %5015 = vmatpush.msrb.mxu3 %v9133_v37 }
0x135a   :  { %4996 = vmatpush.msrb.mxu2 %v9152_v50  ;;  %5016 = vmatpush.msrb.mxu3 %v9154_v32 }
0x135c   :  { %4997 = vmatpush.msrb.mxu2 %v9158_v51  ;;  %5017 = vmatpush.msrb.mxu3 %v9160_v34 }
0x135e   :  { %4998 = vmatpush.msrb.mxu2 %v9168_v26  ;;  %5018 = vmatpush.msrb.mxu3 %v9170_v13 }
0x1360   :  { %4999 = vmatpush.msrb.mxu2 %v9176_v1  ;;  %5019 = vmatpush.msrb.mxu3 %v9178_v18 }
0x1362   :  { %5000 = vmatpush.msrb.mxu2 %v9180_v16  ;;  %5020 = vmatpush.msrb.mxu3 %v9182_v36 }
0x1364   :  { %5001 = vmatpush.msrb.mxu2 %v9189_v48  ;;  %5021 = vmatpush.msrb.mxu3 %v9191_v5 }
0x1366   :  { %5002 = vmatpush.msrb.mxu2 %v9197_v29  ;;  %5022 = vmatpush.msrb.mxu3 %v9199_v39 }
0x1368   :  { %5003 = vmatpush.msrb.mxu2 %v9205_v9  ;;  %5023 = vmatpush.msrb.mxu3 %v9207_v0 }
0x136a   :  { %5004 = vmatpush.msrb.mxu2 %v9213_v30  ;;  %5024 = vmatpush.msrb.mxu3 %v9215_v15 }
0x136c   :  { %5005 = vmatpush.msrb.mxu2 %v9221_v63  ;;  %5025 = vmatpush.msrb.mxu3 %v9223_v38 }
0x136e   :  { %5200 = vmatpush.msra.mxu2 %v9097_v11  ;;  %5220 = vmatpush.msra.mxu3 %v9099_v59 }
0x1370   :  { %5201 = vmatpush.msra.mxu2 %v9101_v52  ;;  %5221 = vmatpush.msra.mxu3 %v9105_v45 }
0x1372   :  { %5202 = vmatpush.msra.mxu2 %v9107_v4  ;;  %5222 = vmatpush.msra.mxu3 %v9109_v14 }
0x1374   :  { %5203 = vmatpush.msra.mxu2 %v9115_v42  ;;  %5223 = vmatpush.msra.mxu3 %v9117_v55 }
0x1376   :  { %5204 = vmatpush.msra.mxu2 %v9123_v28  ;;  %5224 = vmatpush.msra.mxu3 %v9125_v20 }
0x1378   :  { %5205 = vmatpush.msra.mxu2 %v9131_v25  ;;  %5225 = vmatpush.msra.mxu3 %v9133_v37 }
0x137a   :  { %5206 = vmatpush.msra.mxu2 %v9152_v50  ;;  %5226 = vmatpush.msra.mxu3 %v9154_v32 }
0x137c   :  { %5207 = vmatpush.msra.mxu2 %v9158_v51  ;;  %5227 = vmatpush.msra.mxu3 %v9160_v34 }
0x137e   :  { %5208 = vmatpush.msra.mxu2 %v9168_v26  ;;  %5228 = vmatpush.msra.mxu3 %v9170_v13 }
0x1380   :  { %5209 = vmatpush.msra.mxu2 %v9176_v1  ;;  %5229 = vmatpush.msra.mxu3 %v9178_v18 }
0x1382   :  { %5210 = vmatpush.msra.mxu2 %v9180_v16  ;;  %5230 = vmatpush.msra.mxu3 %v9182_v36 }
0x1384   :  { %5211 = vmatpush.msra.mxu2 %v9189_v48  ;;  %5231 = vmatpush.msra.mxu3 %v9191_v5 }
0x1386   :  { %5212 = vmatpush.msra.mxu2 %v9197_v29  ;;  %5232 = vmatpush.msra.mxu3 %v9199_v39 }
0x1388   :  { %5213 = vmatpush.msra.mxu2 %v9205_v9  ;;  %5233 = vmatpush.msra.mxu3 %v9207_v0 }
0x138a   :  { %5214 = vmatpush.msra.mxu2 %v9213_v30  ;;  %5234 = vmatpush.msra.mxu3 %v9215_v15 }
0x138c   :  { %5215 = vmatpush.msra.mxu2 %v9221_v63  ;;  %5235 = vmatpush.msra.mxu3 %v9223_v38 }
0x13d0   :  { %v4534_v23 = vpop.f32.mrf.mxu2  ;;  %v4554_v49 = vpop.f32.mrf.mxu3 }
0x13d1   :  { %v4535_v46 = vadd.f32 %v4534_v23, %v8850_v60  ;;  %v9425_v8 = vadd.f32 %v4554_v49, %v8854_v41 }
0x13d3   :  { %v5867_v43 = vmul.f32 -1.442695, %v4535_v46 }
0x13d5   :  { %6202 = vpow2.f32 %v5867_v43 }
0x13d8   :  { %v4797_v22 = vpop.f32.mrf.mxu2  ;;  %v4817_v57 = vpop.f32.mrf.mxu3 }
0x13d9   :  { %v4798_v21 = vadd.f32 %v4797_v22, %v9318_v54  ;;  %v4818_v10 = vadd.f32 %v4817_v57, %v9328_v6  ;;  %v9814_v57 = vld [vmem:[#allocation15_spill] sm:$0xff] }
0x13db   :  { %v6203_v3 = vpop.eup %6202  ;;  %v5874_v58 = vmul.f32 -1.442695, %v4798_v21 }
0x13dc   :  { %v4563_v12 = vadd.f32 1.0, %v6203_v3 }
0x13dd   :  { %6204 = vpow2.f32 %v5874_v58 }
0x13de   :  { %6206 = vrcp.f32 %v4563_v12  ;;  %v4576_v31 = vand.u32 2147483648, %v4563_v12  ;;  %v4574_v61 = vand.u32 2147483647, %v4563_v12  ;;  %vm4570_vm12 = vweird.f32 %v4563_v12 }
0x13e0   :  { %v4577_v53 = vor.u32 1.1754944e-38, %v4576_v31  ;;  %vm4575_vm13 = vcmp.eq.f32.partialorder %v4574_v61, 8.507059e+37  ;;  %v5875_v31 = vmul.f32 -1.442695, %v4818_v10 }
0x13e3   :  { %v6205_v2 = vpop.eup %6204 }
0x13e4   :  { %v6207_v56 = vpop.eup %6206  ;;  %v4826_v17 = vadd.f32 1.0, %v6205_v2 }
0x13e5   :  { %v4566_v19 = vmul.f32 %v6207_v56, %v4563_v12  ;;  %vm4571_vm11 = vweird.f32 %v6207_v56 }
0x13e6   :  { %6208 = vrcp.f32 %v4826_v17  ;;  %vm4572_vm3 = vmor %vm4570_vm12, %vm4571_vm11  ;;  %v4839_v22 = vand.u32 2147483648, %v4826_v17  ;;  %v4837_v58 = vand.u32 2147483647, %v4826_v17  ;;  %vm4833_vm0 = vweird.f32 %v4826_v17 }
0x13e7   :  { %v4567_v60 = vsub.f32 1.0, %v4566_v19  ;;  %6210 = vtanh.f32 %v9425_v8 }
0x13e8   :  { %6212 = vtanh.f32 %v4818_v10  ;;  %v4840_v12 = vor.u32 1.1754944e-38, %v4839_v22  ;;  %vm4838_vm1 = vcmp.eq.f32.partialorder %v4837_v58, 8.507059e+37 }
0x13e9   :  { %v4568_v27 = vmul.f32 %v6207_v56, %v4567_v60  ;;  %6214 = vpow2.f32 %v5875_v31 }
0x13eb   :  { %v4569_v24 = vadd.f32 %v6207_v56, %v4568_v27 }
0x13ec   :  { %v6209_v33 = vpop.eup %6208 }
0x13ed   :  { %v4829_v40 = vmul.f32 %v6209_v33, %v4826_v17  ;;  %v4573_v23 = vsel %vm4572_vm3, %v6207_v56, %v4569_v24  ;;  %v6211_v41 = vpop.eup %6210  ;;  %vm4834_vm14 = vweird.f32 %v6209_v33 }
0x13ee   :  { %v9429_v43 = vsel %vm4575_vm13, %v4577_v53, %v4573_v23  ;;  %vm4835_vm15 = vmor %vm4833_vm0, %vm4834_vm14  ;;  %v6213_v56 = vpop.eup %6212 }
0x13ef   :  { %v4830_v46 = vsub.f32 1.0, %v4829_v40  ;;  %v9432_v21 = vmul.f32 %v6211_v41, %v9429_v43  ;;  %v6215_v27 = vpop.eup %6214 }
0x13f0   :  { %v4827_v61 = vadd.f32 1.0, %v6215_v27 }
0x13f1   :  { %v4831_v3 = vmul.f32 %v6209_v33, %v4830_v46 }
0x13f2   :  { %6216 = vrcp.f32 %v4827_v61  ;;  %v4854_v22 = vand.u32 2147483648, %v4827_v61  ;;  %vm4848_vm6 = vweird.f32 %v4827_v61  ;;  %v4852_v10 = vand.u32 2147483647, %v4827_v61 }
0x13f3   :  { %v4832_v49 = vadd.f32 %v6209_v33, %v4831_v3 }
0x13f4   :  { %v4855_v58 = vor.u32 1.1754944e-38, %v4854_v22  ;;  %vm4853_vm8 = vcmp.eq.f32.partialorder %v4852_v10, 8.507059e+37  ;;  %v6373_v22 = vld [vmem:[#allocation5 + $0x2c0] sm:$0xff]  ;;  %v6374_v10 = vld [vmem:[#allocation5 + $0x2c8] sm:$0xff] }
0x13f5   :  { %v4836_v2 = vsel %vm4835_vm15, %v6209_v33, %v4832_v49 }
0x13f6   :  { %v4841_v19 = vsel %vm4838_vm1, %v4840_v12, %v4836_v2 }
0x13f7   :  { %v4860_v60 = vmul.f32 %v6213_v56, %v4841_v19  ;;  %v4859_v33 = vmul.f32 %v4841_v19, %v9345_v47  ;;  %v4882_v56 = vpop.permute.xlu0 %4881 }
0x13f8   :  { %v6217_v24 = vpop.eup %6216 }
0x13f9   :  { %4862 = vrot.lane.b32.xlu2 %v4860_v60, %s6534_s13  ;;  %v4844_v40 = vmul.f32 %v6217_v24, %v4827_v61  ;;  %vm4849_vm4 = vweird.f32 %v6217_v24 }
0x13fa   :  { %vm4850_vm7 = vmor %vm4848_vm6, %vm4849_vm4 }
0x13fb   :  { %v4845_v17 = vsub.f32 1.0, %v4844_v40 }
0x13fd   :  { %v4846_v53 = vmul.f32 %v6217_v24, %v4845_v17  ;;  %v6367_v17 = vld [vmem:[#allocation5 + $0x2f0] sm:$0xff] }
0x13ff   :  { %v4847_v46 = vadd.f32 %v6217_v24, %v4846_v53  ;;  %v6368_v53 = vld [vmem:[#allocation5 + $0x2f8] sm:$0xff] }
0x1401   :  { %4986 = vrot.lane.b32.xlu2 %v9814_v57, %s6534_s13  ;;  %v4851_v3 = vsel %vm4850_vm7, %v6217_v24, %v4847_v46  ;;  %v6372_v46 = vld [vmem:[#allocation5 + $0x2d8] sm:$0xff] }
0x1402   :  { %v4856_v12 = vsel %vm4853_vm8, %v4855_v58, %v4851_v3  ;;  %v6375_v3 = vld [vmem:[#allocation5 + $0x2b0] sm:$0xff]  ;;  %v6376_v58 = vld [vmem:[#allocation5 + $0x2b8] sm:$0xff] }
0x1453   :  { %v4863_v23 = vpop.permute.xlu2 %4862 }
0x1454   :  { %v9438_v41 = vadd.f32 %v4863_v23, %v4859_v33  ;;  %v6369_v33 = vld [vmem:[#allocation5 + $0x2e0] sm:$0xff]  ;;  %v6370_v23 = vld [vmem:[#allocation5 + $0x2e8] sm:$0xff] }
0x1456   :  { %6218 = vtanh.f32 %v9438_v41 }
0x145b   :  { %v4987_v24 = vpop.permute.xlu2 %4986 }
0x145c   :  { %v6219_v49 = vpop.eup %6218 }
0x145d   :  { %v9441_v2 = vmul.f32 %v6219_v49, %v4856_v12  ;;  %v6377_v49 = vld [vmem:[#allocation5 + $0x2a0] sm:$0xff]  ;;  %v6378_v12 = vld [vmem:[#allocation5 + $0x2a8] sm:$0xff] }
0x145f   :  { %v4884_v47 = vsel %vm355_vm2, %v4882_v56, %v9441_v2  ;;  %v6379_v56 = vld [vmem:[#allocation5 + $0x290] sm:$0xff] }
0x1460   :  { %4901 = vmatmul.f32.vlgmr.msrb.gmra.mxu0 %v4884_v47  ;;  %4921 = vmatmul.f32.vlgmr.msrb.gmra.mxu1 %v4884_v47  ;;  %v6380_v47 = vld [vmem:[#allocation5 + $0x298] sm:$0xff] }
0x1461   :  { %5305 = vmatpush.msrb.mxu0 %v9097_v11  ;;  %5325 = vmatpush.msrb.mxu1 %v9099_v59 }
0x1463   :  { %5306 = vmatpush.msrb.mxu0 %v9101_v52  ;;  %5326 = vmatpush.msrb.mxu1 %v9105_v45 }
0x1465   :  { %5307 = vmatpush.msrb.mxu0 %v9107_v4  ;;  %5327 = vmatpush.msrb.mxu1 %v9109_v14 }
0x1467   :  { %5308 = vmatpush.msrb.mxu0 %v9115_v42  ;;  %5328 = vmatpush.msrb.mxu1 %v9117_v55 }
0x1469   :  { %5309 = vmatpush.msrb.mxu0 %v9123_v28  ;;  %5329 = vmatpush.msrb.mxu1 %v9125_v20 }
0x146b   :  { %5310 = vmatpush.msrb.mxu0 %v9131_v25  ;;  %5330 = vmatpush.msrb.mxu1 %v9133_v37 }
0x146d   :  { %5311 = vmatpush.msrb.mxu0 %v9152_v50  ;;  %5331 = vmatpush.msrb.mxu1 %v9154_v32 }
0x146f   :  { %5312 = vmatpush.msrb.mxu0 %v9158_v51  ;;  %5332 = vmatpush.msrb.mxu1 %v9160_v34 }
0x1471   :  { %5313 = vmatpush.msrb.mxu0 %v9168_v26  ;;  %5333 = vmatpush.msrb.mxu1 %v9170_v13 }
0x1473   :  { %5314 = vmatpush.msrb.mxu0 %v9176_v1  ;;  %5334 = vmatpush.msrb.mxu1 %v9178_v18  ;;  %v9815_v18 = vld [vmem:[#allocation35_spill] sm:$0xff] }
0x1475   :  { %5315 = vmatpush.msrb.mxu0 %v9180_v16  ;;  %5335 = vmatpush.msrb.mxu1 %v9182_v36 }
0x1477   :  { %5316 = vmatpush.msrb.mxu0 %v9189_v48  ;;  %5336 = vmatpush.msrb.mxu1 %v9191_v5 }
0x1479   :  { %5317 = vmatpush.msrb.mxu0 %v9197_v29  ;;  %5337 = vmatpush.msrb.mxu1 %v9199_v39 }
0x147b   :  { %5318 = vmatpush.msrb.mxu0 %v9205_v9  ;;  %5338 = vmatpush.msrb.mxu1 %v9207_v0 }
0x147d   :  { %5319 = vmatpush.msrb.mxu0 %v9213_v30  ;;  %5339 = vmatpush.msrb.mxu1 %v9215_v15 }
0x147f   :  { %5320 = vmatpush.msrb.mxu0 %v9221_v63  ;;  %5340 = vmatpush.msrb.mxu1 %v9223_v38 }
0x14dd   :  { %v4902_v11 = vpop.f32.mrf.mxu0  ;;  %v4922_v14 = vpop.f32.mrf.mxu1 }
0x14de   :  { %v4903_v59 = vadd.f32 %v4902_v11, %v9318_v54  ;;  %v4923_v55 = vadd.f32 %v4922_v14, %v9328_v6  ;;  %v6381_v11 = vld [vmem:[#allocation5 + $0x280] sm:$0xff]  ;;  %v6386_v14 = vld [vmem:[#allocation5 + $0x268] sm:$0xff] }
0x14e0   :  { %v5876_v52 = vmul.f32 -1.442695, %v4903_v59  ;;  %v5877_v16 = vmul.f32 -1.442695, %v4923_v55  ;;  %v6382_v59 = vld [vmem:[#allocation5 + $0x288] sm:$0xff] }
0x14e2   :  { %6220 = vpow2.f32 %v5876_v52  ;;  %v6383_v52 = vld [vmem:[#allocation5 + $0x270] sm:$0xff] }
0x14e8   :  { %v6221_v45 = vpop.eup %6220 }
0x14e9   :  { %v4931_v4 = vadd.f32 1.0, %v6221_v45  ;;  %v6384_v45 = vld [vmem:[#allocation5 + $0x278] sm:$0xff] }
0x14eb   :  { %6222 = vrcp.f32 %v4931_v4  ;;  %v4944_v25 = vand.u32 2147483648, %v4931_v4  ;;  %v4942_v50 = vand.u32 2147483647, %v4931_v4  ;;  %vm4938_vm10 = vweird.f32 %v4931_v4 }
0x14ec   :  { %6224 = vtanh.f32 %v4923_v55  ;;  %v6388_v55 = vld [vmem:[#allocation5 + $0x258] sm:$0xff] }
0x14ed   :  { %v4945_v51 = vor.u32 1.1754944e-38, %v4944_v25  ;;  %vm4943_vm12 = vcmp.eq.f32.partialorder %v4942_v50, 8.507059e+37  ;;  %6226 = vpow2.f32 %v5877_v16  ;;  %v6391_v25 = vld [vmem:[#allocation5 + $0x230] sm:$0xff]  ;;  %v6393_v50 = vld [vmem:[#allocation5 + $0x220] sm:$0xff] }
0x14f1   :  { %v6223_v42 = vpop.eup %6222 }
0x14f2   :  { %v4934_v28 = vmul.f32 %v6223_v42, %v4931_v4  ;;  %vm4939_vm9 = vweird.f32 %v6223_v42  ;;  %v6225_v26 = vpop.eup %6224  ;;  %v6385_v4 = vld [vmem:[#allocation5 + $0x260] sm:$0xff] }
0x14f3   :  { %vm4940_vm11 = vmor %vm4938_vm10, %vm4939_vm9  ;;  %v6227_v36 = vpop.eup %6226 }
0x14f4   :  { %v4935_v20 = vsub.f32 1.0, %v4934_v28  ;;  %v4932_v48 = vadd.f32 1.0, %v6227_v36  ;;  %v6389_v28 = vld [vmem:[#allocation5 + $0x240] sm:$0xff] }
0x14f6   :  { %v4936_v37 = vmul.f32 %v6223_v42, %v4935_v20  ;;  %6228 = vrcp.f32 %v4932_v48  ;;  %v4959_v38 = vand.u32 2147483648, %v4932_v48  ;;  %vm4953_vm13 = vweird.f32 %v4932_v48  ;;  %v6390_v20 = vld [vmem:[#allocation5 + $0x248] sm:$0xff] }
0x14f7   :  { %v4957_v19 = vand.u32 2147483647, %v4932_v48 }
0x14f8   :  { %v4937_v32 = vadd.f32 %v6223_v42, %v4936_v37  ;;  %v4960_v57 = vor.u32 1.1754944e-38, %v4959_v38  ;;  %v6392_v37 = vld [vmem:[#allocation5 + $0x238] sm:$0xff] }
0x14f9   :  { %vm4958_vm0 = vcmp.eq.f32.partialorder %v4957_v19, 8.507059e+37 }
0x14fa   :  { %v4941_v34 = vsel %vm4940_vm11, %v6223_v42, %v4937_v32  ;;  %v6387_v42 = vld [vmem:[#allocation5 + $0x250] sm:$0xff]  ;;  %v6394_v32 = vld [vmem:[#allocation5 + $0x228] sm:$0xff] }
0x14fb   :  { %v4946_v13 = vsel %vm4943_vm12, %v4945_v51, %v4941_v34  ;;  %v6395_v51 = vld [vmem:[#allocation5 + $0x210] sm:$0xff]  ;;  %v6396_v34 = vld [vmem:[#allocation5 + $0x218] sm:$0xff] }
0x14fc   :  { %v4965_v1 = vmul.f32 %v6225_v26, %v4946_v13  ;;  %v6229_v5 = vpop.eup %6228  ;;  %v4964_v0 = vmul.f32 %v4946_v13, %v9438_v41  ;;  %v6371_v41 = vld [vmem:[#allocation5 + $0x2d0] sm:$0xff]  ;;  %v6397_v26 = vld [vmem:[#allocation5 + $0x200] sm:$0xff]  ;;  %v6398_v13 = vld [vmem:[#allocation5 + $0x208] sm:$0xff] }
0x14fd   :  { %v4949_v29 = vmul.f32 %v6229_v5, %v4932_v48  ;;  %vm4954_vm3 = vweird.f32 %v6229_v5 }
0x14fe   :  { %4967 = vrot.lane.b32.xlu1 %v4965_v1, %s6534_s13  ;;  %vm4955_vm14 = vmor %vm4953_vm13, %vm4954_vm3 }
0x14ff   :  { %v4950_v39 = vsub.f32 1.0, %v4949_v29 }
0x1501   :  { %v4951_v9 = vmul.f32 %v6229_v5, %v4950_v39 }
0x1503   :  { %v4952_v63 = vadd.f32 %v6229_v5, %v4951_v9 }
0x1505   :  { %v4956_v60 = vsel %vm4955_vm14, %v6229_v5, %v4952_v63 }
0x1506   :  { %5091 = vrot.lane.b32.xlu1 %v9815_v18, %s6534_s13  ;;  %v4961_v27 = vsel %vm4958_vm0, %v4960_v57, %v4956_v60 }
0x1570   :  { %v4968_v30 = vpop.permute.xlu1 %4967 }
0x1571   :  { %v9483_v15 = vadd.f32 %v4968_v30, %v4964_v0 }
0x1573   :  { %6230 = vtanh.f32 %v9483_v15 }
0x1579   :  { %v6231_v31 = vpop.eup %6230 }
0x157a   :  { %v9486_v61 = vmul.f32 %v6231_v31, %v4961_v27 }
0x157c   :  { %v4989_v40 = vsel %vm355_vm2, %v4987_v24, %v9486_v61 }
0x157d   :  { %5006 = vmatmul.f32.vlgmr.msrb.gmra.mxu2 %v4989_v40  ;;  %5026 = vmatmul.f32.vlgmr.msrb.gmra.mxu3 %v4989_v40  ;;  %v9816_v40 = vld [vmem:[#allocation38_spill] sm:$0xff] }
0x157e   :  { %5406 = vmatpush.msrb.mxu2 %v6367_v17  ;;  %5426 = vmatpush.msrb.mxu3 %v6368_v53 }
0x1580   :  { %5407 = vmatpush.msrb.mxu2 %v6369_v33  ;;  %5427 = vmatpush.msrb.mxu3 %v6370_v23  ;;  %v5868_v23 = vmul.f32 -1.442695, %v9425_v8 }
0x1582   :  { %5408 = vmatpush.msrb.mxu2 %v6371_v41  ;;  %5428 = vmatpush.msrb.mxu3 %v6372_v46 }
0x1584   :  { %5409 = vmatpush.msrb.mxu2 %v6373_v22  ;;  %5429 = vmatpush.msrb.mxu3 %v6374_v10 }
0x1586   :  { %5410 = vmatpush.msrb.mxu2 %v6375_v3  ;;  %5430 = vmatpush.msrb.mxu3 %v6376_v58 }
0x1588   :  { %5411 = vmatpush.msrb.mxu2 %v6377_v49  ;;  %5431 = vmatpush.msrb.mxu3 %v6378_v12 }
0x158a   :  { %5412 = vmatpush.msrb.mxu2 %v6379_v56  ;;  %5432 = vmatpush.msrb.mxu3 %v6380_v47 }
0x158c   :  { %5413 = vmatpush.msrb.mxu2 %v6381_v11  ;;  %5433 = vmatpush.msrb.mxu3 %v6382_v59 }
0x158e   :  { %5414 = vmatpush.msrb.mxu2 %v6383_v52  ;;  %5434 = vmatpush.msrb.mxu3 %v6384_v45 }
0x1590   :  { %5415 = vmatpush.msrb.mxu2 %v6385_v4  ;;  %5435 = vmatpush.msrb.mxu3 %v6386_v14 }
0x1592   :  { %5416 = vmatpush.msrb.mxu2 %v6387_v42  ;;  %5436 = vmatpush.msrb.mxu3 %v6388_v55 }
0x1594   :  { %5417 = vmatpush.msrb.mxu2 %v6389_v28  ;;  %5437 = vmatpush.msrb.mxu3 %v6390_v20  ;;  %v5092_v28 = vpop.permute.xlu1 %5091 }
0x1596   :  { %5418 = vmatpush.msrb.mxu2 %v6391_v25  ;;  %5438 = vmatpush.msrb.mxu3 %v6392_v37  ;;  %v4596_v37 = vmul.f32 %v9429_v43, %v9343_v7 }
0x1598   :  { %5419 = vmatpush.msrb.mxu2 %v6393_v50  ;;  %5439 = vmatpush.msrb.mxu3 %v6394_v32 }
0x159a   :  { %5420 = vmatpush.msrb.mxu2 %v6395_v51  ;;  %5440 = vmatpush.msrb.mxu3 %v6396_v34 }
0x159c   :  { %5421 = vmatpush.msrb.mxu2 %v6397_v26  ;;  %5441 = vmatpush.msrb.mxu3 %v6398_v13 }
0x1600   :  { %v5007_v1 = vpop.f32.mrf.mxu2  ;;  %v5027_v5 = vpop.f32.mrf.mxu3 }
0x1601   :  { %v5008_v18 = vadd.f32 %v5007_v1, %v9318_v54  ;;  %v5028_v39 = vadd.f32 %v5027_v5, %v9328_v6 }
0x1603   :  { %v5878_v16 = vmul.f32 -1.442695, %v5008_v18  ;;  %v5879_v17 = vmul.f32 -1.442695, %v5028_v39 }
0x1605   :  { %6232 = vpow2.f32 %v5878_v16 }
0x160b   :  { %v6233_v36 = vpop.eup %6232 }
0x160c   :  { %v5036_v48 = vadd.f32 1.0, %v6233_v36 }
0x160e   :  { %6234 = vrcp.f32 %v5036_v48  ;;  %v5049_v30 = vand.u32 2147483648, %v5036_v48  ;;  %v5047_v38 = vand.u32 2147483647, %v5036_v48  ;;  %vm5043_vm1 = vweird.f32 %v5036_v48 }
0x160f   :  { %6236 = vtanh.f32 %v5028_v39 }
0x1610   :  { %v5050_v60 = vor.u32 1.1754944e-38, %v5049_v30  ;;  %vm5048_vm6 = vcmp.eq.f32.partialorder %v5047_v38, 8.507059e+37  ;;  %6238 = vpow2.f32 %v5879_v17 }
0x1614   :  { %v6235_v29 = vpop.eup %6234 }
0x1615   :  { %v5039_v9 = vmul.f32 %v6235_v29, %v5036_v48  ;;  %vm5044_vm15 = vweird.f32 %v6235_v29  ;;  %v6237_v31 = vpop.eup %6236 }
0x1616   :  { %vm5045_vm4 = vmor %vm5043_vm1, %vm5044_vm15  ;;  %v6239_v53 = vpop.eup %6238 }
0x1617   :  { %v5040_v0 = vsub.f32 1.0, %v5039_v9  ;;  %v5037_v33 = vadd.f32 1.0, %v6239_v53  ;;  %v4870_v53 = vperm.slane %v9441_v2, 0 }
0x1619   :  { %v5041_v63 = vmul.f32 %v6235_v29, %v5040_v0  ;;  %6240 = vrcp.f32 %v5037_v33  ;;  %v5064_v11 = vand.u32 2147483648, %v5037_v33  ;;  %vm5058_vm8 = vweird.f32 %v5037_v33 }
0x161a   :  { %6242 = vpow2.f32 %v5868_v23  ;;  %v5062_v8 = vand.u32 2147483647, %v5037_v33 }
0x161b   :  { %v5042_v19 = vadd.f32 %v6235_v29, %v5041_v63  ;;  %v5065_v45 = vor.u32 1.1754944e-38, %v5064_v11 }
0x161c   :  { %vm5063_vm10 = vcmp.eq.f32.partialorder %v5062_v8, 8.507059e+37 }
0x161d   :  { %v5046_v57 = vsel %vm5045_vm4, %v6235_v29, %v5042_v19 }
0x161e   :  { %v5051_v27 = vsel %vm5048_vm6, %v5050_v60, %v5046_v57 }
0x161f   :  { %v5070_v24 = vmul.f32 %v6237_v31, %v5051_v27  ;;  %v6241_v41 = vpop.eup %6240  ;;  %v5069_v49 = vmul.f32 %v5051_v27, %v9483_v15 }
0x1620   :  { %v6243_v46 = vpop.eup %6242  ;;  %v5054_v22 = vmul.f32 %v6241_v41, %v5037_v33  ;;  %vm5059_vm7 = vweird.f32 %v6241_v41 }
0x1621   :  { %5072 = vrot.lane.b32.xlu0 %v5070_v24, %s6534_s13  ;;  %v4564_v10 = vadd.f32 1.0, %v6243_v46  ;;  %vm5060_vm9 = vmor %vm5058_vm8, %vm5059_vm7 }
0x1622   :  { %v5055_v3 = vsub.f32 1.0, %v5054_v22 }
0x1623   :  { %6244 = vrcp.f32 %v4564_v10  ;;  %v4591_v34 = vand.u32 2147483648, %v4564_v10  ;;  %vm4585_vm12 = vweird.f32 %v4564_v10  ;;  %v4589_v26 = vand.u32 2147483647, %v4564_v10 }
0x1624   :  { %v5056_v58 = vmul.f32 %v6241_v41, %v5055_v3 }
0x1625   :  { %v4592_v1 = vor.u32 1.1754944e-38, %v4591_v34  ;;  %vm4590_vm13 = vcmp.eq.f32.partialorder %v4589_v26, 8.507059e+37 }
0x1629   :  { %5196 = vrot.lane.b32.xlu0 %v9816_v40, %s6534_s13  ;;  %v6245_v47 = vpop.eup %6244 }
0x162a   :  { %v4581_v52 = vmul.f32 %v6245_v47, %v4564_v10  ;;  %vm4586_vm11 = vweird.f32 %v6245_v47 }
0x162b   :  { %vm4587_vm3 = vmor %vm4585_vm12, %vm4586_vm11 }
0x162c   :  { %v4582_v55 = vsub.f32 1.0, %v4581_v52 }
0x162e   :  { %v4583_v25 = vmul.f32 %v6245_v47, %v4582_v55 }
0x1630   :  { %v4584_v51 = vadd.f32 %v6245_v47, %v4583_v25 }
0x1631   :  { %4599 = vrot.lane.b32.xlu0 %v9432_v21, %s6534_s13  ;;  %v5057_v21 = vadd.f32 %v6241_v41, %v5056_v58 }
0x1632   :  { %v4588_v13 = vsel %vm4587_vm3, %v6245_v47, %v4584_v51 }
0x1633   :  { %v5061_v59 = vsel %vm5060_vm9, %v6241_v41, %v5057_v21  ;;  %v4593_v16 = vsel %vm4590_vm13, %v4592_v1, %v4588_v13  ;;  %vm4772_vm9 = vcmask 516096  }
0x1634   :  { %v5066_v15 = vsel %vm5063_vm10, %v5065_v45, %v5061_v59 }
0x1693   :  { %v5073_v12 = vpop.permute.xlu0 %5072 }
0x1694   :  { %v9499_v56 = vadd.f32 %v5073_v12, %v5069_v49 }
0x1696   :  { %6246 = vtanh.f32 %v9499_v56 }
0x169b   :  { %v9502_v4 = vpop.permute.xlu0 %5196 }
0x169c   :  { %v6247_v14 = vpop.eup %6246 }
0x169d   :  { %v9504_v42 = vmul.f32 %v6247_v14, %v5066_v15 }
0x169f   :  { %v5094_v20 = vsel %vm355_vm2, %v5092_v28, %v9504_v42  ;;  %v5079_v33 = vrot.slane %v9504_v42, 1 }
0x16a0   :  { %5111 = vmatmul.f32.vlgmr.msra.gmra.mxu0 %v5094_v20  ;;  %5131 = vmatmul.f32.vlgmr.msra.gmra.mxu1 %v5094_v20 }
0x16a1   :  { %v5081_v23 = vperm.slane %v5079_v33, 0 }
0x16a3   :  { %v4600_v50 = vpop.permute.xlu0 %4599 }
0x16a4   :  { %v4602_v32 = vadd.f32 %v4600_v50, %v4596_v37 }
0x16a6   :  { %6248 = vtanh.f32 %v4602_v32 }
0x16ac   :  { %v6249_v18 = vpop.eup %6248 }
0x16ad   :  { %v4604_v36 = vmul.f32 %v6249_v18, %v4593_v16 }
0x171d   :  { %v5112_v48 = vpop.f32.mrf.mxu0  ;;  %v5132_v39 = vpop.f32.mrf.mxu1 }
0x171e   :  { %v5113_v5 = vadd.f32 %v5112_v48, %v9318_v54  ;;  %v5133_v0 = vadd.f32 %v5132_v39, %v9328_v6 }
0x1720   :  { %v5880_v29 = vmul.f32 -1.442695, %v5113_v5  ;;  %v5881_v41 = vmul.f32 -1.442695, %v5133_v0 }
0x1722   :  { %6250 = vpow2.f32 %v5880_v29 }
0x1728   :  { %v6251_v7 = vpop.eup %6250 }
0x1729   :  { %v5141_v43 = vadd.f32 1.0, %v6251_v7 }
0x172b   :  { %6252 = vrcp.f32 %v5141_v43  ;;  %v5154_v38 = vand.u32 2147483648, %v5141_v43  ;;  %v5152_v60 = vand.u32 2147483647, %v5141_v43  ;;  %vm5148_vm0 = vweird.f32 %v5141_v43 }
0x172c   :  { %6254 = vtanh.f32 %v5133_v0 }
0x172d   :  { %v5155_v31 = vor.u32 1.1754944e-38, %v5154_v38  ;;  %vm5153_vm1 = vcmp.eq.f32.partialorder %v5152_v60, 8.507059e+37  ;;  %6256 = vpow2.f32 %v5881_v41 }
0x1731   :  { %v6253_v9 = vpop.eup %6252 }
0x1732   :  { %v5144_v30 = vmul.f32 %v6253_v9, %v5141_v43  ;;  %vm5149_vm14 = vweird.f32 %v6253_v9  ;;  %v6255_v24 = vpop.eup %6254 }
0x1733   :  { %vm5150_vm15 = vmor %vm5148_vm0, %vm5149_vm14  ;;  %v6257_v46 = vpop.eup %6256 }
0x1734   :  { %v5145_v63 = vsub.f32 1.0, %v5144_v30  ;;  %v5142_v22 = vadd.f32 1.0, %v6257_v46 }
0x1736   :  { %v5146_v19 = vmul.f32 %v6253_v9, %v5145_v63  ;;  %6258 = vrcp.f32 %v5142_v22  ;;  %v5169_v11 = vand.u32 2147483648, %v5142_v22  ;;  %vm5163_vm6 = vweird.f32 %v5142_v22 }
0x1737   :  { %v5167_v8 = vand.u32 2147483647, %v5142_v22 }
0x1738   :  { %v5147_v57 = vadd.f32 %v6253_v9, %v5146_v19  ;;  %v5170_v52 = vor.u32 1.1754944e-38, %v5169_v11 }
0x1739   :  { %vm5168_vm8 = vcmp.eq.f32.partialorder %v5167_v8, 8.507059e+37 }
0x173a   :  { %v5151_v27 = vsel %vm5150_vm15, %v6253_v9, %v5147_v57 }
0x173b   :  { %v5156_v40 = vsel %vm5153_vm1, %v5155_v31, %v5151_v27 }
0x173c   :  { %v5175_v17 = vmul.f32 %v6255_v24, %v5156_v40  ;;  %v6259_v10 = vpop.eup %6258  ;;  %v5174_v49 = vmul.f32 %v5156_v40, %v9499_v56 }
0x173d   :  { %vm5164_vm4 = vweird.f32 %v6259_v10 }
0x173e   :  { %5177 = vrot.lane.b32.xlu2 %v5175_v17, %s6534_s13  ;;  %vm5165_vm7 = vmor %vm5163_vm6, %vm5164_vm4 }
0x1746   :  { %5301 = vrot.lane.b32.xlu2 %v9350_v62, %s6534_s13  ;;  %v5159_v62 = vmul.f32 %v6259_v10, %v5142_v22 }
0x1748   :  { %v5160_v3 = vsub.f32 1.0, %v5159_v62 }
0x174a   :  { %v5161_v58 = vmul.f32 %v6259_v10, %v5160_v3 }
0x174c   :  { %v5162_v47 = vadd.f32 %v6259_v10, %v5161_v58 }
0x174e   :  { %4606 = vrot.lane.b32.xlu2 %v4604_v36, %s6534_s13  ;;  %v5166_v59 = vsel %vm5165_vm7, %v6259_v10, %v5162_v47 }
0x174f   :  { %v5171_v15 = vsel %vm5168_vm8, %v5170_v52, %v5166_v59 }
0x1756   :  { %4612 = vrot.lane.b32.xlu2 %v4602_v32, %s6534_s13 }
0x175e   :  { %4872 = vrot.lane.b32.xlu2 %v4870_v53, %s6534_s13 }
0x1766   :  { %5084 = vrot.lane.b32.xlu2 %v5081_v23, %s6534_s13 }
0x1798   :  { %v5178_v12 = vpop.permute.xlu2 %5177 }
0x1799   :  { %v9522_v21 = vadd.f32 %v5178_v12, %v5174_v49 }
0x179b   :  { %6260 = vtanh.f32 %v9522_v21 }
0x17a0   :  { %v9525_v45 = vpop.permute.xlu2 %5301 }
0x17a1   :  { %v6261_v14 = vpop.eup %6260 }
0x17a2   :  { %v9527_v55 = vmul.f32 %v6261_v14, %v5171_v15 }
0x17a4   :  { %v5199_v56 = vsel %vm355_vm2, %v9502_v4, %v9527_v55 }
0x17a5   :  { %5216 = vmatmul.f32.vlgmr.msra.gmra.mxu2 %v5199_v56  ;;  %5236 = vmatmul.f32.vlgmr.msra.gmra.mxu3 %v5199_v56 }
0x17a8   :  { %v9532_v28 = vpop.permute.xlu2 %4606 }
0x17a9   :  { %4610 = vst.msk [vmem:[#allocation8 + $0x2] sm:$0x3] %vm3806_vm5, %v9532_v28 }
0x17b0   :  { %v4613_v20 = vpop.permute.xlu2 %4612 }
0x17b1   :  { %4616 = vst.msk [vmem:[#allocation10 + $0x2] sm:$0x3] %vm3806_vm5, %v4613_v20 }
0x17b8   :  { %v4873_v25 = vpop.permute.xlu2 %4872 }
0x17b9   :  { %4878 = vst.msk [vmem:[#allocation7 + $0x1] sm:$0x1] %vm4772_vm9, %v4873_v25 }
0x17c0   :  { %v5085_v37 = vpop.permute.xlu2 %5084 }
0x17c1   :  { %5089 = vst.msk [vmem:[#allocation7 + $0xb] sm:$0x1] %vm4772_vm9, %v5085_v37 }
0x1828   :  { %v5217_v50 = vpop.f32.mrf.mxu2  ;;  %v5237_v26 = vpop.f32.mrf.mxu3 }
0x1829   :  { %v5218_v4 = vadd.f32 %v5217_v50, %v9318_v54  ;;  %v5238_v1 = vadd.f32 %v5237_v26, %v9328_v6 }
0x182b   :  { %v5882_v32 = vmul.f32 -1.442695, %v5218_v4  ;;  %v5883_v30 = vmul.f32 -1.442695, %v5238_v1 }
0x182d   :  { %6262 = vpow2.f32 %v5882_v32 }
0x1833   :  { %v6263_v51 = vpop.eup %6262 }
0x1834   :  { %v5246_v34 = vadd.f32 1.0, %v6263_v51 }
0x1836   :  { %6264 = vrcp.f32 %v5246_v34  ;;  %v5259_v36 = vand.u32 2147483648, %v5246_v34  ;;  %v5257_v5 = vand.u32 2147483647, %v5246_v34  ;;  %vm5253_vm11 = vweird.f32 %v5246_v34 }
0x1837   :  { %6266 = vtanh.f32 %v5238_v1  ;;  %v5080_v1 = vperm.slane %v9504_v42, 0 }
0x1838   :  { %v5260_v7 = vor.u32 1.1754944e-38, %v5259_v36  ;;  %vm5258_vm3 = vcmp.eq.f32.partialorder %v5257_v5, 8.507059e+37  ;;  %6268 = vpow2.f32 %v5883_v30 }
0x183c   :  { %v6265_v13 = vpop.eup %6264 }
0x183d   :  { %v5249_v18 = vmul.f32 %v6265_v13, %v5246_v34  ;;  %vm5254_vm10 = vweird.f32 %v6265_v13  ;;  %v6267_v39 = vpop.eup %6266  ;;  %v4763_v34 = vrot.slane %v9356_v44, 1 }
0x183e   :  { %vm5255_vm12 = vmor %vm5253_vm11, %vm5254_vm10  ;;  %v6269_v63 = vpop.eup %6268 }
0x183f   :  { %v5250_v16 = vsub.f32 1.0, %v5249_v18  ;;  %v5247_v38 = vadd.f32 1.0, %v6269_v63  ;;  %v4765_v26 = vperm.slane %v4763_v34, 0  ;;  %v5184_v18 = vrot.slane %v9527_v55, 1 }
0x1840   :  { %v5185_v34 = vperm.slane %v9527_v55, 0 }
0x1841   :  { %v5251_v48 = vmul.f32 %v6265_v13, %v5250_v16  ;;  %6270 = vrcp.f32 %v5247_v38  ;;  %v5274_v53 = vand.u32 2147483648, %v5247_v38  ;;  %vm5268_vm14 = vweird.f32 %v5247_v38 }
0x1842   :  { %v5272_v33 = vand.u32 2147483647, %v5247_v38  ;;  %v5186_v16 = vperm.slane %v5184_v18, 0 }
0x1843   :  { %v5252_v29 = vadd.f32 %v6265_v13, %v5251_v48  ;;  %v5275_v41 = vor.u32 1.1754944e-38, %v5274_v53 }
0x1844   :  { %vm5273_vm15 = vcmp.eq.f32.partialorder %v5272_v33, 8.507059e+37 }
0x1845   :  { %v5256_v43 = vsel %vm5255_vm12, %v6265_v13, %v5252_v29  ;;  %v4975_v13 = vperm.slane %v9486_v61, 0 }
0x1846   :  { %v5261_v9 = vsel %vm5258_vm3, %v5260_v7, %v5256_v43 }
0x1847   :  { %v5280_v0 = vmul.f32 %v6267_v39, %v5261_v9  ;;  %v6271_v19 = vpop.eup %6270  ;;  %v5279_v27 = vmul.f32 %v5261_v9, %v9522_v21 }
0x1848   :  { %v5264_v60 = vmul.f32 %v6271_v19, %v5247_v38  ;;  %vm5269_vm13 = vweird.f32 %v6271_v19 }
0x1849   :  { %5282 = vrot.lane.b32.xlu1 %v5280_v0, %s6534_s13  ;;  %vm5270_vm0 = vmor %vm5268_vm14, %vm5269_vm13 }
0x184a   :  { %v5265_v57 = vsub.f32 1.0, %v5264_v60 }
0x184c   :  { %v5266_v31 = vmul.f32 %v6271_v19, %v5265_v57 }
0x184e   :  { %v5267_v17 = vadd.f32 %v6271_v19, %v5266_v31 }
0x1850   :  { %v5271_v23 = vsel %vm5270_vm0, %v6271_v19, %v5267_v17 }
0x1851   :  { %v5276_v22 = vsel %vm5273_vm15, %v5275_v41, %v5271_v23 }
0x18bb   :  { %v5283_v24 = vpop.permute.xlu1 %5282 }
0x18bc   :  { %v9543_v40 = vadd.f32 %v5283_v24, %v5279_v27 }
0x18be   :  { %6272 = vtanh.f32 %v9543_v40 }
0x18c4   :  { %v6273_v46 = vpop.eup %6272 }
0x18c5   :  { %v9546_v10 = vmul.f32 %v6273_v46, %v5276_v22 }
0x18c7   :  { %v5304_v62 = vsel %vm355_vm2, %v9525_v45, %v9546_v10  ;;  %v5290_v3 = vperm.slane %v9546_v10, 0 }
0x18c8   :  { %5321 = vmatmul.f32.vlgmr.msrb.gmra.mxu0 %v5304_v62  ;;  %5341 = vmatmul.f32.vlgmr.msrb.gmra.mxu1 %v5304_v62 }
0x18c9   :  { %5292 = vrot.lane.b32.xlu2 %v5290_v3, %s6534_s13 }
0x1923   :  { %v5293_v58 = vpop.permute.xlu2 %5292 }
0x1924   :  { %5298 = vst.msk [vmem:[#allocation7 + $0x5] sm:$0x1] %vm4772_vm9, %v5293_v58 }
0x1945   :  { %v5322_v49 = vpop.f32.mrf.mxu0  ;;  %v5342_v8 = vpop.f32.mrf.mxu1 }
0x1946   :  { %v5323_v12 = vadd.f32 %v5322_v49, %v9318_v54  ;;  %v5343_v52 = vadd.f32 %v5342_v8, %v9328_v6 }
0x1948   :  { %v5884_v21 = vmul.f32 -1.442695, %v5323_v12  ;;  %v5885_v36 = vmul.f32 -1.442695, %v5343_v52 }
0x194a   :  { %6274 = vpow2.f32 %v5884_v21 }
0x1950   :  { %v6275_v47 = vpop.eup %6274 }
0x1951   :  { %v5351_v11 = vadd.f32 1.0, %v6275_v47 }
0x1953   :  { %6276 = vrcp.f32 %v5351_v11  ;;  %v5364_v15 = vand.u32 2147483648, %v5351_v11  ;;  %v5362_v20 = vand.u32 2147483647, %v5351_v11  ;;  %vm5358_vm4 = vweird.f32 %v5351_v11 }
0x1954   :  { %6278 = vtanh.f32 %v5343_v52 }
0x1955   :  { %v5365_v37 = vor.u32 1.1754944e-38, %v5364_v15  ;;  %vm5363_vm7 = vcmp.eq.f32.partialorder %v5362_v20, 8.507059e+37  ;;  %6280 = vpow2.f32 %v5885_v36 }
0x1959   :  { %v6277_v59 = vpop.eup %6276 }
0x195a   :  { %v5354_v45 = vmul.f32 %v6277_v59, %v5351_v11  ;;  %vm5359_vm1 = vweird.f32 %v6277_v59  ;;  %v6279_v4 = vpop.eup %6278 }
0x195b   :  { %vm5360_vm6 = vmor %vm5358_vm4, %vm5359_vm1 }
0x195c   :  { %v5355_v14 = vsub.f32 1.0, %v5354_v45 }
0x195e   :  { %v5356_v56 = vmul.f32 %v6277_v59, %v5355_v14 }
0x1960   :  { %v5357_v25 = vadd.f32 %v6277_v59, %v5356_v56 }
0x1962   :  { %v5361_v50 = vsel %vm5360_vm6, %v6277_v59, %v5357_v25 }
0x1963   :  { %v5366_v32 = vsel %vm5363_vm7, %v5365_v37, %v5361_v50  ;;  %v4869_v50 = vrot.slane %v9441_v2, 1 }
0x1964   :  { %v5385_v51 = vmul.f32 %v6279_v4, %v5366_v32  ;;  %v5384_v39 = vmul.f32 %v5366_v32, %v9543_v40  ;;  %v4974_v32 = vrot.slane %v9486_v61, 1 }
0x1965   :  { %v4871_v4 = vperm.slane %v4869_v50, 0 }
0x1966   :  { %5387 = vrot.lane.b32.xlu1 %v5385_v51, %s6534_s13  ;;  %v4976_v51 = vperm.slane %v4974_v32, 0 }
0x196e   :  { %3809 = vrot.lane.b32.xlu1 %v9330_v35, %s6534_s13  ;;  %v6281_v35 = vpop.eup %6280 }
0x196f   :  { %v5352_v48 = vadd.f32 1.0, %v6281_v35 }
0x1971   :  { %6282 = vrcp.f32 %v5352_v48  ;;  %v5379_v30 = vand.u32 2147483648, %v5352_v48  ;;  %vm5373_vm10 = vweird.f32 %v5352_v48  ;;  %v5377_v63 = vand.u32 2147483647, %v5352_v48 }
0x1973   :  { %v5380_v19 = vor.u32 1.1754944e-38, %v5379_v30  ;;  %vm5378_vm12 = vcmp.eq.f32.partialorder %v5377_v63, 8.507059e+37 }
0x1976   :  { %4768 = vrot.lane.b32.xlu1 %v4765_v26, %s6534_s13  ;;  %v5289_v26 = vrot.slane %v9546_v10, 1 }
0x1977   :  { %v6283_v5 = vpop.eup %6282 }
0x1978   :  { %v5369_v29 = vmul.f32 %v6283_v5, %v5352_v48  ;;  %vm5374_vm8 = vweird.f32 %v6283_v5 }
0x1979   :  { %vm5375_vm11 = vmor %vm5373_vm10, %vm5374_vm8 }
0x197a   :  { %v5370_v7 = vsub.f32 1.0, %v5369_v29 }
0x197c   :  { %v5371_v43 = vmul.f32 %v6283_v5, %v5370_v7 }
0x197e   :  { %4977 = vrot.lane.b32.xlu1 %v4975_v13, %s6534_s13  ;;  %v5372_v0 = vadd.f32 %v6283_v5, %v5371_v43  ;;  %v5291_v13 = vperm.slane %v5289_v26, 0 }
0x1980   :  { %v5376_v38 = vsel %vm5375_vm11, %v6283_v5, %v5372_v0 }
0x1981   :  { %v5381_v31 = vsel %vm5378_vm12, %v5380_v19, %v5376_v38 }
0x1986   :  { %5082 = vrot.lane.b32.xlu1 %v5080_v1, %s6534_s13 }
0x198e   :  { %5189 = vrot.lane.b32.xlu1 %v5186_v16, %s6534_s13 }
0x19d8   :  { %v5388_v9 = vpop.permute.xlu1 %5387 }
0x19d9   :  { %v9568_v42 = vadd.f32 %v5388_v9, %v5384_v39 }
0x19db   :  { %6284 = vtanh.f32 %v9568_v42 }
0x19e0   :  { %v3810_v60 = vpop.permute.xlu1 %3809 }
0x19e1   :  { %v6285_v57 = vpop.eup %6284  ;;  %3812 = vst.msk [vmem:[#allocation10] sm:$0x3] %vm3806_vm5, %v3810_v60 }
0x19e2   :  { %v5392_v27 = vmul.f32 %v6285_v57, %v5381_v31 }
0x19e4   :  { %v5405_v24 = vsel %vm355_vm2, %v9532_v28, %v5392_v27  ;;  %v5395_v40 = vperm.slane %v5392_v27, 0  ;;  %v5394_v17 = vrot.slane %v5392_v27, 1 }
0x19e5   :  { %5422 = vmatmul.f32.vlgmr.msrb.gmra.mxu2 %v5405_v24  ;;  %5442 = vmatmul.f32.vlgmr.msrb.gmra.mxu3 %v5405_v24 }
0x19e6   :  { %5397 = vrot.lane.b32.xlu1 %v5395_v40, %s6534_s13  ;;  %v5396_v53 = vperm.slane %v5394_v17, 0 }
0x19e8   :  { %v4769_v33 = vpop.permute.xlu1 %4768  ;;  %5399 = vrot.lane.b32.xlu2 %v5396_v53, %s6534_s13 }
0x19e9   :  { %4774 = vst.msk [vmem:[#allocation7 + $0x8] sm:$0x1] %vm4772_vm9, %v4769_v33 }
0x19f0   :  { %v4978_v23 = vpop.permute.xlu1 %4977 }
0x19f1   :  { %4983 = vst.msk [vmem:[#allocation7 + $0x2] sm:$0x1] %vm4772_vm9, %v4978_v23 }
0x19f8   :  { %v5083_v41 = vpop.permute.xlu1 %5082 }
0x19f9   :  { %5088 = vst.msk [vmem:[#allocation7 + $0x3] sm:$0x1] %vm4772_vm9, %v5083_v41 }
0x1a00   :  { %v5190_v46 = vpop.permute.xlu1 %5189 }
0x1a01   :  { %5194 = vst.msk [vmem:[#allocation7 + $0xc] sm:$0x1] %vm4772_vm9, %v5190_v46 }
0x1a42   :  { %v5400_v28 = vpop.permute.xlu2 %5399 }
0x1a43   :  { %5404 = vst.msk [vmem:[#allocation7 + $0xe] sm:$0x1] %vm4772_vm9, %v5400_v28 }
0x1a58   :  { %v5398_v22 = vpop.permute.xlu1 %5397 }
0x1a59   :  { %5403 = vst.msk [vmem:[#allocation7 + $0x6] sm:$0x1] %vm4772_vm9, %v5398_v22 }
0x1a68   :  { %v5423_v62 = vpop.f32.mrf.mxu2  ;;  %v5443_v21 = vpop.f32.mrf.mxu3 }
0x1a69   :  { %v5424_v3 = vadd.f32 %v5423_v62, %v9318_v54  ;;  %v5444_v11 = vadd.f32 %v5443_v21, %v9328_v6  ;;  %v4764_v6 = vperm.slane %v9356_v44, 0 }
0x1a6b   :  { %v5886_v58 = vmul.f32 -1.442695, %v5424_v3  ;;  %v5887_v44 = vmul.f32 -1.442695, %v5444_v11 }
0x1a6d   :  { %6286 = vpow2.f32 %v5886_v58 }
0x1a73   :  { %v6287_v49 = vpop.eup %6286 }
0x1a74   :  { %v5452_v12 = vadd.f32 1.0, %v6287_v49 }
0x1a76   :  { %6288 = vrcp.f32 %v5452_v12  ;;  %v5465_v52 = vand.u32 2147483648, %v5452_v12  ;;  %v5463_v14 = vand.u32 2147483647, %v5452_v12  ;;  %vm5459_vm3 = vweird.f32 %v5452_v12 }
0x1a77   :  { %6290 = vtanh.f32 %v5444_v11 }
0x1a78   :  { %v5466_v54 = vor.u32 1.1754944e-38, %v5465_v52  ;;  %vm5464_vm14 = vcmp.eq.f32.partialorder %v5463_v14, 8.507059e+37  ;;  %6292 = vpow2.f32 %v5887_v44 }
0x1a7c   :  { %v6289_v47 = vpop.eup %6288 }
0x1a7d   :  { %v5455_v8 = vmul.f32 %v6289_v47, %v5452_v12  ;;  %vm5460_vm2 = vweird.f32 %v6289_v47  ;;  %v6291_v20 = vpop.eup %6290 }
0x1a7e   :  { %vm5461_vm13 = vmor %vm5459_vm3, %vm5460_vm2  ;;  %v6293_v2 = vpop.eup %6292 }
0x1a7f   :  { %v5456_v59 = vsub.f32 1.0, %v5455_v8  ;;  %v5453_v1 = vadd.f32 1.0, %v6293_v2 }
0x1a81   :  { %v5457_v45 = vmul.f32 %v6289_v47, %v5456_v59  ;;  %6294 = vrcp.f32 %v5453_v1  ;;  %v5480_v10 = vand.u32 2147483648, %v5453_v1  ;;  %vm5474_vm15 = vweird.f32 %v5453_v1 }
0x1a82   :  { %v5478_v29 = vand.u32 2147483647, %v5453_v1 }
0x1a83   :  { %v5458_v15 = vadd.f32 %v6289_v47, %v5457_v45  ;;  %v5481_v43 = vor.u32 1.1754944e-38, %v5480_v10 }
0x1a84   :  { %vm5479_vm4 = vcmp.eq.f32.partialorder %v5478_v29, 8.507059e+37 }
0x1a85   :  { %v5462_v56 = vsel %vm5461_vm13, %v6289_v47, %v5458_v15 }
0x1a86   :  { %v5467_v25 = vsel %vm5464_vm14, %v5466_v54, %v5462_v56 }
0x1a87   :  { %v5486_v37 = vmul.f32 %v6291_v20, %v5467_v25  ;;  %v6295_v18 = vpop.eup %6294  ;;  %v5485_v35 = vmul.f32 %v5467_v25, %v9568_v42 }
0x1a88   :  { %v5470_v16 = vmul.f32 %v6295_v18, %v5453_v1  ;;  %vm5475_vm0 = vweird.f32 %v6295_v18 }
0x1a89   :  { %5488 = vrot.lane.b32.xlu0 %v5486_v37, %s6534_s13  ;;  %vm5476_vm1 = vmor %vm5474_vm15, %vm5475_vm0 }
0x1a8a   :  { %v5471_v61 = vsub.f32 1.0, %v5470_v16 }
0x1a8c   :  { %v5472_v36 = vmul.f32 %v6295_v18, %v5471_v61 }
0x1a8e   :  { %v5473_v5 = vadd.f32 %v6295_v18, %v5472_v36 }
0x1a90   :  { %v5477_v7 = vsel %vm5476_vm1, %v6295_v18, %v5473_v5 }
0x1a91   :  { %4766 = vrot.lane.b32.xlu0 %v4764_v6, %s6534_s13  ;;  %v5482_v0 = vsel %vm5479_vm4, %v5481_v43, %v5477_v7 }
0x1a99   :  { %4874 = vrot.lane.b32.xlu0 %v4871_v4, %s6534_s13 }
0x1aa1   :  { %4979 = vrot.lane.b32.xlu0 %v4976_v51, %s6534_s13 }
0x1aa9   :  { %5187 = vrot.lane.b32.xlu0 %v5185_v34, %s6534_s13 }
0x1ab1   :  { %5294 = vrot.lane.b32.xlu0 %v5291_v13, %s6534_s13 }
0x1afb   :  { %v5489_v48 = vpop.permute.xlu0 %5488 }
0x1afc   :  { %v5491_v55 = vadd.f32 %v5489_v48, %v5485_v35 }
0x1afe   :  { %6296 = vtanh.f32 %v5491_v55 }
0x1b03   :  { %v4767_v39 = vpop.permute.xlu0 %4766 }
0x1b04   :  { %v6297_v9 = vpop.eup %6296  ;;  %4773 = vst.msk [vmem:[#allocation7] sm:$0x1] %vm4772_vm9, %v4767_v39 }
0x1b05   :  { %v5493_v30 = vmul.f32 %v6297_v9, %v5482_v0 }
0x1b07   :  { %5506 = vrot.lane.b32.xlu2 %v5493_v30, %s6534_s13  ;;  %v5496_v42 = vperm.slane %v5493_v30, 0  ;;  %v5495_v63 = vrot.slane %v5493_v30, 1 }
0x1b09   :  { %5498 = vrot.lane.b32.xlu0 %v5496_v42, %s6534_s13  ;;  %v5497_v38 = vperm.slane %v5495_v63, 0 }
0x1b0b   :  { %v4875_v19 = vpop.permute.xlu0 %4874  ;;  %5500 = vrot.lane.b32.xlu1 %v5497_v38, %s6534_s13 }
0x1b0c   :  { %4879 = vst.msk [vmem:[#allocation7 + $0x9] sm:$0x1] %vm4772_vm9, %v4875_v19 }
0x1b0f   :  { %5512 = vrot.lane.b32.xlu2 %v5491_v55, %s6534_s13  ;;  %s6536_s13 = smov 32  }
0x1b13   :  { %v4980_v60 = vpop.permute.xlu0 %4979 }
0x1b14   :  { %4984 = vst.msk [vmem:[#allocation7 + $0xa] sm:$0x1] %vm4772_vm9, %v4980_v60 }
0x1b1b   :  { %v5188_v57 = vpop.permute.xlu0 %5187 }
0x1b1c   :  { %5193 = vst.msk [vmem:[#allocation7 + $0x4] sm:$0x1] %vm4772_vm9, %v5188_v57 }
0x1b23   :  { %v5295_v31 = vpop.permute.xlu0 %5294 }
0x1b24   :  { %5299 = vst.msk [vmem:[#allocation7 + $0xd] sm:$0x1] %vm4772_vm9, %v5295_v31 }
0x1b61   :  { %v5507_v27 = vpop.permute.xlu2 %5506 }
0x1b62   :  { %5510 = vst.msk [vmem:[#allocation8 + $0x4] sm:$0x3] %vm3806_vm5, %v5507_v27 }
0x1b63   :  { %5544 = dma.vmem_to_hbm [thread:$0]  %s5537_s28, 96, %s5539_s0, [#allocation9], %s6536_s13, %s6536_s13, %s6537_s11  }
0x1b69   :  { %v5513_v24 = vpop.permute.xlu2 %5512 }
0x1b6a   :  { %5516 = vst.msk [vmem:[#allocation10 + $0x4] sm:$0x3] %vm3806_vm5, %v5513_v24 }
0x1b6b   :  { %5557 = dma.vmem_to_hbm [thread:$0]  %s5550_s12, 96, %s5552_s16, [#allocation9], %s6536_s13, %s6536_s13, %s6537_s11  }
0x1b7b   :  { %v5499_v40 = vpop.permute.xlu0 %5498 }
0x1b7c   :  { %5504 = vst.msk [vmem:[#allocation7 + $0x7] sm:$0x1] %vm4772_vm9, %v5499_v40 }
0x1b7d   :  { %v5501_v17 = vpop.permute.xlu1 %5500 }
0x1b7e   :  { %5505 = vst.msk [vmem:[#allocation7 + $0xf] sm:$0x1] %vm4772_vm9, %v5501_v17 }
0x1b7f   :  { %5529 = dma.vmem_to_hbm [thread:$0]  %s5522_s17, 256, %s5524_s19, [#allocation4], %s6528_s21, %s6528_s21, %s6529_s22  }
0x1b80   :  { %6523 = dma.done.wait [#allocation4], 256  }
0x1b81   :  { %6524 = vsyncadd [#allocation4], 4294967040 }
0x1b82   :  { %6525 = dma.done.wait [#allocation9], 192  }
0x1b83   :  { %6526 = vsyncadd [#allocation9], 4294967104 }
0x1b84   :  { %5572 = vsyncpa [#allocation3], 1 }
0x1b85   :  { %5573 = vsyncpa [#allocation6], 1 }
0x1b86   :  { %5574 = vsyncpa [#allocation4], 1 }
0x1b87   :  { %5575 = vsyncpa [#allocation9], 1 }

</bundles_post_ra>
